<compile_context>
chip_gen: v5e
topology: v5e:2x2
jax: 0.10.0
libtpu: 0.0.40
codegen_flags: <defaults>
</compile_context>

<pallas_src>
import math
import jax
import jax.numpy as jnp
from jax import lax
from jax.experimental import pallas as pl
from jax.experimental.pallas import tpu as pltpu

D_MODEL = 128        # module constant
MAX_LEN = 16         # small sequence for the demo (module constant scaled down)
NUM_HEADS = 4
D_HEAD = D_MODEL // NUM_HEADS
D_FF = 256
TARGET_TYPES = 8
VOCAB = 32
BATCH = 2
K_MIX = 5
LN_EPS = 1e-5

# ---- bf16 weight slab layout (rows x 128 lanes) -------------------------------
ATT_W_STRIDE = 4 * D_MODEL            # Wq@0, Wk@128, Wv@256, Wo@384 per attention
FFN_W_BASE = 4 * ATT_W_STRIDE         # 2048; per layer: W1a, W1b, W2top, W2bot
WSLAB_ROWS = FFN_W_BASE + 2 * 4 * D_MODEL   # 3072

# ---- f32 slab layout (rows x 128 lanes) ----------------------------------------
ATT_B_BASE = 0                        # 4 rows per attention: bq, bk, bv, bo
FFN_B_BASE = 16                       # 3 rows per layer: b1[:128], b1[128:], b2
LN_BASE = 22                          # 2 rows per norm (gamma, beta), 6 norms
DIV_ROW = 34
EMB_ROW = 40                          # VOCAB rows of embedding
FSLAB_ROWS = EMB_ROW + VOCAB          # 72

# ---- packed mixture-head column layout (all offsets 8-aligned) -----------------
HEAD_PACK = 256
HEAD_ROWS = 136                       # rows 0..127 weight, row 128 bias, pad to 136
ALPHA_COL = 0          # 5 blocks of TARGET_TYPES
EV_MEAN_COL = 40       # 5 blocks of TARGET_TYPES
EV_STD_COL = 80        # 5 blocks of TARGET_TYPES
ALPHA_T_COL = 120      # 5 single columns, stride 8
T_MEAN_COL = 160       # 5 single columns, stride 8
T_STD_COL = 200        # 5 single columns, stride 8


# ----------------------------- fused kernel ------------------------------------

def fused_forward_kernel(inp_ref, wslab_ref, fslab_ref, head_ref, eps_ref, out_ref):
    BL = BATCH * MAX_LEN

    ids_f = inp_ref[:, 0:1]                                   # (BL, 1) f32 (exact ints)
    m = inp_ref[:, 8:9]                                       # (BL, 1) f32 mask

    # -------- embedding via one-hot matmul (no data-dependent gather) ----------
    ids_i = ids_f.astype(jnp.int32)
    cols = lax.broadcasted_iota(jnp.int32, (BL, VOCAB), 1)
    one_hot = jnp.where(cols == ids_i, 1.0, 0.0).astype(jnp.float32)
    x_emb = jnp.dot(one_hot, fslab_ref[EMB_ROW:EMB_ROW + VOCAB, :],
                    preferred_element_type=jnp.float32)       # (BL, D)

    # -------- positional encoding: one transcendental pass ----------------------
    # even mask -> sin(angle), odd mask -> cos(angle) = sin(angle + pi/2)
    angle = m * fslab_ref[DIV_ROW:DIV_ROW + 1, :]              # (BL, D)
    phase = jnp.where(jnp.mod(m, 2.0) == 0.0, 0.0, math.pi / 2.0)   # (BL, 1)
    inp_x = x_emb + jnp.sin(angle + phase)

    def layernorm(v, idx):
        g = fslab_ref[LN_BASE + 2 * idx: LN_BASE + 2 * idx + 1, :]
        b = fslab_ref[LN_BASE + 2 * idx + 1: LN_BASE + 2 * idx + 2, :]
        mu = jnp.mean(v, axis=-1, keepdims=True)
        var = jnp.mean((v - mu) ** 2, axis=-1, keepdims=True)
        return (v - mu) * lax.rsqrt(var + LN_EPS) * g + b

    def mha(q_in, k_in, v_in, a_idx):
        # Full-width projections (3 matmuls), per-head 32-lane windows for the
        # score/PV matmuls, single full-width output projection.
        wbase = a_idx * ATT_W_STRIDE
        bbase = ATT_B_BASE + a_idx * 4
        q_bf = q_in.astype(jnp.bfloat16)
        k_bf = k_in.astype(jnp.bfloat16)
        v_bf = v_in.astype(jnp.bfloat16)
        # 1/sqrt(d_head) folded into Wq and bq at pack time.
        q_all = (jnp.dot(q_bf, wslab_ref[wbase:wbase + D_MODEL, :],
                         preferred_element_type=jnp.float32)
                 + fslab_ref[bbase:bbase + 1, :])
        k_all = (jnp.dot(k_bf, wslab_ref[wbase + D_MODEL:wbase + 2 * D_MODEL, :],
                         preferred_element_type=jnp.float32)
                 + fslab_ref[bbase + 1:bbase + 2, :])
        v_all = (jnp.dot(v_bf, wslab_ref[wbase + 2 * D_MODEL:wbase + 3 * D_MODEL, :],
                         preferred_element_type=jnp.float32)
                 + fslab_ref[bbase + 2:bbase + 3, :])

        heads = []
        for h in range(NUM_HEADS):                      # static, small
            c = slice(h * D_HEAD, (h + 1) * D_HEAD)
            qh, kh, vh = q_all[:, c], k_all[:, c], v_all[:, c]
            per_b = []
            for b in range(BATCH):                      # static; keeps batches separate
                r = slice(b * MAX_LEN, (b + 1) * MAX_LEN)
                s = lax.dot_general(qh[r], kh[r], (((1,), (1,)), ((), ())),
                                    preferred_element_type=jnp.float32)
                s = s - jnp.max(s, axis=-1, keepdims=True)
                p = jnp.exp(s)
                p = p * pl.reciprocal(jnp.sum(p, axis=-1, keepdims=True), approx=True)
                per_b.append(jnp.dot(p, vh[r], preferred_element_type=jnp.float32))
            heads.append(jnp.concatenate(per_b, axis=0))          # (BL, d_head)
        attn_out = jnp.concatenate(heads, axis=-1)                # (BL, D)
        return (jnp.dot(attn_out.astype(jnp.bfloat16),
                        wslab_ref[wbase + 3 * D_MODEL:wbase + 4 * D_MODEL, :],
                        preferred_element_type=jnp.float32)
                + fslab_ref[bbase + 3:bbase + 4, :])

    def decoder_layer(x, enc, layer):
        x1 = layernorm(x + mha(x, x, x, layer * 2 + 0), layer * 3 + 0)
        x2 = layernorm(x1 + mha(x1, enc, enc, layer * 2 + 1), layer * 3 + 1)
        wb = FFN_W_BASE + layer * 4 * D_MODEL
        bb = FFN_B_BASE + layer * 3
        x2_bf = x2.astype(jnp.bfloat16)
        h1 = jnp.maximum(
            jnp.dot(x2_bf, wslab_ref[wb:wb + D_MODEL, :],
                    preferred_element_type=jnp.float32) + fslab_ref[bb:bb + 1, :], 0.0)
        h2 = jnp.maximum(
            jnp.dot(x2_bf, wslab_ref[wb + D_MODEL:wb + 2 * D_MODEL, :],
                    preferred_element_type=jnp.float32) + fslab_ref[bb + 1:bb + 2, :], 0.0)
        ff = (jnp.dot(h1.astype(jnp.bfloat16),
                      wslab_ref[wb + 2 * D_MODEL:wb + 3 * D_MODEL, :],
                      preferred_element_type=jnp.float32)
              + jnp.dot(h2.astype(jnp.bfloat16),
                        wslab_ref[wb + 3 * D_MODEL:wb + 4 * D_MODEL, :],
                        preferred_element_type=jnp.float32)
              + fslab_ref[bb + 2:bb + 3, :])
        return layernorm(x2 + ff, layer * 3 + 2)

    # Reference passes the RAW embedding as the decoder input; pos-encoded
    # tensor only as cross-attention memory.
    x = decoder_layer(x_emb, inp_x, 0)
    x = decoder_layer(x, inp_x, 1)

    # x[:, 0, :] in the (B, L, D) view == rows b*L of the (B*L, D) layout
    x0 = jnp.concatenate(
        [x[b * MAX_LEN:b * MAX_LEN + 1, :] for b in range(BATCH)], axis=0)   # (B, D)

    # -------- packed mixture heads: one (B,128)@(128,256) matmul ----------------
    res = (jnp.dot(x0, head_ref[0:D_MODEL, :], preferred_element_type=jnp.float32)
           + head_ref[D_MODEL:D_MODEL + 1, :])

    T = TARGET_TYPES
    a_log = [res[:, ALPHA_COL + k * T: ALPHA_COL + (k + 1) * T] for k in range(K_MIX)]
    at_log = [res[:, ALPHA_T_COL + 8 * k: ALPHA_T_COL + 8 * k + 1] for k in range(K_MIX)]

    def softmax_components(logits):
        mx = logits[0]
        for l in logits[1:]:
            mx = jnp.maximum(mx, l)
        ex = [jnp.exp(l - mx) for l in logits]
        tot = ex[0]
        for e in ex[1:]:
            tot = tot + e
        inv = 1.0 / tot                 # tiny tensors; exact division
        return [e * inv for e in ex]

    alpha = softmax_components(a_log)       # 5 x (B, T)
    alpha_t = softmax_components(at_log)    # 5 x (B, 1)

    # exponentiate each std block once (2 EUP pushes instead of 10 slice exps)
    ev_std_all = jnp.exp(res[:, EV_STD_COL:EV_STD_COL + K_MIX * T])
    t_std_all = jnp.exp(res[:, T_STD_COL:T_STD_COL + 8 * K_MIX])

    ev_pred = None
    t_pred = None
    for k in range(K_MIX):
        eps_k = eps_ref[k]                                         # (B, 16)
        mean = res[:, EV_MEAN_COL + k * T: EV_MEAN_COL + (k + 1) * T]
        std = ev_std_all[:, k * T:(k + 1) * T]
        ev_k = (mean + std * eps_k[:, 0:T]) * alpha[k]
        tmean = res[:, T_MEAN_COL + 8 * k: T_MEAN_COL + 8 * k + 1]
        tstd = t_std_all[:, 8 * k:8 * k + 1]
        t_k = (tmean + tstd * eps_k[:, T:T + 1]) * alpha_t[k]
        ev_pred = ev_k if ev_pred is None else ev_pred + ev_k
        t_pred = t_k if t_pred is None else t_pred + t_k

    # lane-dense output slab: lanes [0:T) event preds, lane T time pred
    pad = jnp.zeros((BATCH, D_MODEL - TARGET_TYPES - 1), jnp.float32)
    out_ref[...] = jnp.concatenate([ev_pred, t_pred, pad], axis=-1)


# ----------------------------- wrapper ------------------------------------------

def _full_spec(arr):
    nd = arr.ndim
    return pl.BlockSpec(arr.shape, lambda i, _nd=nd: (0,) * _nd)


@jax.jit
def hierarchical_forward(params, event_set, time_arr, mask, set_size):
    del time_arr, set_size                   # unused by the reference forward
    BL = BATCH * MAX_LEN
    ids_f = event_set.reshape(BL).astype(jnp.float32)
    msk_f = mask.reshape(BL).astype(jnp.float32)
    inp = jnp.zeros((BL, 16), jnp.float32)
    inp = inp.at[:, 0].set(ids_f).at[:, 8].set(msk_f)
    args = (inp, params['wslab'], params['fslab'], params['head_wb'], params['eps'])
    slab = pl.pallas_call(
        fused_forward_kernel,
        out_shape=jax.ShapeDtypeStruct((BATCH, D_MODEL), jnp.float32),
        grid=(1,),
        in_specs=[_full_spec(a) for a in args],
        out_specs=pl.BlockSpec((BATCH, D_MODEL), lambda i: (0, 0)),
        compiler_params=pltpu.CompilerParams(dimension_semantics=("arbitrary",)),
    )(*args)
    return slab[:, :TARGET_TYPES], slab[:, TARGET_TYPES:TARGET_TYPES + 1]


# ----------------------------- parameter setup -----------------------------------

def bayes_linear(key, in_f, out_f, prior_sigma=0.1):
    # effective weight = weight_mu + exp(log prior_sigma) * eps  (sampled once)
    k1, k2, k3, k4 = jax.random.split(key, 4)
    stdv = 1.0 / math.sqrt(in_f)
    w = (jax.random.uniform(k1, (out_f, in_f), jnp.float32, -stdv, stdv)
         + prior_sigma * jax.random.normal(k3, (out_f, in_f), jnp.float32))
    b = (jax.random.uniform(k2, (out_f,), jnp.float32, -stdv, stdv)
         + prior_sigma * jax.random.normal(k4, (out_f,), jnp.float32))
    return w.T, b                            # (in, out), (out,)


def dense(key, in_f, out_f):
    k1, k2 = jax.random.split(key)
    stdv = 1.0 / math.sqrt(in_f)
    w = jax.random.uniform(k1, (out_f, in_f), jnp.float32, -stdv, stdv)
    b = jax.random.uniform(k2, (out_f,), jnp.float32, -stdv, stdv)
    return w.T, b


def decoder_layer_raw(key):
    keys = jax.random.split(key, 10)
    proj_w, proj_b = [], []
    for i in range(8):                       # [Wq,Wk,Wv,Wo]_self + [Wq,Wk,Wv,Wo]_cross
        w, b = bayes_linear(keys[i], D_MODEL, D_MODEL)
        proj_w.append(w)
        proj_b.append(b)
    w1, b1 = bayes_linear(keys[8], D_MODEL, D_FF)
    w2, b2 = bayes_linear(keys[9], D_FF, D_MODEL)
    return proj_w, proj_b, w1, b1, w2, b2


def pack_decoder_params(layer_keys, div, embedding):
    """One bf16 weight slab + one f32 bias/LN/div/embedding slab."""
    scale = 1.0 / math.sqrt(D_HEAD)
    att_wblocks, ffn_wblocks = [], []
    attn_bias_rows, ffn_bias_rows = [], []
    for lk in layer_keys:
        proj_w, proj_b, w1, b1, w2, b2 = decoder_layer_raw(lk)
        for attn in range(2):                                  # self, cross
            wq, wk, wv, wo = (proj_w[attn * 4 + i] for i in range(4))
            bq, bk, bv, bo = (proj_b[attn * 4 + i] for i in range(4))
            att_wblocks += [wq * scale, wk, wv, wo]            # fold 1/sqrt(dk) into Wq
            attn_bias_rows += [bq * scale, bk, bv, bo]
        ffn_wblocks += [w1[:, :D_MODEL], w1[:, D_MODEL:], w2[:D_MODEL, :], w2[D_MODEL:, :]]
        ffn_bias_rows += [b1[:D_MODEL], b1[D_MODEL:], b2]

    wslab = jnp.concatenate(att_wblocks + ffn_wblocks, axis=0).astype(jnp.bfloat16)
    assert wslab.shape == (WSLAB_ROWS, D_MODEL)

    rows = [r.reshape(1, D_MODEL) for r in attn_bias_rows]      # 16 rows
    rows += [r.reshape(1, D_MODEL) for r in ffn_bias_rows]      # 6 rows
    for _ in range(2 * 3):                                      # 6 norms: gamma=1, beta=0
        rows += [jnp.ones((1, D_MODEL), jnp.float32), jnp.zeros((1, D_MODEL), jnp.float32)]
    rows += [div.reshape(1, D_MODEL)]                           # row 34
    rows += [jnp.zeros((EMB_ROW - 35, D_MODEL), jnp.float32)]   # pad to row 40
    rows += [embedding]                                         # rows 40..71
    fslab = jnp.concatenate(rows, axis=0)
    assert fslab.shape == (FSLAB_ROWS, D_MODEL)
    return wslab, fslab


def head_params(key):
    # Pack all 30 mixture-head linears into one (D, 256) matrix + bias row.
    keys = iter(jax.random.split(key, 6 * K_MIX + 2))
    T = TARGET_TYPES
    hw = jnp.zeros((D_MODEL, HEAD_PACK), jnp.float32)
    hb = jnp.zeros((1, HEAD_PACK), jnp.float32)

    def put(hw, hb, col, w, b):
        width = w.shape[1]
        return (hw.at[:, col:col + width].set(w),
                hb.at[0, col:col + width].set(b))

    for k in range(K_MIX):                                      # alpha (BayesLinear)
        w, b = bayes_linear(next(keys), D_MODEL, T)
        hw, hb = put(hw, hb, ALPHA_COL + k * T, w, b)
    for k in range(K_MIX):                                      # alpha_time (BayesLinear)
        w, b = bayes_linear(next(keys), D_MODEL, 1)
        hw, hb = put(hw, hb, ALPHA_T_COL + 8 * k, w, b)
    for k in range(K_MIX):                                      # event mean (Linear)
        w, b = dense(next(keys), D_MODEL, T)
        hw, hb = put(hw, hb, EV_MEAN_COL + k * T, w, b)
    for k in range(K_MIX):                                      # event log-std (Linear)
        w, b = dense(next(keys), D_MODEL, T)
        hw, hb = put(hw, hb, EV_STD_COL + k * T, w, b)
    for k in range(K_MIX):                                      # time mean (Linear)
        w, b = dense(next(keys), D_MODEL, 1)
        hw, hb = put(hw, hb, T_MEAN_COL + 8 * k, w, b)
    for k in range(K_MIX):                                      # time log-std (Linear)
        w, b = dense(next(keys), D_MODEL, 1)
        hw, hb = put(hw, hb, T_STD_COL + 8 * k, w, b)

    head_wb = jnp.concatenate(
        [hw, hb, jnp.zeros((HEAD_ROWS - D_MODEL - 1, HEAD_PACK), jnp.float32)], axis=0)

    eps_ev = jax.random.normal(next(keys), (K_MIX, BATCH, T), jnp.float32)
    eps_t = jax.random.normal(next(keys), (K_MIX, BATCH, 1), jnp.float32)
    eps = jnp.zeros((K_MIX, BATCH, 16), jnp.float32)
    eps = eps.at[:, :, 0:T].set(eps_ev).at[:, :, T:T + 1].set(eps_t)
    return dict(head_wb=head_wb, eps=eps)


def build_params(key):
    k_emb, k_d1, k_d2, k_h = jax.random.split(key, 4)
    embedding = jax.random.normal(k_emb, (VOCAB, D_MODEL), jnp.float32)
    div = jnp.exp(jnp.arange(D_MODEL, dtype=jnp.float32)
                  * (-math.log(10000.0) / D_MODEL)).reshape(1, D_MODEL)
    wslab, fslab = pack_decoder_params([k_d1, k_d2], div, embedding)
    params = dict(wslab=wslab, fslab=fslab)
    params.update(head_params(k_h))
    return params


# TODO(synk): v7x-specific 2-TensorCore batch sharding (grid=(BATCH,) with
# "parallel" semantics, per-batch (MAX_LEN, D) blocks, broadcast weights) is
# intentionally not used here; the single fused block (M = B*L) is the right
# layout for single-TC v5e/v6e and everything fits trivially in v7x's 64 MiB VMEM.

if __name__ == "__main__":
    key = jax.random.PRNGKey(0)
    k_params, k_in = jax.random.split(key)
    params = build_params(k_params)

    event_set = jax.random.randint(k_in, (BATCH, MAX_LEN), 0, VOCAB)
    mask = jnp.tile(jnp.arange(MAX_LEN, dtype=jnp.float32)[None, :], (BATCH, 1))
    time_arr = jnp.zeros((BATCH, MAX_LEN), jnp.float32)
    set_size = jnp.full((BATCH,), MAX_LEN, dtype=jnp.int32)

    ev_pred, t_pred = hierarchical_forward(params, event_set, time_arr, mask, set_size)
    jax.block_until_ready((ev_pred, t_pred))
    assert ev_pred.shape == (BATCH, TARGET_TYPES)
    assert t_pred.shape == (BATCH, 1)
    assert bool(jnp.all(jnp.isfinite(ev_pred))) and bool(jnp.all(jnp.isfinite(t_pred)))
    print("KERNEL_OK")
</pallas_src>

<mosaic_0001>
module attributes {stable_mosaic.version = 11 : i64} {
  func.func @fused_forward_kernel(%arg0: i32, %arg1: memref<32x16xf32, #tpu.memory_space<vmem>>, %arg2: memref<3072x128xbf16, #tpu.memory_space<vmem>>, %arg3: memref<72x128xf32, #tpu.memory_space<vmem>>, %arg4: memref<136x256xf32, #tpu.memory_space<vmem>>, %arg5: memref<5x2x16xf32, #tpu.memory_space<vmem>>, %arg6: memref<2x128xf32, #tpu.memory_space<vmem>>) attributes {dimension_semantics = [#tpu.dimension_semantics<arbitrary>], iteration_bounds = array<i64: 1>, scalar_prefetch = 0 : i64, scratch_operands = 0 : i64, tpu.core_type = #tpu.core_type<tc>, window_params = [{pipeline_mode = #tpu.pipeline_mode<synchronous>, transform_indices = @transform_0, window_bounds = array<i64: 32, 16>}, {pipeline_mode = #tpu.pipeline_mode<synchronous>, transform_indices = @transform_1, window_bounds = array<i64: 3072, 128>}, {pipeline_mode = #tpu.pipeline_mode<synchronous>, transform_indices = @transform_2, window_bounds = array<i64: 72, 128>}, {pipeline_mode = #tpu.pipeline_mode<synchronous>, transform_indices = @transform_3, window_bounds = array<i64: 136, 256>}, {pipeline_mode = #tpu.pipeline_mode<synchronous>, transform_indices = @transform_4, window_bounds = array<i64: 5, 2, 16>}, {pipeline_mode = #tpu.pipeline_mode<synchronous>, transform_indices = @transform_5, window_bounds = array<i64: 2, 128>}]} {
    %c0 = arith.constant 0 : index
    %c0_0 = arith.constant 0 : index
    %0 = vector.load %arg1[%c0, %c0_0] : memref<32x16xf32, #tpu.memory_space<vmem>>, vector<32x1xf32>
    %c0_1 = arith.constant 0 : index
    %c8 = arith.constant 8 : index
    %1 = vector.load %arg1[%c0_1, %c8] : memref<32x16xf32, #tpu.memory_space<vmem>>, vector<32x1xf32>
    %2 = arith.fptosi %0 : vector<32x1xf32> to vector<32x1xi32>
    %3 = tpu.iota {dimensions = array<i32: 1>} : vector<32x32xi32>
    %4 = vector.broadcast %2 : vector<32x1xi32> to vector<32x32xi32>
    %5 = arith.cmpi eq, %3, %4 : vector<32x32xi32>
    %cst = arith.constant 1.000000e+00 : f32
    %cst_2 = arith.constant 0.000000e+00 : f32
    %6 = vector.broadcast %cst : f32 to vector<32x32xf32>
    %7 = vector.broadcast %cst_2 : f32 to vector<32x32xf32>
    %8 = arith.select %5, %6, %7 : vector<32x32xi1>, vector<32x32xf32>
    %c40 = arith.constant 40 : index
    %c0_3 = arith.constant 0 : index
    %9 = vector.load %arg3[%c40, %c0_3] : memref<72x128xf32, #tpu.memory_space<vmem>>, vector<32x128xf32>
    %cst_4 = arith.constant dense<0.000000e+00> : vector<32x128xf32>
    %10 = tpu.matmul %8, %9, %cst_4 {dimension_numbers = #tpu.dot_dimension_numbers<[1], [0], [0], [1], [0, 0, 1, 1], [], []>} : vector<32x32xf32>, vector<32x128xf32>, vector<32x128xf32> -> vector<32x128xf32>
    %c34 = arith.constant 34 : index
    %c0_5 = arith.constant 0 : index
    %11 = vector.load %arg3[%c34, %c0_5] : memref<72x128xf32, #tpu.memory_space<vmem>>, vector<1x128xf32>
    %12 = vector.broadcast %1 : vector<32x1xf32> to vector<32x128xf32>
    %13 = vector.broadcast %11 : vector<1x128xf32> to vector<32x128xf32>
    %14 = arith.mulf %12, %13 : vector<32x128xf32>
    %cst_6 = arith.constant 2.000000e+00 : f32
    %15 = vector.broadcast %cst_6 : f32 to vector<32x1xf32>
    %16 = arith.remf %1, %15 : vector<32x1xf32>
    %cst_7 = arith.constant 0.000000e+00 : f32
    %17 = vector.broadcast %cst_7 : f32 to vector<32x1xf32>
    %18 = arith.cmpf one, %16, %17 : vector<32x1xf32>
    %cst_8 = arith.constant 0.000000e+00 : f32
    %19 = vector.broadcast %cst_8 : f32 to vector<32x1xf32>
    %20 = arith.cmpf olt, %16, %19 : vector<32x1xf32>
    %cst_9 = arith.constant 0.000000e+00 : f32
    %21 = arith.cmpf olt, %cst_6, %cst_9 : f32
    %22 = vector.broadcast %21 : i1 to vector<32x1xi1>
    %23 = vector.broadcast %22 : vector<32x1xi1> to vector<32x1xi1>
    %24 = arith.xori %20, %23 : vector<32x1xi1>
    %25 = arith.andi %24, %18 : vector<32x1xi1>
    %26 = vector.broadcast %cst_6 : f32 to vector<32x1xf32>
    %27 = arith.addf %16, %26 : vector<32x1xf32>
    %28 = arith.select %25, %27, %16 : vector<32x1xi1>, vector<32x1xf32>
    %cst_10 = arith.constant 0.000000e+00 : f32
    %29 = vector.broadcast %cst_10 : f32 to vector<32x1xf32>
    %30 = arith.cmpf oeq, %28, %29 : vector<32x1xf32>
    %cst_11 = arith.constant 0.000000e+00 : f32
    %cst_12 = arith.constant 1.57079637 : f32
    %31 = vector.broadcast %cst_11 : f32 to vector<32x1xf32>
    %32 = vector.broadcast %cst_12 : f32 to vector<32x1xf32>
    %33 = arith.select %30, %31, %32 : vector<32x1xi1>, vector<32x1xf32>
    %34 = vector.broadcast %33 : vector<32x1xf32> to vector<32x128xf32>
    %35 = arith.addf %14, %34 : vector<32x128xf32>
    %36 = math.sin %35 : vector<32x128xf32>
    %37 = arith.addf %10, %36 : vector<32x128xf32>
    %38 = arith.truncf %10 : vector<32x128xf32> to vector<32x128xbf16>
    %39 = arith.truncf %10 : vector<32x128xf32> to vector<32x128xbf16>
    %40 = arith.truncf %10 : vector<32x128xf32> to vector<32x128xbf16>
    %c0_13 = arith.constant 0 : index
    %c0_14 = arith.constant 0 : index
    %41 = vector.load %arg2[%c0_13, %c0_14] : memref<3072x128xbf16, #tpu.memory_space<vmem>>, vector<128x128xbf16>
    %cst_15 = arith.constant dense<0.000000e+00> : vector<32x128xf32>
    %42 = tpu.matmul %38, %41, %cst_15 {dimension_numbers = #tpu.dot_dimension_numbers<[1], [0], [0], [1], [0, 0, 1, 1], [], []>} : vector<32x128xbf16>, vector<128x128xbf16>, vector<32x128xf32> -> vector<32x128xf32>
    %c0_16 = arith.constant 0 : index
    %c0_17 = arith.constant 0 : index
    %43 = vector.load %arg3[%c0_16, %c0_17] : memref<72x128xf32, #tpu.memory_space<vmem>>, vector<1x128xf32>
    %44 = vector.broadcast %43 : vector<1x128xf32> to vector<32x128xf32>
    %45 = arith.addf %42, %44 : vector<32x128xf32>
    %c128 = arith.constant 128 : index
    %c0_18 = arith.constant 0 : index
    %46 = vector.load %arg2[%c128, %c0_18] : memref<3072x128xbf16, #tpu.memory_space<vmem>>, vector<128x128xbf16>
    %cst_19 = arith.constant dense<0.000000e+00> : vector<32x128xf32>
    %47 = tpu.matmul %39, %46, %cst_19 {dimension_numbers = #tpu.dot_dimension_numbers<[1], [0], [0], [1], [0, 0, 1, 1], [], []>} : vector<32x128xbf16>, vector<128x128xbf16>, vector<32x128xf32> -> vector<32x128xf32>
    %c1 = arith.constant 1 : index
    %c0_20 = arith.constant 0 : index
    %48 = vector.load %arg3[%c1, %c0_20] : memref<72x128xf32, #tpu.memory_space<vmem>>, vector<1x128xf32>
    %49 = vector.broadcast %48 : vector<1x128xf32> to vector<32x128xf32>
    %50 = arith.addf %47, %49 : vector<32x128xf32>
    %c256 = arith.constant 256 : index
    %c0_21 = arith.constant 0 : index
    %51 = vector.load %arg2[%c256, %c0_21] : memref<3072x128xbf16, #tpu.memory_space<vmem>>, vector<128x128xbf16>
    %cst_22 = arith.constant dense<0.000000e+00> : vector<32x128xf32>
    %52 = tpu.matmul %40, %51, %cst_22 {dimension_numbers = #tpu.dot_dimension_numbers<[1], [0], [0], [1], [0, 0, 1, 1], [], []>} : vector<32x128xbf16>, vector<128x128xbf16>, vector<32x128xf32> -> vector<32x128xf32>
    %c2 = arith.constant 2 : index
    %c0_23 = arith.constant 0 : index
    %53 = vector.load %arg3[%c2, %c0_23] : memref<72x128xf32, #tpu.memory_space<vmem>>, vector<1x128xf32>
    %54 = vector.broadcast %53 : vector<1x128xf32> to vector<32x128xf32>
    %55 = arith.addf %52, %54 : vector<32x128xf32>
    %56 = vector.extract_strided_slice %45 {offsets = [0, 0], sizes = [32, 32], strides = [1, 1]} : vector<32x128xf32> to vector<32x32xf32>
    %57 = vector.extract_strided_slice %50 {offsets = [0, 0], sizes = [32, 32], strides = [1, 1]} : vector<32x128xf32> to vector<32x32xf32>
    %58 = vector.extract_strided_slice %55 {offsets = [0, 0], sizes = [32, 32], strides = [1, 1]} : vector<32x128xf32> to vector<32x32xf32>
    %59 = vector.extract_strided_slice %56 {offsets = [0, 0], sizes = [16, 32], strides = [1, 1]} : vector<32x32xf32> to vector<16x32xf32>
    %60 = vector.extract_strided_slice %57 {offsets = [0, 0], sizes = [16, 32], strides = [1, 1]} : vector<32x32xf32> to vector<16x32xf32>
    %cst_24 = arith.constant dense<0.000000e+00> : vector<16x16xf32>
    %61 = tpu.matmul %59, %60, %cst_24 {dimension_numbers = #tpu.dot_dimension_numbers<[1], [1], [0], [0], [0, 0, 1, 0], [], []>} : vector<16x32xf32>, vector<16x32xf32>, vector<16x16xf32> -> vector<16x16xf32>
    %cst_25 = arith.constant dense<0xFF800000> : vector<16xf32>
    %62 = vector.multi_reduction <maximumf>, %61, %cst_25 [1] : vector<16x16xf32> to vector<16xf32>
    %63 = vector.shape_cast %62 : vector<16xf32> to vector<16x1xf32>
    %64 = vector.broadcast %63 : vector<16x1xf32> to vector<16x16xf32>
    %65 = arith.subf %61, %64 : vector<16x16xf32>
    %66 = math.exp %65 : vector<16x16xf32>
    %cst_26 = arith.constant dense<0.000000e+00> : vector<16xf32>
    %67 = vector.multi_reduction <add>, %66, %cst_26 [1] : vector<16x16xf32> to vector<16xf32>
    %68 = vector.shape_cast %67 : vector<16xf32> to vector<16x1xf32>
    %69 = tpu.reciprocal %68 {approx = true} : vector<16x1xf32> -> vector<16x1xf32>
    %70 = vector.broadcast %69 : vector<16x1xf32> to vector<16x16xf32>
    %71 = arith.mulf %66, %70 : vector<16x16xf32>
    %72 = vector.extract_strided_slice %58 {offsets = [0, 0], sizes = [16, 32], strides = [1, 1]} : vector<32x32xf32> to vector<16x32xf32>
    %cst_27 = arith.constant dense<0.000000e+00> : vector<16x32xf32>
    %73 = tpu.matmul %71, %72, %cst_27 {dimension_numbers = #tpu.dot_dimension_numbers<[1], [0], [0], [1], [0, 0, 1, 1], [], []>} : vector<16x16xf32>, vector<16x32xf32>, vector<16x32xf32> -> vector<16x32xf32>
    %74 = vector.extract_strided_slice %56 {offsets = [16, 0], sizes = [16, 32], strides = [1, 1]} : vector<32x32xf32> to vector<16x32xf32>
    %75 = vector.extract_strided_slice %57 {offsets = [16, 0], sizes = [16, 32], strides = [1, 1]} : vector<32x32xf32> to vector<16x32xf32>
    %cst_28 = arith.constant dense<0.000000e+00> : vector<16x16xf32>
    %76 = tpu.matmul %74, %75, %cst_28 {dimension_numbers = #tpu.dot_dimension_numbers<[1], [1], [0], [0], [0, 0, 1, 0], [], []>} : vector<16x32xf32>, vector<16x32xf32>, vector<16x16xf32> -> vector<16x16xf32>
    %cst_29 = arith.constant dense<0xFF800000> : vector<16xf32>
    %77 = vector.multi_reduction <maximumf>, %76, %cst_29 [1] : vector<16x16xf32> to vector<16xf32>
    %78 = vector.shape_cast %77 : vector<16xf32> to vector<16x1xf32>
    %79 = vector.broadcast %78 : vector<16x1xf32> to vector<16x16xf32>
    %80 = arith.subf %76, %79 : vector<16x16xf32>
    %81 = math.exp %80 : vector<16x16xf32>
    %cst_30 = arith.constant dense<0.000000e+00> : vector<16xf32>
    %82 = vector.multi_reduction <add>, %81, %cst_30 [1] : vector<16x16xf32> to vector<16xf32>
    %83 = vector.shape_cast %82 : vector<16xf32> to vector<16x1xf32>
    %84 = tpu.reciprocal %83 {approx = true} : vector<16x1xf32> -> vector<16x1xf32>
    %85 = vector.broadcast %84 : vector<16x1xf32> to vector<16x16xf32>
    %86 = arith.mulf %81, %85 : vector<16x16xf32>
    %87 = vector.extract_strided_slice %58 {offsets = [16, 0], sizes = [16, 32], strides = [1, 1]} : vector<32x32xf32> to vector<16x32xf32>
    %cst_31 = arith.constant dense<0.000000e+00> : vector<16x32xf32>
    %88 = tpu.matmul %86, %87, %cst_31 {dimension_numbers = #tpu.dot_dimension_numbers<[1], [0], [0], [1], [0, 0, 1, 1], [], []>} : vector<16x16xf32>, vector<16x32xf32>, vector<16x32xf32> -> vector<16x32xf32>
    %89 = tpu.concatenate %73, %88 in 0 : vector<16x32xf32>, vector<16x32xf32> -> vector<32x32xf32>
    %90 = vector.extract_strided_slice %45 {offsets = [0, 32], sizes = [32, 32], strides = [1, 1]} : vector<32x128xf32> to vector<32x32xf32>
    %91 = vector.extract_strided_slice %50 {offsets = [0, 32], sizes = [32, 32], strides = [1, 1]} : vector<32x128xf32> to vector<32x32xf32>
    %92 = vector.extract_strided_slice %55 {offsets = [0, 32], sizes = [32, 32], strides = [1, 1]} : vector<32x128xf32> to vector<32x32xf32>
    %93 = vector.extract_strided_slice %90 {offsets = [0, 0], sizes = [16, 32], strides = [1, 1]} : vector<32x32xf32> to vector<16x32xf32>
    %94 = vector.extract_strided_slice %91 {offsets = [0, 0], sizes = [16, 32], strides = [1, 1]} : vector<32x32xf32> to vector<16x32xf32>
    %cst_32 = arith.constant dense<0.000000e+00> : vector<16x16xf32>
    %95 = tpu.matmul %93, %94, %cst_32 {dimension_numbers = #tpu.dot_dimension_numbers<[1], [1], [0], [0], [0, 0, 1, 0], [], []>} : vector<16x32xf32>, vector<16x32xf32>, vector<16x16xf32> -> vector<16x16xf32>
    %cst_33 = arith.constant dense<0xFF800000> : vector<16xf32>
    %96 = vector.multi_reduction <maximumf>, %95, %cst_33 [1] : vector<16x16xf32> to vector<16xf32>
    %97 = vector.shape_cast %96 : vector<16xf32> to vector<16x1xf32>
    %98 = vector.broadcast %97 : vector<16x1xf32> to vector<16x16xf32>
    %99 = arith.subf %95, %98 : vector<16x16xf32>
    %100 = math.exp %99 : vector<16x16xf32>
    %cst_34 = arith.constant dense<0.000000e+00> : vector<16xf32>
    %101 = vector.multi_reduction <add>, %100, %cst_34 [1] : vector<16x16xf32> to vector<16xf32>
    %102 = vector.shape_cast %101 : vector<16xf32> to vector<16x1xf32>
    %103 = tpu.reciprocal %102 {approx = true} : vector<16x1xf32> -> vector<16x1xf32>
    %104 = vector.broadcast %103 : vector<16x1xf32> to vector<16x16xf32>
    %105 = arith.mulf %100, %104 : vector<16x16xf32>
    %106 = vector.extract_strided_slice %92 {offsets = [0, 0], sizes = [16, 32], strides = [1, 1]} : vector<32x32xf32> to vector<16x32xf32>
    %cst_35 = arith.constant dense<0.000000e+00> : vector<16x32xf32>
    %107 = tpu.matmul %105, %106, %cst_35 {dimension_numbers = #tpu.dot_dimension_numbers<[1], [0], [0], [1], [0, 0, 1, 1], [], []>} : vector<16x16xf32>, vector<16x32xf32>, vector<16x32xf32> -> vector<16x32xf32>
    %108 = vector.extract_strided_slice %90 {offsets = [16, 0], sizes = [16, 32], strides = [1, 1]} : vector<32x32xf32> to vector<16x32xf32>
    %109 = vector.extract_strided_slice %91 {offsets = [16, 0], sizes = [16, 32], strides = [1, 1]} : vector<32x32xf32> to vector<16x32xf32>
    %cst_36 = arith.constant dense<0.000000e+00> : vector<16x16xf32>
    %110 = tpu.matmul %108, %109, %cst_36 {dimension_numbers = #tpu.dot_dimension_numbers<[1], [1], [0], [0], [0, 0, 1, 0], [], []>} : vector<16x32xf32>, vector<16x32xf32>, vector<16x16xf32> -> vector<16x16xf32>
    %cst_37 = arith.constant dense<0xFF800000> : vector<16xf32>
    %111 = vector.multi_reduction <maximumf>, %110, %cst_37 [1] : vector<16x16xf32> to vector<16xf32>
    %112 = vector.shape_cast %111 : vector<16xf32> to vector<16x1xf32>
    %113 = vector.broadcast %112 : vector<16x1xf32> to vector<16x16xf32>
    %114 = arith.subf %110, %113 : vector<16x16xf32>
    %115 = math.exp %114 : vector<16x16xf32>
    %cst_38 = arith.constant dense<0.000000e+00> : vector<16xf32>
    %116 = vector.multi_reduction <add>, %115, %cst_38 [1] : vector<16x16xf32> to vector<16xf32>
    %117 = vector.shape_cast %116 : vector<16xf32> to vector<16x1xf32>
    %118 = tpu.reciprocal %117 {approx = true} : vector<16x1xf32> -> vector<16x1xf32>
    %119 = vector.broadcast %118 : vector<16x1xf32> to vector<16x16xf32>
    %120 = arith.mulf %115, %119 : vector<16x16xf32>
    %121 = vector.extract_strided_slice %92 {offsets = [16, 0], sizes = [16, 32], strides = [1, 1]} : vector<32x32xf32> to vector<16x32xf32>
    %cst_39 = arith.constant dense<0.000000e+00> : vector<16x32xf32>
    %122 = tpu.matmul %120, %121, %cst_39 {dimension_numbers = #tpu.dot_dimension_numbers<[1], [0], [0], [1], [0, 0, 1, 1], [], []>} : vector<16x16xf32>, vector<16x32xf32>, vector<16x32xf32> -> vector<16x32xf32>
    %123 = tpu.concatenate %107, %122 in 0 : vector<16x32xf32>, vector<16x32xf32> -> vector<32x32xf32>
    %124 = vector.extract_strided_slice %45 {offsets = [0, 64], sizes = [32, 32], strides = [1, 1]} : vector<32x128xf32> to vector<32x32xf32>
    %125 = vector.extract_strided_slice %50 {offsets = [0, 64], sizes = [32, 32], strides = [1, 1]} : vector<32x128xf32> to vector<32x32xf32>
    %126 = vector.extract_strided_slice %55 {offsets = [0, 64], sizes = [32, 32], strides = [1, 1]} : vector<32x128xf32> to vector<32x32xf32>
    %127 = vector.extract_strided_slice %124 {offsets = [0, 0], sizes = [16, 32], strides = [1, 1]} : vector<32x32xf32> to vector<16x32xf32>
    %128 = vector.extract_strided_slice %125 {offsets = [0, 0], sizes = [16, 32], strides = [1, 1]} : vector<32x32xf32> to vector<16x32xf32>
    %cst_40 = arith.constant dense<0.000000e+00> : vector<16x16xf32>
    %129 = tpu.matmul %127, %128, %cst_40 {dimension_numbers = #tpu.dot_dimension_numbers<[1], [1], [0], [0], [0, 0, 1, 0], [], []>} : vector<16x32xf32>, vector<16x32xf32>, vector<16x16xf32> -> vector<16x16xf32>
    %cst_41 = arith.constant dense<0xFF800000> : vector<16xf32>
    %130 = vector.multi_reduction <maximumf>, %129, %cst_41 [1] : vector<16x16xf32> to vector<16xf32>
    %131 = vector.shape_cast %130 : vector<16xf32> to vector<16x1xf32>
    %132 = vector.broadcast %131 : vector<16x1xf32> to vector<16x16xf32>
    %133 = arith.subf %129, %132 : vector<16x16xf32>
    %134 = math.exp %133 : vector<16x16xf32>
    %cst_42 = arith.constant dense<0.000000e+00> : vector<16xf32>
    %135 = vector.multi_reduction <add>, %134, %cst_42 [1] : vector<16x16xf32> to vector<16xf32>
    %136 = vector.shape_cast %135 : vector<16xf32> to vector<16x1xf32>
    %137 = tpu.reciprocal %136 {approx = true} : vector<16x1xf32> -> vector<16x1xf32>
    %138 = vector.broadcast %137 : vector<16x1xf32> to vector<16x16xf32>
    %139 = arith.mulf %134, %138 : vector<16x16xf32>
    %140 = vector.extract_strided_slice %126 {offsets = [0, 0], sizes = [16, 32], strides = [1, 1]} : vector<32x32xf32> to vector<16x32xf32>
    %cst_43 = arith.constant dense<0.000000e+00> : vector<16x32xf32>
    %141 = tpu.matmul %139, %140, %cst_43 {dimension_numbers = #tpu.dot_dimension_numbers<[1], [0], [0], [1], [0, 0, 1, 1], [], []>} : vector<16x16xf32>, vector<16x32xf32>, vector<16x32xf32> -> vector<16x32xf32>
    %142 = vector.extract_strided_slice %124 {offsets = [16, 0], sizes = [16, 32], strides = [1, 1]} : vector<32x32xf32> to vector<16x32xf32>
    %143 = vector.extract_strided_slice %125 {offsets = [16, 0], sizes = [16, 32], strides = [1, 1]} : vector<32x32xf32> to vector<16x32xf32>
    %cst_44 = arith.constant dense<0.000000e+00> : vector<16x16xf32>
    %144 = tpu.matmul %142, %143, %cst_44 {dimension_numbers = #tpu.dot_dimension_numbers<[1], [1], [0], [0], [0, 0, 1, 0], [], []>} : vector<16x32xf32>, vector<16x32xf32>, vector<16x16xf32> -> vector<16x16xf32>
    %cst_45 = arith.constant dense<0xFF800000> : vector<16xf32>
    %145 = vector.multi_reduction <maximumf>, %144, %cst_45 [1] : vector<16x16xf32> to vector<16xf32>
    %146 = vector.shape_cast %145 : vector<16xf32> to vector<16x1xf32>
    %147 = vector.broadcast %146 : vector<16x1xf32> to vector<16x16xf32>
    %148 = arith.subf %144, %147 : vector<16x16xf32>
    %149 = math.exp %148 : vector<16x16xf32>
    %cst_46 = arith.constant dense<0.000000e+00> : vector<16xf32>
    %150 = vector.multi_reduction <add>, %149, %cst_46 [1] : vector<16x16xf32> to vector<16xf32>
    %151 = vector.shape_cast %150 : vector<16xf32> to vector<16x1xf32>
    %152 = tpu.reciprocal %151 {approx = true} : vector<16x1xf32> -> vector<16x1xf32>
    %153 = vector.broadcast %152 : vector<16x1xf32> to vector<16x16xf32>
    %154 = arith.mulf %149, %153 : vector<16x16xf32>
    %155 = vector.extract_strided_slice %126 {offsets = [16, 0], sizes = [16, 32], strides = [1, 1]} : vector<32x32xf32> to vector<16x32xf32>
    %cst_47 = arith.constant dense<0.000000e+00> : vector<16x32xf32>
    %156 = tpu.matmul %154, %155, %cst_47 {dimension_numbers = #tpu.dot_dimension_numbers<[1], [0], [0], [1], [0, 0, 1, 1], [], []>} : vector<16x16xf32>, vector<16x32xf32>, vector<16x32xf32> -> vector<16x32xf32>
    %157 = tpu.concatenate %141, %156 in 0 : vector<16x32xf32>, vector<16x32xf32> -> vector<32x32xf32>
    %158 = vector.extract_strided_slice %45 {offsets = [0, 96], sizes = [32, 32], strides = [1, 1]} : vector<32x128xf32> to vector<32x32xf32>
    %159 = vector.extract_strided_slice %50 {offsets = [0, 96], sizes = [32, 32], strides = [1, 1]} : vector<32x128xf32> to vector<32x32xf32>
    %160 = vector.extract_strided_slice %55 {offsets = [0, 96], sizes = [32, 32], strides = [1, 1]} : vector<32x128xf32> to vector<32x32xf32>
    %161 = vector.extract_strided_slice %158 {offsets = [0, 0], sizes = [16, 32], strides = [1, 1]} : vector<32x32xf32> to vector<16x32xf32>
    %162 = vector.extract_strided_slice %159 {offsets = [0, 0], sizes = [16, 32], strides = [1, 1]} : vector<32x32xf32> to vector<16x32xf32>
    %cst_48 = arith.constant dense<0.000000e+00> : vector<16x16xf32>
    %163 = tpu.matmul %161, %162, %cst_48 {dimension_numbers = #tpu.dot_dimension_numbers<[1], [1], [0], [0], [0, 0, 1, 0], [], []>} : vector<16x32xf32>, vector<16x32xf32>, vector<16x16xf32> -> vector<16x16xf32>
    %cst_49 = arith.constant dense<0xFF800000> : vector<16xf32>
    %164 = vector.multi_reduction <maximumf>, %163, %cst_49 [1] : vector<16x16xf32> to vector<16xf32>
    %165 = vector.shape_cast %164 : vector<16xf32> to vector<16x1xf32>
    %166 = vector.broadcast %165 : vector<16x1xf32> to vector<16x16xf32>
    %167 = arith.subf %163, %166 : vector<16x16xf32>
    %168 = math.exp %167 : vector<16x16xf32>
    %cst_50 = arith.constant dense<0.000000e+00> : vector<16xf32>
    %169 = vector.multi_reduction <add>, %168, %cst_50 [1] : vector<16x16xf32> to vector<16xf32>
    %170 = vector.shape_cast %169 : vector<16xf32> to vector<16x1xf32>
    %171 = tpu.reciprocal %170 {approx = true} : vector<16x1xf32> -> vector<16x1xf32>
    %172 = vector.broadcast %171 : vector<16x1xf32> to vector<16x16xf32>
    %173 = arith.mulf %168, %172 : vector<16x16xf32>
    %174 = vector.extract_strided_slice %160 {offsets = [0, 0], sizes = [16, 32], strides = [1, 1]} : vector<32x32xf32> to vector<16x32xf32>
    %cst_51 = arith.constant dense<0.000000e+00> : vector<16x32xf32>
    %175 = tpu.matmul %173, %174, %cst_51 {dimension_numbers = #tpu.dot_dimension_numbers<[1], [0], [0], [1], [0, 0, 1, 1], [], []>} : vector<16x16xf32>, vector<16x32xf32>, vector<16x32xf32> -> vector<16x32xf32>
    %176 = vector.extract_strided_slice %158 {offsets = [16, 0], sizes = [16, 32], strides = [1, 1]} : vector<32x32xf32> to vector<16x32xf32>
    %177 = vector.extract_strided_slice %159 {offsets = [16, 0], sizes = [16, 32], strides = [1, 1]} : vector<32x32xf32> to vector<16x32xf32>
    %cst_52 = arith.constant dense<0.000000e+00> : vector<16x16xf32>
    %178 = tpu.matmul %176, %177, %cst_52 {dimension_numbers = #tpu.dot_dimension_numbers<[1], [1], [0], [0], [0, 0, 1, 0], [], []>} : vector<16x32xf32>, vector<16x32xf32>, vector<16x16xf32> -> vector<16x16xf32>
    %cst_53 = arith.constant dense<0xFF800000> : vector<16xf32>
    %179 = vector.multi_reduction <maximumf>, %178, %cst_53 [1] : vector<16x16xf32> to vector<16xf32>
    %180 = vector.shape_cast %179 : vector<16xf32> to vector<16x1xf32>
    %181 = vector.broadcast %180 : vector<16x1xf32> to vector<16x16xf32>
    %182 = arith.subf %178, %181 : vector<16x16xf32>
    %183 = math.exp %182 : vector<16x16xf32>
    %cst_54 = arith.constant dense<0.000000e+00> : vector<16xf32>
    %184 = vector.multi_reduction <add>, %183, %cst_54 [1] : vector<16x16xf32> to vector<16xf32>
    %185 = vector.shape_cast %184 : vector<16xf32> to vector<16x1xf32>
    %186 = tpu.reciprocal %185 {approx = true} : vector<16x1xf32> -> vector<16x1xf32>
    %187 = vector.broadcast %186 : vector<16x1xf32> to vector<16x16xf32>
    %188 = arith.mulf %183, %187 : vector<16x16xf32>
    %189 = vector.extract_strided_slice %160 {offsets = [16, 0], sizes = [16, 32], strides = [1, 1]} : vector<32x32xf32> to vector<16x32xf32>
    %cst_55 = arith.constant dense<0.000000e+00> : vector<16x32xf32>
    %190 = tpu.matmul %188, %189, %cst_55 {dimension_numbers = #tpu.dot_dimension_numbers<[1], [0], [0], [1], [0, 0, 1, 1], [], []>} : vector<16x16xf32>, vector<16x32xf32>, vector<16x32xf32> -> vector<16x32xf32>
    %191 = tpu.concatenate %175, %190 in 0 : vector<16x32xf32>, vector<16x32xf32> -> vector<32x32xf32>
    %192 = tpu.concatenate %89, %123, %157, %191 in 1 : vector<32x32xf32>, vector<32x32xf32>, vector<32x32xf32>, vector<32x32xf32> -> vector<32x128xf32>
    %193 = arith.truncf %192 : vector<32x128xf32> to vector<32x128xbf16>
    %c384 = arith.constant 384 : index
    %c0_56 = arith.constant 0 : index
    %194 = vector.load %arg2[%c384, %c0_56] : memref<3072x128xbf16, #tpu.memory_space<vmem>>, vector<128x128xbf16>
    %cst_57 = arith.constant dense<0.000000e+00> : vector<32x128xf32>
    %195 = tpu.matmul %193, %194, %cst_57 {dimension_numbers = #tpu.dot_dimension_numbers<[1], [0], [0], [1], [0, 0, 1, 1], [], []>} : vector<32x128xbf16>, vector<128x128xbf16>, vector<32x128xf32> -> vector<32x128xf32>
    %c3 = arith.constant 3 : index
    %c0_58 = arith.constant 0 : index
    %196 = vector.load %arg3[%c3, %c0_58] : memref<72x128xf32, #tpu.memory_space<vmem>>, vector<1x128xf32>
    %197 = vector.broadcast %196 : vector<1x128xf32> to vector<32x128xf32>
    %198 = arith.addf %195, %197 : vector<32x128xf32>
    %199 = arith.addf %10, %198 : vector<32x128xf32>
    %c22 = arith.constant 22 : index
    %c0_59 = arith.constant 0 : index
    %200 = vector.load %arg3[%c22, %c0_59] : memref<72x128xf32, #tpu.memory_space<vmem>>, vector<1x128xf32>
    %c23 = arith.constant 23 : index
    %c0_60 = arith.constant 0 : index
    %201 = vector.load %arg3[%c23, %c0_60] : memref<72x128xf32, #tpu.memory_space<vmem>>, vector<1x128xf32>
    %cst_61 = arith.constant dense<0.000000e+00> : vector<32xf32>
    %202 = vector.multi_reduction <add>, %199, %cst_61 [1] : vector<32x128xf32> to vector<32xf32>
    %203 = vector.shape_cast %202 : vector<32xf32> to vector<32x1xf32>
    %cst_62 = arith.constant 1.280000e+02 : f32
    %204 = vector.broadcast %cst_62 : f32 to vector<32x1xf32>
    %205 = arith.divf %203, %204 : vector<32x1xf32>
    %206 = vector.broadcast %205 : vector<32x1xf32> to vector<32x128xf32>
    %207 = arith.subf %199, %206 : vector<32x128xf32>
    %208 = arith.mulf %207, %207 : vector<32x128xf32>
    %cst_63 = arith.constant dense<0.000000e+00> : vector<32xf32>
    %209 = vector.multi_reduction <add>, %208, %cst_63 [1] : vector<32x128xf32> to vector<32xf32>
    %210 = vector.shape_cast %209 : vector<32xf32> to vector<32x1xf32>
    %cst_64 = arith.constant 1.280000e+02 : f32
    %211 = vector.broadcast %cst_64 : f32 to vector<32x1xf32>
    %212 = arith.divf %210, %211 : vector<32x1xf32>
    %213 = vector.broadcast %205 : vector<32x1xf32> to vector<32x128xf32>
    %214 = arith.subf %199, %213 : vector<32x128xf32>
    %cst_65 = arith.constant 9.99999974E-6 : f32
    %215 = vector.broadcast %cst_65 : f32 to vector<32x1xf32>
    %216 = arith.addf %212, %215 : vector<32x1xf32>
    %217 = math.rsqrt %216 : vector<32x1xf32>
    %218 = vector.broadcast %217 : vector<32x1xf32> to vector<32x128xf32>
    %219 = arith.mulf %214, %218 : vector<32x128xf32>
    %220 = vector.broadcast %200 : vector<1x128xf32> to vector<32x128xf32>
    %221 = arith.mulf %219, %220 : vector<32x128xf32>
    %222 = vector.broadcast %201 : vector<1x128xf32> to vector<32x128xf32>
    %223 = arith.addf %221, %222 : vector<32x128xf32>
    %224 = arith.truncf %223 : vector<32x128xf32> to vector<32x128xbf16>
    %225 = arith.truncf %37 : vector<32x128xf32> to vector<32x128xbf16>
    %226 = arith.truncf %37 : vector<32x128xf32> to vector<32x128xbf16>
    %c512 = arith.constant 512 : index
    %c0_66 = arith.constant 0 : index
    %227 = vector.load %arg2[%c512, %c0_66] : memref<3072x128xbf16, #tpu.memory_space<vmem>>, vector<128x128xbf16>
    %cst_67 = arith.constant dense<0.000000e+00> : vector<32x128xf32>
    %228 = tpu.matmul %224, %227, %cst_67 {dimension_numbers = #tpu.dot_dimension_numbers<[1], [0], [0], [1], [0, 0, 1, 1], [], []>} : vector<32x128xbf16>, vector<128x128xbf16>, vector<32x128xf32> -> vector<32x128xf32>
    %c4 = arith.constant 4 : index
    %c0_68 = arith.constant 0 : index
    %229 = vector.load %arg3[%c4, %c0_68] : memref<72x128xf32, #tpu.memory_space<vmem>>, vector<1x128xf32>
    %230 = vector.broadcast %229 : vector<1x128xf32> to vector<32x128xf32>
    %231 = arith.addf %228, %230 : vector<32x128xf32>
    %c640 = arith.constant 640 : index
    %c0_69 = arith.constant 0 : index
    %232 = vector.load %arg2[%c640, %c0_69] : memref<3072x128xbf16, #tpu.memory_space<vmem>>, vector<128x128xbf16>
    %cst_70 = arith.constant dense<0.000000e+00> : vector<32x128xf32>
    %233 = tpu.matmul %225, %232, %cst_70 {dimension_numbers = #tpu.dot_dimension_numbers<[1], [0], [0], [1], [0, 0, 1, 1], [], []>} : vector<32x128xbf16>, vector<128x128xbf16>, vector<32x128xf32> -> vector<32x128xf32>
    %c5 = arith.constant 5 : index
    %c0_71 = arith.constant 0 : index
    %234 = vector.load %arg3[%c5, %c0_71] : memref<72x128xf32, #tpu.memory_space<vmem>>, vector<1x128xf32>
    %235 = vector.broadcast %234 : vector<1x128xf32> to vector<32x128xf32>
    %236 = arith.addf %233, %235 : vector<32x128xf32>
    %c768 = arith.constant 768 : index
    %c0_72 = arith.constant 0 : index
    %237 = vector.load %arg2[%c768, %c0_72] : memref<3072x128xbf16, #tpu.memory_space<vmem>>, vector<128x128xbf16>
    %cst_73 = arith.constant dense<0.000000e+00> : vector<32x128xf32>
    %238 = tpu.matmul %226, %237, %cst_73 {dimension_numbers = #tpu.dot_dimension_numbers<[1], [0], [0], [1], [0, 0, 1, 1], [], []>} : vector<32x128xbf16>, vector<128x128xbf16>, vector<32x128xf32> -> vector<32x128xf32>
    %c6 = arith.constant 6 : index
    %c0_74 = arith.constant 0 : index
    %239 = vector.load %arg3[%c6, %c0_74] : memref<72x128xf32, #tpu.memory_space<vmem>>, vector<1x128xf32>
    %240 = vector.broadcast %239 : vector<1x128xf32> to vector<32x128xf32>
    %241 = arith.addf %238, %240 : vector<32x128xf32>
    %242 = vector.extract_strided_slice %231 {offsets = [0, 0], sizes = [32, 32], strides = [1, 1]} : vector<32x128xf32> to vector<32x32xf32>
    %243 = vector.extract_strided_slice %236 {offsets = [0, 0], sizes = [32, 32], strides = [1, 1]} : vector<32x128xf32> to vector<32x32xf32>
    %244 = vector.extract_strided_slice %241 {offsets = [0, 0], sizes = [32, 32], strides = [1, 1]} : vector<32x128xf32> to vector<32x32xf32>
    %245 = vector.extract_strided_slice %242 {offsets = [0, 0], sizes = [16, 32], strides = [1, 1]} : vector<32x32xf32> to vector<16x32xf32>
    %246 = vector.extract_strided_slice %243 {offsets = [0, 0], sizes = [16, 32], strides = [1, 1]} : vector<32x32xf32> to vector<16x32xf32>
    %cst_75 = arith.constant dense<0.000000e+00> : vector<16x16xf32>
    %247 = tpu.matmul %245, %246, %cst_75 {dimension_numbers = #tpu.dot_dimension_numbers<[1], [1], [0], [0], [0, 0, 1, 0], [], []>} : vector<16x32xf32>, vector<16x32xf32>, vector<16x16xf32> -> vector<16x16xf32>
    %cst_76 = arith.constant dense<0xFF800000> : vector<16xf32>
    %248 = vector.multi_reduction <maximumf>, %247, %cst_76 [1] : vector<16x16xf32> to vector<16xf32>
    %249 = vector.shape_cast %248 : vector<16xf32> to vector<16x1xf32>
    %250 = vector.broadcast %249 : vector<16x1xf32> to vector<16x16xf32>
    %251 = arith.subf %247, %250 : vector<16x16xf32>
    %252 = math.exp %251 : vector<16x16xf32>
    %cst_77 = arith.constant dense<0.000000e+00> : vector<16xf32>
    %253 = vector.multi_reduction <add>, %252, %cst_77 [1] : vector<16x16xf32> to vector<16xf32>
    %254 = vector.shape_cast %253 : vector<16xf32> to vector<16x1xf32>
    %255 = tpu.reciprocal %254 {approx = true} : vector<16x1xf32> -> vector<16x1xf32>
    %256 = vector.broadcast %255 : vector<16x1xf32> to vector<16x16xf32>
    %257 = arith.mulf %252, %256 : vector<16x16xf32>
    %258 = vector.extract_strided_slice %244 {offsets = [0, 0], sizes = [16, 32], strides = [1, 1]} : vector<32x32xf32> to vector<16x32xf32>
    %cst_78 = arith.constant dense<0.000000e+00> : vector<16x32xf32>
    %259 = tpu.matmul %257, %258, %cst_78 {dimension_numbers = #tpu.dot_dimension_numbers<[1], [0], [0], [1], [0, 0, 1, 1], [], []>} : vector<16x16xf32>, vector<16x32xf32>, vector<16x32xf32> -> vector<16x32xf32>
    %260 = vector.extract_strided_slice %242 {offsets = [16, 0], sizes = [16, 32], strides = [1, 1]} : vector<32x32xf32> to vector<16x32xf32>
    %261 = vector.extract_strided_slice %243 {offsets = [16, 0], sizes = [16, 32], strides = [1, 1]} : vector<32x32xf32> to vector<16x32xf32>
    %cst_79 = arith.constant dense<0.000000e+00> : vector<16x16xf32>
    %262 = tpu.matmul %260, %261, %cst_79 {dimension_numbers = #tpu.dot_dimension_numbers<[1], [1], [0], [0], [0, 0, 1, 0], [], []>} : vector<16x32xf32>, vector<16x32xf32>, vector<16x16xf32> -> vector<16x16xf32>
    %cst_80 = arith.constant dense<0xFF800000> : vector<16xf32>
    %263 = vector.multi_reduction <maximumf>, %262, %cst_80 [1] : vector<16x16xf32> to vector<16xf32>
    %264 = vector.shape_cast %263 : vector<16xf32> to vector<16x1xf32>
    %265 = vector.broadcast %264 : vector<16x1xf32> to vector<16x16xf32>
    %266 = arith.subf %262, %265 : vector<16x16xf32>
    %267 = math.exp %266 : vector<16x16xf32>
    %cst_81 = arith.constant dense<0.000000e+00> : vector<16xf32>
    %268 = vector.multi_reduction <add>, %267, %cst_81 [1] : vector<16x16xf32> to vector<16xf32>
    %269 = vector.shape_cast %268 : vector<16xf32> to vector<16x1xf32>
    %270 = tpu.reciprocal %269 {approx = true} : vector<16x1xf32> -> vector<16x1xf32>
    %271 = vector.broadcast %270 : vector<16x1xf32> to vector<16x16xf32>
    %272 = arith.mulf %267, %271 : vector<16x16xf32>
    %273 = vector.extract_strided_slice %244 {offsets = [16, 0], sizes = [16, 32], strides = [1, 1]} : vector<32x32xf32> to vector<16x32xf32>
    %cst_82 = arith.constant dense<0.000000e+00> : vector<16x32xf32>
    %274 = tpu.matmul %272, %273, %cst_82 {dimension_numbers = #tpu.dot_dimension_numbers<[1], [0], [0], [1], [0, 0, 1, 1], [], []>} : vector<16x16xf32>, vector<16x32xf32>, vector<16x32xf32> -> vector<16x32xf32>
    %275 = tpu.concatenate %259, %274 in 0 : vector<16x32xf32>, vector<16x32xf32> -> vector<32x32xf32>
    %276 = vector.extract_strided_slice %231 {offsets = [0, 32], sizes = [32, 32], strides = [1, 1]} : vector<32x128xf32> to vector<32x32xf32>
    %277 = vector.extract_strided_slice %236 {offsets = [0, 32], sizes = [32, 32], strides = [1, 1]} : vector<32x128xf32> to vector<32x32xf32>
    %278 = vector.extract_strided_slice %241 {offsets = [0, 32], sizes = [32, 32], strides = [1, 1]} : vector<32x128xf32> to vector<32x32xf32>
    %279 = vector.extract_strided_slice %276 {offsets = [0, 0], sizes = [16, 32], strides = [1, 1]} : vector<32x32xf32> to vector<16x32xf32>
    %280 = vector.extract_strided_slice %277 {offsets = [0, 0], sizes = [16, 32], strides = [1, 1]} : vector<32x32xf32> to vector<16x32xf32>
    %cst_83 = arith.constant dense<0.000000e+00> : vector<16x16xf32>
    %281 = tpu.matmul %279, %280, %cst_83 {dimension_numbers = #tpu.dot_dimension_numbers<[1], [1], [0], [0], [0, 0, 1, 0], [], []>} : vector<16x32xf32>, vector<16x32xf32>, vector<16x16xf32> -> vector<16x16xf32>
    %cst_84 = arith.constant dense<0xFF800000> : vector<16xf32>
    %282 = vector.multi_reduction <maximumf>, %281, %cst_84 [1] : vector<16x16xf32> to vector<16xf32>
    %283 = vector.shape_cast %282 : vector<16xf32> to vector<16x1xf32>
    %284 = vector.broadcast %283 : vector<16x1xf32> to vector<16x16xf32>
    %285 = arith.subf %281, %284 : vector<16x16xf32>
    %286 = math.exp %285 : vector<16x16xf32>
    %cst_85 = arith.constant dense<0.000000e+00> : vector<16xf32>
    %287 = vector.multi_reduction <add>, %286, %cst_85 [1] : vector<16x16xf32> to vector<16xf32>
    %288 = vector.shape_cast %287 : vector<16xf32> to vector<16x1xf32>
    %289 = tpu.reciprocal %288 {approx = true} : vector<16x1xf32> -> vector<16x1xf32>
    %290 = vector.broadcast %289 : vector<16x1xf32> to vector<16x16xf32>
    %291 = arith.mulf %286, %290 : vector<16x16xf32>
    %292 = vector.extract_strided_slice %278 {offsets = [0, 0], sizes = [16, 32], strides = [1, 1]} : vector<32x32xf32> to vector<16x32xf32>
    %cst_86 = arith.constant dense<0.000000e+00> : vector<16x32xf32>
    %293 = tpu.matmul %291, %292, %cst_86 {dimension_numbers = #tpu.dot_dimension_numbers<[1], [0], [0], [1], [0, 0, 1, 1], [], []>} : vector<16x16xf32>, vector<16x32xf32>, vector<16x32xf32> -> vector<16x32xf32>
    %294 = vector.extract_strided_slice %276 {offsets = [16, 0], sizes = [16, 32], strides = [1, 1]} : vector<32x32xf32> to vector<16x32xf32>
    %295 = vector.extract_strided_slice %277 {offsets = [16, 0], sizes = [16, 32], strides = [1, 1]} : vector<32x32xf32> to vector<16x32xf32>
    %cst_87 = arith.constant dense<0.000000e+00> : vector<16x16xf32>
    %296 = tpu.matmul %294, %295, %cst_87 {dimension_numbers = #tpu.dot_dimension_numbers<[1], [1], [0], [0], [0, 0, 1, 0], [], []>} : vector<16x32xf32>, vector<16x32xf32>, vector<16x16xf32> -> vector<16x16xf32>
    %cst_88 = arith.constant dense<0xFF800000> : vector<16xf32>
    %297 = vector.multi_reduction <maximumf>, %296, %cst_88 [1] : vector<16x16xf32> to vector<16xf32>
    %298 = vector.shape_cast %297 : vector<16xf32> to vector<16x1xf32>
    %299 = vector.broadcast %298 : vector<16x1xf32> to vector<16x16xf32>
    %300 = arith.subf %296, %299 : vector<16x16xf32>
    %301 = math.exp %300 : vector<16x16xf32>
    %cst_89 = arith.constant dense<0.000000e+00> : vector<16xf32>
    %302 = vector.multi_reduction <add>, %301, %cst_89 [1] : vector<16x16xf32> to vector<16xf32>
    %303 = vector.shape_cast %302 : vector<16xf32> to vector<16x1xf32>
    %304 = tpu.reciprocal %303 {approx = true} : vector<16x1xf32> -> vector<16x1xf32>
    %305 = vector.broadcast %304 : vector<16x1xf32> to vector<16x16xf32>
    %306 = arith.mulf %301, %305 : vector<16x16xf32>
    %307 = vector.extract_strided_slice %278 {offsets = [16, 0], sizes = [16, 32], strides = [1, 1]} : vector<32x32xf32> to vector<16x32xf32>
    %cst_90 = arith.constant dense<0.000000e+00> : vector<16x32xf32>
    %308 = tpu.matmul %306, %307, %cst_90 {dimension_numbers = #tpu.dot_dimension_numbers<[1], [0], [0], [1], [0, 0, 1, 1], [], []>} : vector<16x16xf32>, vector<16x32xf32>, vector<16x32xf32> -> vector<16x32xf32>
    %309 = tpu.concatenate %293, %308 in 0 : vector<16x32xf32>, vector<16x32xf32> -> vector<32x32xf32>
    %310 = vector.extract_strided_slice %231 {offsets = [0, 64], sizes = [32, 32], strides = [1, 1]} : vector<32x128xf32> to vector<32x32xf32>
    %311 = vector.extract_strided_slice %236 {offsets = [0, 64], sizes = [32, 32], strides = [1, 1]} : vector<32x128xf32> to vector<32x32xf32>
    %312 = vector.extract_strided_slice %241 {offsets = [0, 64], sizes = [32, 32], strides = [1, 1]} : vector<32x128xf32> to vector<32x32xf32>
    %313 = vector.extract_strided_slice %310 {offsets = [0, 0], sizes = [16, 32], strides = [1, 1]} : vector<32x32xf32> to vector<16x32xf32>
    %314 = vector.extract_strided_slice %311 {offsets = [0, 0], sizes = [16, 32], strides = [1, 1]} : vector<32x32xf32> to vector<16x32xf32>
    %cst_91 = arith.constant dense<0.000000e+00> : vector<16x16xf32>
    %315 = tpu.matmul %313, %314, %cst_91 {dimension_numbers = #tpu.dot_dimension_numbers<[1], [1], [0], [0], [0, 0, 1, 0], [], []>} : vector<16x32xf32>, vector<16x32xf32>, vector<16x16xf32> -> vector<16x16xf32>
    %cst_92 = arith.constant dense<0xFF800000> : vector<16xf32>
    %316 = vector.multi_reduction <maximumf>, %315, %cst_92 [1] : vector<16x16xf32> to vector<16xf32>
    %317 = vector.shape_cast %316 : vector<16xf32> to vector<16x1xf32>
    %318 = vector.broadcast %317 : vector<16x1xf32> to vector<16x16xf32>
    %319 = arith.subf %315, %318 : vector<16x16xf32>
    %320 = math.exp %319 : vector<16x16xf32>
    %cst_93 = arith.constant dense<0.000000e+00> : vector<16xf32>
    %321 = vector.multi_reduction <add>, %320, %cst_93 [1] : vector<16x16xf32> to vector<16xf32>
    %322 = vector.shape_cast %321 : vector<16xf32> to vector<16x1xf32>
    %323 = tpu.reciprocal %322 {approx = true} : vector<16x1xf32> -> vector<16x1xf32>
    %324 = vector.broadcast %323 : vector<16x1xf32> to vector<16x16xf32>
    %325 = arith.mulf %320, %324 : vector<16x16xf32>
    %326 = vector.extract_strided_slice %312 {offsets = [0, 0], sizes = [16, 32], strides = [1, 1]} : vector<32x32xf32> to vector<16x32xf32>
    %cst_94 = arith.constant dense<0.000000e+00> : vector<16x32xf32>
    %327 = tpu.matmul %325, %326, %cst_94 {dimension_numbers = #tpu.dot_dimension_numbers<[1], [0], [0], [1], [0, 0, 1, 1], [], []>} : vector<16x16xf32>, vector<16x32xf32>, vector<16x32xf32> -> vector<16x32xf32>
    %328 = vector.extract_strided_slice %310 {offsets = [16, 0], sizes = [16, 32], strides = [1, 1]} : vector<32x32xf32> to vector<16x32xf32>
    %329 = vector.extract_strided_slice %311 {offsets = [16, 0], sizes = [16, 32], strides = [1, 1]} : vector<32x32xf32> to vector<16x32xf32>
    %cst_95 = arith.constant dense<0.000000e+00> : vector<16x16xf32>
    %330 = tpu.matmul %328, %329, %cst_95 {dimension_numbers = #tpu.dot_dimension_numbers<[1], [1], [0], [0], [0, 0, 1, 0], [], []>} : vector<16x32xf32>, vector<16x32xf32>, vector<16x16xf32> -> vector<16x16xf32>
    %cst_96 = arith.constant dense<0xFF800000> : vector<16xf32>
    %331 = vector.multi_reduction <maximumf>, %330, %cst_96 [1] : vector<16x16xf32> to vector<16xf32>
    %332 = vector.shape_cast %331 : vector<16xf32> to vector<16x1xf32>
    %333 = vector.broadcast %332 : vector<16x1xf32> to vector<16x16xf32>
    %334 = arith.subf %330, %333 : vector<16x16xf32>
    %335 = math.exp %334 : vector<16x16xf32>
    %cst_97 = arith.constant dense<0.000000e+00> : vector<16xf32>
    %336 = vector.multi_reduction <add>, %335, %cst_97 [1] : vector<16x16xf32> to vector<16xf32>
    %337 = vector.shape_cast %336 : vector<16xf32> to vector<16x1xf32>
    %338 = tpu.reciprocal %337 {approx = true} : vector<16x1xf32> -> vector<16x1xf32>
    %339 = vector.broadcast %338 : vector<16x1xf32> to vector<16x16xf32>
    %340 = arith.mulf %335, %339 : vector<16x16xf32>
    %341 = vector.extract_strided_slice %312 {offsets = [16, 0], sizes = [16, 32], strides = [1, 1]} : vector<32x32xf32> to vector<16x32xf32>
    %cst_98 = arith.constant dense<0.000000e+00> : vector<16x32xf32>
    %342 = tpu.matmul %340, %341, %cst_98 {dimension_numbers = #tpu.dot_dimension_numbers<[1], [0], [0], [1], [0, 0, 1, 1], [], []>} : vector<16x16xf32>, vector<16x32xf32>, vector<16x32xf32> -> vector<16x32xf32>
    %343 = tpu.concatenate %327, %342 in 0 : vector<16x32xf32>, vector<16x32xf32> -> vector<32x32xf32>
    %344 = vector.extract_strided_slice %231 {offsets = [0, 96], sizes = [32, 32], strides = [1, 1]} : vector<32x128xf32> to vector<32x32xf32>
    %345 = vector.extract_strided_slice %236 {offsets = [0, 96], sizes = [32, 32], strides = [1, 1]} : vector<32x128xf32> to vector<32x32xf32>
    %346 = vector.extract_strided_slice %241 {offsets = [0, 96], sizes = [32, 32], strides = [1, 1]} : vector<32x128xf32> to vector<32x32xf32>
    %347 = vector.extract_strided_slice %344 {offsets = [0, 0], sizes = [16, 32], strides = [1, 1]} : vector<32x32xf32> to vector<16x32xf32>
    %348 = vector.extract_strided_slice %345 {offsets = [0, 0], sizes = [16, 32], strides = [1, 1]} : vector<32x32xf32> to vector<16x32xf32>
    %cst_99 = arith.constant dense<0.000000e+00> : vector<16x16xf32>
    %349 = tpu.matmul %347, %348, %cst_99 {dimension_numbers = #tpu.dot_dimension_numbers<[1], [1], [0], [0], [0, 0, 1, 0], [], []>} : vector<16x32xf32>, vector<16x32xf32>, vector<16x16xf32> -> vector<16x16xf32>
    %cst_100 = arith.constant dense<0xFF800000> : vector<16xf32>
    %350 = vector.multi_reduction <maximumf>, %349, %cst_100 [1] : vector<16x16xf32> to vector<16xf32>
    %351 = vector.shape_cast %350 : vector<16xf32> to vector<16x1xf32>
    %352 = vector.broadcast %351 : vector<16x1xf32> to vector<16x16xf32>
    %353 = arith.subf %349, %352 : vector<16x16xf32>
    %354 = math.exp %353 : vector<16x16xf32>
    %cst_101 = arith.constant dense<0.000000e+00> : vector<16xf32>
    %355 = vector.multi_reduction <add>, %354, %cst_101 [1] : vector<16x16xf32> to vector<16xf32>
    %356 = vector.shape_cast %355 : vector<16xf32> to vector<16x1xf32>
    %357 = tpu.reciprocal %356 {approx = true} : vector<16x1xf32> -> vector<16x1xf32>
    %358 = vector.broadcast %357 : vector<16x1xf32> to vector<16x16xf32>
    %359 = arith.mulf %354, %358 : vector<16x16xf32>
    %360 = vector.extract_strided_slice %346 {offsets = [0, 0], sizes = [16, 32], strides = [1, 1]} : vector<32x32xf32> to vector<16x32xf32>
    %cst_102 = arith.constant dense<0.000000e+00> : vector<16x32xf32>
    %361 = tpu.matmul %359, %360, %cst_102 {dimension_numbers = #tpu.dot_dimension_numbers<[1], [0], [0], [1], [0, 0, 1, 1], [], []>} : vector<16x16xf32>, vector<16x32xf32>, vector<16x32xf32> -> vector<16x32xf32>
    %362 = vector.extract_strided_slice %344 {offsets = [16, 0], sizes = [16, 32], strides = [1, 1]} : vector<32x32xf32> to vector<16x32xf32>
    %363 = vector.extract_strided_slice %345 {offsets = [16, 0], sizes = [16, 32], strides = [1, 1]} : vector<32x32xf32> to vector<16x32xf32>
    %cst_103 = arith.constant dense<0.000000e+00> : vector<16x16xf32>
    %364 = tpu.matmul %362, %363, %cst_103 {dimension_numbers = #tpu.dot_dimension_numbers<[1], [1], [0], [0], [0, 0, 1, 0], [], []>} : vector<16x32xf32>, vector<16x32xf32>, vector<16x16xf32> -> vector<16x16xf32>
    %cst_104 = arith.constant dense<0xFF800000> : vector<16xf32>
    %365 = vector.multi_reduction <maximumf>, %364, %cst_104 [1] : vector<16x16xf32> to vector<16xf32>
    %366 = vector.shape_cast %365 : vector<16xf32> to vector<16x1xf32>
    %367 = vector.broadcast %366 : vector<16x1xf32> to vector<16x16xf32>
    %368 = arith.subf %364, %367 : vector<16x16xf32>
    %369 = math.exp %368 : vector<16x16xf32>
    %cst_105 = arith.constant dense<0.000000e+00> : vector<16xf32>
    %370 = vector.multi_reduction <add>, %369, %cst_105 [1] : vector<16x16xf32> to vector<16xf32>
    %371 = vector.shape_cast %370 : vector<16xf32> to vector<16x1xf32>
    %372 = tpu.reciprocal %371 {approx = true} : vector<16x1xf32> -> vector<16x1xf32>
    %373 = vector.broadcast %372 : vector<16x1xf32> to vector<16x16xf32>
    %374 = arith.mulf %369, %373 : vector<16x16xf32>
    %375 = vector.extract_strided_slice %346 {offsets = [16, 0], sizes = [16, 32], strides = [1, 1]} : vector<32x32xf32> to vector<16x32xf32>
    %cst_106 = arith.constant dense<0.000000e+00> : vector<16x32xf32>
    %376 = tpu.matmul %374, %375, %cst_106 {dimension_numbers = #tpu.dot_dimension_numbers<[1], [0], [0], [1], [0, 0, 1, 1], [], []>} : vector<16x16xf32>, vector<16x32xf32>, vector<16x32xf32> -> vector<16x32xf32>
    %377 = tpu.concatenate %361, %376 in 0 : vector<16x32xf32>, vector<16x32xf32> -> vector<32x32xf32>
    %378 = tpu.concatenate %275, %309, %343, %377 in 1 : vector<32x32xf32>, vector<32x32xf32>, vector<32x32xf32>, vector<32x32xf32> -> vector<32x128xf32>
    %379 = arith.truncf %378 : vector<32x128xf32> to vector<32x128xbf16>
    %c896 = arith.constant 896 : index
    %c0_107 = arith.constant 0 : index
    %380 = vector.load %arg2[%c896, %c0_107] : memref<3072x128xbf16, #tpu.memory_space<vmem>>, vector<128x128xbf16>
    %cst_108 = arith.constant dense<0.000000e+00> : vector<32x128xf32>
    %381 = tpu.matmul %379, %380, %cst_108 {dimension_numbers = #tpu.dot_dimension_numbers<[1], [0], [0], [1], [0, 0, 1, 1], [], []>} : vector<32x128xbf16>, vector<128x128xbf16>, vector<32x128xf32> -> vector<32x128xf32>
    %c7 = arith.constant 7 : index
    %c0_109 = arith.constant 0 : index
    %382 = vector.load %arg3[%c7, %c0_109] : memref<72x128xf32, #tpu.memory_space<vmem>>, vector<1x128xf32>
    %383 = vector.broadcast %382 : vector<1x128xf32> to vector<32x128xf32>
    %384 = arith.addf %381, %383 : vector<32x128xf32>
    %385 = arith.addf %223, %384 : vector<32x128xf32>
    %c24 = arith.constant 24 : index
    %c0_110 = arith.constant 0 : index
    %386 = vector.load %arg3[%c24, %c0_110] : memref<72x128xf32, #tpu.memory_space<vmem>>, vector<1x128xf32>
    %c25 = arith.constant 25 : index
    %c0_111 = arith.constant 0 : index
    %387 = vector.load %arg3[%c25, %c0_111] : memref<72x128xf32, #tpu.memory_space<vmem>>, vector<1x128xf32>
    %cst_112 = arith.constant dense<0.000000e+00> : vector<32xf32>
    %388 = vector.multi_reduction <add>, %385, %cst_112 [1] : vector<32x128xf32> to vector<32xf32>
    %389 = vector.shape_cast %388 : vector<32xf32> to vector<32x1xf32>
    %cst_113 = arith.constant 1.280000e+02 : f32
    %390 = vector.broadcast %cst_113 : f32 to vector<32x1xf32>
    %391 = arith.divf %389, %390 : vector<32x1xf32>
    %392 = vector.broadcast %391 : vector<32x1xf32> to vector<32x128xf32>
    %393 = arith.subf %385, %392 : vector<32x128xf32>
    %394 = arith.mulf %393, %393 : vector<32x128xf32>
    %cst_114 = arith.constant dense<0.000000e+00> : vector<32xf32>
    %395 = vector.multi_reduction <add>, %394, %cst_114 [1] : vector<32x128xf32> to vector<32xf32>
    %396 = vector.shape_cast %395 : vector<32xf32> to vector<32x1xf32>
    %cst_115 = arith.constant 1.280000e+02 : f32
    %397 = vector.broadcast %cst_115 : f32 to vector<32x1xf32>
    %398 = arith.divf %396, %397 : vector<32x1xf32>
    %399 = vector.broadcast %391 : vector<32x1xf32> to vector<32x128xf32>
    %400 = arith.subf %385, %399 : vector<32x128xf32>
    %cst_116 = arith.constant 9.99999974E-6 : f32
    %401 = vector.broadcast %cst_116 : f32 to vector<32x1xf32>
    %402 = arith.addf %398, %401 : vector<32x1xf32>
    %403 = math.rsqrt %402 : vector<32x1xf32>
    %404 = vector.broadcast %403 : vector<32x1xf32> to vector<32x128xf32>
    %405 = arith.mulf %400, %404 : vector<32x128xf32>
    %406 = vector.broadcast %386 : vector<1x128xf32> to vector<32x128xf32>
    %407 = arith.mulf %405, %406 : vector<32x128xf32>
    %408 = vector.broadcast %387 : vector<1x128xf32> to vector<32x128xf32>
    %409 = arith.addf %407, %408 : vector<32x128xf32>
    %410 = arith.truncf %409 : vector<32x128xf32> to vector<32x128xbf16>
    %c2048 = arith.constant 2048 : index
    %c0_117 = arith.constant 0 : index
    %411 = vector.load %arg2[%c2048, %c0_117] : memref<3072x128xbf16, #tpu.memory_space<vmem>>, vector<128x128xbf16>
    %cst_118 = arith.constant dense<0.000000e+00> : vector<32x128xf32>
    %412 = tpu.matmul %410, %411, %cst_118 {dimension_numbers = #tpu.dot_dimension_numbers<[1], [0], [0], [1], [0, 0, 1, 1], [], []>} : vector<32x128xbf16>, vector<128x128xbf16>, vector<32x128xf32> -> vector<32x128xf32>
    %c16 = arith.constant 16 : index
    %c0_119 = arith.constant 0 : index
    %413 = vector.load %arg3[%c16, %c0_119] : memref<72x128xf32, #tpu.memory_space<vmem>>, vector<1x128xf32>
    %414 = vector.broadcast %413 : vector<1x128xf32> to vector<32x128xf32>
    %415 = arith.addf %412, %414 : vector<32x128xf32>
    %cst_120 = arith.constant 0.000000e+00 : f32
    %416 = vector.broadcast %cst_120 : f32 to vector<32x128xf32>
    %417 = arith.maximumf %415, %416 : vector<32x128xf32>
    %c2176 = arith.constant 2176 : index
    %c0_121 = arith.constant 0 : index
    %418 = vector.load %arg2[%c2176, %c0_121] : memref<3072x128xbf16, #tpu.memory_space<vmem>>, vector<128x128xbf16>
    %cst_122 = arith.constant dense<0.000000e+00> : vector<32x128xf32>
    %419 = tpu.matmul %410, %418, %cst_122 {dimension_numbers = #tpu.dot_dimension_numbers<[1], [0], [0], [1], [0, 0, 1, 1], [], []>} : vector<32x128xbf16>, vector<128x128xbf16>, vector<32x128xf32> -> vector<32x128xf32>
    %c17 = arith.constant 17 : index
    %c0_123 = arith.constant 0 : index
    %420 = vector.load %arg3[%c17, %c0_123] : memref<72x128xf32, #tpu.memory_space<vmem>>, vector<1x128xf32>
    %421 = vector.broadcast %420 : vector<1x128xf32> to vector<32x128xf32>
    %422 = arith.addf %419, %421 : vector<32x128xf32>
    %cst_124 = arith.constant 0.000000e+00 : f32
    %423 = vector.broadcast %cst_124 : f32 to vector<32x128xf32>
    %424 = arith.maximumf %422, %423 : vector<32x128xf32>
    %425 = arith.truncf %417 : vector<32x128xf32> to vector<32x128xbf16>
    %c2304 = arith.constant 2304 : index
    %c0_125 = arith.constant 0 : index
    %426 = vector.load %arg2[%c2304, %c0_125] : memref<3072x128xbf16, #tpu.memory_space<vmem>>, vector<128x128xbf16>
    %cst_126 = arith.constant dense<0.000000e+00> : vector<32x128xf32>
    %427 = tpu.matmul %425, %426, %cst_126 {dimension_numbers = #tpu.dot_dimension_numbers<[1], [0], [0], [1], [0, 0, 1, 1], [], []>} : vector<32x128xbf16>, vector<128x128xbf16>, vector<32x128xf32> -> vector<32x128xf32>
    %428 = arith.truncf %424 : vector<32x128xf32> to vector<32x128xbf16>
    %c2432 = arith.constant 2432 : index
    %c0_127 = arith.constant 0 : index
    %429 = vector.load %arg2[%c2432, %c0_127] : memref<3072x128xbf16, #tpu.memory_space<vmem>>, vector<128x128xbf16>
    %cst_128 = arith.constant dense<0.000000e+00> : vector<32x128xf32>
    %430 = tpu.matmul %428, %429, %cst_128 {dimension_numbers = #tpu.dot_dimension_numbers<[1], [0], [0], [1], [0, 0, 1, 1], [], []>} : vector<32x128xbf16>, vector<128x128xbf16>, vector<32x128xf32> -> vector<32x128xf32>
    %431 = arith.addf %427, %430 : vector<32x128xf32>
    %c18 = arith.constant 18 : index
    %c0_129 = arith.constant 0 : index
    %432 = vector.load %arg3[%c18, %c0_129] : memref<72x128xf32, #tpu.memory_space<vmem>>, vector<1x128xf32>
    %433 = vector.broadcast %432 : vector<1x128xf32> to vector<32x128xf32>
    %434 = arith.addf %431, %433 : vector<32x128xf32>
    %435 = arith.addf %409, %434 : vector<32x128xf32>
    %c26 = arith.constant 26 : index
    %c0_130 = arith.constant 0 : index
    %436 = vector.load %arg3[%c26, %c0_130] : memref<72x128xf32, #tpu.memory_space<vmem>>, vector<1x128xf32>
    %c27 = arith.constant 27 : index
    %c0_131 = arith.constant 0 : index
    %437 = vector.load %arg3[%c27, %c0_131] : memref<72x128xf32, #tpu.memory_space<vmem>>, vector<1x128xf32>
    %cst_132 = arith.constant dense<0.000000e+00> : vector<32xf32>
    %438 = vector.multi_reduction <add>, %435, %cst_132 [1] : vector<32x128xf32> to vector<32xf32>
    %439 = vector.shape_cast %438 : vector<32xf32> to vector<32x1xf32>
    %cst_133 = arith.constant 1.280000e+02 : f32
    %440 = vector.broadcast %cst_133 : f32 to vector<32x1xf32>
    %441 = arith.divf %439, %440 : vector<32x1xf32>
    %442 = vector.broadcast %441 : vector<32x1xf32> to vector<32x128xf32>
    %443 = arith.subf %435, %442 : vector<32x128xf32>
    %444 = arith.mulf %443, %443 : vector<32x128xf32>
    %cst_134 = arith.constant dense<0.000000e+00> : vector<32xf32>
    %445 = vector.multi_reduction <add>, %444, %cst_134 [1] : vector<32x128xf32> to vector<32xf32>
    %446 = vector.shape_cast %445 : vector<32xf32> to vector<32x1xf32>
    %cst_135 = arith.constant 1.280000e+02 : f32
    %447 = vector.broadcast %cst_135 : f32 to vector<32x1xf32>
    %448 = arith.divf %446, %447 : vector<32x1xf32>
    %449 = vector.broadcast %441 : vector<32x1xf32> to vector<32x128xf32>
    %450 = arith.subf %435, %449 : vector<32x128xf32>
    %cst_136 = arith.constant 9.99999974E-6 : f32
    %451 = vector.broadcast %cst_136 : f32 to vector<32x1xf32>
    %452 = arith.addf %448, %451 : vector<32x1xf32>
    %453 = math.rsqrt %452 : vector<32x1xf32>
    %454 = vector.broadcast %453 : vector<32x1xf32> to vector<32x128xf32>
    %455 = arith.mulf %450, %454 : vector<32x128xf32>
    %456 = vector.broadcast %436 : vector<1x128xf32> to vector<32x128xf32>
    %457 = arith.mulf %455, %456 : vector<32x128xf32>
    %458 = vector.broadcast %437 : vector<1x128xf32> to vector<32x128xf32>
    %459 = arith.addf %457, %458 : vector<32x128xf32>
    %460 = arith.truncf %459 : vector<32x128xf32> to vector<32x128xbf16>
    %461 = arith.truncf %459 : vector<32x128xf32> to vector<32x128xbf16>
    %462 = arith.truncf %459 : vector<32x128xf32> to vector<32x128xbf16>
    %c1024 = arith.constant 1024 : index
    %c0_137 = arith.constant 0 : index
    %463 = vector.load %arg2[%c1024, %c0_137] : memref<3072x128xbf16, #tpu.memory_space<vmem>>, vector<128x128xbf16>
    %cst_138 = arith.constant dense<0.000000e+00> : vector<32x128xf32>
    %464 = tpu.matmul %460, %463, %cst_138 {dimension_numbers = #tpu.dot_dimension_numbers<[1], [0], [0], [1], [0, 0, 1, 1], [], []>} : vector<32x128xbf16>, vector<128x128xbf16>, vector<32x128xf32> -> vector<32x128xf32>
    %c8_139 = arith.constant 8 : index
    %c0_140 = arith.constant 0 : index
    %465 = vector.load %arg3[%c8_139, %c0_140] : memref<72x128xf32, #tpu.memory_space<vmem>>, vector<1x128xf32>
    %466 = vector.broadcast %465 : vector<1x128xf32> to vector<32x128xf32>
    %467 = arith.addf %464, %466 : vector<32x128xf32>
    %c1152 = arith.constant 1152 : index
    %c0_141 = arith.constant 0 : index
    %468 = vector.load %arg2[%c1152, %c0_141] : memref<3072x128xbf16, #tpu.memory_space<vmem>>, vector<128x128xbf16>
    %cst_142 = arith.constant dense<0.000000e+00> : vector<32x128xf32>
    %469 = tpu.matmul %461, %468, %cst_142 {dimension_numbers = #tpu.dot_dimension_numbers<[1], [0], [0], [1], [0, 0, 1, 1], [], []>} : vector<32x128xbf16>, vector<128x128xbf16>, vector<32x128xf32> -> vector<32x128xf32>
    %c9 = arith.constant 9 : index
    %c0_143 = arith.constant 0 : index
    %470 = vector.load %arg3[%c9, %c0_143] : memref<72x128xf32, #tpu.memory_space<vmem>>, vector<1x128xf32>
    %471 = vector.broadcast %470 : vector<1x128xf32> to vector<32x128xf32>
    %472 = arith.addf %469, %471 : vector<32x128xf32>
    %c1280 = arith.constant 1280 : index
    %c0_144 = arith.constant 0 : index
    %473 = vector.load %arg2[%c1280, %c0_144] : memref<3072x128xbf16, #tpu.memory_space<vmem>>, vector<128x128xbf16>
    %cst_145 = arith.constant dense<0.000000e+00> : vector<32x128xf32>
    %474 = tpu.matmul %462, %473, %cst_145 {dimension_numbers = #tpu.dot_dimension_numbers<[1], [0], [0], [1], [0, 0, 1, 1], [], []>} : vector<32x128xbf16>, vector<128x128xbf16>, vector<32x128xf32> -> vector<32x128xf32>
    %c10 = arith.constant 10 : index
    %c0_146 = arith.constant 0 : index
    %475 = vector.load %arg3[%c10, %c0_146] : memref<72x128xf32, #tpu.memory_space<vmem>>, vector<1x128xf32>
    %476 = vector.broadcast %475 : vector<1x128xf32> to vector<32x128xf32>
    %477 = arith.addf %474, %476 : vector<32x128xf32>
    %478 = vector.extract_strided_slice %467 {offsets = [0, 0], sizes = [32, 32], strides = [1, 1]} : vector<32x128xf32> to vector<32x32xf32>
    %479 = vector.extract_strided_slice %472 {offsets = [0, 0], sizes = [32, 32], strides = [1, 1]} : vector<32x128xf32> to vector<32x32xf32>
    %480 = vector.extract_strided_slice %477 {offsets = [0, 0], sizes = [32, 32], strides = [1, 1]} : vector<32x128xf32> to vector<32x32xf32>
    %481 = vector.extract_strided_slice %478 {offsets = [0, 0], sizes = [16, 32], strides = [1, 1]} : vector<32x32xf32> to vector<16x32xf32>
    %482 = vector.extract_strided_slice %479 {offsets = [0, 0], sizes = [16, 32], strides = [1, 1]} : vector<32x32xf32> to vector<16x32xf32>
    %cst_147 = arith.constant dense<0.000000e+00> : vector<16x16xf32>
    %483 = tpu.matmul %481, %482, %cst_147 {dimension_numbers = #tpu.dot_dimension_numbers<[1], [1], [0], [0], [0, 0, 1, 0], [], []>} : vector<16x32xf32>, vector<16x32xf32>, vector<16x16xf32> -> vector<16x16xf32>
    %cst_148 = arith.constant dense<0xFF800000> : vector<16xf32>
    %484 = vector.multi_reduction <maximumf>, %483, %cst_148 [1] : vector<16x16xf32> to vector<16xf32>
    %485 = vector.shape_cast %484 : vector<16xf32> to vector<16x1xf32>
    %486 = vector.broadcast %485 : vector<16x1xf32> to vector<16x16xf32>
    %487 = arith.subf %483, %486 : vector<16x16xf32>
    %488 = math.exp %487 : vector<16x16xf32>
    %cst_149 = arith.constant dense<0.000000e+00> : vector<16xf32>
    %489 = vector.multi_reduction <add>, %488, %cst_149 [1] : vector<16x16xf32> to vector<16xf32>
    %490 = vector.shape_cast %489 : vector<16xf32> to vector<16x1xf32>
    %491 = tpu.reciprocal %490 {approx = true} : vector<16x1xf32> -> vector<16x1xf32>
    %492 = vector.broadcast %491 : vector<16x1xf32> to vector<16x16xf32>
    %493 = arith.mulf %488, %492 : vector<16x16xf32>
    %494 = vector.extract_strided_slice %480 {offsets = [0, 0], sizes = [16, 32], strides = [1, 1]} : vector<32x32xf32> to vector<16x32xf32>
    %cst_150 = arith.constant dense<0.000000e+00> : vector<16x32xf32>
    %495 = tpu.matmul %493, %494, %cst_150 {dimension_numbers = #tpu.dot_dimension_numbers<[1], [0], [0], [1], [0, 0, 1, 1], [], []>} : vector<16x16xf32>, vector<16x32xf32>, vector<16x32xf32> -> vector<16x32xf32>
    %496 = vector.extract_strided_slice %478 {offsets = [16, 0], sizes = [16, 32], strides = [1, 1]} : vector<32x32xf32> to vector<16x32xf32>
    %497 = vector.extract_strided_slice %479 {offsets = [16, 0], sizes = [16, 32], strides = [1, 1]} : vector<32x32xf32> to vector<16x32xf32>
    %cst_151 = arith.constant dense<0.000000e+00> : vector<16x16xf32>
    %498 = tpu.matmul %496, %497, %cst_151 {dimension_numbers = #tpu.dot_dimension_numbers<[1], [1], [0], [0], [0, 0, 1, 0], [], []>} : vector<16x32xf32>, vector<16x32xf32>, vector<16x16xf32> -> vector<16x16xf32>
    %cst_152 = arith.constant dense<0xFF800000> : vector<16xf32>
    %499 = vector.multi_reduction <maximumf>, %498, %cst_152 [1] : vector<16x16xf32> to vector<16xf32>
    %500 = vector.shape_cast %499 : vector<16xf32> to vector<16x1xf32>
    %501 = vector.broadcast %500 : vector<16x1xf32> to vector<16x16xf32>
    %502 = arith.subf %498, %501 : vector<16x16xf32>
    %503 = math.exp %502 : vector<16x16xf32>
    %cst_153 = arith.constant dense<0.000000e+00> : vector<16xf32>
    %504 = vector.multi_reduction <add>, %503, %cst_153 [1] : vector<16x16xf32> to vector<16xf32>
    %505 = vector.shape_cast %504 : vector<16xf32> to vector<16x1xf32>
    %506 = tpu.reciprocal %505 {approx = true} : vector<16x1xf32> -> vector<16x1xf32>
    %507 = vector.broadcast %506 : vector<16x1xf32> to vector<16x16xf32>
    %508 = arith.mulf %503, %507 : vector<16x16xf32>
    %509 = vector.extract_strided_slice %480 {offsets = [16, 0], sizes = [16, 32], strides = [1, 1]} : vector<32x32xf32> to vector<16x32xf32>
    %cst_154 = arith.constant dense<0.000000e+00> : vector<16x32xf32>
    %510 = tpu.matmul %508, %509, %cst_154 {dimension_numbers = #tpu.dot_dimension_numbers<[1], [0], [0], [1], [0, 0, 1, 1], [], []>} : vector<16x16xf32>, vector<16x32xf32>, vector<16x32xf32> -> vector<16x32xf32>
    %511 = tpu.concatenate %495, %510 in 0 : vector<16x32xf32>, vector<16x32xf32> -> vector<32x32xf32>
    %512 = vector.extract_strided_slice %467 {offsets = [0, 32], sizes = [32, 32], strides = [1, 1]} : vector<32x128xf32> to vector<32x32xf32>
    %513 = vector.extract_strided_slice %472 {offsets = [0, 32], sizes = [32, 32], strides = [1, 1]} : vector<32x128xf32> to vector<32x32xf32>
    %514 = vector.extract_strided_slice %477 {offsets = [0, 32], sizes = [32, 32], strides = [1, 1]} : vector<32x128xf32> to vector<32x32xf32>
    %515 = vector.extract_strided_slice %512 {offsets = [0, 0], sizes = [16, 32], strides = [1, 1]} : vector<32x32xf32> to vector<16x32xf32>
    %516 = vector.extract_strided_slice %513 {offsets = [0, 0], sizes = [16, 32], strides = [1, 1]} : vector<32x32xf32> to vector<16x32xf32>
    %cst_155 = arith.constant dense<0.000000e+00> : vector<16x16xf32>
    %517 = tpu.matmul %515, %516, %cst_155 {dimension_numbers = #tpu.dot_dimension_numbers<[1], [1], [0], [0], [0, 0, 1, 0], [], []>} : vector<16x32xf32>, vector<16x32xf32>, vector<16x16xf32> -> vector<16x16xf32>
    %cst_156 = arith.constant dense<0xFF800000> : vector<16xf32>
    %518 = vector.multi_reduction <maximumf>, %517, %cst_156 [1] : vector<16x16xf32> to vector<16xf32>
    %519 = vector.shape_cast %518 : vector<16xf32> to vector<16x1xf32>
    %520 = vector.broadcast %519 : vector<16x1xf32> to vector<16x16xf32>
    %521 = arith.subf %517, %520 : vector<16x16xf32>
    %522 = math.exp %521 : vector<16x16xf32>
    %cst_157 = arith.constant dense<0.000000e+00> : vector<16xf32>
    %523 = vector.multi_reduction <add>, %522, %cst_157 [1] : vector<16x16xf32> to vector<16xf32>
    %524 = vector.shape_cast %523 : vector<16xf32> to vector<16x1xf32>
    %525 = tpu.reciprocal %524 {approx = true} : vector<16x1xf32> -> vector<16x1xf32>
    %526 = vector.broadcast %525 : vector<16x1xf32> to vector<16x16xf32>
    %527 = arith.mulf %522, %526 : vector<16x16xf32>
    %528 = vector.extract_strided_slice %514 {offsets = [0, 0], sizes = [16, 32], strides = [1, 1]} : vector<32x32xf32> to vector<16x32xf32>
    %cst_158 = arith.constant dense<0.000000e+00> : vector<16x32xf32>
    %529 = tpu.matmul %527, %528, %cst_158 {dimension_numbers = #tpu.dot_dimension_numbers<[1], [0], [0], [1], [0, 0, 1, 1], [], []>} : vector<16x16xf32>, vector<16x32xf32>, vector<16x32xf32> -> vector<16x32xf32>
    %530 = vector.extract_strided_slice %512 {offsets = [16, 0], sizes = [16, 32], strides = [1, 1]} : vector<32x32xf32> to vector<16x32xf32>
    %531 = vector.extract_strided_slice %513 {offsets = [16, 0], sizes = [16, 32], strides = [1, 1]} : vector<32x32xf32> to vector<16x32xf32>
    %cst_159 = arith.constant dense<0.000000e+00> : vector<16x16xf32>
    %532 = tpu.matmul %530, %531, %cst_159 {dimension_numbers = #tpu.dot_dimension_numbers<[1], [1], [0], [0], [0, 0, 1, 0], [], []>} : vector<16x32xf32>, vector<16x32xf32>, vector<16x16xf32> -> vector<16x16xf32>
    %cst_160 = arith.constant dense<0xFF800000> : vector<16xf32>
    %533 = vector.multi_reduction <maximumf>, %532, %cst_160 [1] : vector<16x16xf32> to vector<16xf32>
    %534 = vector.shape_cast %533 : vector<16xf32> to vector<16x1xf32>
    %535 = vector.broadcast %534 : vector<16x1xf32> to vector<16x16xf32>
    %536 = arith.subf %532, %535 : vector<16x16xf32>
    %537 = math.exp %536 : vector<16x16xf32>
    %cst_161 = arith.constant dense<0.000000e+00> : vector<16xf32>
    %538 = vector.multi_reduction <add>, %537, %cst_161 [1] : vector<16x16xf32> to vector<16xf32>
    %539 = vector.shape_cast %538 : vector<16xf32> to vector<16x1xf32>
    %540 = tpu.reciprocal %539 {approx = true} : vector<16x1xf32> -> vector<16x1xf32>
    %541 = vector.broadcast %540 : vector<16x1xf32> to vector<16x16xf32>
    %542 = arith.mulf %537, %541 : vector<16x16xf32>
    %543 = vector.extract_strided_slice %514 {offsets = [16, 0], sizes = [16, 32], strides = [1, 1]} : vector<32x32xf32> to vector<16x32xf32>
    %cst_162 = arith.constant dense<0.000000e+00> : vector<16x32xf32>
    %544 = tpu.matmul %542, %543, %cst_162 {dimension_numbers = #tpu.dot_dimension_numbers<[1], [0], [0], [1], [0, 0, 1, 1], [], []>} : vector<16x16xf32>, vector<16x32xf32>, vector<16x32xf32> -> vector<16x32xf32>
    %545 = tpu.concatenate %529, %544 in 0 : vector<16x32xf32>, vector<16x32xf32> -> vector<32x32xf32>
    %546 = vector.extract_strided_slice %467 {offsets = [0, 64], sizes = [32, 32], strides = [1, 1]} : vector<32x128xf32> to vector<32x32xf32>
    %547 = vector.extract_strided_slice %472 {offsets = [0, 64], sizes = [32, 32], strides = [1, 1]} : vector<32x128xf32> to vector<32x32xf32>
    %548 = vector.extract_strided_slice %477 {offsets = [0, 64], sizes = [32, 32], strides = [1, 1]} : vector<32x128xf32> to vector<32x32xf32>
    %549 = vector.extract_strided_slice %546 {offsets = [0, 0], sizes = [16, 32], strides = [1, 1]} : vector<32x32xf32> to vector<16x32xf32>
    %550 = vector.extract_strided_slice %547 {offsets = [0, 0], sizes = [16, 32], strides = [1, 1]} : vector<32x32xf32> to vector<16x32xf32>
    %cst_163 = arith.constant dense<0.000000e+00> : vector<16x16xf32>
    %551 = tpu.matmul %549, %550, %cst_163 {dimension_numbers = #tpu.dot_dimension_numbers<[1], [1], [0], [0], [0, 0, 1, 0], [], []>} : vector<16x32xf32>, vector<16x32xf32>, vector<16x16xf32> -> vector<16x16xf32>
    %cst_164 = arith.constant dense<0xFF800000> : vector<16xf32>
    %552 = vector.multi_reduction <maximumf>, %551, %cst_164 [1] : vector<16x16xf32> to vector<16xf32>
    %553 = vector.shape_cast %552 : vector<16xf32> to vector<16x1xf32>
    %554 = vector.broadcast %553 : vector<16x1xf32> to vector<16x16xf32>
    %555 = arith.subf %551, %554 : vector<16x16xf32>
    %556 = math.exp %555 : vector<16x16xf32>
    %cst_165 = arith.constant dense<0.000000e+00> : vector<16xf32>
    %557 = vector.multi_reduction <add>, %556, %cst_165 [1] : vector<16x16xf32> to vector<16xf32>
    %558 = vector.shape_cast %557 : vector<16xf32> to vector<16x1xf32>
    %559 = tpu.reciprocal %558 {approx = true} : vector<16x1xf32> -> vector<16x1xf32>
    %560 = vector.broadcast %559 : vector<16x1xf32> to vector<16x16xf32>
    %561 = arith.mulf %556, %560 : vector<16x16xf32>
    %562 = vector.extract_strided_slice %548 {offsets = [0, 0], sizes = [16, 32], strides = [1, 1]} : vector<32x32xf32> to vector<16x32xf32>
    %cst_166 = arith.constant dense<0.000000e+00> : vector<16x32xf32>
    %563 = tpu.matmul %561, %562, %cst_166 {dimension_numbers = #tpu.dot_dimension_numbers<[1], [0], [0], [1], [0, 0, 1, 1], [], []>} : vector<16x16xf32>, vector<16x32xf32>, vector<16x32xf32> -> vector<16x32xf32>
    %564 = vector.extract_strided_slice %546 {offsets = [16, 0], sizes = [16, 32], strides = [1, 1]} : vector<32x32xf32> to vector<16x32xf32>
    %565 = vector.extract_strided_slice %547 {offsets = [16, 0], sizes = [16, 32], strides = [1, 1]} : vector<32x32xf32> to vector<16x32xf32>
    %cst_167 = arith.constant dense<0.000000e+00> : vector<16x16xf32>
    %566 = tpu.matmul %564, %565, %cst_167 {dimension_numbers = #tpu.dot_dimension_numbers<[1], [1], [0], [0], [0, 0, 1, 0], [], []>} : vector<16x32xf32>, vector<16x32xf32>, vector<16x16xf32> -> vector<16x16xf32>
    %cst_168 = arith.constant dense<0xFF800000> : vector<16xf32>
    %567 = vector.multi_reduction <maximumf>, %566, %cst_168 [1] : vector<16x16xf32> to vector<16xf32>
    %568 = vector.shape_cast %567 : vector<16xf32> to vector<16x1xf32>
    %569 = vector.broadcast %568 : vector<16x1xf32> to vector<16x16xf32>
    %570 = arith.subf %566, %569 : vector<16x16xf32>
    %571 = math.exp %570 : vector<16x16xf32>
    %cst_169 = arith.constant dense<0.000000e+00> : vector<16xf32>
    %572 = vector.multi_reduction <add>, %571, %cst_169 [1] : vector<16x16xf32> to vector<16xf32>
    %573 = vector.shape_cast %572 : vector<16xf32> to vector<16x1xf32>
    %574 = tpu.reciprocal %573 {approx = true} : vector<16x1xf32> -> vector<16x1xf32>
    %575 = vector.broadcast %574 : vector<16x1xf32> to vector<16x16xf32>
    %576 = arith.mulf %571, %575 : vector<16x16xf32>
    %577 = vector.extract_strided_slice %548 {offsets = [16, 0], sizes = [16, 32], strides = [1, 1]} : vector<32x32xf32> to vector<16x32xf32>
    %cst_170 = arith.constant dense<0.000000e+00> : vector<16x32xf32>
    %578 = tpu.matmul %576, %577, %cst_170 {dimension_numbers = #tpu.dot_dimension_numbers<[1], [0], [0], [1], [0, 0, 1, 1], [], []>} : vector<16x16xf32>, vector<16x32xf32>, vector<16x32xf32> -> vector<16x32xf32>
    %579 = tpu.concatenate %563, %578 in 0 : vector<16x32xf32>, vector<16x32xf32> -> vector<32x32xf32>
    %580 = vector.extract_strided_slice %467 {offsets = [0, 96], sizes = [32, 32], strides = [1, 1]} : vector<32x128xf32> to vector<32x32xf32>
    %581 = vector.extract_strided_slice %472 {offsets = [0, 96], sizes = [32, 32], strides = [1, 1]} : vector<32x128xf32> to vector<32x32xf32>
    %582 = vector.extract_strided_slice %477 {offsets = [0, 96], sizes = [32, 32], strides = [1, 1]} : vector<32x128xf32> to vector<32x32xf32>
    %583 = vector.extract_strided_slice %580 {offsets = [0, 0], sizes = [16, 32], strides = [1, 1]} : vector<32x32xf32> to vector<16x32xf32>
    %584 = vector.extract_strided_slice %581 {offsets = [0, 0], sizes = [16, 32], strides = [1, 1]} : vector<32x32xf32> to vector<16x32xf32>
    %cst_171 = arith.constant dense<0.000000e+00> : vector<16x16xf32>
    %585 = tpu.matmul %583, %584, %cst_171 {dimension_numbers = #tpu.dot_dimension_numbers<[1], [1], [0], [0], [0, 0, 1, 0], [], []>} : vector<16x32xf32>, vector<16x32xf32>, vector<16x16xf32> -> vector<16x16xf32>
    %cst_172 = arith.constant dense<0xFF800000> : vector<16xf32>
    %586 = vector.multi_reduction <maximumf>, %585, %cst_172 [1] : vector<16x16xf32> to vector<16xf32>
    %587 = vector.shape_cast %586 : vector<16xf32> to vector<16x1xf32>
    %588 = vector.broadcast %587 : vector<16x1xf32> to vector<16x16xf32>
    %589 = arith.subf %585, %588 : vector<16x16xf32>
    %590 = math.exp %589 : vector<16x16xf32>
    %cst_173 = arith.constant dense<0.000000e+00> : vector<16xf32>
    %591 = vector.multi_reduction <add>, %590, %cst_173 [1] : vector<16x16xf32> to vector<16xf32>
    %592 = vector.shape_cast %591 : vector<16xf32> to vector<16x1xf32>
    %593 = tpu.reciprocal %592 {approx = true} : vector<16x1xf32> -> vector<16x1xf32>
    %594 = vector.broadcast %593 : vector<16x1xf32> to vector<16x16xf32>
    %595 = arith.mulf %590, %594 : vector<16x16xf32>
    %596 = vector.extract_strided_slice %582 {offsets = [0, 0], sizes = [16, 32], strides = [1, 1]} : vector<32x32xf32> to vector<16x32xf32>
    %cst_174 = arith.constant dense<0.000000e+00> : vector<16x32xf32>
    %597 = tpu.matmul %595, %596, %cst_174 {dimension_numbers = #tpu.dot_dimension_numbers<[1], [0], [0], [1], [0, 0, 1, 1], [], []>} : vector<16x16xf32>, vector<16x32xf32>, vector<16x32xf32> -> vector<16x32xf32>
    %598 = vector.extract_strided_slice %580 {offsets = [16, 0], sizes = [16, 32], strides = [1, 1]} : vector<32x32xf32> to vector<16x32xf32>
    %599 = vector.extract_strided_slice %581 {offsets = [16, 0], sizes = [16, 32], strides = [1, 1]} : vector<32x32xf32> to vector<16x32xf32>
    %cst_175 = arith.constant dense<0.000000e+00> : vector<16x16xf32>
    %600 = tpu.matmul %598, %599, %cst_175 {dimension_numbers = #tpu.dot_dimension_numbers<[1], [1], [0], [0], [0, 0, 1, 0], [], []>} : vector<16x32xf32>, vector<16x32xf32>, vector<16x16xf32> -> vector<16x16xf32>
    %cst_176 = arith.constant dense<0xFF800000> : vector<16xf32>
    %601 = vector.multi_reduction <maximumf>, %600, %cst_176 [1] : vector<16x16xf32> to vector<16xf32>
    %602 = vector.shape_cast %601 : vector<16xf32> to vector<16x1xf32>
    %603 = vector.broadcast %602 : vector<16x1xf32> to vector<16x16xf32>
    %604 = arith.subf %600, %603 : vector<16x16xf32>
    %605 = math.exp %604 : vector<16x16xf32>
    %cst_177 = arith.constant dense<0.000000e+00> : vector<16xf32>
    %606 = vector.multi_reduction <add>, %605, %cst_177 [1] : vector<16x16xf32> to vector<16xf32>
    %607 = vector.shape_cast %606 : vector<16xf32> to vector<16x1xf32>
    %608 = tpu.reciprocal %607 {approx = true} : vector<16x1xf32> -> vector<16x1xf32>
    %609 = vector.broadcast %608 : vector<16x1xf32> to vector<16x16xf32>
    %610 = arith.mulf %605, %609 : vector<16x16xf32>
    %611 = vector.extract_strided_slice %582 {offsets = [16, 0], sizes = [16, 32], strides = [1, 1]} : vector<32x32xf32> to vector<16x32xf32>
    %cst_178 = arith.constant dense<0.000000e+00> : vector<16x32xf32>
    %612 = tpu.matmul %610, %611, %cst_178 {dimension_numbers = #tpu.dot_dimension_numbers<[1], [0], [0], [1], [0, 0, 1, 1], [], []>} : vector<16x16xf32>, vector<16x32xf32>, vector<16x32xf32> -> vector<16x32xf32>
    %613 = tpu.concatenate %597, %612 in 0 : vector<16x32xf32>, vector<16x32xf32> -> vector<32x32xf32>
    %614 = tpu.concatenate %511, %545, %579, %613 in 1 : vector<32x32xf32>, vector<32x32xf32>, vector<32x32xf32>, vector<32x32xf32> -> vector<32x128xf32>
    %615 = arith.truncf %614 : vector<32x128xf32> to vector<32x128xbf16>
    %c1408 = arith.constant 1408 : index
    %c0_179 = arith.constant 0 : index
    %616 = vector.load %arg2[%c1408, %c0_179] : memref<3072x128xbf16, #tpu.memory_space<vmem>>, vector<128x128xbf16>
    %cst_180 = arith.constant dense<0.000000e+00> : vector<32x128xf32>
    %617 = tpu.matmul %615, %616, %cst_180 {dimension_numbers = #tpu.dot_dimension_numbers<[1], [0], [0], [1], [0, 0, 1, 1], [], []>} : vector<32x128xbf16>, vector<128x128xbf16>, vector<32x128xf32> -> vector<32x128xf32>
    %c11 = arith.constant 11 : index
    %c0_181 = arith.constant 0 : index
    %618 = vector.load %arg3[%c11, %c0_181] : memref<72x128xf32, #tpu.memory_space<vmem>>, vector<1x128xf32>
    %619 = vector.broadcast %618 : vector<1x128xf32> to vector<32x128xf32>
    %620 = arith.addf %617, %619 : vector<32x128xf32>
    %621 = arith.addf %459, %620 : vector<32x128xf32>
    %c28 = arith.constant 28 : index
    %c0_182 = arith.constant 0 : index
    %622 = vector.load %arg3[%c28, %c0_182] : memref<72x128xf32, #tpu.memory_space<vmem>>, vector<1x128xf32>
    %c29 = arith.constant 29 : index
    %c0_183 = arith.constant 0 : index
    %623 = vector.load %arg3[%c29, %c0_183] : memref<72x128xf32, #tpu.memory_space<vmem>>, vector<1x128xf32>
    %cst_184 = arith.constant dense<0.000000e+00> : vector<32xf32>
    %624 = vector.multi_reduction <add>, %621, %cst_184 [1] : vector<32x128xf32> to vector<32xf32>
    %625 = vector.shape_cast %624 : vector<32xf32> to vector<32x1xf32>
    %cst_185 = arith.constant 1.280000e+02 : f32
    %626 = vector.broadcast %cst_185 : f32 to vector<32x1xf32>
    %627 = arith.divf %625, %626 : vector<32x1xf32>
    %628 = vector.broadcast %627 : vector<32x1xf32> to vector<32x128xf32>
    %629 = arith.subf %621, %628 : vector<32x128xf32>
    %630 = arith.mulf %629, %629 : vector<32x128xf32>
    %cst_186 = arith.constant dense<0.000000e+00> : vector<32xf32>
    %631 = vector.multi_reduction <add>, %630, %cst_186 [1] : vector<32x128xf32> to vector<32xf32>
    %632 = vector.shape_cast %631 : vector<32xf32> to vector<32x1xf32>
    %cst_187 = arith.constant 1.280000e+02 : f32
    %633 = vector.broadcast %cst_187 : f32 to vector<32x1xf32>
    %634 = arith.divf %632, %633 : vector<32x1xf32>
    %635 = vector.broadcast %627 : vector<32x1xf32> to vector<32x128xf32>
    %636 = arith.subf %621, %635 : vector<32x128xf32>
    %cst_188 = arith.constant 9.99999974E-6 : f32
    %637 = vector.broadcast %cst_188 : f32 to vector<32x1xf32>
    %638 = arith.addf %634, %637 : vector<32x1xf32>
    %639 = math.rsqrt %638 : vector<32x1xf32>
    %640 = vector.broadcast %639 : vector<32x1xf32> to vector<32x128xf32>
    %641 = arith.mulf %636, %640 : vector<32x128xf32>
    %642 = vector.broadcast %622 : vector<1x128xf32> to vector<32x128xf32>
    %643 = arith.mulf %641, %642 : vector<32x128xf32>
    %644 = vector.broadcast %623 : vector<1x128xf32> to vector<32x128xf32>
    %645 = arith.addf %643, %644 : vector<32x128xf32>
    %646 = arith.truncf %645 : vector<32x128xf32> to vector<32x128xbf16>
    %647 = arith.truncf %37 : vector<32x128xf32> to vector<32x128xbf16>
    %648 = arith.truncf %37 : vector<32x128xf32> to vector<32x128xbf16>
    %c1536 = arith.constant 1536 : index
    %c0_189 = arith.constant 0 : index
    %649 = vector.load %arg2[%c1536, %c0_189] : memref<3072x128xbf16, #tpu.memory_space<vmem>>, vector<128x128xbf16>
    %cst_190 = arith.constant dense<0.000000e+00> : vector<32x128xf32>
    %650 = tpu.matmul %646, %649, %cst_190 {dimension_numbers = #tpu.dot_dimension_numbers<[1], [0], [0], [1], [0, 0, 1, 1], [], []>} : vector<32x128xbf16>, vector<128x128xbf16>, vector<32x128xf32> -> vector<32x128xf32>
    %c12 = arith.constant 12 : index
    %c0_191 = arith.constant 0 : index
    %651 = vector.load %arg3[%c12, %c0_191] : memref<72x128xf32, #tpu.memory_space<vmem>>, vector<1x128xf32>
    %652 = vector.broadcast %651 : vector<1x128xf32> to vector<32x128xf32>
    %653 = arith.addf %650, %652 : vector<32x128xf32>
    %c1664 = arith.constant 1664 : index
    %c0_192 = arith.constant 0 : index
    %654 = vector.load %arg2[%c1664, %c0_192] : memref<3072x128xbf16, #tpu.memory_space<vmem>>, vector<128x128xbf16>
    %cst_193 = arith.constant dense<0.000000e+00> : vector<32x128xf32>
    %655 = tpu.matmul %647, %654, %cst_193 {dimension_numbers = #tpu.dot_dimension_numbers<[1], [0], [0], [1], [0, 0, 1, 1], [], []>} : vector<32x128xbf16>, vector<128x128xbf16>, vector<32x128xf32> -> vector<32x128xf32>
    %c13 = arith.constant 13 : index
    %c0_194 = arith.constant 0 : index
    %656 = vector.load %arg3[%c13, %c0_194] : memref<72x128xf32, #tpu.memory_space<vmem>>, vector<1x128xf32>
    %657 = vector.broadcast %656 : vector<1x128xf32> to vector<32x128xf32>
    %658 = arith.addf %655, %657 : vector<32x128xf32>
    %c1792 = arith.constant 1792 : index
    %c0_195 = arith.constant 0 : index
    %659 = vector.load %arg2[%c1792, %c0_195] : memref<3072x128xbf16, #tpu.memory_space<vmem>>, vector<128x128xbf16>
    %cst_196 = arith.constant dense<0.000000e+00> : vector<32x128xf32>
    %660 = tpu.matmul %648, %659, %cst_196 {dimension_numbers = #tpu.dot_dimension_numbers<[1], [0], [0], [1], [0, 0, 1, 1], [], []>} : vector<32x128xbf16>, vector<128x128xbf16>, vector<32x128xf32> -> vector<32x128xf32>
    %c14 = arith.constant 14 : index
    %c0_197 = arith.constant 0 : index
    %661 = vector.load %arg3[%c14, %c0_197] : memref<72x128xf32, #tpu.memory_space<vmem>>, vector<1x128xf32>
    %662 = vector.broadcast %661 : vector<1x128xf32> to vector<32x128xf32>
    %663 = arith.addf %660, %662 : vector<32x128xf32>
    %664 = vector.extract_strided_slice %653 {offsets = [0, 0], sizes = [32, 32], strides = [1, 1]} : vector<32x128xf32> to vector<32x32xf32>
    %665 = vector.extract_strided_slice %658 {offsets = [0, 0], sizes = [32, 32], strides = [1, 1]} : vector<32x128xf32> to vector<32x32xf32>
    %666 = vector.extract_strided_slice %663 {offsets = [0, 0], sizes = [32, 32], strides = [1, 1]} : vector<32x128xf32> to vector<32x32xf32>
    %667 = vector.extract_strided_slice %664 {offsets = [0, 0], sizes = [16, 32], strides = [1, 1]} : vector<32x32xf32> to vector<16x32xf32>
    %668 = vector.extract_strided_slice %665 {offsets = [0, 0], sizes = [16, 32], strides = [1, 1]} : vector<32x32xf32> to vector<16x32xf32>
    %cst_198 = arith.constant dense<0.000000e+00> : vector<16x16xf32>
    %669 = tpu.matmul %667, %668, %cst_198 {dimension_numbers = #tpu.dot_dimension_numbers<[1], [1], [0], [0], [0, 0, 1, 0], [], []>} : vector<16x32xf32>, vector<16x32xf32>, vector<16x16xf32> -> vector<16x16xf32>
    %cst_199 = arith.constant dense<0xFF800000> : vector<16xf32>
    %670 = vector.multi_reduction <maximumf>, %669, %cst_199 [1] : vector<16x16xf32> to vector<16xf32>
    %671 = vector.shape_cast %670 : vector<16xf32> to vector<16x1xf32>
    %672 = vector.broadcast %671 : vector<16x1xf32> to vector<16x16xf32>
    %673 = arith.subf %669, %672 : vector<16x16xf32>
    %674 = math.exp %673 : vector<16x16xf32>
    %cst_200 = arith.constant dense<0.000000e+00> : vector<16xf32>
    %675 = vector.multi_reduction <add>, %674, %cst_200 [1] : vector<16x16xf32> to vector<16xf32>
    %676 = vector.shape_cast %675 : vector<16xf32> to vector<16x1xf32>
    %677 = tpu.reciprocal %676 {approx = true} : vector<16x1xf32> -> vector<16x1xf32>
    %678 = vector.broadcast %677 : vector<16x1xf32> to vector<16x16xf32>
    %679 = arith.mulf %674, %678 : vector<16x16xf32>
    %680 = vector.extract_strided_slice %666 {offsets = [0, 0], sizes = [16, 32], strides = [1, 1]} : vector<32x32xf32> to vector<16x32xf32>
    %cst_201 = arith.constant dense<0.000000e+00> : vector<16x32xf32>
    %681 = tpu.matmul %679, %680, %cst_201 {dimension_numbers = #tpu.dot_dimension_numbers<[1], [0], [0], [1], [0, 0, 1, 1], [], []>} : vector<16x16xf32>, vector<16x32xf32>, vector<16x32xf32> -> vector<16x32xf32>
    %682 = vector.extract_strided_slice %664 {offsets = [16, 0], sizes = [16, 32], strides = [1, 1]} : vector<32x32xf32> to vector<16x32xf32>
    %683 = vector.extract_strided_slice %665 {offsets = [16, 0], sizes = [16, 32], strides = [1, 1]} : vector<32x32xf32> to vector<16x32xf32>
    %cst_202 = arith.constant dense<0.000000e+00> : vector<16x16xf32>
    %684 = tpu.matmul %682, %683, %cst_202 {dimension_numbers = #tpu.dot_dimension_numbers<[1], [1], [0], [0], [0, 0, 1, 0], [], []>} : vector<16x32xf32>, vector<16x32xf32>, vector<16x16xf32> -> vector<16x16xf32>
    %cst_203 = arith.constant dense<0xFF800000> : vector<16xf32>
    %685 = vector.multi_reduction <maximumf>, %684, %cst_203 [1] : vector<16x16xf32> to vector<16xf32>
    %686 = vector.shape_cast %685 : vector<16xf32> to vector<16x1xf32>
    %687 = vector.broadcast %686 : vector<16x1xf32> to vector<16x16xf32>
    %688 = arith.subf %684, %687 : vector<16x16xf32>
    %689 = math.exp %688 : vector<16x16xf32>
    %cst_204 = arith.constant dense<0.000000e+00> : vector<16xf32>
    %690 = vector.multi_reduction <add>, %689, %cst_204 [1] : vector<16x16xf32> to vector<16xf32>
    %691 = vector.shape_cast %690 : vector<16xf32> to vector<16x1xf32>
    %692 = tpu.reciprocal %691 {approx = true} : vector<16x1xf32> -> vector<16x1xf32>
    %693 = vector.broadcast %692 : vector<16x1xf32> to vector<16x16xf32>
    %694 = arith.mulf %689, %693 : vector<16x16xf32>
    %695 = vector.extract_strided_slice %666 {offsets = [16, 0], sizes = [16, 32], strides = [1, 1]} : vector<32x32xf32> to vector<16x32xf32>
    %cst_205 = arith.constant dense<0.000000e+00> : vector<16x32xf32>
    %696 = tpu.matmul %694, %695, %cst_205 {dimension_numbers = #tpu.dot_dimension_numbers<[1], [0], [0], [1], [0, 0, 1, 1], [], []>} : vector<16x16xf32>, vector<16x32xf32>, vector<16x32xf32> -> vector<16x32xf32>
    %697 = tpu.concatenate %681, %696 in 0 : vector<16x32xf32>, vector<16x32xf32> -> vector<32x32xf32>
    %698 = vector.extract_strided_slice %653 {offsets = [0, 32], sizes = [32, 32], strides = [1, 1]} : vector<32x128xf32> to vector<32x32xf32>
    %699 = vector.extract_strided_slice %658 {offsets = [0, 32], sizes = [32, 32], strides = [1, 1]} : vector<32x128xf32> to vector<32x32xf32>
    %700 = vector.extract_strided_slice %663 {offsets = [0, 32], sizes = [32, 32], strides = [1, 1]} : vector<32x128xf32> to vector<32x32xf32>
    %701 = vector.extract_strided_slice %698 {offsets = [0, 0], sizes = [16, 32], strides = [1, 1]} : vector<32x32xf32> to vector<16x32xf32>
    %702 = vector.extract_strided_slice %699 {offsets = [0, 0], sizes = [16, 32], strides = [1, 1]} : vector<32x32xf32> to vector<16x32xf32>
    %cst_206 = arith.constant dense<0.000000e+00> : vector<16x16xf32>
    %703 = tpu.matmul %701, %702, %cst_206 {dimension_numbers = #tpu.dot_dimension_numbers<[1], [1], [0], [0], [0, 0, 1, 0], [], []>} : vector<16x32xf32>, vector<16x32xf32>, vector<16x16xf32> -> vector<16x16xf32>
    %cst_207 = arith.constant dense<0xFF800000> : vector<16xf32>
    %704 = vector.multi_reduction <maximumf>, %703, %cst_207 [1] : vector<16x16xf32> to vector<16xf32>
    %705 = vector.shape_cast %704 : vector<16xf32> to vector<16x1xf32>
    %706 = vector.broadcast %705 : vector<16x1xf32> to vector<16x16xf32>
    %707 = arith.subf %703, %706 : vector<16x16xf32>
    %708 = math.exp %707 : vector<16x16xf32>
    %cst_208 = arith.constant dense<0.000000e+00> : vector<16xf32>
    %709 = vector.multi_reduction <add>, %708, %cst_208 [1] : vector<16x16xf32> to vector<16xf32>
    %710 = vector.shape_cast %709 : vector<16xf32> to vector<16x1xf32>
    %711 = tpu.reciprocal %710 {approx = true} : vector<16x1xf32> -> vector<16x1xf32>
    %712 = vector.broadcast %711 : vector<16x1xf32> to vector<16x16xf32>
    %713 = arith.mulf %708, %712 : vector<16x16xf32>
    %714 = vector.extract_strided_slice %700 {offsets = [0, 0], sizes = [16, 32], strides = [1, 1]} : vector<32x32xf32> to vector<16x32xf32>
    %cst_209 = arith.constant dense<0.000000e+00> : vector<16x32xf32>
    %715 = tpu.matmul %713, %714, %cst_209 {dimension_numbers = #tpu.dot_dimension_numbers<[1], [0], [0], [1], [0, 0, 1, 1], [], []>} : vector<16x16xf32>, vector<16x32xf32>, vector<16x32xf32> -> vector<16x32xf32>
    %716 = vector.extract_strided_slice %698 {offsets = [16, 0], sizes = [16, 32], strides = [1, 1]} : vector<32x32xf32> to vector<16x32xf32>
    %717 = vector.extract_strided_slice %699 {offsets = [16, 0], sizes = [16, 32], strides = [1, 1]} : vector<32x32xf32> to vector<16x32xf32>
    %cst_210 = arith.constant dense<0.000000e+00> : vector<16x16xf32>
    %718 = tpu.matmul %716, %717, %cst_210 {dimension_numbers = #tpu.dot_dimension_numbers<[1], [1], [0], [0], [0, 0, 1, 0], [], []>} : vector<16x32xf32>, vector<16x32xf32>, vector<16x16xf32> -> vector<16x16xf32>
    %cst_211 = arith.constant dense<0xFF800000> : vector<16xf32>
    %719 = vector.multi_reduction <maximumf>, %718, %cst_211 [1] : vector<16x16xf32> to vector<16xf32>
    %720 = vector.shape_cast %719 : vector<16xf32> to vector<16x1xf32>
    %721 = vector.broadcast %720 : vector<16x1xf32> to vector<16x16xf32>
    %722 = arith.subf %718, %721 : vector<16x16xf32>
    %723 = math.exp %722 : vector<16x16xf32>
    %cst_212 = arith.constant dense<0.000000e+00> : vector<16xf32>
    %724 = vector.multi_reduction <add>, %723, %cst_212 [1] : vector<16x16xf32> to vector<16xf32>
    %725 = vector.shape_cast %724 : vector<16xf32> to vector<16x1xf32>
    %726 = tpu.reciprocal %725 {approx = true} : vector<16x1xf32> -> vector<16x1xf32>
    %727 = vector.broadcast %726 : vector<16x1xf32> to vector<16x16xf32>
    %728 = arith.mulf %723, %727 : vector<16x16xf32>
    %729 = vector.extract_strided_slice %700 {offsets = [16, 0], sizes = [16, 32], strides = [1, 1]} : vector<32x32xf32> to vector<16x32xf32>
    %cst_213 = arith.constant dense<0.000000e+00> : vector<16x32xf32>
    %730 = tpu.matmul %728, %729, %cst_213 {dimension_numbers = #tpu.dot_dimension_numbers<[1], [0], [0], [1], [0, 0, 1, 1], [], []>} : vector<16x16xf32>, vector<16x32xf32>, vector<16x32xf32> -> vector<16x32xf32>
    %731 = tpu.concatenate %715, %730 in 0 : vector<16x32xf32>, vector<16x32xf32> -> vector<32x32xf32>
    %732 = vector.extract_strided_slice %653 {offsets = [0, 64], sizes = [32, 32], strides = [1, 1]} : vector<32x128xf32> to vector<32x32xf32>
    %733 = vector.extract_strided_slice %658 {offsets = [0, 64], sizes = [32, 32], strides = [1, 1]} : vector<32x128xf32> to vector<32x32xf32>
    %734 = vector.extract_strided_slice %663 {offsets = [0, 64], sizes = [32, 32], strides = [1, 1]} : vector<32x128xf32> to vector<32x32xf32>
    %735 = vector.extract_strided_slice %732 {offsets = [0, 0], sizes = [16, 32], strides = [1, 1]} : vector<32x32xf32> to vector<16x32xf32>
    %736 = vector.extract_strided_slice %733 {offsets = [0, 0], sizes = [16, 32], strides = [1, 1]} : vector<32x32xf32> to vector<16x32xf32>
    %cst_214 = arith.constant dense<0.000000e+00> : vector<16x16xf32>
    %737 = tpu.matmul %735, %736, %cst_214 {dimension_numbers = #tpu.dot_dimension_numbers<[1], [1], [0], [0], [0, 0, 1, 0], [], []>} : vector<16x32xf32>, vector<16x32xf32>, vector<16x16xf32> -> vector<16x16xf32>
    %cst_215 = arith.constant dense<0xFF800000> : vector<16xf32>
    %738 = vector.multi_reduction <maximumf>, %737, %cst_215 [1] : vector<16x16xf32> to vector<16xf32>
    %739 = vector.shape_cast %738 : vector<16xf32> to vector<16x1xf32>
    %740 = vector.broadcast %739 : vector<16x1xf32> to vector<16x16xf32>
    %741 = arith.subf %737, %740 : vector<16x16xf32>
    %742 = math.exp %741 : vector<16x16xf32>
    %cst_216 = arith.constant dense<0.000000e+00> : vector<16xf32>
    %743 = vector.multi_reduction <add>, %742, %cst_216 [1] : vector<16x16xf32> to vector<16xf32>
    %744 = vector.shape_cast %743 : vector<16xf32> to vector<16x1xf32>
    %745 = tpu.reciprocal %744 {approx = true} : vector<16x1xf32> -> vector<16x1xf32>
    %746 = vector.broadcast %745 : vector<16x1xf32> to vector<16x16xf32>
    %747 = arith.mulf %742, %746 : vector<16x16xf32>
    %748 = vector.extract_strided_slice %734 {offsets = [0, 0], sizes = [16, 32], strides = [1, 1]} : vector<32x32xf32> to vector<16x32xf32>
    %cst_217 = arith.constant dense<0.000000e+00> : vector<16x32xf32>
    %749 = tpu.matmul %747, %748, %cst_217 {dimension_numbers = #tpu.dot_dimension_numbers<[1], [0], [0], [1], [0, 0, 1, 1], [], []>} : vector<16x16xf32>, vector<16x32xf32>, vector<16x32xf32> -> vector<16x32xf32>
    %750 = vector.extract_strided_slice %732 {offsets = [16, 0], sizes = [16, 32], strides = [1, 1]} : vector<32x32xf32> to vector<16x32xf32>
    %751 = vector.extract_strided_slice %733 {offsets = [16, 0], sizes = [16, 32], strides = [1, 1]} : vector<32x32xf32> to vector<16x32xf32>
    %cst_218 = arith.constant dense<0.000000e+00> : vector<16x16xf32>
    %752 = tpu.matmul %750, %751, %cst_218 {dimension_numbers = #tpu.dot_dimension_numbers<[1], [1], [0], [0], [0, 0, 1, 0], [], []>} : vector<16x32xf32>, vector<16x32xf32>, vector<16x16xf32> -> vector<16x16xf32>
    %cst_219 = arith.constant dense<0xFF800000> : vector<16xf32>
    %753 = vector.multi_reduction <maximumf>, %752, %cst_219 [1] : vector<16x16xf32> to vector<16xf32>
    %754 = vector.shape_cast %753 : vector<16xf32> to vector<16x1xf32>
    %755 = vector.broadcast %754 : vector<16x1xf32> to vector<16x16xf32>
    %756 = arith.subf %752, %755 : vector<16x16xf32>
    %757 = math.exp %756 : vector<16x16xf32>
    %cst_220 = arith.constant dense<0.000000e+00> : vector<16xf32>
    %758 = vector.multi_reduction <add>, %757, %cst_220 [1] : vector<16x16xf32> to vector<16xf32>
    %759 = vector.shape_cast %758 : vector<16xf32> to vector<16x1xf32>
    %760 = tpu.reciprocal %759 {approx = true} : vector<16x1xf32> -> vector<16x1xf32>
    %761 = vector.broadcast %760 : vector<16x1xf32> to vector<16x16xf32>
    %762 = arith.mulf %757, %761 : vector<16x16xf32>
    %763 = vector.extract_strided_slice %734 {offsets = [16, 0], sizes = [16, 32], strides = [1, 1]} : vector<32x32xf32> to vector<16x32xf32>
    %cst_221 = arith.constant dense<0.000000e+00> : vector<16x32xf32>
    %764 = tpu.matmul %762, %763, %cst_221 {dimension_numbers = #tpu.dot_dimension_numbers<[1], [0], [0], [1], [0, 0, 1, 1], [], []>} : vector<16x16xf32>, vector<16x32xf32>, vector<16x32xf32> -> vector<16x32xf32>
    %765 = tpu.concatenate %749, %764 in 0 : vector<16x32xf32>, vector<16x32xf32> -> vector<32x32xf32>
    %766 = vector.extract_strided_slice %653 {offsets = [0, 96], sizes = [32, 32], strides = [1, 1]} : vector<32x128xf32> to vector<32x32xf32>
    %767 = vector.extract_strided_slice %658 {offsets = [0, 96], sizes = [32, 32], strides = [1, 1]} : vector<32x128xf32> to vector<32x32xf32>
    %768 = vector.extract_strided_slice %663 {offsets = [0, 96], sizes = [32, 32], strides = [1, 1]} : vector<32x128xf32> to vector<32x32xf32>
    %769 = vector.extract_strided_slice %766 {offsets = [0, 0], sizes = [16, 32], strides = [1, 1]} : vector<32x32xf32> to vector<16x32xf32>
    %770 = vector.extract_strided_slice %767 {offsets = [0, 0], sizes = [16, 32], strides = [1, 1]} : vector<32x32xf32> to vector<16x32xf32>
    %cst_222 = arith.constant dense<0.000000e+00> : vector<16x16xf32>
    %771 = tpu.matmul %769, %770, %cst_222 {dimension_numbers = #tpu.dot_dimension_numbers<[1], [1], [0], [0], [0, 0, 1, 0], [], []>} : vector<16x32xf32>, vector<16x32xf32>, vector<16x16xf32> -> vector<16x16xf32>
    %cst_223 = arith.constant dense<0xFF800000> : vector<16xf32>
    %772 = vector.multi_reduction <maximumf>, %771, %cst_223 [1] : vector<16x16xf32> to vector<16xf32>
    %773 = vector.shape_cast %772 : vector<16xf32> to vector<16x1xf32>
    %774 = vector.broadcast %773 : vector<16x1xf32> to vector<16x16xf32>
    %775 = arith.subf %771, %774 : vector<16x16xf32>
    %776 = math.exp %775 : vector<16x16xf32>
    %cst_224 = arith.constant dense<0.000000e+00> : vector<16xf32>
    %777 = vector.multi_reduction <add>, %776, %cst_224 [1] : vector<16x16xf32> to vector<16xf32>
    %778 = vector.shape_cast %777 : vector<16xf32> to vector<16x1xf32>
    %779 = tpu.reciprocal %778 {approx = true} : vector<16x1xf32> -> vector<16x1xf32>
    %780 = vector.broadcast %779 : vector<16x1xf32> to vector<16x16xf32>
    %781 = arith.mulf %776, %780 : vector<16x16xf32>
    %782 = vector.extract_strided_slice %768 {offsets = [0, 0], sizes = [16, 32], strides = [1, 1]} : vector<32x32xf32> to vector<16x32xf32>
    %cst_225 = arith.constant dense<0.000000e+00> : vector<16x32xf32>
    %783 = tpu.matmul %781, %782, %cst_225 {dimension_numbers = #tpu.dot_dimension_numbers<[1], [0], [0], [1], [0, 0, 1, 1], [], []>} : vector<16x16xf32>, vector<16x32xf32>, vector<16x32xf32> -> vector<16x32xf32>
    %784 = vector.extract_strided_slice %766 {offsets = [16, 0], sizes = [16, 32], strides = [1, 1]} : vector<32x32xf32> to vector<16x32xf32>
    %785 = vector.extract_strided_slice %767 {offsets = [16, 0], sizes = [16, 32], strides = [1, 1]} : vector<32x32xf32> to vector<16x32xf32>
    %cst_226 = arith.constant dense<0.000000e+00> : vector<16x16xf32>
    %786 = tpu.matmul %784, %785, %cst_226 {dimension_numbers = #tpu.dot_dimension_numbers<[1], [1], [0], [0], [0, 0, 1, 0], [], []>} : vector<16x32xf32>, vector<16x32xf32>, vector<16x16xf32> -> vector<16x16xf32>
    %cst_227 = arith.constant dense<0xFF800000> : vector<16xf32>
    %787 = vector.multi_reduction <maximumf>, %786, %cst_227 [1] : vector<16x16xf32> to vector<16xf32>
    %788 = vector.shape_cast %787 : vector<16xf32> to vector<16x1xf32>
    %789 = vector.broadcast %788 : vector<16x1xf32> to vector<16x16xf32>
    %790 = arith.subf %786, %789 : vector<16x16xf32>
    %791 = math.exp %790 : vector<16x16xf32>
    %cst_228 = arith.constant dense<0.000000e+00> : vector<16xf32>
    %792 = vector.multi_reduction <add>, %791, %cst_228 [1] : vector<16x16xf32> to vector<16xf32>
    %793 = vector.shape_cast %792 : vector<16xf32> to vector<16x1xf32>
    %794 = tpu.reciprocal %793 {approx = true} : vector<16x1xf32> -> vector<16x1xf32>
    %795 = vector.broadcast %794 : vector<16x1xf32> to vector<16x16xf32>
    %796 = arith.mulf %791, %795 : vector<16x16xf32>
    %797 = vector.extract_strided_slice %768 {offsets = [16, 0], sizes = [16, 32], strides = [1, 1]} : vector<32x32xf32> to vector<16x32xf32>
    %cst_229 = arith.constant dense<0.000000e+00> : vector<16x32xf32>
    %798 = tpu.matmul %796, %797, %cst_229 {dimension_numbers = #tpu.dot_dimension_numbers<[1], [0], [0], [1], [0, 0, 1, 1], [], []>} : vector<16x16xf32>, vector<16x32xf32>, vector<16x32xf32> -> vector<16x32xf32>
    %799 = tpu.concatenate %783, %798 in 0 : vector<16x32xf32>, vector<16x32xf32> -> vector<32x32xf32>
    %800 = tpu.concatenate %697, %731, %765, %799 in 1 : vector<32x32xf32>, vector<32x32xf32>, vector<32x32xf32>, vector<32x32xf32> -> vector<32x128xf32>
    %801 = arith.truncf %800 : vector<32x128xf32> to vector<32x128xbf16>
    %c1920 = arith.constant 1920 : index
    %c0_230 = arith.constant 0 : index
    %802 = vector.load %arg2[%c1920, %c0_230] : memref<3072x128xbf16, #tpu.memory_space<vmem>>, vector<128x128xbf16>
    %cst_231 = arith.constant dense<0.000000e+00> : vector<32x128xf32>
    %803 = tpu.matmul %801, %802, %cst_231 {dimension_numbers = #tpu.dot_dimension_numbers<[1], [0], [0], [1], [0, 0, 1, 1], [], []>} : vector<32x128xbf16>, vector<128x128xbf16>, vector<32x128xf32> -> vector<32x128xf32>
    %c15 = arith.constant 15 : index
    %c0_232 = arith.constant 0 : index
    %804 = vector.load %arg3[%c15, %c0_232] : memref<72x128xf32, #tpu.memory_space<vmem>>, vector<1x128xf32>
    %805 = vector.broadcast %804 : vector<1x128xf32> to vector<32x128xf32>
    %806 = arith.addf %803, %805 : vector<32x128xf32>
    %807 = arith.addf %645, %806 : vector<32x128xf32>
    %c30 = arith.constant 30 : index
    %c0_233 = arith.constant 0 : index
    %808 = vector.load %arg3[%c30, %c0_233] : memref<72x128xf32, #tpu.memory_space<vmem>>, vector<1x128xf32>
    %c31 = arith.constant 31 : index
    %c0_234 = arith.constant 0 : index
    %809 = vector.load %arg3[%c31, %c0_234] : memref<72x128xf32, #tpu.memory_space<vmem>>, vector<1x128xf32>
    %cst_235 = arith.constant dense<0.000000e+00> : vector<32xf32>
    %810 = vector.multi_reduction <add>, %807, %cst_235 [1] : vector<32x128xf32> to vector<32xf32>
    %811 = vector.shape_cast %810 : vector<32xf32> to vector<32x1xf32>
    %cst_236 = arith.constant 1.280000e+02 : f32
    %812 = vector.broadcast %cst_236 : f32 to vector<32x1xf32>
    %813 = arith.divf %811, %812 : vector<32x1xf32>
    %814 = vector.broadcast %813 : vector<32x1xf32> to vector<32x128xf32>
    %815 = arith.subf %807, %814 : vector<32x128xf32>
    %816 = arith.mulf %815, %815 : vector<32x128xf32>
    %cst_237 = arith.constant dense<0.000000e+00> : vector<32xf32>
    %817 = vector.multi_reduction <add>, %816, %cst_237 [1] : vector<32x128xf32> to vector<32xf32>
    %818 = vector.shape_cast %817 : vector<32xf32> to vector<32x1xf32>
    %cst_238 = arith.constant 1.280000e+02 : f32
    %819 = vector.broadcast %cst_238 : f32 to vector<32x1xf32>
    %820 = arith.divf %818, %819 : vector<32x1xf32>
    %821 = vector.broadcast %813 : vector<32x1xf32> to vector<32x128xf32>
    %822 = arith.subf %807, %821 : vector<32x128xf32>
    %cst_239 = arith.constant 9.99999974E-6 : f32
    %823 = vector.broadcast %cst_239 : f32 to vector<32x1xf32>
    %824 = arith.addf %820, %823 : vector<32x1xf32>
    %825 = math.rsqrt %824 : vector<32x1xf32>
    %826 = vector.broadcast %825 : vector<32x1xf32> to vector<32x128xf32>
    %827 = arith.mulf %822, %826 : vector<32x128xf32>
    %828 = vector.broadcast %808 : vector<1x128xf32> to vector<32x128xf32>
    %829 = arith.mulf %827, %828 : vector<32x128xf32>
    %830 = vector.broadcast %809 : vector<1x128xf32> to vector<32x128xf32>
    %831 = arith.addf %829, %830 : vector<32x128xf32>
    %832 = arith.truncf %831 : vector<32x128xf32> to vector<32x128xbf16>
    %c2560 = arith.constant 2560 : index
    %c0_240 = arith.constant 0 : index
    %833 = vector.load %arg2[%c2560, %c0_240] : memref<3072x128xbf16, #tpu.memory_space<vmem>>, vector<128x128xbf16>
    %cst_241 = arith.constant dense<0.000000e+00> : vector<32x128xf32>
    %834 = tpu.matmul %832, %833, %cst_241 {dimension_numbers = #tpu.dot_dimension_numbers<[1], [0], [0], [1], [0, 0, 1, 1], [], []>} : vector<32x128xbf16>, vector<128x128xbf16>, vector<32x128xf32> -> vector<32x128xf32>
    %c19 = arith.constant 19 : index
    %c0_242 = arith.constant 0 : index
    %835 = vector.load %arg3[%c19, %c0_242] : memref<72x128xf32, #tpu.memory_space<vmem>>, vector<1x128xf32>
    %836 = vector.broadcast %835 : vector<1x128xf32> to vector<32x128xf32>
    %837 = arith.addf %834, %836 : vector<32x128xf32>
    %cst_243 = arith.constant 0.000000e+00 : f32
    %838 = vector.broadcast %cst_243 : f32 to vector<32x128xf32>
    %839 = arith.maximumf %837, %838 : vector<32x128xf32>
    %c2688 = arith.constant 2688 : index
    %c0_244 = arith.constant 0 : index
    %840 = vector.load %arg2[%c2688, %c0_244] : memref<3072x128xbf16, #tpu.memory_space<vmem>>, vector<128x128xbf16>
    %cst_245 = arith.constant dense<0.000000e+00> : vector<32x128xf32>
    %841 = tpu.matmul %832, %840, %cst_245 {dimension_numbers = #tpu.dot_dimension_numbers<[1], [0], [0], [1], [0, 0, 1, 1], [], []>} : vector<32x128xbf16>, vector<128x128xbf16>, vector<32x128xf32> -> vector<32x128xf32>
    %c20 = arith.constant 20 : index
    %c0_246 = arith.constant 0 : index
    %842 = vector.load %arg3[%c20, %c0_246] : memref<72x128xf32, #tpu.memory_space<vmem>>, vector<1x128xf32>
    %843 = vector.broadcast %842 : vector<1x128xf32> to vector<32x128xf32>
    %844 = arith.addf %841, %843 : vector<32x128xf32>
    %cst_247 = arith.constant 0.000000e+00 : f32
    %845 = vector.broadcast %cst_247 : f32 to vector<32x128xf32>
    %846 = arith.maximumf %844, %845 : vector<32x128xf32>
    %847 = arith.truncf %839 : vector<32x128xf32> to vector<32x128xbf16>
    %c2816 = arith.constant 2816 : index
    %c0_248 = arith.constant 0 : index
    %848 = vector.load %arg2[%c2816, %c0_248] : memref<3072x128xbf16, #tpu.memory_space<vmem>>, vector<128x128xbf16>
    %cst_249 = arith.constant dense<0.000000e+00> : vector<32x128xf32>
    %849 = tpu.matmul %847, %848, %cst_249 {dimension_numbers = #tpu.dot_dimension_numbers<[1], [0], [0], [1], [0, 0, 1, 1], [], []>} : vector<32x128xbf16>, vector<128x128xbf16>, vector<32x128xf32> -> vector<32x128xf32>
    %850 = arith.truncf %846 : vector<32x128xf32> to vector<32x128xbf16>
    %c2944 = arith.constant 2944 : index
    %c0_250 = arith.constant 0 : index
    %851 = vector.load %arg2[%c2944, %c0_250] : memref<3072x128xbf16, #tpu.memory_space<vmem>>, vector<128x128xbf16>
    %cst_251 = arith.constant dense<0.000000e+00> : vector<32x128xf32>
    %852 = tpu.matmul %850, %851, %cst_251 {dimension_numbers = #tpu.dot_dimension_numbers<[1], [0], [0], [1], [0, 0, 1, 1], [], []>} : vector<32x128xbf16>, vector<128x128xbf16>, vector<32x128xf32> -> vector<32x128xf32>
    %853 = arith.addf %849, %852 : vector<32x128xf32>
    %c21 = arith.constant 21 : index
    %c0_252 = arith.constant 0 : index
    %854 = vector.load %arg3[%c21, %c0_252] : memref<72x128xf32, #tpu.memory_space<vmem>>, vector<1x128xf32>
    %855 = vector.broadcast %854 : vector<1x128xf32> to vector<32x128xf32>
    %856 = arith.addf %853, %855 : vector<32x128xf32>
    %857 = arith.addf %831, %856 : vector<32x128xf32>
    %c32 = arith.constant 32 : index
    %c0_253 = arith.constant 0 : index
    %858 = vector.load %arg3[%c32, %c0_253] : memref<72x128xf32, #tpu.memory_space<vmem>>, vector<1x128xf32>
    %c33 = arith.constant 33 : index
    %c0_254 = arith.constant 0 : index
    %859 = vector.load %arg3[%c33, %c0_254] : memref<72x128xf32, #tpu.memory_space<vmem>>, vector<1x128xf32>
    %cst_255 = arith.constant dense<0.000000e+00> : vector<32xf32>
    %860 = vector.multi_reduction <add>, %857, %cst_255 [1] : vector<32x128xf32> to vector<32xf32>
    %861 = vector.shape_cast %860 : vector<32xf32> to vector<32x1xf32>
    %cst_256 = arith.constant 1.280000e+02 : f32
    %862 = vector.broadcast %cst_256 : f32 to vector<32x1xf32>
    %863 = arith.divf %861, %862 : vector<32x1xf32>
    %864 = vector.broadcast %863 : vector<32x1xf32> to vector<32x128xf32>
    %865 = arith.subf %857, %864 : vector<32x128xf32>
    %866 = arith.mulf %865, %865 : vector<32x128xf32>
    %cst_257 = arith.constant dense<0.000000e+00> : vector<32xf32>
    %867 = vector.multi_reduction <add>, %866, %cst_257 [1] : vector<32x128xf32> to vector<32xf32>
    %868 = vector.shape_cast %867 : vector<32xf32> to vector<32x1xf32>
    %cst_258 = arith.constant 1.280000e+02 : f32
    %869 = vector.broadcast %cst_258 : f32 to vector<32x1xf32>
    %870 = arith.divf %868, %869 : vector<32x1xf32>
    %871 = vector.broadcast %863 : vector<32x1xf32> to vector<32x128xf32>
    %872 = arith.subf %857, %871 : vector<32x128xf32>
    %cst_259 = arith.constant 9.99999974E-6 : f32
    %873 = vector.broadcast %cst_259 : f32 to vector<32x1xf32>
    %874 = arith.addf %870, %873 : vector<32x1xf32>
    %875 = math.rsqrt %874 : vector<32x1xf32>
    %876 = vector.broadcast %875 : vector<32x1xf32> to vector<32x128xf32>
    %877 = arith.mulf %872, %876 : vector<32x128xf32>
    %878 = vector.broadcast %858 : vector<1x128xf32> to vector<32x128xf32>
    %879 = arith.mulf %877, %878 : vector<32x128xf32>
    %880 = vector.broadcast %859 : vector<1x128xf32> to vector<32x128xf32>
    %881 = arith.addf %879, %880 : vector<32x128xf32>
    %882 = vector.extract_strided_slice %881 {offsets = [0, 0], sizes = [1, 128], strides = [1, 1]} : vector<32x128xf32> to vector<1x128xf32>
    %883 = vector.extract_strided_slice %881 {offsets = [16, 0], sizes = [1, 128], strides = [1, 1]} : vector<32x128xf32> to vector<1x128xf32>
    %884 = tpu.concatenate %882, %883 in 0 : vector<1x128xf32>, vector<1x128xf32> -> vector<2x128xf32>
    %c0_260 = arith.constant 0 : index
    %c0_261 = arith.constant 0 : index
    %885 = vector.load %arg4[%c0_260, %c0_261] : memref<136x256xf32, #tpu.memory_space<vmem>>, vector<128x256xf32>
    %cst_262 = arith.constant dense<0.000000e+00> : vector<2x256xf32>
    %886 = tpu.matmul %884, %885, %cst_262 {dimension_numbers = #tpu.dot_dimension_numbers<[1], [0], [0], [1], [0, 0, 1, 1], [], []>} : vector<2x128xf32>, vector<128x256xf32>, vector<2x256xf32> -> vector<2x256xf32>
    %c128_263 = arith.constant 128 : index
    %c0_264 = arith.constant 0 : index
    %887 = vector.load %arg4[%c128_263, %c0_264] : memref<136x256xf32, #tpu.memory_space<vmem>>, vector<1x256xf32>
    %888 = vector.broadcast %887 : vector<1x256xf32> to vector<2x256xf32>
    %889 = arith.addf %886, %888 : vector<2x256xf32>
    %890 = vector.extract_strided_slice %889 {offsets = [0, 0], sizes = [2, 8], strides = [1, 1]} : vector<2x256xf32> to vector<2x8xf32>
    %891 = vector.extract_strided_slice %889 {offsets = [0, 8], sizes = [2, 8], strides = [1, 1]} : vector<2x256xf32> to vector<2x8xf32>
    %892 = vector.extract_strided_slice %889 {offsets = [0, 16], sizes = [2, 8], strides = [1, 1]} : vector<2x256xf32> to vector<2x8xf32>
    %893 = vector.extract_strided_slice %889 {offsets = [0, 24], sizes = [2, 8], strides = [1, 1]} : vector<2x256xf32> to vector<2x8xf32>
    %894 = vector.extract_strided_slice %889 {offsets = [0, 32], sizes = [2, 8], strides = [1, 1]} : vector<2x256xf32> to vector<2x8xf32>
    %895 = vector.extract_strided_slice %889 {offsets = [0, 120], sizes = [2, 1], strides = [1, 1]} : vector<2x256xf32> to vector<2x1xf32>
    %896 = vector.extract_strided_slice %889 {offsets = [0, 128], sizes = [2, 1], strides = [1, 1]} : vector<2x256xf32> to vector<2x1xf32>
    %897 = vector.extract_strided_slice %889 {offsets = [0, 136], sizes = [2, 1], strides = [1, 1]} : vector<2x256xf32> to vector<2x1xf32>
    %898 = vector.extract_strided_slice %889 {offsets = [0, 144], sizes = [2, 1], strides = [1, 1]} : vector<2x256xf32> to vector<2x1xf32>
    %899 = vector.extract_strided_slice %889 {offsets = [0, 152], sizes = [2, 1], strides = [1, 1]} : vector<2x256xf32> to vector<2x1xf32>
    %900 = arith.maximumf %890, %891 : vector<2x8xf32>
    %901 = arith.maximumf %900, %892 : vector<2x8xf32>
    %902 = arith.maximumf %901, %893 : vector<2x8xf32>
    %903 = arith.maximumf %902, %894 : vector<2x8xf32>
    %904 = arith.subf %890, %903 : vector<2x8xf32>
    %905 = math.exp %904 : vector<2x8xf32>
    %906 = arith.subf %891, %903 : vector<2x8xf32>
    %907 = math.exp %906 : vector<2x8xf32>
    %908 = arith.subf %892, %903 : vector<2x8xf32>
    %909 = math.exp %908 : vector<2x8xf32>
    %910 = arith.subf %893, %903 : vector<2x8xf32>
    %911 = math.exp %910 : vector<2x8xf32>
    %912 = arith.subf %894, %903 : vector<2x8xf32>
    %913 = math.exp %912 : vector<2x8xf32>
    %914 = arith.addf %905, %907 : vector<2x8xf32>
    %915 = arith.addf %914, %909 : vector<2x8xf32>
    %916 = arith.addf %915, %911 : vector<2x8xf32>
    %917 = arith.addf %916, %913 : vector<2x8xf32>
    %cst_265 = arith.constant 1.000000e+00 : f32
    %918 = vector.broadcast %cst_265 : f32 to vector<2x8xf32>
    %919 = arith.divf %918, %917 : vector<2x8xf32>
    %920 = arith.mulf %905, %919 : vector<2x8xf32>
    %921 = arith.mulf %907, %919 : vector<2x8xf32>
    %922 = arith.mulf %909, %919 : vector<2x8xf32>
    %923 = arith.mulf %911, %919 : vector<2x8xf32>
    %924 = arith.mulf %913, %919 : vector<2x8xf32>
    %925 = arith.maximumf %895, %896 : vector<2x1xf32>
    %926 = arith.maximumf %925, %897 : vector<2x1xf32>
    %927 = arith.maximumf %926, %898 : vector<2x1xf32>
    %928 = arith.maximumf %927, %899 : vector<2x1xf32>
    %929 = arith.subf %895, %928 : vector<2x1xf32>
    %930 = math.exp %929 : vector<2x1xf32>
    %931 = arith.subf %896, %928 : vector<2x1xf32>
    %932 = math.exp %931 : vector<2x1xf32>
    %933 = arith.subf %897, %928 : vector<2x1xf32>
    %934 = math.exp %933 : vector<2x1xf32>
    %935 = arith.subf %898, %928 : vector<2x1xf32>
    %936 = math.exp %935 : vector<2x1xf32>
    %937 = arith.subf %899, %928 : vector<2x1xf32>
    %938 = math.exp %937 : vector<2x1xf32>
    %939 = arith.addf %930, %932 : vector<2x1xf32>
    %940 = arith.addf %939, %934 : vector<2x1xf32>
    %941 = arith.addf %940, %936 : vector<2x1xf32>
    %942 = arith.addf %941, %938 : vector<2x1xf32>
    %cst_266 = arith.constant 1.000000e+00 : f32
    %943 = vector.broadcast %cst_266 : f32 to vector<2x1xf32>
    %944 = arith.divf %943, %942 : vector<2x1xf32>
    %945 = arith.mulf %930, %944 : vector<2x1xf32>
    %946 = arith.mulf %932, %944 : vector<2x1xf32>
    %947 = arith.mulf %934, %944 : vector<2x1xf32>
    %948 = arith.mulf %936, %944 : vector<2x1xf32>
    %949 = arith.mulf %938, %944 : vector<2x1xf32>
    %950 = vector.extract_strided_slice %889 {offsets = [0, 80], sizes = [2, 40], strides = [1, 1]} : vector<2x256xf32> to vector<2x40xf32>
    %951 = math.exp %950 : vector<2x40xf32>
    %952 = vector.extract_strided_slice %889 {offsets = [0, 200], sizes = [2, 40], strides = [1, 1]} : vector<2x256xf32> to vector<2x40xf32>
    %953 = math.exp %952 : vector<2x40xf32>
    %c0_267 = arith.constant 0 : index
    %c0_268 = arith.constant 0 : index
    %c0_269 = arith.constant 0 : index
    %954 = vector.load %arg5[%c0_267, %c0_268, %c0_269] : memref<5x2x16xf32, #tpu.memory_space<vmem>>, vector<1x2x16xf32>
    %955 = vector.shape_cast %954 : vector<1x2x16xf32> to vector<2x16xf32>
    %956 = vector.extract_strided_slice %889 {offsets = [0, 40], sizes = [2, 8], strides = [1, 1]} : vector<2x256xf32> to vector<2x8xf32>
    %957 = vector.extract_strided_slice %951 {offsets = [0, 0], sizes = [2, 8], strides = [1, 1]} : vector<2x40xf32> to vector<2x8xf32>
    %958 = vector.extract_strided_slice %955 {offsets = [0, 0], sizes = [2, 8], strides = [1, 1]} : vector<2x16xf32> to vector<2x8xf32>
    %959 = arith.mulf %957, %958 : vector<2x8xf32>
    %960 = arith.addf %956, %959 : vector<2x8xf32>
    %961 = arith.mulf %960, %920 : vector<2x8xf32>
    %962 = vector.extract_strided_slice %889 {offsets = [0, 160], sizes = [2, 1], strides = [1, 1]} : vector<2x256xf32> to vector<2x1xf32>
    %963 = vector.extract_strided_slice %953 {offsets = [0, 0], sizes = [2, 1], strides = [1, 1]} : vector<2x40xf32> to vector<2x1xf32>
    %964 = vector.extract_strided_slice %955 {offsets = [0, 8], sizes = [2, 1], strides = [1, 1]} : vector<2x16xf32> to vector<2x1xf32>
    %965 = arith.mulf %963, %964 : vector<2x1xf32>
    %966 = arith.addf %962, %965 : vector<2x1xf32>
    %967 = arith.mulf %966, %945 : vector<2x1xf32>
    %c1_270 = arith.constant 1 : index
    %c0_271 = arith.constant 0 : index
    %c0_272 = arith.constant 0 : index
    %968 = vector.load %arg5[%c1_270, %c0_271, %c0_272] : memref<5x2x16xf32, #tpu.memory_space<vmem>>, vector<1x2x16xf32>
    %969 = vector.shape_cast %968 : vector<1x2x16xf32> to vector<2x16xf32>
    %970 = vector.extract_strided_slice %889 {offsets = [0, 48], sizes = [2, 8], strides = [1, 1]} : vector<2x256xf32> to vector<2x8xf32>
    %971 = vector.extract_strided_slice %951 {offsets = [0, 8], sizes = [2, 8], strides = [1, 1]} : vector<2x40xf32> to vector<2x8xf32>
    %972 = vector.extract_strided_slice %969 {offsets = [0, 0], sizes = [2, 8], strides = [1, 1]} : vector<2x16xf32> to vector<2x8xf32>
    %973 = arith.mulf %971, %972 : vector<2x8xf32>
    %974 = arith.addf %970, %973 : vector<2x8xf32>
    %975 = arith.mulf %974, %921 : vector<2x8xf32>
    %976 = vector.extract_strided_slice %889 {offsets = [0, 168], sizes = [2, 1], strides = [1, 1]} : vector<2x256xf32> to vector<2x1xf32>
    %977 = vector.extract_strided_slice %953 {offsets = [0, 8], sizes = [2, 1], strides = [1, 1]} : vector<2x40xf32> to vector<2x1xf32>
    %978 = vector.extract_strided_slice %969 {offsets = [0, 8], sizes = [2, 1], strides = [1, 1]} : vector<2x16xf32> to vector<2x1xf32>
    %979 = arith.mulf %977, %978 : vector<2x1xf32>
    %980 = arith.addf %976, %979 : vector<2x1xf32>
    %981 = arith.mulf %980, %946 : vector<2x1xf32>
    %982 = arith.addf %961, %975 : vector<2x8xf32>
    %983 = arith.addf %967, %981 : vector<2x1xf32>
    %c2_273 = arith.constant 2 : index
    %c0_274 = arith.constant 0 : index
    %c0_275 = arith.constant 0 : index
    %984 = vector.load %arg5[%c2_273, %c0_274, %c0_275] : memref<5x2x16xf32, #tpu.memory_space<vmem>>, vector<1x2x16xf32>
    %985 = vector.shape_cast %984 : vector<1x2x16xf32> to vector<2x16xf32>
    %986 = vector.extract_strided_slice %889 {offsets = [0, 56], sizes = [2, 8], strides = [1, 1]} : vector<2x256xf32> to vector<2x8xf32>
    %987 = vector.extract_strided_slice %951 {offsets = [0, 16], sizes = [2, 8], strides = [1, 1]} : vector<2x40xf32> to vector<2x8xf32>
    %988 = vector.extract_strided_slice %985 {offsets = [0, 0], sizes = [2, 8], strides = [1, 1]} : vector<2x16xf32> to vector<2x8xf32>
    %989 = arith.mulf %987, %988 : vector<2x8xf32>
    %990 = arith.addf %986, %989 : vector<2x8xf32>
    %991 = arith.mulf %990, %922 : vector<2x8xf32>
    %992 = vector.extract_strided_slice %889 {offsets = [0, 176], sizes = [2, 1], strides = [1, 1]} : vector<2x256xf32> to vector<2x1xf32>
    %993 = vector.extract_strided_slice %953 {offsets = [0, 16], sizes = [2, 1], strides = [1, 1]} : vector<2x40xf32> to vector<2x1xf32>
    %994 = vector.extract_strided_slice %985 {offsets = [0, 8], sizes = [2, 1], strides = [1, 1]} : vector<2x16xf32> to vector<2x1xf32>
    %995 = arith.mulf %993, %994 : vector<2x1xf32>
    %996 = arith.addf %992, %995 : vector<2x1xf32>
    %997 = arith.mulf %996, %947 : vector<2x1xf32>
    %998 = arith.addf %982, %991 : vector<2x8xf32>
    %999 = arith.addf %983, %997 : vector<2x1xf32>
    %c3_276 = arith.constant 3 : index
    %c0_277 = arith.constant 0 : index
    %c0_278 = arith.constant 0 : index
    %1000 = vector.load %arg5[%c3_276, %c0_277, %c0_278] : memref<5x2x16xf32, #tpu.memory_space<vmem>>, vector<1x2x16xf32>
    %1001 = vector.shape_cast %1000 : vector<1x2x16xf32> to vector<2x16xf32>
    %1002 = vector.extract_strided_slice %889 {offsets = [0, 64], sizes = [2, 8], strides = [1, 1]} : vector<2x256xf32> to vector<2x8xf32>
    %1003 = vector.extract_strided_slice %951 {offsets = [0, 24], sizes = [2, 8], strides = [1, 1]} : vector<2x40xf32> to vector<2x8xf32>
    %1004 = vector.extract_strided_slice %1001 {offsets = [0, 0], sizes = [2, 8], strides = [1, 1]} : vector<2x16xf32> to vector<2x8xf32>
    %1005 = arith.mulf %1003, %1004 : vector<2x8xf32>
    %1006 = arith.addf %1002, %1005 : vector<2x8xf32>
    %1007 = arith.mulf %1006, %923 : vector<2x8xf32>
    %1008 = vector.extract_strided_slice %889 {offsets = [0, 184], sizes = [2, 1], strides = [1, 1]} : vector<2x256xf32> to vector<2x1xf32>
    %1009 = vector.extract_strided_slice %953 {offsets = [0, 24], sizes = [2, 1], strides = [1, 1]} : vector<2x40xf32> to vector<2x1xf32>
    %1010 = vector.extract_strided_slice %1001 {offsets = [0, 8], sizes = [2, 1], strides = [1, 1]} : vector<2x16xf32> to vector<2x1xf32>
    %1011 = arith.mulf %1009, %1010 : vector<2x1xf32>
    %1012 = arith.addf %1008, %1011 : vector<2x1xf32>
    %1013 = arith.mulf %1012, %948 : vector<2x1xf32>
    %1014 = arith.addf %998, %1007 : vector<2x8xf32>
    %1015 = arith.addf %999, %1013 : vector<2x1xf32>
    %c4_279 = arith.constant 4 : index
    %c0_280 = arith.constant 0 : index
    %c0_281 = arith.constant 0 : index
    %1016 = vector.load %arg5[%c4_279, %c0_280, %c0_281] : memref<5x2x16xf32, #tpu.memory_space<vmem>>, vector<1x2x16xf32>
    %1017 = vector.shape_cast %1016 : vector<1x2x16xf32> to vector<2x16xf32>
    %1018 = vector.extract_strided_slice %889 {offsets = [0, 72], sizes = [2, 8], strides = [1, 1]} : vector<2x256xf32> to vector<2x8xf32>
    %1019 = vector.extract_strided_slice %951 {offsets = [0, 32], sizes = [2, 8], strides = [1, 1]} : vector<2x40xf32> to vector<2x8xf32>
    %1020 = vector.extract_strided_slice %1017 {offsets = [0, 0], sizes = [2, 8], strides = [1, 1]} : vector<2x16xf32> to vector<2x8xf32>
    %1021 = arith.mulf %1019, %1020 : vector<2x8xf32>
    %1022 = arith.addf %1018, %1021 : vector<2x8xf32>
    %1023 = arith.mulf %1022, %924 : vector<2x8xf32>
    %1024 = vector.extract_strided_slice %889 {offsets = [0, 192], sizes = [2, 1], strides = [1, 1]} : vector<2x256xf32> to vector<2x1xf32>
    %1025 = vector.extract_strided_slice %953 {offsets = [0, 32], sizes = [2, 1], strides = [1, 1]} : vector<2x40xf32> to vector<2x1xf32>
    %1026 = vector.extract_strided_slice %1017 {offsets = [0, 8], sizes = [2, 1], strides = [1, 1]} : vector<2x16xf32> to vector<2x1xf32>
    %1027 = arith.mulf %1025, %1026 : vector<2x1xf32>
    %1028 = arith.addf %1024, %1027 : vector<2x1xf32>
    %1029 = arith.mulf %1028, %949 : vector<2x1xf32>
    %1030 = arith.addf %1014, %1023 : vector<2x8xf32>
    %1031 = arith.addf %1015, %1029 : vector<2x1xf32>
    %cst_282 = arith.constant 0.000000e+00 : f32
    %1032 = vector.broadcast %cst_282 : f32 to vector<2x119xf32>
    %1033 = tpu.concatenate %1030, %1031, %1032 in 1 : vector<2x8xf32>, vector<2x1xf32>, vector<2x119xf32> -> vector<2x128xf32>
    %c0_283 = arith.constant 0 : index
    %c0_284 = arith.constant 0 : index
    %1034 = vector.load %arg6[%c0_283, %c0_284] : memref<2x128xf32, #tpu.memory_space<vmem>>, vector<2x128xf32>
    tpu.vector_store %arg6[%c0_283, %c0_284], %1033 {strides = array<i32>} : memref<2x128xf32, #tpu.memory_space<vmem>>, vector<2x128xf32>,
    return
  }
  func.func @transform_0(%arg0: i32) -> (i32, i32) {
    %c0_i32 = arith.constant 0 : i32
    %c0_i32_0 = arith.constant 0 : i32
    %c0_i32_1 = arith.constant 0 : i32
    return %c0_i32, %c0_i32_0 : i32, i32
  }
  func.func @transform_1(%arg0: i32) -> (i32, i32) {
    %c0_i32 = arith.constant 0 : i32
    %c0_i32_0 = arith.constant 0 : i32
    %c0_i32_1 = arith.constant 0 : i32
    return %c0_i32, %c0_i32_0 : i32, i32
  }
  func.func @transform_2(%arg0: i32) -> (i32, i32) {
    %c0_i32 = arith.constant 0 : i32
    %c0_i32_0 = arith.constant 0 : i32
    %c0_i32_1 = arith.constant 0 : i32
    return %c0_i32, %c0_i32_0 : i32, i32
  }
  func.func @transform_3(%arg0: i32) -> (i32, i32) {
    %c0_i32 = arith.constant 0 : i32
    %c0_i32_0 = arith.constant 0 : i32
    %c0_i32_1 = arith.constant 0 : i32
    return %c0_i32, %c0_i32_0 : i32, i32
  }
  func.func @transform_4(%arg0: i32) -> (i32, i32, i32) {
    %c0_i32 = arith.constant 0 : i32
    %c0_i32_0 = arith.constant 0 : i32
    %c0_i32_1 = arith.constant 0 : i32
    %c0_i32_2 = arith.constant 0 : i32
    return %c0_i32, %c0_i32_0, %c0_i32_1 : i32, i32, i32
  }
  func.func @transform_5(%arg0: i32) -> (i32, i32) {
    %c0_i32 = arith.constant 0 : i32
    %c0_i32_0 = arith.constant 0 : i32
    %c0_i32_1 = arith.constant 0 : i32
    return %c0_i32, %c0_i32_0 : i32, i32
  }
}

</mosaic_0001>

<bundles_post_ra>
// kernel: hierarchical_forward.1
= control target key start
LH: loop header
LB: loop body
LE: loop exit
PB: predicated region body
PF: predicated region fallthrough
CT: control target
= control target key end

     0   :  { %10 = vsyncpa [#allocation3], 0  ;;  %s11432_s0 = inlined_call_operand.vmem [shape: f32[32,16], index: 0, kind: input, shape index: {}]   ;;  %s11433_s1 = inlined_call_operand.hbm [shape: bf16[3072,128], index: 1, kind: input, shape index: {}]   ;;  %s11434_s2 = inlined_call_operand.vmem [shape: f32[72,128], index: 2, kind: input, shape index: {}]   ;;  %s11435_s3 = inlined_call_operand.hbm [shape: f32[136,256], index: 3, kind: input, shape index: {}]   ;;  %s11436_s4 = inlined_call_operand.vmem [shape: f32[5,2,16], index: 4, kind: input, shape index: {}]   ;;  %s11437_s5 = inlined_call_operand.vmem [shape: f32[2,128], index: 5, kind: output, shape index: {}]  }
   0x1   :  { %s18_s20 = sshll.u32 %s11433_s1, 4  ;;  %s19_s20 = int_to_ptr.hbm [resolvable:$true] %s18_s20 }
   0x2   :  { %11 = vsyncpa [#allocation5], 0  ;;  %s9158_s21 = smov [#allocation2]   ;;  %s33_s25 = sshll.u32 %s11435_s3, 4  ;;  %s34_s25 = int_to_ptr.hbm [resolvable:$true] %s33_s25 }
   0x3   :  { %s20_s22 = sshll.u32 %s9158_s21, 4  ;;  %s9159_s26 = smov 64   ;;  %s21_s22 = int_to_ptr.vmem [resolvable:$true] %s20_s22 }
   0x4   :  { %s9160_s27 = smov 4   ;;  %s9161_s28 = smov [#allocation4]  }
   0x5   :  { %26 = dma.hbm_to_vmem [thread:$0]  %s19_s20, 24576, %s21_s22, [#allocation3], %s9159_s26, %s9159_s26, %s9160_s27  }
   0x6   :  { %s35_s29 = sshll.u32 %s9161_s28, 4  ;;  %s9162_s30 = smov 256   ;;  %s36_s29 = int_to_ptr.vmem [resolvable:$true] %s35_s29 }
   0x7   :  { %s9163_s1 = smov 16  }
   0x8   :  { %41 = dma.hbm_to_vmem [thread:$0]  %s34_s25, 4352, %s36_s29, [#allocation5], %s9162_s30, %s9162_s30, %s9163_s1  }
   0x9   :  { %9154 = dma.done.wait [#allocation3], 24576  }
   0xa   :  { %9155 = vsyncadd [#allocation3], 4294942720 }
   0xb   :  { %9156 = dma.done.wait [#allocation5], 4352  }
   0xc   :  { %9157 = vsyncadd [#allocation5], 4294962944  ;;  %v9164_v0 = vmov 0   ;;  %v52_v1 = vld [vmem:[%s11432_s0] sm:$0xff]  ;;  %v53_v2 = vld [vmem:[%s11432_s0 + $0x8] sm:$0xff]  ;;  %v60_v37 = vlaneseq  ;;  %vm86_vm4 = vcmask 261120  }
   0xd   :  { %8490 = vset.pattern.permute.xlu0 %v9164_v0  ;;  %8491 = vset.pattern.permute.xlu1 %v9164_v0  ;;  %v85_v3 = vld [vmem:[%s11434_s2 + $0x40] sm:$0xff]  ;;  %vm8441_vm0 = vcmp.lt.s32.totalorder %v52_v1, 0  ;;  %v8442_v4 = vceil.f32 %v52_v1  ;;  %v8443_v5 = vfloor.f32 %v52_v1  ;;  %vm8446_vm1 = vcmp.lt.s32.totalorder %v53_v2, 0  ;;  %v84_v6 = vld [vmem:[%s11434_s2 + $0x38] sm:$0xff]  ;;  %v83_v7 = vld [vmem:[%s11434_s2 + $0x30] sm:$0xff]  ;;  %s9166_s25 = smov 96  }
   0xe   :  { %111 = vmatpush.msra.mxu0 %v85_v3  ;;  %v8447_v9 = vceil.f32 %v53_v2  ;;  %v8448_v10 = vfloor.f32 %v53_v2  ;;  %v82_v14 = vld [vmem:[%s11434_s2 + $0x28] sm:$0xff]  ;;  %v54_v15 = vld [vmem:[%s11432_s0 + $0x10] sm:$0xff]  ;;  %v55_v16 = vld [vmem:[%s11432_s0 + $0x18] sm:$0xff]  ;;  %v61_v41 = vand.u32 127, %v60_v37  ;;  %v9165_v43 = vmov 0.0   ;;  %s9167_s29 = smov 32  }
   0xf   :  { %v8444_v8 = vsel %vm8441_vm0, %v8442_v4, %v8443_v5  ;;  %v8254_v17 = vld [vmem:[#allocation2 + $0x38] sm:$0xff]  ;;  %vm8451_vm2 = vcmp.lt.s32.totalorder %v54_v15, 0  ;;  %v8452_v18 = vceil.f32 %v54_v15  ;;  %v8453_v19 = vfloor.f32 %v54_v15  ;;  %v8253_v22 = vld [vmem:[#allocation2 + $0x30] sm:$0xff]  ;;  %v8252_v29 = vld [vmem:[#allocation2 + $0x28] sm:$0xff]  ;;  %s9178_s30 = smov 120   ;;  %s9180_s3 = smov 104  }
  0x10   :  { %112 = vmatpush.msra.mxu0 %v84_v6  ;;  %v8445_v11 = vcvt.f32.s32 %v8444_v8  ;;  %v8449_v12 = vsel %vm8446_vm1, %v8447_v9, %v8448_v10  ;;  %v8262_v20 = vld [vmem:[#allocation2 + $0x78] sm:$0xff]  ;;  %966 = vmatpush.bf16.msra.mxu1 %v8254_v17  ;;  %v8457_v24 = vceil.f32 %v55_v16  ;;  %v8458_v25 = vfloor.f32 %v55_v16  ;;  %v8261_v26 = vld [vmem:[#allocation2 + $0x70] sm:$0xff]  ;;  %v8260_v31 = vld [vmem:[#allocation2 + $0x68] sm:$0xff]  ;;  %s9181_s6 = smov 8   ;;  %s9182_s7 = smov 24  }
  0x11   :  { %v8450_v13 = vcvt.f32.s32 %v8449_v12  ;;  %v8270_v21 = vld [vmem:[#allocation2 + $0xb8] sm:$0xff]  ;;  %v8454_v23 = vsel %vm8451_vm2, %v8452_v18, %v8453_v19  ;;  %1051 = vmatpush.bf16.msra.mxu2 %v8262_v20  ;;  %v8269_v27 = vld [vmem:[#allocation2 + $0xb0] sm:$0xff]  ;;  %vm8456_vm3 = vcmp.lt.s32.totalorder %v55_v16, 0  ;;  %v8268_v32 = vld [vmem:[#allocation2 + $0xa8] sm:$0xff]  ;;  %vm1190_vm9 = vcmask 130048   ;;  %s9183_s10 = smov 88  }
  0x12   :  { %113 = vmatpush.msra.mxu0 %v83_v7  ;;  %63 = vperm.xlu0 %8490, %v8445_v11   ;;  %v8455_v28 = vcvt.f32.s32 %v8454_v23  ;;  %v8459_v30 = vsel %vm8456_vm3, %v8457_v24, %v8458_v25  ;;  %v8251_v34 = vld [vmem:[#allocation2 + $0x20] sm:$0xff]  ;;  %v8250_v38 = vld [vmem:[#allocation2 + $0x18] sm:$0xff]  ;;  %v8249_v47 = vld [vmem:[#allocation2 + $0x10] sm:$0xff]  ;;  %s9184_s16 = smov 80   ;;  %s9185_s17 = smov 72  }
  0x13   :  { %1136 = vmatpush.bf16.msra.mxu3 %v8270_v21  ;;  %v8460_v33 = vcvt.f32.s32 %v8459_v30  ;;  %v8259_v35 = vld [vmem:[#allocation2 + $0x60] sm:$0xff]  ;;  %v8258_v39 = vld [vmem:[#allocation2 + $0x58] sm:$0xff]  ;;  %v8257_v48 = vld [vmem:[#allocation2 + $0x50] sm:$0xff] }
  0x14   :  { %114 = vmatpush.msra.mxu0 %v82_v14  ;;  %69 = vperm.xlu1 %8491, %v8455_v28   ;;  %v8267_v36 = vld [vmem:[#allocation2 + $0xa0] sm:$0xff]  ;;  %v8266_v40 = vld [vmem:[#allocation2 + $0x98] sm:$0xff]  ;;  %v8265_v49 = vld [vmem:[#allocation2 + $0x90] sm:$0xff] }
  0x15   :  { %967 = vmatpush.bf16.msra.mxu1 %v8253_v22  ;;  %1052 = vmatpush.bf16.msra.mxu2 %v8261_v26  ;;  %v8248_v50 = vld [vmem:[#allocation2 + $0x8] sm:$0xff]  ;;  %v8247_v53 = vld [vmem:[#allocation2] sm:$0xff] }
  0x16   :  { %v8256_v51 = vld [vmem:[#allocation2 + $0x48] sm:$0xff]  ;;  %v8255_v54 = vld [vmem:[#allocation2 + $0x40] sm:$0xff] }
  0x17   :  { %1137 = vmatpush.bf16.msra.mxu3 %v8269_v27  ;;  %v8264_v52 = vld [vmem:[#allocation2 + $0x88] sm:$0xff]  ;;  %v8263_v55 = vld [vmem:[#allocation2 + $0x80] sm:$0xff] }
  0x18   :  { %v8737_v5 = vld [vmem:[%s11434_s2 + $0x2] ss:$0 sm:$0xff]  ;;  %v8736_v6 = vld [vmem:[%s11434_s2 + $0x1] ss:$0 sm:$0xff]  ;;  %v8735_v14 = vld [vmem:[%s11434_s2] ss:$0 sm:$0xff] }
  0x19   :  { %968 = vmatpush.bf16.msra.mxu1 %v8252_v29  ;;  %1053 = vmatpush.bf16.msra.mxu2 %v8260_v31 }
  0x1a   :  { %66 = vperm.xlu0 %8490, %v8450_v13  }
  0x1b   :  { %1138 = vmatpush.bf16.msra.mxu3 %v8268_v32 }
  0x1c   :  { %72 = vperm.xlu1 %8491, %v8460_v33  }
  0x1d   :  { %969 = vmatpush.bf16.msra.mxu1 %v8251_v34  ;;  %1054 = vmatpush.bf16.msra.mxu2 %v8259_v35 }
  0x1f   :  { %1139 = vmatpush.bf16.msra.mxu3 %v8267_v36 }
  0x21   :  { %970 = vmatpush.bf16.msra.mxu1 %v8250_v38  ;;  %1055 = vmatpush.bf16.msra.mxu2 %v8258_v39 }
  0x23   :  { %1140 = vmatpush.bf16.msra.mxu3 %v8266_v40 }
  0x25   :  { %971 = vmatpush.bf16.msra.mxu1 %v8249_v47  ;;  %1056 = vmatpush.bf16.msra.mxu2 %v8257_v48 }
  0x27   :  { %1141 = vmatpush.bf16.msra.mxu3 %v8265_v49 }
  0x29   :  { %972 = vmatpush.bf16.msra.mxu1 %v8248_v50  ;;  %1057 = vmatpush.bf16.msra.mxu2 %v8256_v51 }
  0x2b   :  { %1142 = vmatpush.bf16.msra.mxu3 %v8264_v52 }
  0x2d   :  { %973 = vmatpush.bf16.msra.mxu1 %v8247_v53  ;;  %1058 = vmatpush.bf16.msra.mxu2 %v8255_v54 }
  0x2f   :  { %1143 = vmatpush.bf16.msra.mxu3 %v8263_v55 }
  0x84   :  { %v64_v42 = vpop.permute.xlu0 %63 }
  0x85   :  { %vm74_vm5 = vcmp.eq.s32.totalorder %v61_v41, %v64_v42 }
  0x86   :  { %v78_v44 = vsel %vm74_vm5, 1.0, %v9165_v43  ;;  %v70_v56 = vpop.permute.xlu1 %69 }
  0x87   :  { %7267 = vmatmul.msk.f32.vlgmr.msra.gmra.mxu0 %vm86_vm4, %v78_v44  ;;  %vm76_vm7 = vcmp.eq.s32.totalorder %v61_v41, %v70_v56 }
  0x88   :  { %v80_v57 = vsel %vm76_vm7, 1.0, %v9165_v43 }
  0x8c   :  { %v67_v45 = vpop.permute.xlu0 %66 }
  0x8d   :  { %vm75_vm6 = vcmp.eq.s32.totalorder %v61_v41, %v67_v45 }
  0x8e   :  { %v79_v46 = vsel %vm75_vm6, 1.0, %v9165_v43  ;;  %v73_v58 = vpop.permute.xlu1 %72 }
  0x8f   :  { %7268 = vmatmul.msk.f32.gmra.mxu0 %vm86_vm4, %v79_v46  ;;  %vm77_vm8 = vcmp.eq.s32.totalorder %v61_v41, %v73_v58 }
  0x90   :  { %v81_v59 = vsel %vm77_vm8, 1.0, %v9165_v43 }
  0x97   :  { %7269 = vmatmul.msk.f32.gmra.mxu0 %vm86_vm4, %v80_v57 }
  0x9f   :  { %7270 = vmatmul.msk.f32.gmra.mxu0 %vm86_vm4, %v81_v59 }
 0x104   :  { %v9256_v60 = vpop.f32.mrf.mxu0 }
 0x10c   :  { %v9258_v61 = vpop.f32.mrf.mxu0 }
 0x10d   :  { %v898_v62 = vpack.c.bf16 %v9258_v61, %v9256_v60 }
 0x10f   :  { %974 = vmatmul.bf16.vlgmr.msra.gmra.mxu1 %v898_v62  ;;  %1059 = vmatmul.bf16.vlgmr.msra.gmra.mxu2 %v898_v62 }
 0x110   :  { %1144 = vmatmul.bf16.vlgmr.msra.gmra.mxu3 %v898_v62 }
 0x114   :  { %v9262_v63 = vpop.f32.mrf.mxu0 }
 0x11c   :  { %v9264_v1 = vpop.f32.mrf.mxu0 }
 0x11d   :  { %v899_v2 = vpack.c.bf16 %v9264_v1, %v9262_v63 }
 0x11f   :  { %1064 = vmatmul.bf16.gmra.mxu2 %v899_v2  ;;  %979 = vmatmul.bf16.gmra.mxu1 %v899_v2 }
 0x120   :  { %1149 = vmatmul.bf16.gmra.mxu3 %v899_v2 }
 0x18c   :  { %v975_v12 = vpop.f32.mrf.mxu1 }
 0x18d   :  { %v9288_v16 = vadd.f32 %v8735_v14, %v975_v12 }
 0x192   :  { %v1060_v3 = vpop.f32.mrf.mxu2 }
 0x193   :  { %v1145_v4 = vpop.f32.mrf.mxu3  ;;  %v1061_v15 = vadd.f32 %v8736_v6, %v1060_v3 }
 0x194   :  { %v1146_v10 = vadd.f32 %v8737_v5, %v1145_v4  ;;  %v977_v17 = vpop.f32.mrf.mxu1 }
 0x195   :  { %v9292_v18 = vadd.f32 %v8735_v14, %v977_v17 }
 0x19a   :  { %v1062_v7 = vpop.f32.mrf.mxu2 }
 0x19b   :  { %v9274_v8 = vadd.f32 %v8736_v6, %v1062_v7  ;;  %v1147_v9 = vpop.f32.mrf.mxu3 }
 0x19c   :  { %v1148_v11 = vadd.f32 %v8737_v5, %v1147_v9  ;;  %v980_v24 = vpop.f32.mrf.mxu1 }
 0x19d   :  { %1530 = vrot.lane.b32.xlu1 %v9274_v8, %s9159_s26  ;;  %1334 = vrot.lane.b32.xlu2 %v9274_v8, %s9166_s25  ;;  %v9306_v25 = vadd.f32 %v8735_v14, %v980_v24 }
 0x19e   :  { %7379 = vmatpush.xpose.msk.msrb.mxu0 %vm86_vm4, %v9274_v8  ;;  %v9282_v13 = vpack.i.bf16 %v1146_v10, %v1148_v11 }
 0x1a2   :  { %7380 = vmatpush.xpose.msk.msrb.mxu0 %vm86_vm4, %v1061_v15  ;;  %v1065_v20 = vpop.f32.mrf.mxu2 }
 0x1a3   :  { %v9300_v23 = vadd.f32 %v8736_v6, %v1065_v20  ;;  %v1150_v31 = vpop.f32.mrf.mxu3 }
 0x1a4   :  { %v982_v30 = vpop.f32.mrf.mxu1  ;;  %v1151_v34 = vadd.f32 %v8737_v5, %v1150_v31 }
 0x1a5   :  { %7381 = vmatmul.msk.f32.vlgmr.msrb.gmra.mxu0 %vm86_vm4, %v9288_v16  ;;  %v9316_v32 = vadd.f32 %v8735_v14, %v982_v30 }
 0x1a6   :  { %1233 = vmatpush.msra.mxu0 %v1148_v11 }
 0x1a7   :  { %1428 = vrot.lane.b32.xlu1 %v9316_v32, %s9166_s25 }
 0x1a8   :  { %1234 = vmatpush.msra.mxu0 %v1146_v10 }
 0x1aa   :  { %v1067_v21 = vpop.f32.mrf.mxu2 }
 0x1ab   :  { %v9298_v22 = vadd.f32 %v8736_v6, %v1067_v21  ;;  %v1152_v33 = vpop.f32.mrf.mxu3 }
 0x1ac   :  { %v1153_v35 = vadd.f32 %v8737_v5, %v1152_v33 }
 0x1ad   :  { %7382 = vmatmul.msk.f32.gmra.mxu0 %vm86_vm4, %v9292_v18  ;;  %7385 = vmatpush.xpose.msk.msrb.mxu1 %vm86_vm4, %v9298_v22 }
 0x1ae   :  { %1432 = vrot.lane.b32.xlu0 %v9298_v22, %s9166_s25  ;;  %1319 = vmatpush.msrb.mxu2 %v1153_v35  ;;  %v9323_v36 = vpack.i.bf16 %v1151_v34, %v1153_v35 }
 0x1b0   :  { %1320 = vmatpush.msrb.mxu2 %v1151_v34 }
 0x1b1   :  { %7386 = vmatpush.xpose.msk.msrb.mxu1 %vm86_vm4, %v9300_v23 }
 0x1b4   :  { %7387 = vmatmul.msk.f32.vlgmr.msrb.gmra.mxu1 %vm86_vm4, %v9306_v25 }
 0x1b6   :  { %1426 = vrot.lane.b32.xlu0 %v9306_v25, %s9166_s25 }
 0x1bc   :  { %7388 = vmatmul.msk.f32.gmra.mxu1 %vm86_vm4, %v9316_v32 }
 0x1f7   :  { %v1335_v19 = vpop.permute.xlu2 %1334 }
 0x1f8   :  { %7391 = vmatpush.xpose.msk.msrb.mxu0 %vm86_vm4, %v1335_v19  ;;  %8439 = vmatpush.xpose.msk.msrb.mxu3 %vm86_vm4, %v1335_v19 }
 0x20f   :  { %v1531_v47 = vpop.permute.xlu1 %1530 }
 0x219   :  { %v1429_v57 = vpop.permute.xlu1 %1428 }
 0x220   :  { %v1433_v39 = vpop.permute.xlu0 %1432 }
 0x221   :  { %7397 = vmatpush.xpose.msk.msra.mxu1 %vm86_vm4, %v1433_v39 }
 0x222   :  { %v1184_v26 = vpop.f32.mrf.mxu0 }
 0x223   :  { %v1191_v27 = vsel %vm1190_vm9, %v1184_v26, -inf }
 0x224   :  { %1192 = vmax.xlane.f32.xlu2 %v1191_v27 }
 0x228   :  { %v1427_v55 = vpop.permute.xlu0 %1426 }
 0x22a   :  { %v1187_v28 = vpop.f32.mrf.mxu0 }
 0x22b   :  { %v1194_v29 = vsel %vm1190_vm9, %v1187_v28, -inf }
 0x22c   :  { %1195 = vmax.xlane.f32.xlu2 %v1194_v29 }
 0x231   :  { %v9347_v51 = vpop.f32.mrf.mxu1 }
 0x232   :  { %v1277_v52 = vsel %vm1190_vm9, %v9347_v51, -inf }
 0x239   :  { %v9376_v62 = vpop.f32.mrf.mxu1 }
 0x23a   :  { %v1280_v2 = vsel %vm1190_vm9, %v9376_v62, -inf }
 0x244   :  { %1332 = vrot.lane.b32.xlu2 %v1061_v15, %s9166_s25 }
 0x24c   :  { %1328 = vrot.lane.b32.xlu2 %v9288_v16, %s9166_s25 }
 0x254   :  { %1330 = vrot.lane.b32.xlu2 %v9292_v18, %s9166_s25 }
 0x25c   :  { %1430 = vrot.lane.b32.xlu2 %v9300_v23, %s9166_s25 }
 0x264   :  { %1528 = vrot.lane.b32.xlu2 %v1061_v15, %s9159_s26 }
 0x26c   :  { %1524 = vrot.lane.b32.xlu2 %v9288_v16, %s9159_s26 }
 0x274   :  { %1626 = vrot.lane.b32.xlu2 %v9298_v22, %s9159_s26 }
 0x27c   :  { %1720 = vrot.lane.b32.xlu2 %v1061_v15, %s9167_s29 }
 0x284   :  { %1622 = vrot.lane.b32.xlu2 %v9316_v32, %s9159_s26 }
 0x28c   :  { %1816 = vrot.lane.b32.xlu2 %v9300_v23, %s9167_s29 }
 0x297   :  { %v1193_v37 = vpop.xlane.xlu2 %1192 }
 0x298   :  { %v1197_v38 = vsub.f32 %v1184_v26, %v1193_v37 }
 0x29a   :  { %v1199_v40 = vmul.f32 1.442695, %v1197_v38 }
 0x29c   :  { %8770 = vpow2.f32 %v1199_v40 }
 0x29f   :  { %v1196_v41 = vpop.xlane.xlu2 %1195 }
 0x2a0   :  { %v1198_v42 = vsub.f32 %v1187_v28, %v1196_v41 }
 0x2a2   :  { %v8771_v43 = vpop.eup %8770  ;;  %v1201_v44 = vmul.f32 1.442695, %v1198_v42 }
 0x2a3   :  { %v1203_v45 = vsel %vm1190_vm9, %v8771_v43, 0.0 }
 0x2a4   :  { %8772 = vpow2.f32 %v1201_v44  ;;  %1204 = vadd.xlane.f32.xlu0 %v1203_v45 }
 0x2a7   :  { %v1333_v46 = vpop.permute.xlu2 %1332 }
 0x2a8   :  { %7392 = vmatpush.xpose.msk.msrb.mxu0 %vm86_vm4, %v1333_v46  ;;  %8440 = vmatpush.xpose.msk.msrb.mxu3 %vm86_vm4, %v1333_v46 }
 0x2aa   :  { %v8773_v48 = vpop.eup %8772 }
 0x2ab   :  { %v1206_v49 = vsel %vm1190_vm9, %v8773_v48, 0.0 }
 0x2ac   :  { %7403 = vmatpush.xpose.msk.msra.mxu3 %vm86_vm4, %v1531_v47  ;;  %1207 = vadd.xlane.f32.xlu1 %v1206_v49 }
 0x2af   :  { %v1329_v50 = vpop.permute.xlu2 %1328 }
 0x2b5   :  { %1278 = vmax.xlane.f32.xlu2 %v1277_v52 }
 0x2b7   :  { %v1331_v53 = vpop.permute.xlu2 %1330 }
 0x2b8   :  { %7394 = vmatmul.msk.f32.vlgmr.msrb.gmra.mxu3 %vm86_vm4, %v1331_v53  ;;  %1526 = vrot.lane.b32.xlu0 %v9292_v18, %s9159_s26 }
 0x2bf   :  { %v1431_v54 = vpop.permute.xlu2 %1430 }
 0x2c0   :  { %7398 = vmatpush.xpose.msk.msra.mxu1 %vm86_vm4, %v1431_v54  ;;  %1624 = vrot.lane.b32.xlu0 %v9300_v23, %s9159_s26 }
 0x2c3   :  { %7399 = vmatmul.msk.f32.vlgmr.msra.gmra.mxu1 %vm86_vm4, %v1427_v55 }
 0x2c5   :  { %1722 = vrot.lane.b32.xlu1 %v9274_v8, %s9167_s29 }
 0x2c7   :  { %v1529_v56 = vpop.permute.xlu2 %1528 }
 0x2c8   :  { %7404 = vmatpush.xpose.msk.msra.mxu3 %vm86_vm4, %v1529_v56  ;;  %1716 = vrot.lane.b32.xlu0 %v9288_v16, %s9167_s29 }
 0x2cb   :  { %7400 = vmatmul.msk.f32.gmra.mxu1 %vm86_vm4, %v1429_v57 }
 0x2cd   :  { %1620 = vrot.lane.b32.xlu1 %v9306_v25, %s9159_s26 }
 0x2cf   :  { %v1525_v58 = vpop.permute.xlu2 %1524 }
 0x2d0   :  { %7405 = vmatmul.msk.f32.vlgmr.msra.gmra.mxu3 %vm86_vm4, %v1525_v58  ;;  %1818 = vrot.lane.b32.xlu0 %v9298_v22, %s9167_s29 }
 0x2d5   :  { %1718 = vrot.lane.b32.xlu1 %v9292_v18, %s9167_s29 }
 0x2d7   :  { %v1627_v59 = vpop.permute.xlu2 %1626 }
 0x2d8   :  { %1814 = vrot.lane.b32.xlu0 %v9316_v32, %s9167_s29  ;;  %7409 = vmatpush.xpose.msk.msrb.mxu1 %vm86_vm4, %v1627_v59 }
 0x2dd   :  { %1812 = vrot.lane.b32.xlu1 %v9306_v25, %s9167_s29 }
 0x2df   :  { %v1721_v10 = vpop.permute.xlu2 %1720 }
 0x2e7   :  { %v1623_v16 = vpop.permute.xlu2 %1622 }
 0x2ef   :  { %v1817_v22 = vpop.permute.xlu2 %1816 }
 0x302   :  { %1281 = vmax.xlane.f32.xlu0 %v1280_v2 }
 0x317   :  { %v1205_v3 = vpop.xlane.xlu0 %1204 }
 0x318   :  { %8774 = vrcp.f32 %v1205_v3 }
 0x31e   :  { %v8775_v4 = vpop.eup %8774 }
 0x31f   :  { %v1211_v5 = vmul.f32 %v8775_v4, %v8771_v43  ;;  %v1208_v6 = vpop.xlane.xlu1 %1207 }
 0x320   :  { %8776 = vrcp.f32 %v1208_v6 }
 0x321   :  { %7383 = vmatmul.msk.f32.vlgmr.msra.gmra.mxu0 %vm1190_vm9, %v1211_v5 }
 0x326   :  { %v8777_v7 = vpop.eup %8776 }
 0x327   :  { %v1212_v8 = vmul.f32 %v8777_v7, %v8773_v48 }
 0x328   :  { %v1279_v30 = vpop.xlane.xlu2 %1278 }
 0x329   :  { %7384 = vmatmul.msk.f32.gmra.mxu0 %vm1190_vm9, %v1212_v8  ;;  %v1283_v31 = vsub.f32 %v9347_v51, %v1279_v30 }
 0x32a   :  { %v1527_v9 = vpop.permute.xlu0 %1526 }
 0x32b   :  { %7406 = vmatmul.msk.f32.gmra.mxu3 %vm86_vm4, %v1527_v9  ;;  %v1285_v32 = vmul.f32 1.442695, %v1283_v31 }
 0x32d   :  { %8778 = vpow2.f32 %v1285_v32 }
 0x331   :  { %7393 = vmatmul.msk.f32.vlgmr.msrb.gmra.mxu0 %vm86_vm4, %v1329_v50 }
 0x332   :  { %v1625_v11 = vpop.permute.xlu0 %1624 }
 0x333   :  { %7410 = vmatpush.xpose.msk.msrb.mxu1 %vm86_vm4, %v1625_v11  ;;  %v9410_v35 = vpop.eup %8778 }
 0x334   :  { %v1289_v38 = vsel %vm1190_vm9, %v9410_v35, 0.0 }
 0x337   :  { %v1723_v12 = vpop.permute.xlu1 %1722 }
 0x338   :  { %7415 = vmatpush.xpose.msk.msrb.mxu3 %vm86_vm4, %v1723_v12 }
 0x33a   :  { %v1717_v14 = vpop.permute.xlu0 %1716 }
 0x33b   :  { %v1364_v15 = vpop.f32.mrf.mxu3 }
 0x33c   :  { %7416 = vmatpush.xpose.msk.msrb.mxu3 %vm86_vm4, %v1721_v10  ;;  %v1370_v17 = vsel %vm1190_vm9, %v1364_v15, -inf }
 0x33d   :  { %1371 = vmax.xlane.f32.xlu2 %v1370_v17 }
 0x33f   :  { %v1621_v18 = vpop.permute.xlu1 %1620  ;;  %7417 = vmatmul.msk.f32.vlgmr.msrb.gmra.mxu3 %vm86_vm4, %v1717_v14 }
 0x340   :  { %v9389_v19 = vpop.f32.mrf.mxu1  ;;  %7411 = vmatmul.msk.f32.vlgmr.msrb.gmra.mxu1 %vm86_vm4, %v1621_v18 }
 0x341   :  { %v1465_v20 = vsel %vm1190_vm9, %v9389_v19, -inf }
 0x342   :  { %v1819_v21 = vpop.permute.xlu0 %1818  ;;  %1466 = vmax.xlane.f32.xlu1 %v1465_v20 }
 0x343   :  { %7421 = vmatpush.xpose.msk.msra.mxu1 %vm86_vm4, %v1819_v21 }
 0x347   :  { %v1719_v23 = vpop.permute.xlu1 %1718  ;;  %7422 = vmatpush.xpose.msk.msra.mxu1 %vm86_vm4, %v1817_v22 }
 0x348   :  { %v9396_v24 = vpop.f32.mrf.mxu1  ;;  %7412 = vmatmul.msk.f32.gmra.mxu1 %vm86_vm4, %v1623_v16  ;;  %7418 = vmatmul.msk.f32.gmra.mxu3 %vm86_vm4, %v1719_v23 }
 0x349   :  { %v1468_v25 = vsel %vm1190_vm9, %v9396_v24, -inf }
 0x34a   :  { %1469 = vmax.xlane.f32.xlu2 %v1468_v25  ;;  %v1815_v29 = vpop.permute.xlu0 %1814 }
 0x34f   :  { %v1813_v26 = vpop.permute.xlu1 %1812 }
 0x350   :  { %7423 = vmatmul.msk.f32.vlgmr.msra.gmra.mxu1 %vm86_vm4, %v1813_v26 }
 0x353   :  { %v1557_v27 = vpop.f32.mrf.mxu3 }
 0x354   :  { %v1563_v28 = vsel %vm1190_vm9, %v1557_v27, -inf }
 0x355   :  { %1564 = vmax.xlane.f32.xlu0 %v1563_v28 }
 0x358   :  { %7424 = vmatmul.msk.f32.gmra.mxu1 %vm86_vm4, %v1815_v29 }
 0x375   :  { %v1282_v42 = vpop.xlane.xlu0 %1281 }
 0x376   :  { %v1284_v48 = vsub.f32 %v9376_v62, %v1282_v42 }
 0x378   :  { %v1287_v51 = vmul.f32 1.442695, %v1284_v48 }
 0x39e   :  { %v9412_v37 = vpop.f32.mrf.mxu0 }
 0x3a6   :  { %v9420_v41 = vpop.f32.mrf.mxu0 }
 0x3ae   :  { %v9406_v33 = vpop.f32.mrf.mxu3  ;;  %v9431_v52 = vpop.f32.mrf.mxu0 }
 0x3af   :  { %v1566_v34 = vsel %vm1190_vm9, %v9406_v33, -inf  ;;  %v1367_v62 = vsel %vm1190_vm9, %v9431_v52, -inf }
 0x3b0   :  { %1567 = vmax.xlane.f32.xlu1 %v1566_v34  ;;  %v1372_v43 = vpop.xlane.xlu2 %1371 }
 0x3b1   :  { %v1374_v46 = vsub.f32 %v1364_v15, %v1372_v43 }
 0x3b3   :  { %v1377_v50 = vmul.f32 1.442695, %v1374_v46 }
 0x3b5   :  { %v1467_v54 = vpop.xlane.xlu1 %1466  ;;  %8780 = vpow2.f32 %v1377_v50 }
 0x3b6   :  { %8782 = vpow2.f32 %v1287_v51  ;;  %v1471_v59 = vsub.f32 %v9389_v19, %v1467_v54 }
 0x3b8   :  { %1290 = vadd.xlane.f32.xlu1 %v1289_v38  ;;  %v1473_v4 = vmul.f32 1.442695, %v1471_v59 }
 0x3bb   :  { %v9444_v6 = vpop.eup %8780 }
 0x3bc   :  { %v9446_v7 = vpop.eup %8782  ;;  %v1382_v10 = vsel %vm1190_vm9, %v9444_v6, 0.0 }
 0x3bd   :  { %v9416_v39 = vpop.f32.mrf.mxu1  ;;  %v1470_v5 = vpop.xlane.xlu2 %1469  ;;  %v1292_v12 = vsel %vm1190_vm9, %v9446_v7, 0.0 }
 0x3be   :  { %v1659_v40 = vsel %vm1190_vm9, %v9416_v39, -inf  ;;  %v1472_v8 = vsub.f32 %v9396_v24, %v1470_v5 }
 0x3bf   :  { %1660 = vmax.xlane.f32.xlu0 %v1659_v40 }
 0x3c0   :  { %v1475_v14 = vmul.f32 1.442695, %v1472_v8 }
 0x3c2   :  { %v9422_v44 = vpop.f32.mrf.mxu3 }
 0x3c3   :  { %v1755_v45 = vsel %vm1190_vm9, %v9422_v44, -inf }
 0x3c4   :  { %1756 = vmax.xlane.f32.xlu2 %v1755_v45 }
 0x3c5   :  { %v9426_v47 = vpop.f32.mrf.mxu1 }
 0x3c6   :  { %v1662_v49 = vsel %vm1190_vm9, %v9426_v47, -inf }
 0x3c7   :  { %1663 = vmax.xlane.f32.xlu1 %v1662_v49 }
 0x3c8   :  { %v1565_v53 = vpop.xlane.xlu0 %1564 }
 0x3c9   :  { %v1569_v57 = vsub.f32 %v1557_v27, %v1565_v53 }
 0x3cb   :  { %v9433_v55 = vpop.f32.mrf.mxu3  ;;  %v1571_v3 = vmul.f32 1.442695, %v1569_v57 }
 0x3cc   :  { %v1758_v56 = vsel %vm1190_vm9, %v9433_v55, -inf }
 0x3cd   :  { %v9437_v58 = vpop.f32.mrf.mxu1  ;;  %1759 = vmax.xlane.f32.xlu0 %v1758_v56  ;;  %8784 = vpow2.f32 %v1571_v3 }
 0x3ce   :  { %v1851_v2 = vsel %vm1190_vm9, %v9437_v58, -inf  ;;  %8786 = vpow2.f32 %v1473_v4 }
 0x3cf   :  { %1368 = vmax.xlane.f32.xlu1 %v1367_v62  ;;  %1852 = vmax.xlane.f32.xlu2 %v1851_v2  ;;  %8788 = vpow2.f32 %v1475_v14 }
 0x3d3   :  { %v9457_v15 = vpop.eup %8784 }
 0x3d4   :  { %v9459_v16 = vpop.eup %8786  ;;  %v1575_v17 = vsel %vm1190_vm9, %v9457_v15, 0.0 }
 0x3d5   :  { %v9449_v9 = vpop.f32.mrf.mxu1  ;;  %v1477_v18 = vsel %vm1190_vm9, %v9459_v16, 0.0  ;;  %v9465_v19 = vpop.eup %8788 }
 0x3d6   :  { %v1854_v11 = vsel %vm1190_vm9, %v9449_v9, -inf  ;;  %v1480_v20 = vsel %vm1190_vm9, %v9465_v19, 0.0 }
 0x3d7   :  { %1383 = vadd.xlane.f32.xlu2 %v1382_v10  ;;  %1855 = vmax.xlane.f32.xlu0 %v1854_v11 }
 0x3d8   :  { %1293 = vadd.xlane.f32.xlu1 %v1292_v12 }
 0x3df   :  { %1576 = vadd.xlane.f32.xlu2 %v1575_v17 }
 0x3e0   :  { %1478 = vadd.xlane.f32.xlu1 %v1477_v18 }
 0x3e7   :  { %1481 = vadd.xlane.f32.xlu2 %v1480_v20 }
 0x3eb   :  { %8493 = vrot.lane.b32.xlu0 %v9282_v13, %s9166_s25 }
 0x3f3   :  { %8503 = vrot.lane.b32.xlu0 %v9282_v13, %s9159_s26 }
 0x3f9   :  { %8498 = vrot.lane.b32.xlu1 %v9323_v36, %s9166_s25 }
 0x401   :  { %8508 = vrot.lane.b32.xlu1 %v9323_v36, %s9159_s26 }
 0x409   :  { %8513 = vrot.lane.b32.xlu1 %v9282_v13, %s9167_s29 }
 0x423   :  { %v1568_v21 = vpop.xlane.xlu1 %1567 }
 0x424   :  { %v1570_v22 = vsub.f32 %v9406_v33, %v1568_v21 }
 0x426   :  { %v1573_v23 = vmul.f32 1.442695, %v1570_v22 }
 0x428   :  { %8790 = vpow2.f32 %v1573_v23 }
 0x42b   :  { %v1291_v24 = vpop.xlane.xlu1 %1290 }
 0x42c   :  { %8792 = vrcp.f32 %v1291_v24 }
 0x42e   :  { %v9480_v25 = vpop.eup %8790 }
 0x42f   :  { %v1578_v26 = vsel %vm1190_vm9, %v9480_v25, 0.0 }
 0x430   :  { %1579 = vadd.xlane.f32.xlu2 %v1578_v26 }
 0x432   :  { %v8793_v27 = vpop.eup %8792  ;;  %v1661_v28 = vpop.xlane.xlu0 %1660 }
 0x433   :  { %v1665_v29 = vsub.f32 %v9416_v39, %v1661_v28  ;;  %v1297_v30 = vmul.f32 %v8793_v27, %v9410_v35 }
 0x435   :  { %v1667_v13 = vmul.f32 1.442695, %v1665_v29  ;;  %7389 = vmatmul.msk.f32.vlgmr.msrb.gmra.mxu2 %vm1190_vm9, %v1297_v30 }
 0x437   :  { %8794 = vpow2.f32 %v1667_v13  ;;  %v1757_v31 = vpop.xlane.xlu2 %1756 }
 0x438   :  { %v1761_v32 = vsub.f32 %v9422_v44, %v1757_v31 }
 0x43a   :  { %v1763_v33 = vmul.f32 1.442695, %v1761_v32  ;;  %v1664_v34 = vpop.xlane.xlu1 %1663 }
 0x43b   :  { %v1666_v38 = vsub.f32 %v9426_v47, %v1664_v34 }
 0x43c   :  { %8796 = vpow2.f32 %v1763_v33 }
 0x43d   :  { %v9489_v40 = vpop.eup %8794  ;;  %v1669_v42 = vmul.f32 1.442695, %v1666_v38 }
 0x43e   :  { %v1671_v39 = vsel %vm1190_vm9, %v9489_v40, 0.0 }
 0x43f   :  { %1672 = vadd.xlane.f32.xlu0 %v1671_v39  ;;  %8798 = vpow2.f32 %v1669_v42 }
 0x440   :  { %v1760_v35 = vpop.xlane.xlu0 %1759 }
 0x441   :  { %v1762_v53 = vsub.f32 %v9433_v55, %v1760_v35 }
 0x442   :  { %v9493_v43 = vpop.eup %8796  ;;  %v1369_v45 = vpop.xlane.xlu1 %1368 }
 0x443   :  { %v1853_v46 = vpop.xlane.xlu2 %1852  ;;  %v1373_v44 = vsub.f32 %v9431_v52, %v1369_v45  ;;  %v1767_v47 = vsel %vm1190_vm9, %v9493_v43, 0.0  ;;  %v1765_v62 = vmul.f32 1.442695, %v1762_v53 }
 0x444   :  { %v1857_v48 = vsub.f32 %v9437_v58, %v1853_v46  ;;  %1768 = vadd.xlane.f32.xlu2 %v1767_v47 }
 0x445   :  { %v1375_v50 = vmul.f32 1.442695, %v1373_v44  ;;  %v9499_v51 = vpop.eup %8798 }
 0x446   :  { %v1859_v49 = vmul.f32 1.442695, %v1857_v48  ;;  %v1674_v52 = vsel %vm1190_vm9, %v9499_v51, 0.0 }
 0x448   :  { %8800 = vpow2.f32 %v1859_v49 }
 0x449   :  { %8802 = vpow2.f32 %v1375_v50 }
 0x44a   :  { %v1856_v54 = vpop.xlane.xlu0 %1855 }
 0x44b   :  { %v1294_v56 = vpop.xlane.xlu1 %1293  ;;  %v1858_v57 = vsub.f32 %v9449_v9, %v1856_v54  ;;  %v1384_v10 = vpop.xlane.xlu2 %1383 }
 0x44c   :  { %8804 = vrcp.f32 %v1294_v56  ;;  %1675 = vadd.xlane.f32.xlu2 %v1674_v52 }
 0x44d   :  { %v1861_v58 = vmul.f32 1.442695, %v1858_v57 }
 0x44e   :  { %v9505_v59 = vpop.eup %8800 }
 0x44f   :  { %8806 = vpow2.f32 %v1861_v58  ;;  %v1863_v2 = vsel %vm1190_vm9, %v9505_v59, 0.0  ;;  %v9509_v3 = vpop.eup %8802 }
 0x450   :  { %1864 = vadd.xlane.f32.xlu1 %v1863_v2  ;;  %8808 = vpow2.f32 %v1765_v62  ;;  %v1379_v5 = vsel %vm1190_vm9, %v9509_v3, 0.0 }
 0x452   :  { %v8805_v55 = vpop.eup %8804 }
 0x453   :  { %v1298_v4 = vmul.f32 %v8805_v55, %v9446_v7  ;;  %v1577_v18 = vpop.xlane.xlu2 %1576  ;;  %v1479_v20 = vpop.xlane.xlu1 %1478 }
 0x454   :  { %1380 = vadd.xlane.f32.xlu2 %v1379_v5  ;;  %8810 = vrcp.f32 %v1479_v20 }
 0x455   :  { %v9514_v8 = vpop.eup %8806  ;;  %7390 = vmatmul.msk.f32.gmra.mxu2 %vm1190_vm9, %v1298_v4 }
 0x456   :  { %v1866_v9 = vsel %vm1190_vm9, %v9514_v8, 0.0  ;;  %v9519_v11 = vpop.eup %8808 }
 0x457   :  { %1867 = vadd.xlane.f32.xlu0 %v1866_v9  ;;  %v1770_v12 = vsel %vm1190_vm9, %v9519_v11, 0.0 }
 0x45a   :  { %v8811_v27 = vpop.eup %8810 }
 0x45b   :  { %v1482_v24 = vpop.xlane.xlu2 %1481  ;;  %v1485_v30 = vmul.f32 %v8811_v27, %v9459_v16 }
 0x45c   :  { %1771 = vadd.xlane.f32.xlu2 %v1770_v12  ;;  %8812 = vrcp.f32 %v1482_v24 }
 0x45d   :  { %v8494_v7 = vpop.permute.xlu0 %8493 }
 0x45e   :  { %v8495_v14 = vunpack.i.l.bf16 %v8494_v7  ;;  %v8496_v17 = vunpack.i.h.bf16 %v8494_v7 }
 0x460   :  { %1417 = vmatpush.msra.mxu0 %v8495_v14 }
 0x462   :  { %1418 = vmatpush.msra.mxu0 %v8496_v17  ;;  %v8813_v31 = vpop.eup %8812 }
 0x463   :  { %v1486_v34 = vmul.f32 %v8813_v31, %v9465_v19 }
 0x465   :  { %v8504_v21 = vpop.permute.xlu0 %8503 }
 0x466   :  { %v8505_v22 = vunpack.i.l.bf16 %v8504_v21  ;;  %v8506_v23 = vunpack.i.h.bf16 %v8504_v21 }
 0x468   :  { %1611 = vmatpush.msrb.mxu0 %v8505_v22 }
 0x46a   :  { %1612 = vmatpush.msrb.mxu0 %v8506_v23 }
 0x46b   :  { %v8499_v26 = vpop.permute.xlu1 %8498 }
 0x46c   :  { %v8500_v28 = vunpack.i.l.bf16 %v8499_v26  ;;  %v8501_v29 = vunpack.i.h.bf16 %v8499_v26 }
 0x46e   :  { %1515 = vmatpush.msra.mxu2 %v8500_v28 }
 0x470   :  { %1516 = vmatpush.msra.mxu2 %v8501_v29 }
 0x471   :  { %7401 = vmatmul.msk.f32.vlgmr.msra.gmra.mxu2 %vm1190_vm9, %v1485_v30 }
 0x473   :  { %v8509_v13 = vpop.permute.xlu1 %8508 }
 0x474   :  { %v8510_v32 = vunpack.i.l.bf16 %v8509_v13  ;;  %8518 = vrot.lane.b32.xlu2 %v9323_v36, %s9167_s29  ;;  %v8511_v33 = vunpack.i.h.bf16 %v8509_v13 }
 0x476   :  { %1707 = vmatpush.msrb.mxu2 %v8510_v32 }
 0x478   :  { %1708 = vmatpush.msrb.mxu2 %v8511_v33 }
 0x479   :  { %7402 = vmatmul.msk.f32.gmra.mxu2 %vm1190_vm9, %v1486_v34 }
 0x47b   :  { %v8514_v36 = vpop.permute.xlu1 %8513 }
 0x47c   :  { %v8515_v53 = vunpack.i.l.bf16 %v8514_v36 }
 0x4a3   :  { %v1580_v38 = vpop.xlane.xlu2 %1579 }
 0x4b2   :  { %v1673_v42 = vpop.xlane.xlu0 %1672 }
 0x4b3   :  { %8814 = vrcp.f32 %v1673_v42 }
 0x4b7   :  { %v1769_v16 = vpop.xlane.xlu2 %1768 }
 0x4b8   :  { %v9542_v9 = vpop.f32.mrf.mxu2 }
 0x4b9   :  { %v8815_v39 = vpop.eup %8814 }
 0x4ba   :  { %v1679_v35 = vmul.f32 %v8815_v39, %v9489_v40  ;;  %v8516_v40 = vunpack.i.h.bf16 %v8514_v36 }
 0x4bc   :  { %7413 = vmatmul.msk.f32.vlgmr.msrb.gmra.mxu2 %vm1190_vm9, %v1679_v35 }
 0x4bf   :  { %v1676_v45 = vpop.xlane.xlu2 %1675 }
 0x4c0   :  { %8816 = vrcp.f32 %v1676_v45  ;;  %v9169_v45 = vmov 8  }
 0x4c1   :  { %8553 = vset.pattern.permute.xlu0 %v9169_v45  ;;  %8554 = vset.pattern.permute.xlu1 %v9169_v45 }
 0x4c2   :  { %8552 = vset.pattern.permute.xlu2 %v9169_v45  ;;  %v8276_v45 = vld [vmem:[#allocation2 + $0xe8] sm:$0xff] }
 0x4c3   :  { %v1865_v47 = vpop.xlane.xlu1 %1864 }
 0x4c6   :  { %v8817_v46 = vpop.eup %8816 }
 0x4c7   :  { %v1381_v44 = vpop.xlane.xlu2 %1380  ;;  %v1680_v48 = vmul.f32 %v8817_v46, %v9499_v51 }
 0x4c8   :  { %8818 = vrcp.f32 %v1381_v44  ;;  %v9170_v44 = vmov 1.5707964  }
 0x4c9   :  { %7414 = vmatmul.msk.f32.gmra.mxu2 %vm1190_vm9, %v1680_v48  ;;  %8820 = vrcp.f32 %v1384_v10 }
 0x4ca   :  { %8822 = vrcp.f32 %v1865_v47  ;;  %v1868_v56 = vpop.xlane.xlu0 %1867 }
 0x4cb   :  { %8824 = vrcp.f32 %v1577_v18 }
 0x4cc   :  { %8826 = vrcp.f32 %v1868_v56 }
 0x4cd   :  { %8828 = vrcp.f32 %v1580_v38  ;;  %v9567_v38 = vld [vmem:[%s11432_s0 + $0x10] sm:$0xff] }
 0x4ce   :  { %v8819_v19 = vpop.eup %8818  ;;  %8830 = vrcp.f32 %v1769_v16  ;;  %v188_v42 = vand.u32 2147483647, %v9567_v38  ;;  %v203_v56 = vand.u32 2147483648, %v9567_v38 }
 0x4cf   :  { %v1387_v49 = vmul.f32 %v8819_v19, %v9509_v3  ;;  %v1772_v50 = vpop.xlane.xlu2 %1771  ;;  %v8821_v54 = vpop.eup %8820 }
 0x4d0   :  { %v1388_v57 = vmul.f32 %v8821_v54, %v9444_v6  ;;  %v8823_v52 = vpop.eup %8822  ;;  %8832 = vrcp.f32 %v1772_v50 }
 0x4d1   :  { %7395 = vmatmul.msk.f32.vlgmr.msra.gmra.mxu0 %vm1190_vm9, %v1387_v49  ;;  %v1871_v2 = vmul.f32 %v8823_v52, %v9505_v59  ;;  %v8825_v3 = vpop.eup %8824 }
 0x4d2   :  { %1803 = vmatpush.msra.mxu0 %v8515_v53  ;;  %v1583_v55 = vmul.f32 %v8825_v3, %v9457_v15  ;;  %v8827_v4 = vpop.eup %8826 }
 0x4d3   :  { %v1872_v6 = vmul.f32 %v8827_v4, %v9514_v8  ;;  %v8829_v5 = vpop.eup %8828 }
 0x4d4   :  { %1804 = vmatpush.msra.mxu0 %v8516_v40  ;;  %v1584_v59 = vmul.f32 %v8829_v5, %v9480_v25  ;;  %v8831_v10 = vpop.eup %8830  ;;  %v9168_v25 = vmov 2.0  }
 0x4d5   :  { %v1775_v15 = vmul.f32 %v8831_v10, %v9493_v43  ;;  %8834 = vrcp.f32 %v9168_v25  ;;  %v9557_v43 = vld [vmem:[%s11432_s0 + $0x8] sm:$0xff] }
 0x4d6   :  { %v8833_v7 = vpop.eup %8832  ;;  %v186_v32 = vand.u32 2147483648, %v9557_v43 }
 0x4d7   :  { %v8519_v51 = vpop.permute.xlu2 %8518  ;;  %v1776_v14 = vmul.f32 %v8833_v7, %v9519_v11  ;;  %v171_v11 = vand.u32 2147483647, %v9557_v43 }
 0x4d8   :  { %v8520_v58 = vunpack.i.l.bf16 %v8519_v51  ;;  %v8521_v62 = vunpack.i.h.bf16 %v8519_v51  ;;  %v9547_v12 = vpop.f32.mrf.mxu2 }
 0x4d9   :  { %7396 = vmatmul.msk.f32.gmra.mxu0 %vm1190_vm9, %v1388_v57 }
 0x4da   :  { %1899 = vmatpush.msra.mxu2 %v8520_v58 }
 0x4db   :  { %v8835_v20 = vpop.eup %8834 }
 0x4dc   :  { %1900 = vmatpush.msra.mxu2 %v8521_v62  ;;  %v156_v21 = vmul.f32 2.0, %v8835_v20  ;;  %vm160_vm10 = vweird.f32 %v8835_v20  ;;  %v9104_v62 = vld [vmem:[%s11432_s0] sm:$0xff] }
 0x4dd   :  { %7425 = vmatmul.msk.f32.vlgmr.msra.gmra.mxu2 %vm1190_vm9, %v1871_v2  ;;  %v154_v2 = vand.u32 2147483647, %v9104_v62 }
 0x4de   :  { %v157_v22 = vsub.f32 1.0, %v156_v21 }
 0x4e0   :  { %v158_v23 = vmul.f32 %v8835_v20, %v157_v22 }
 0x4e1   :  { %7407 = vmatmul.msk.f32.vlgmr.msrb.gmra.mxu0 %vm1190_vm9, %v1583_v55 }
 0x4e2   :  { %v159_v24 = vadd.f32 %v8835_v20, %v158_v23 }
 0x4e4   :  { %v9560_v26 = vsel %vm160_vm10, %v8835_v20, %v159_v24 }
 0x4e5   :  { %7426 = vmatmul.msk.f32.gmra.mxu2 %vm1190_vm9, %v1872_v6  ;;  %v179_v27 = vmul.f32 %v171_v11, %v9560_v26  ;;  %v196_v35 = vmul.f32 %v188_v42, %v9560_v26  ;;  %v162_v4 = vmul.f32 %v9560_v26, %v154_v2 }
 0x4e7   :  { %v180_v28 = vfloor.f32 %v179_v27  ;;  %v197_v36 = vfloor.f32 %v196_v35  ;;  %v163_v10 = vfloor.f32 %v162_v4 }
 0x4e9   :  { %7408 = vmatmul.msk.f32.gmra.mxu0 %vm1190_vm9, %v1584_v59  ;;  %v181_v29 = vmul.f32 2.0, %v180_v28  ;;  %v198_v19 = vmul.f32 2.0, %v197_v36  ;;  %v164_v7 = vmul.f32 2.0, %v163_v10  ;;  %v8275_v36 = vld [vmem:[#allocation2 + $0xe0] sm:$0xff] }
 0x4eb   :  { %v182_v30 = vsub.f32 %v171_v11, %v181_v29  ;;  %v199_v50 = vsub.f32 %v188_v42, %v198_v19  ;;  %v165_v25 = vsub.f32 %v154_v2, %v164_v7  ;;  %v8278_v42 = vld [vmem:[#allocation2 + $0xf8] sm:$0xff]  ;;  %v8273_v19 = vld [vmem:[#allocation2 + $0xd0] sm:$0xff] }
 0x4ec   :  { %2038 = vmatpush.bf16.msra.mxu3 %v8278_v42 }
 0x4ed   :  { %vm183_vm11 = vcmp.eq.f32.partialorder %v182_v30, 2.0  ;;  %vm200_vm0 = vcmp.eq.f32.partialorder %v199_v50, 2.0  ;;  %vm166_vm6 = vcmp.eq.f32.partialorder %v165_v25, 2.0 }
 0x4ee   :  { %v184_v13 = vsel %vm183_vm11, 0.0, %v182_v30  ;;  %v201_v40 = vsel %vm200_vm0, 0.0, %v199_v50  ;;  %v167_v11 = vsel %vm166_vm6, 0.0, %v165_v25 }
 0x4ef   :  { %v185_v31 = vand.u32 2147483647, %v184_v13  ;;  %v202_v54 = vand.u32 2147483647, %v201_v40  ;;  %v168_v30 = vand.u32 2147483647, %v167_v11 }
 0x4f0   :  { %v169_v13 = vand.u32 2147483648, %v9104_v62 }
 0x4f1   :  { %7419 = vmatmul.msk.f32.vlgmr.msra.gmra.mxu0 %vm1190_vm9, %v1775_v15  ;;  %v187_v34 = vor.u32 %v186_v32, %v185_v31  ;;  %v204_v51 = vor.u32 %v203_v56, %v202_v54 }
 0x4f3   :  { %vm223_vm12 = vcmp.ne.f32.partialorder %v187_v34, 0.0  ;;  %vm227_vm13 = vcmp.lt.f32.partialorder %v187_v34, 0.0  ;;  %v235_v39 = vadd.f32 2.0, %v187_v34  ;;  %vm224_vm1 = vcmp.ne.f32.partialorder %v204_v51, 0.0 }
 0x4f4   :  { %v1518_v8 = vpop.f32.mrf.mxu2  ;;  %vm231_vm14 = vmand %vm227_vm13, %vm223_vm12  ;;  %vm228_vm2 = vcmp.lt.f32.partialorder %v204_v51, 0.0  ;;  %v236_v52 = vadd.f32 2.0, %v204_v51 }
 0x4f5   :  { %v239_v46 = vsel %vm231_vm14, %v235_v39, %v187_v34  ;;  %vm232_vm3 = vmand %vm228_vm2, %vm224_vm1  ;;  %v8277_v39 = vld [vmem:[#allocation2 + $0xf0] sm:$0xff]  ;;  %vm1960_vm1 = vcmask 523264   ;;  %vm1965_vm2 = vcmask 785408  }
 0x4f6   :  { %vm243_vm15 = vcmp.eq.f32.partialorder %v239_v46, 0.0  ;;  %v240_v3 = vsel %vm232_vm3, %v236_v52, %v204_v51  ;;  %2039 = vmatpush.bf16.msra.mxu3 %v8277_v39 }
 0x4f7   :  { %v247_v48 = vsel %vm243_vm15, 0.0, %v9170_v44  ;;  %vm244_vm5 = vcmp.eq.f32.partialorder %v240_v3, 0.0 }
 0x4f8   :  { %v248_v55 = vsel %vm244_vm5, 0.0, %v9170_v44 }
 0x4f9   :  { %7420 = vmatmul.msk.f32.gmra.mxu0 %vm1190_vm9, %v1776_v14 }
 0x4fa   :  { %2040 = vmatpush.bf16.msra.mxu3 %v8276_v45 }
 0x4fc   :  { %v1521_v17 = vpop.f32.mrf.mxu2 }
 0x4fd   :  { %v8537_v18 = vpack.i.bf16 %v1521_v17, %v1518_v8  ;;  %v9105_v8 = vld [vmem:[%s11432_s0 + $0x18] sm:$0xff] }
 0x4fe   :  { %v205_v14 = vand.u32 2147483647, %v9105_v8  ;;  %v220_v29 = vand.u32 2147483648, %v9105_v8  ;;  %2041 = vmatpush.bf16.msra.mxu3 %v8275_v36 }
 0x4ff   :  { %8538 = vrot.lane.b32.xlu1 %v8537_v18, %s9167_s29 }
 0x500   :  { %v213_v18 = vmul.f32 %v205_v14, %v9560_v26 }
 0x502   :  { %v214_v20 = vfloor.f32 %v213_v18 }
 0x504   :  { %v215_v21 = vmul.f32 2.0, %v214_v20  ;;  %v9611_v20 = vld [vmem:[%s11434_s2 + $0x22] ss:$0 sm:$0xff] }
 0x506   :  { %v216_v22 = vsub.f32 %v205_v14, %v215_v21 }
 0x507   :  { %257 = vperm.xlu1 %8554, %v247_v48   ;;  %v8274_v48 = vld [vmem:[#allocation2 + $0xd8] sm:$0xff] }
 0x508   :  { %vm217_vm7 = vcmp.eq.f32.partialorder %v216_v22, 2.0  ;;  %2042 = vmatpush.bf16.msra.mxu3 %v8274_v48 }
 0x509   :  { %v218_v27 = vsel %vm217_vm7, 0.0, %v216_v22 }
 0x50a   :  { %v219_v28 = vand.u32 2147483647, %v218_v27 }
 0x50c   :  { %v221_v26 = vor.u32 %v220_v29, %v219_v28  ;;  %2043 = vmatpush.bf16.msra.mxu3 %v8273_v19 }
 0x50e   :  { %vm225_vm8 = vcmp.ne.f32.partialorder %v221_v26, 0.0  ;;  %vm229_vm10 = vcmp.lt.f32.partialorder %v221_v26, 0.0  ;;  %v237_v31 = vadd.f32 2.0, %v221_v26 }
 0x50f   :  { %262 = vperm.xlu1 %8554, %v248_v55   ;;  %vm233_vm11 = vmand %vm229_vm10, %vm225_vm8 }
 0x53f   :  { %v9570_v16 = vpop.f32.mrf.mxu2 }
 0x54c   :  { %v1713_v53 = vpop.f32.mrf.mxu2 }
 0x54d   :  { %v8542_v32 = vpack.i.bf16 %v1713_v53, %v9570_v16 }
 0x54e   :  { %v1420_v33 = vpop.f32.mrf.mxu0 }
 0x556   :  { %v1423_v47 = vpop.f32.mrf.mxu0 }
 0x557   :  { %v8522_v49 = vpack.i.bf16 %v1423_v47, %v1420_v33  ;;  %v241_v33 = vsel %vm233_vm11, %v237_v31, %v221_v26  ;;  %v8272_v47 = vld [vmem:[#allocation2 + $0xc8] sm:$0xff] }
 0x558   :  { %vm245_vm12 = vcmp.eq.f32.partialorder %v241_v33, 0.0  ;;  %2044 = vmatpush.bf16.msra.mxu3 %v8272_v47 }
 0x559   :  { %8523 = vrot.lane.b32.xlu0 %v8522_v49, %s9167_s29  ;;  %v249_v34 = vsel %vm245_vm12, 0.0, %v9170_v44  ;;  %v8271_v49 = vld [vmem:[#allocation2 + $0xc0] sm:$0xff] }
 0x55c   :  { %2045 = vmatpush.bf16.msra.mxu3 %v8271_v49 }
 0x55e   :  { %v1614_v57 = vpop.f32.mrf.mxu0 }
 0x560   :  { %v1902_v58 = vpop.f32.mrf.mxu2 }
 0x566   :  { %v1617_v6 = vpop.f32.mrf.mxu0 }
 0x567   :  { %v8527_v5 = vpack.i.bf16 %v1617_v6, %v1614_v57 }
 0x568   :  { %v1905_v59 = vpop.f32.mrf.mxu2 }
 0x569   :  { %v8547_v15 = vpack.i.bf16 %v1905_v59, %v1902_v58  ;;  %8528 = vrot.lane.b32.xlu2 %v8527_v5, %s9159_s26 }
 0x56b   :  { %8548 = vrot.lane.b32.xlu0 %v8547_v15, %s9166_s25 }
 0x56e   :  { %v1806_v17 = vpop.f32.mrf.mxu0 }
 0x573   :  { %136 = vperm.xlu0 %8553, %v9557_v43   ;;  %v170_v43 = vor.u32 %v169_v13, %v168_v30 }
 0x575   :  { %vm222_vm13 = vcmp.ne.f32.partialorder %v170_v43, 0.0  ;;  %vm226_vm14 = vcmp.lt.f32.partialorder %v170_v43, 0.0  ;;  %v234_v35 = vadd.f32 2.0, %v170_v43 }
 0x576   :  { %v1809_v23 = vpop.f32.mrf.mxu0  ;;  %vm230_vm15 = vmand %vm226_vm14, %vm222_vm13 }
 0x577   :  { %v8532_v24 = vpack.i.bf16 %v1809_v23, %v1806_v17  ;;  %v238_v46 = vsel %vm230_vm15, %v234_v35, %v170_v43 }
 0x578   :  { %vm242_vm0 = vcmp.eq.f32.partialorder %v238_v46, 0.0 }
 0x579   :  { %8533 = vrot.lane.b32.xlu2 %v8532_v24, %s9166_s25  ;;  %v246_v16 = vsel %vm242_vm0, 0.0, %v9170_v44 }
 0x57b   :  { %146 = vperm.xlu0 %8553, %v9105_v8  }
 0x581   :  { %8543 = vrot.lane.b32.xlu2 %v8542_v32, %s9159_s26 }
 0x589   :  { %131 = vperm.xlu2 %8552, %v9104_v62  }
 0x591   :  { %252 = vperm.xlu2 %8552, %v246_v16  }
 0x599   :  { %141 = vperm.xlu2 %8552, %v9567_v38  }
 0x5a1   :  { %267 = vperm.xlu2 %8552, %v249_v34  }
 0x5c3   :  { %v8529_v50 = vpop.permute.xlu2 %8528 }
 0x5c4   :  { %v8531_v56 = vunpack.i.h.bf16 %v8529_v50  ;;  %v8530_v51 = vunpack.i.l.bf16 %v8529_v50  ;;  %v9171_v50 = vmov 683565275  }
 0x5cb   :  { %v8524_v53 = vpop.permute.xlu0 %8523 }
 0x5cc   :  { %v8526_v40 = vunpack.i.h.bf16 %v8524_v53  ;;  %v8525_v54 = vunpack.i.l.bf16 %v8524_v53 }
 0x5ce   :  { %v1957_v44 = vsel %vm86_vm4, %v9420_v41, %v8526_v40  ;;  %v1956_v38 = vsel %vm86_vm4, %v9412_v37, %v8525_v54  ;;  %v8539_v41 = vpop.permute.xlu1 %8538  ;;  %v9172_v40 = vmov 2475754826  }
 0x5cf   :  { %v1961_v62 = vsel %vm1960_vm1, %v1956_v38, %v8530_v51  ;;  %v1962_v2 = vsel %vm1960_vm1, %v1957_v44, %v8531_v56  ;;  %v8541_v37 = vunpack.i.h.bf16 %v8539_v41  ;;  %v8540_v5 = vunpack.i.l.bf16 %v8539_v41 }
 0x5d0   :  { %v9173_v44 = vmov 2131351028   ;;  %v9174_v56 = vmov 2102212464  }
 0x5d1   :  { %v1958_v14 = vsel %vm86_vm4, %v9542_v9, %v8540_v5  ;;  %v1959_v17 = vsel %vm86_vm4, %v9547_v12, %v8541_v37 }
 0x5d3   :  { %v8534_v57 = vpop.permute.xlu2 %8533 }
 0x5d4   :  { %v8536_v52 = vunpack.i.h.bf16 %v8534_v57  ;;  %v8535_v58 = vunpack.i.l.bf16 %v8534_v57  ;;  %v9175_v57 = vmov 920167782  }
 0x5d6   :  { %v1967_v3 = vsel %vm1965_vm2, %v1962_v2, %v8536_v52  ;;  %v1966_v55 = vsel %vm1965_vm2, %v1961_v62, %v8535_v58  ;;  %v258_v11 = vpop.permute.xlu1 %257 }
 0x5d7   :  { %v1970_v4 = vpack.c.bf16 %v1967_v3, %v1966_v55 }
 0x5d9   :  { %2046 = vmatmul.bf16.vlgmr.msra.gmra.mxu3 %v1970_v4 }
 0x5db   :  { %v8544_v6 = vpop.permute.xlu2 %8543 }
 0x5dc   :  { %v8546_v59 = vunpack.i.h.bf16 %v8544_v6  ;;  %v8545_v10 = vunpack.i.l.bf16 %v8544_v6  ;;  %v9176_v6 = vmov 1326507024  }
 0x5dd   :  { %v8549_v15 = vpop.permute.xlu0 %8548 }
 0x5de   :  { %v8551_v7 = vunpack.i.h.bf16 %v8549_v15  ;;  %v8550_v8 = vunpack.i.l.bf16 %v8549_v15  ;;  %v1963_v18 = vsel %vm1960_vm1, %v1958_v14, %v8545_v10  ;;  %v1964_v25 = vsel %vm1960_vm1, %v1959_v17, %v8546_v59 }
 0x5e0   :  { %v1968_v22 = vsel %vm1965_vm2, %v1963_v18, %v8550_v8  ;;  %v1969_v23 = vsel %vm1965_vm2, %v1964_v25, %v8551_v7 }
 0x5e1   :  { %v1971_v27 = vpack.c.bf16 %v1969_v23, %v1968_v22 }
 0x5e3   :  { %v132_v21 = vpop.permute.xlu2 %131 }
 0x5e4   :  { %v150_v12 = vmul.f32 %v9611_v20, %v132_v21 }
 0x5e5   :  { %v137_v24 = vpop.permute.xlu0 %136 }
 0x5e6   :  { %v151_v9 = vmul.f32 %v9611_v20, %v137_v24 }
 0x5e8   :  { %v9617_v28 = vadd.f32 %v258_v11, %v151_v9 }
 0x5e9   :  { %2051 = vmatmul.bf16.gmra.mxu3 %v1971_v27 }
 0x5ea   :  { %v429_v29 = vand.u32 2147483647, %v9617_v28  ;;  %v432_v30 = vand.u32 2139095040, %v9617_v28 }
 0x5eb   :  { %v253_v13 = vpop.permute.xlu2 %252 }
 0x5ec   :  { %v433_v26 = vshrl.u32 %v432_v30, 23  ;;  %v436_v31 = vand.u32 8388607, %v429_v29  ;;  %v9623_v43 = vadd.f32 %v253_v13, %v150_v12 }
 0x5ee   :  { %v7274_v32 = vadd.s32 4294967169, %v433_v26  ;;  %v277_v33 = vand.u32 2139095040, %v9623_v43  ;;  %v437_v34 = vor.u32 8388608, %v436_v31  ;;  %v274_v35 = vand.u32 2147483647, %v9623_v43 }
 0x5f0   :  { %v439_v42 = vadd.s32 1, %v7274_v32  ;;  %v278_v39 = vshrl.u32 %v277_v33, 23  ;;  %v9627_v16 = vshll.u32 %v437_v34, 8  ;;  %v281_v19 = vand.u32 8388607, %v274_v35 }
 0x5f2   :  { %vm440_vm3 = vcmp.gt.s32.totalorder %v439_v42, 0  ;;  %v7271_v45 = vadd.s32 4294967169, %v278_v39  ;;  %v478_v58 = vand.u32 65535, %v9627_v16  ;;  %v479_v62 = vshrl.u32 %v9627_v16, 16 }
 0x5f3   :  { %v441_v46 = vsel %vm440_vm3, %v439_v42, 0  ;;  %v282_v23 = vor.u32 8388608, %v281_v19 }
 0x5f4   :  { %v442_v36 = vshrl.u32 %v441_v46, 5  ;;  %v443_v48 = vand.u32 31, %v441_v46  ;;  %v284_v47 = vadd.s32 1, %v7271_v45 }
 0x5f5   :  { %v9657_v45 = vshll.u32 %v282_v23, 8 }
 0x5f6   :  { %v444_v49 = vsub.s32 32, %v443_v48  ;;  %v446_v53 = vshll.u32 %v9171_v50, %v443_v48  ;;  %v449_v54 = vshll.u32 %v9172_v40, %v443_v48  ;;  %v452_v38 = vshll.u32 %v9173_v44, %v443_v48 }
 0x5f7   :  { %v455_v51 = vshll.u32 %v9174_v56, %v443_v48  ;;  %v458_v52 = vshll.u32 %v9175_v57, %v443_v48  ;;  %vm461_vm5 = vcmp.lt.s32.totalorder %v442_v36, 1  ;;  %vm464_vm6 = vcmp.lt.s32.totalorder %v442_v36, 4 }
 0x5f8   :  { %v447_v2 = vshrl.u32 %v9172_v40, %v444_v49  ;;  %v450_v3 = vshrl.u32 %v9173_v44, %v444_v49  ;;  %v453_v55 = vshrl.u32 %v9174_v56, %v444_v49  ;;  %v445_v4 = vshrl.u32 %v9171_v50, %v444_v49 }
 0x5f9   :  { %v456_v41 = vshrl.u32 %v9175_v57, %v444_v49  ;;  %v459_v37 = vshrl.u32 %v9176_v6, %v444_v49  ;;  %vm285_vm7 = vcmp.gt.s32.totalorder %v284_v47, 0  ;;  %vm463_vm8 = vcmp.lt.s32.totalorder %v442_v36, 3 }
 0x5fa   :  { %v448_v5 = vor.u32 %v447_v2, %v446_v53  ;;  %v451_v59 = vor.u32 %v450_v3, %v449_v54  ;;  %v454_v10 = vor.u32 %v453_v55, %v452_v38  ;;  %v286_v8 = vsel %vm285_vm7, %v284_v47, 0 }
 0x5fb   :  { %v457_v15 = vor.u32 %v456_v41, %v455_v51  ;;  %v460_v7 = vor.u32 %v459_v37, %v458_v52  ;;  %vm462_vm10 = vcmp.lt.s32.totalorder %v442_v36, 2  ;;  %v288_v27 = vand.u32 31, %v286_v8 }
 0x5fc   :  { %v466_v14 = vsel %vm464_vm6, %v454_v10, 2102212464  ;;  %v469_v17 = vsel %vm461_vm5, %v448_v5, %v451_v59  ;;  %v473_v18 = vsel %vm461_vm5, %v451_v59, %v454_v10  ;;  %v465_v25 = vsel %vm461_vm5, %v445_v4, %v448_v5 }
 0x5fd   :  { %v470_v21 = vsel %vm464_vm6, %v457_v15, 920167782  ;;  %v474_v22 = vsel %vm464_vm6, %v460_v7, 1326507024  ;;  %v467_v24 = vsel %vm463_vm8, %v451_v59, %v466_v14  ;;  %v9649_v13 = vshrl.u32 %v286_v8, 5 }
 0x5fe   :  { %v471_v11 = vsel %vm463_vm8, %v454_v10, %v470_v21  ;;  %v475_v9 = vsel %vm463_vm8, %v457_v15, %v474_v22  ;;  %v9652_v34 = vsel %vm462_vm10, %v465_v25, %v467_v24  ;;  %v9654_v42 = vsub.s32 32, %v288_v27 }
 0x5ff   :  { %v472_v12 = vsel %vm462_vm10, %v469_v17, %v471_v11  ;;  %v476_v30 = vsel %vm462_vm10, %v473_v18, %v475_v9  ;;  %v291_v39 = vshll.u32 %v9171_v50, %v288_v27  ;;  %v294_v47 = vshll.u32 %v9172_v40, %v288_v27 }
 0x600   :  { %v480_v26 = vand.u32 65535, %v476_v30  ;;  %v481_v31 = vshrl.u32 %v476_v30, 16  ;;  %v502_v32 = vand.u32 65535, %v472_v12  ;;  %v503_v33 = vshrl.u32 %v472_v12, 16 }
 0x601   :  { %v297_v38 = vshll.u32 %v9173_v44, %v288_v27  ;;  %vm306_vm11 = vcmp.lt.s32.totalorder %v9649_v13, 1  ;;  %v292_v59 = vshrl.u32 %v9172_v40, %v9654_v42  ;;  %v295_v15 = vshrl.u32 %v9173_v44, %v9654_v42 }
 0x602   :  { %v482_v46 = vmul.u32 %v480_v26, %v478_v58  ;;  %v483_v48 = vmul.u32 %v481_v31, %v478_v58  ;;  %v484_v19 = vmul.u32 %v480_v26, %v479_v62  ;;  %v504_v49 = vmul.u32 %v502_v32, %v478_v58 }
 0x603   :  { %v505_v53 = vmul.u32 %v503_v33, %v478_v58  ;;  %v506_v54 = vmul.u32 %v502_v32, %v479_v62  ;;  %v485_v51 = vmul.u32 %v481_v31, %v479_v62  ;;  %v507_v2 = vmul.u32 %v503_v33, %v479_v62 }
 0x604   :  { %v486_v36 = vshll.u32 %v483_v48, 16  ;;  %v488_v52 = vshll.u32 %v484_v19, 16  ;;  %v487_v3 = vshrl.u32 %v483_v48, 16  ;;  %v489_v55 = vshrl.u32 %v484_v19, 16 }
 0x605   :  { %v508_v4 = vshll.u32 %v505_v53, 16  ;;  %v510_v41 = vshll.u32 %v506_v54, 16  ;;  %v509_v5 = vshrl.u32 %v505_v53, 16  ;;  %v511_v7 = vshrl.u32 %v506_v54, 16 }
 0x606   :  { %vm490_vm12 = vc.u32 %v482_v46, %v486_v36  ;;  %v492_v37 = vadd.s32 %v486_v36, %v482_v46  ;;  %v9669_v18 = vor.u32 %v292_v59, %v291_v39  ;;  %v9672_v22 = vor.u32 %v295_v15, %v294_v47 }
 0x607   :  { %v491_v58 = vsel %vm490_vm12, 1, %v9164_v0  ;;  %vm512_vm13 = vc.u32 %v504_v49, %v508_v4  ;;  %v514_v10 = vadd.s32 %v508_v4, %v504_v49  ;;  %v298_v23 = vshrl.u32 %v9174_v56, %v9654_v42 }
 0x608   :  { %v493_v62 = vadd.s32 %v491_v58, %v485_v51  ;;  %vm494_vm14 = vc.u32 %v492_v37, %v488_v52  ;;  %v513_v8 = vsel %vm512_vm13, 1, %v9164_v0  ;;  %v300_v11 = vshll.u32 %v9174_v56, %v288_v27 }
 0x609   :  { %v495_v14 = vsel %vm494_vm14, 1, %v9164_v0  ;;  %v515_v17 = vadd.s32 %v513_v8, %v507_v2  ;;  %vm516_vm15 = vc.u32 %v514_v10, %v510_v41  ;;  %v301_v9 = vshrl.u32 %v9175_v57, %v9654_v42 }
 0x60a   :  { %v497_v25 = vadd.s32 %v495_v14, %v493_v62  ;;  %v517_v21 = vsel %vm516_vm15, 1, %v9164_v0  ;;  %v303_v12 = vshll.u32 %v9175_v57, %v288_v27  ;;  %v9680_v26 = vadd.s32 %v514_v10, %v510_v41  ;;  %v263_v10 = vpop.permute.xlu1 %262 }
 0x60b   :  { %v519_v24 = vadd.s32 %v517_v21, %v515_v17  ;;  %v299_v31 = vor.u32 %v298_v23, %v297_v38  ;;  %v304_v32 = vshrl.u32 %v9176_v6, %v9654_v42  ;;  %v302_v39 = vor.u32 %v301_v9, %v300_v11  ;;  %v142_v38 = vpop.permute.xlu2 %141 }
 0x60c   :  { %v498_v30 = vadd.s32 %v497_v25, %v487_v3  ;;  %vm308_vm0 = vcmp.lt.s32.totalorder %v9649_v13, 3  ;;  %vm309_vm3 = vcmp.lt.s32.totalorder %v9649_v13, 4  ;;  %vm307_vm5 = vcmp.lt.s32.totalorder %v9649_v13, 2 }
 0x60d   :  { %v520_v33 = vadd.s32 %v519_v24, %v509_v5  ;;  %v305_v48 = vor.u32 %v304_v32, %v303_v12  ;;  %v314_v27 = vsel %vm306_vm11, %v9669_v18, %v9672_v22  ;;  %v315_v47 = vsel %vm309_vm3, %v302_v39, 920167782 }
 0x60e   :  { %v9686_v46 = vadd.s32 %v498_v30, %v489_v55  ;;  %v522_v49 = vmul.u32 %v9627_v16, %v9652_v34  ;;  %v316_v53 = vsel %vm308_vm0, %v299_v31, %v315_v47  ;;  %v323_v54 = vand.u32 65535, %v9657_v45 }
 0x60f   :  { %v521_v19 = vadd.s32 %v520_v33, %v511_v7  ;;  %v317_v36 = vsel %vm307_vm5, %v314_v27, %v316_v53  ;;  %v318_v52 = vsel %vm306_vm11, %v9672_v22, %v299_v31  ;;  %v319_v16 = vsel %vm309_vm3, %v305_v48, 1326507024 }
 0x610   :  { %vm524_vm6 = vc.u32 %v9686_v46, %v9680_v26  ;;  %v320_v34 = vsel %vm308_vm0, %v302_v39, %v319_v16  ;;  %v324_v2 = vshrl.u32 %v9657_v45, 16  ;;  %v347_v3 = vand.u32 65535, %v317_v36 }
 0x611   :  { %v525_v51 = vadd.s32 1, %v521_v19  ;;  %v348_v55 = vshrl.u32 %v317_v36, 16  ;;  %v321_v41 = vsel %vm307_vm5, %v318_v52, %v320_v34  ;;  %v152_v37 = vmul.f32 %v9611_v20, %v142_v38 }
 0x612   :  { %v325_v59 = vand.u32 65535, %v321_v41  ;;  %v326_v58 = vshrl.u32 %v321_v41, 16  ;;  %v351_v62 = vmul.u32 %v347_v3, %v324_v2  ;;  %v349_v25 = vmul.u32 %v347_v3, %v323_v54 }
 0x613   :  { %v526_v4 = vsel %vm524_vm6, %v525_v51, %v521_v19  ;;  %v350_v15 = vmul.u32 %v348_v55, %v323_v54  ;;  %v9715_v23 = vadd.f32 %v263_v10, %v152_v37  ;;  %v290_v11 = vshrl.u32 %v9171_v50, %v9654_v42 }
 0x614   :  { %v527_v5 = vadd.s32 %v526_v4, %v522_v49  ;;  %v327_v8 = vmul.u32 %v325_v59, %v323_v54  ;;  %v328_v14 = vmul.u32 %v326_v58, %v323_v54  ;;  %v329_v17 = vmul.u32 %v325_v59, %v324_v2 }
 0x615   :  { %v353_v21 = vshll.u32 %v350_v15, 16  ;;  %v330_v9 = vmul.u32 %v326_v58, %v324_v2  ;;  %v311_v30 = vsel %vm309_vm3, %v299_v31, 2102212464  ;;  %v352_v33 = vmul.u32 %v348_v55, %v324_v2 }
 0x616   :  { %v528_v7 = vadd.s32 536870912, %v527_v5  ;;  %v331_v12 = vshll.u32 %v328_v14, 16  ;;  %v333_v32 = vshll.u32 %v329_v17, 16  ;;  %v355_v39 = vshll.u32 %v351_v62, 16 }
 0x617   :  { %v354_v27 = vshrl.u32 %v350_v15, 16  ;;  %vm357_vm8 = vc.u32 %v349_v25, %v353_v21  ;;  %v359_v49 = vadd.s32 %v353_v21, %v349_v25  ;;  %v587_v53 = vand.u32 2139095040, %v9715_v23 }
 0x618   :  { %v9717_v24 = vshrl.u32 %v528_v7, 30  ;;  %vm335_vm7 = vc.u32 %v327_v8, %v331_v12  ;;  %v337_v19 = vadd.s32 %v331_v12, %v327_v8  ;;  %v332_v54 = vshrl.u32 %v328_v14, 16 }
 0x619   :  { %v336_v47 = vsel %vm335_vm7, 1, %v9164_v0  ;;  %v334_v51 = vshrl.u32 %v329_v17, 16  ;;  %v358_v36 = vsel %vm357_vm8, 1, %v9164_v0  ;;  %vm361_vm12 = vc.u32 %v359_v49, %v355_v39 }
 0x61a   :  { %v530_v48 = vshll.u32 %v9717_v24, 30  ;;  %v338_v38 = vadd.s32 %v336_v47, %v330_v9  ;;  %vm339_vm10 = vc.u32 %v337_v19, %v333_v32  ;;  %v360_v34 = vadd.s32 %v358_v36, %v352_v33 }
 0x61b   :  { %v340_v31 = vsel %vm339_vm10, 1, %v9164_v0  ;;  %v310_v2 = vsel %vm306_vm11, %v290_v11, %v9669_v18  ;;  %v312_v3 = vsel %vm308_vm0, %v9672_v22, %v311_v30  ;;  %v362_v55 = vsel %vm361_vm12, 1, %v9164_v0 }
 0x61c   :  { %v531_v42 = vsub.s32 %v527_v5, %v530_v48  ;;  %v342_v16 = vadd.s32 %v340_v31, %v338_v38  ;;  %v588_v4 = vshrl.u32 %v587_v53, 23  ;;  %v356_v5 = vshrl.u32 %v351_v62, 16 }
 0x61d   :  { %v364_v59 = vadd.s32 %v362_v55, %v360_v34  ;;  %v9735_v10 = vadd.s32 %v359_v49, %v355_v39  ;;  %v313_v7 = vsel %vm307_vm5, %v310_v2, %v312_v3  ;;  %v584_v14 = vand.u32 2147483647, %v9715_v23 }
 0x61e   :  { %vm532_vm13 = vcmp.lt.s32.totalorder %v531_v42, 0  ;;  %v533_v52 = vsub.s32 0, %v531_v42  ;;  %v343_v37 = vadd.s32 %v342_v16, %v332_v54  ;;  %v7277_v15 = vadd.s32 4294967169, %v588_v4  ;;  %v147_v16 = vpop.permute.xlu0 %146 }
 0x61f   :  { %v365_v18 = vadd.s32 %v364_v59, %v354_v27  ;;  %v523_v25 = vadd.s32 %v9680_v26, %v9686_v46  ;;  %v367_v62 = vmul.u32 %v9657_v45, %v313_v7  ;;  %v591_v9 = vand.u32 8388607, %v584_v14 }
 0x620   :  { %v534_v41 = vsel %vm532_vm13, %v533_v52, %v531_v42  ;;  %v9739_v8 = vadd.s32 %v343_v37, %v334_v51  ;;  %v594_v17 = vadd.s32 1, %v7277_v15  ;;  %vm431_vm8 = vcmp.lt.s32.totalorder %v9617_v28, 0 }
 0x621   :  { %v535_v58 = vclz %v534_v41  ;;  %v366_v21 = vadd.s32 %v365_v18, %v356_v5  ;;  %v592_v27 = vor.u32 8388608, %v591_v9  ;;  %vm9812_vm10 = vcmp.le.f32.partialorder %v429_v29, 0.7853982 }
 0x622   :  { %vm369_vm14 = vc.u32 %v9739_v8, %v9735_v10  ;;  %vm595_vm15 = vcmp.gt.s32.totalorder %v594_v17, 0 }
 0x623   :  { %v7275_v22 = vadd.s32 4294967294, %v535_v58  ;;  %v370_v11 = vadd.s32 1, %v366_v21  ;;  %v596_v12 = vsel %vm595_vm15, %v594_v17, 0  ;;  %v9769_v59 = vshll.u32 %v592_v27, 8  ;;  %v268_v17 = vpop.permute.xlu2 %267 }
 0x624   :  { %v598_v48 = vand.u32 31, %v596_v12  ;;  %v9749_v45 = vshrl.u32 %v596_v12, 5  ;;  %v153_v58 = vmul.f32 %v9611_v20, %v147_v16 }
 0x625   :  { %vm7276_vm11 = vcmp.lt.s32.totalorder %v7275_v22, 0  ;;  %v371_v39 = vsel %vm369_vm14, %v370_v11, %v366_v21 }
 0x626   :  { %v538_v13 = vsel %vm7276_vm11, 0, %v7275_v22  ;;  %v372_v19 = vadd.s32 %v371_v39, %v367_v62  ;;  %v9751_v47 = vsub.s32 32, %v598_v48  ;;  %v601_v49 = vshll.u32 %v9171_v50, %v598_v48 }
 0x627   :  { %v539_v30 = vsub.s32 32, %v538_v13  ;;  %v540_v32 = vshll.u32 %v531_v42, %v538_v13  ;;  %v543_v33 = vsub.s32 4294967266, %v538_v13  ;;  %v604_v51 = vshll.u32 %v9172_v40, %v598_v48 }
 0x628   :  { %v373_v38 = vadd.s32 536870912, %v372_v19  ;;  %v605_v42 = vshrl.u32 %v9173_v44, %v9751_v47  ;;  %v607_v31 = vshll.u32 %v9173_v44, %v598_v48  ;;  %v608_v36 = vshrl.u32 %v9174_v56, %v9751_v47 }
 0x629   :  { %v541_v26 = vshrl.u32 %v523_v25, %v539_v30  ;;  %v544_v46 = vadd.s32 127, %v543_v33  ;;  %v610_v52 = vshll.u32 %v9174_v56, %v598_v48  ;;  %v602_v3 = vshrl.u32 %v9172_v40, %v9751_v47 }
 0x62a   :  { %v9761_v2 = vshrl.u32 %v373_v38, 30  ;;  %v611_v55 = vshrl.u32 %v9175_v57, %v9751_v47  ;;  %v613_v41 = vshll.u32 %v9175_v57, %v598_v48  ;;  %v9772_v15 = vor.u32 %v605_v42, %v604_v51 }
 0x62b   :  { %v542_v53 = vor.u32 %v541_v26, %v540_v32  ;;  %v545_v54 = vshll.u32 %v544_v46, 23  ;;  %v9774_v7 = vor.u32 %v608_v36, %v607_v31  ;;  %v614_v22 = vshrl.u32 %v9176_v6, %v9751_v47 }
 0x62c   :  { %v375_v5 = vshll.u32 %v9761_v2, 30  ;;  %v612_v18 = vor.u32 %v611_v55, %v610_v52  ;;  %v9778_v21 = vor.u32 %v602_v3, %v601_v49  ;;  %vm616_vm0 = vcmp.lt.s32.totalorder %v9749_v45, 1 }
 0x62d   :  { %v546_v34 = vor.u32 4788187, %v545_v54  ;;  %v549_v4 = vcvt.s32.f32 %v542_v53  ;;  %vm619_vm3 = vcmp.lt.s32.totalorder %v9749_v45, 4  ;;  %v615_v13 = vor.u32 %v614_v22, %v613_v41 }
 0x62e   :  { %v376_v25 = vsub.s32 %v372_v19, %v375_v5  ;;  %vm618_vm5 = vcmp.lt.s32.totalorder %v9749_v45, 3  ;;  %vm617_vm7 = vcmp.lt.s32.totalorder %v9749_v45, 2  ;;  %v9784_v11 = vadd.f32 %v268_v17, %v153_v58 }
 0x62f   :  { %v547_v37 = vand.u32 2147483647, %v546_v34  ;;  %v625_v9 = vsel %vm619_vm3, %v612_v18, 920167782  ;;  %v628_v12 = vsel %vm616_vm0, %v9772_v15, %v9774_v7  ;;  %v629_v30 = vsel %vm619_vm3, %v615_v13, 1326507024 }
 0x630   :  { %vm377_vm6 = vcmp.lt.s32.totalorder %v376_v25, 0  ;;  %v378_v20 = vsub.s32 0, %v376_v25  ;;  %v633_v32 = vand.u32 65535, %v9769_v59  ;;  %v624_v39 = vsel %vm616_vm0, %v9778_v21, %v9772_v15 }
 0x631   :  { %v550_v62 = vmul.f32 %v549_v4, %v547_v37  ;;  %v626_v48 = vsel %vm618_vm5, %v9774_v7, %v625_v9  ;;  %v630_v26 = vsel %vm618_vm5, %v612_v18, %v629_v30  ;;  %v634_v49 = vshrl.u32 %v9769_v59, 16 }
 0x632   :  { %v379_v33 = vsel %vm377_vm6, %v378_v20, %v376_v25  ;;  %v631_v27 = vsel %vm617_vm7, %v628_v12, %v630_v26  ;;  %v627_v51 = vsel %vm617_vm7, %v624_v39, %v626_v48  ;;  %v368_v31 = vadd.s32 %v9735_v10, %v9739_v8 }
 0x633   :  { %v551_v46 = vxor.u32 2147483648, %v550_v62  ;;  %v380_v19 = vclz %v379_v33  ;;  %v635_v53 = vand.u32 65535, %v631_v27  ;;  %v636_v54 = vshrl.u32 %v631_v27, 16 }
 0x634   :  { %v742_v52 = vand.u32 2139095040, %v9784_v11  ;;  %v657_v41 = vand.u32 65535, %v627_v51  ;;  %v658_v37 = vshrl.u32 %v627_v51, 16  ;;  %v739_v22 = vand.u32 2147483647, %v9784_v11 }
 0x635   :  { %v7272_v38 = vadd.s32 4294967294, %v380_v19  ;;  %v638_v36 = vmul.u32 %v636_v54, %v633_v32  ;;  %v552_v16 = vsel %vm431_vm8, %v551_v46, %v550_v62  ;;  %v637_v34 = vmul.u32 %v635_v53, %v633_v32 }
 0x636   :  { %v639_v3 = vmul.u32 %v635_v53, %v634_v49  ;;  %v640_v18 = vmul.u32 %v636_v54, %v634_v49  ;;  %v9824_v10 = vsel %vm9812_vm10, %v9617_v28, %v552_v16  ;;  %v743_v13 = vshrl.u32 %v742_v52, 23 }
 0x637   :  { %vm7273_vm12 = vcmp.lt.s32.totalorder %v7272_v38, 0  ;;  %v641_v4 = vshll.u32 %v638_v36, 16  ;;  %vm276_vm11 = vcmp.lt.s32.totalorder %v9623_v43, 0  ;;  %v660_v12 = vmul.u32 %v658_v37, %v633_v32 }
 0x638   :  { %v383_v55 = vsel %vm7273_vm12, 0, %v7272_v38  ;;  %v643_v8 = vshll.u32 %v639_v3, 16  ;;  %v661_v48 = vmul.u32 %v657_v41, %v634_v49  ;;  %v9831_v26 = vmul.f32 %v9824_v10, %v9824_v10 }
 0x639   :  { %v384_v29 = vsub.s32 32, %v383_v55  ;;  %v385_v5 = vshll.u32 %v376_v25, %v383_v55  ;;  %v388_v58 = vsub.s32 4294967266, %v383_v55  ;;  %vm645_vm13 = vc.u32 %v637_v34, %v641_v4 }
 0x63a   :  { %v646_v20 = vsel %vm645_vm13, 1, %v9164_v0  ;;  %v647_v9 = vadd.s32 %v641_v4, %v637_v34  ;;  %v659_v25 = vmul.u32 %v657_v41, %v633_v32  ;;  %v642_v46 = vshrl.u32 %v638_v36, 16 }
 0x63b   :  { %v386_v17 = vshrl.u32 %v368_v31, %v384_v29  ;;  %v389_v62 = vadd.s32 127, %v388_v58  ;;  %v648_v39 = vadd.s32 %v646_v20, %v640_v18  ;;  %v663_v19 = vshll.u32 %v660_v12, 16 }
 0x63c   :  { %vm649_vm14 = vc.u32 %v647_v9, %v643_v8  ;;  %v662_v38 = vmul.u32 %v658_v37, %v634_v49  ;;  %v600_v51 = vshrl.u32 %v9171_v50, %v9751_v47  ;;  %v621_v32 = vsel %vm619_vm3, %v9774_v7, 2102212464 }
 0x63d   :  { %v387_v30 = vor.u32 %v386_v17, %v385_v5  ;;  %v390_v33 = vshll.u32 %v389_v62, 23  ;;  %v650_v54 = vsel %vm649_vm14, 1, %v9164_v0  ;;  %v665_v52 = vshll.u32 %v661_v48, 16 }
 0x63e   :  { %v652_v31 = vadd.s32 %v650_v54, %v648_v39  ;;  %vm667_vm15 = vc.u32 %v659_v25, %v663_v19  ;;  %v669_v34 = vadd.s32 %v663_v19, %v659_v25  ;;  %v7280_v36 = vadd.s32 4294967169, %v743_v13 }
 0x63f   :  { %v391_v27 = vor.u32 4788187, %v390_v33  ;;  %v394_v53 = vcvt.s32.f32 %v387_v30  ;;  %v565_v55 = vmul.f32 -0.00019511016, %v9831_v26  ;;  %v644_v4 = vshrl.u32 %v639_v3, 16 }
 0x640   :  { %v653_v41 = vadd.s32 %v652_v31, %v642_v46  ;;  %v668_v29 = vsel %vm667_vm15, 1, %v9164_v0  ;;  %v664_v37 = vshrl.u32 %v660_v12, 16  ;;  %vm671_vm6 = vc.u32 %v669_v34, %v665_v52 }
 0x641   :  { %v392_v16 = vand.u32 2147483647, %v391_v27  ;;  %v670_v5 = vadd.s32 %v668_v29, %v662_v38  ;;  %vm9843_vm12 = vcmp.le.f32.partialorder %v274_v35, 0.7853982  ;;  %v620_v7 = vsel %vm616_vm0, %v600_v51, %v9778_v21 }
 0x642   :  { %v622_v3 = vsel %vm618_vm5, %v9772_v15, %v621_v32  ;;  %v672_v58 = vsel %vm671_vm6, 1, %v9164_v0  ;;  %v666_v8 = vshrl.u32 %v661_v48, 16  ;;  %v749_v62 = vadd.s32 1, %v7280_v36 }
 0x643   :  { %v395_v49 = vmul.f32 %v394_v53, %v392_v16  ;;  %v674_v17 = vadd.s32 %v672_v58, %v670_v5  ;;  %v566_v13 = vadd.f32 0.008332121, %v565_v55  ;;  %v9854_v20 = vadd.s32 %v653_v41, %v644_v4 }
 0x644   :  { %v9856_v35 = vadd.s32 %v669_v34, %v665_v52  ;;  %v746_v9 = vand.u32 8388607, %v739_v22  ;;  %v623_v15 = vsel %vm617_vm7, %v620_v7, %v622_v3  ;;  %vm750_vm0 = vcmp.gt.s32.totalorder %v749_v62, 0 }
 0x645   :  { %v396_v18 = vxor.u32 2147483648, %v395_v49  ;;  %v675_v25 = vadd.s32 %v674_v17, %v664_v37  ;;  %v553_v12 = vsub.s32 4, %v9717_v24  ;;  %v751_v33 = vsel %vm750_vm0, %v749_v62, 0 }
 0x646   :  { %v398_v39 = vsub.s32 4, %v9761_v2  ;;  %v753_v19 = vand.u32 31, %v751_v33  ;;  %v567_v45 = vmul.f32 %v566_v13, %v9831_v26  ;;  %v677_v27 = vmul.u32 %v9769_v59, %v623_v15 }
 0x647   :  { %v397_v21 = vsel %vm276_vm11, %v396_v18, %v395_v49  ;;  %v676_v46 = vadd.s32 %v675_v25, %v666_v8  ;;  %vm679_vm3 = vc.u32 %v9854_v20, %v9856_v35  ;;  %v747_v53 = vor.u32 8388608, %v746_v9 }
 0x648   :  { %v9868_v30 = vsel %vm9843_vm12, %v9623_v43, %v397_v21  ;;  %v754_v51 = vsub.s32 32, %v753_v19  ;;  %v756_v32 = vshll.u32 %v9171_v50, %v753_v19  ;;  %v9881_v31 = vshrl.u32 %v751_v33, 5 }
 0x649   :  { %v9873_v48 = vmul.f32 %v9868_v30, %v9868_v30  ;;  %v680_v38 = vadd.s32 1, %v676_v46  ;;  %v759_v52 = vshll.u32 %v9172_v40, %v753_v19  ;;  %v762_v16 = vshll.u32 %v9173_v44, %v753_v19 }
 0x64a   :  { %v765_v34 = vshll.u32 %v9174_v56, %v753_v19  ;;  %v757_v55 = vshrl.u32 %v9172_v40, %v754_v51  ;;  %v768_v4 = vshll.u32 %v9175_v57, %v753_v19  ;;  %v760_v29 = vshrl.u32 %v9173_v44, %v754_v51 }
 0x64b   :  { %v410_v54 = vmul.f32 -0.00019511016, %v9873_v48  ;;  %v681_v59 = vsel %vm679_vm3, %v680_v38, %v676_v46  ;;  %v763_v49 = vshrl.u32 %v9174_v56, %v754_v51  ;;  %v766_v37 = vshrl.u32 %v9175_v57, %v754_v51 }
 0x64c   :  { %v682_v41 = vadd.s32 %v681_v59, %v677_v27  ;;  %v9894_v5 = vsel %vm431_vm8, %v553_v12, %v9717_v24  ;;  %v758_v3 = vor.u32 %v757_v55, %v756_v32  ;;  %v769_v58 = vshrl.u32 %v9176_v6, %v754_v51  ;;  %v8302_v59 = vld [vmem:[#allocation2 + $0x1b8] sm:$0xff] }
 0x64d   :  { %v411_v36 = vadd.f32 0.008332121, %v410_v54  ;;  %v761_v18 = vor.u32 %v760_v29, %v759_v52  ;;  %v767_v8 = vor.u32 %v766_v37, %v765_v34  ;;  %vm771_vm5 = vcmp.lt.s32.totalorder %v9881_v31, 1  ;;  %2400 = vmatpush.bf16.msrb.mxu2 %v8302_v59 }
 0x64e   :  { %v683_v40 = vadd.s32 536870912, %v682_v41  ;;  %v568_v44 = vadd.f32 -0.16666654, %v567_v45  ;;  %v9902_v56 = vsel %vm276_vm11, %v398_v39, %v9761_v2  ;;  %v764_v57 = vor.u32 %v763_v49, %v762_v16 }
 0x64f   :  { %v412_v7 = vmul.f32 %v411_v36, %v9873_v48  ;;  %v9904_v17 = vshll.u32 %v747_v53, 8  ;;  %v770_v62 = vor.u32 %v769_v58, %v768_v4  ;;  %vm773_vm7 = vcmp.lt.s32.totalorder %v9881_v31, 3  ;;  %v8294_v36 = vld [vmem:[#allocation2 + $0x178] sm:$0xff] }
 0x650   :  { %v9906_v24 = vshrl.u32 %v683_v40, 30  ;;  %vm774_vm8 = vcmp.lt.s32.totalorder %v9881_v31, 4  ;;  %vm772_vm13 = vcmp.lt.s32.totalorder %v9881_v31, 2  ;;  %v779_v13 = vsel %vm771_vm5, %v758_v3, %v761_v18  ;;  %2315 = vmatpush.bf16.msrb.mxu1 %v8294_v36 }
 0x651   :  { %v413_v6 = vadd.f32 -0.16666654, %v412_v7  ;;  %v780_v2 = vsel %vm774_vm8, %v767_v8, 920167782  ;;  %v556_v9 = vsel %vm9812_vm10, 0, %v9894_v5  ;;  %v401_v21 = vsel %vm9843_vm12, 0, %v9902_v56 }
 0x652   :  { %v685_v15 = vshll.u32 %v9906_v24, 30  ;;  %v9923_v25 = vmul.f32 %v568_v44, %v9831_v26  ;;  %v781_v12 = vsel %vm773_vm7, %v764_v57, %v780_v2  ;;  %v783_v33 = vsel %vm771_vm5, %v761_v18, %v764_v57 }
 0x653   :  { %v788_v39 = vand.u32 65535, %v9904_v17  ;;  %v782_v19 = vsel %vm772_vm13, %v779_v13, %v781_v12  ;;  %v784_v45 = vsel %vm774_vm8, %v770_v62, 1326507024  ;;  %v789_v27 = vshrl.u32 %v9904_v17, 16  ;;  %v8293_v62 = vld [vmem:[#allocation2 + $0x170] sm:$0xff] }
 0x654   :  { %v9930_v46 = vsub.s32 %v682_v41, %v685_v15  ;;  %v414_v53 = vmul.f32 %v413_v6, %v9873_v48  ;;  %v755_v54 = vshrl.u32 %v9171_v50, %v754_v51  ;;  %v785_v38 = vsel %vm773_vm7, %v767_v8, %v784_v45  ;;  %v8301_v6 = vld [vmem:[#allocation2 + $0x1b0] sm:$0xff]  ;;  %2316 = vmatpush.bf16.msrb.mxu1 %v8293_v62 }
 0x655   :  { %v812_v32 = vand.u32 65535, %v782_v19  ;;  %v786_v16 = vsel %vm772_vm13, %v783_v33, %v785_v38  ;;  %v813_v34 = vshrl.u32 %v782_v19, 16  ;;  %v678_v55 = vadd.s32 %v9856_v35, %v9854_v20  ;;  %2401 = vmatpush.bf16.msrb.mxu2 %v8301_v6 }
 0x656   :  { %vm687_vm11 = vcmp.lt.s32.totalorder %v9930_v46, 0  ;;  %v688_v52 = vsub.s32 0, %v9930_v46  ;;  %v776_v50 = vsel %vm774_vm8, %v764_v57, 2102212464  ;;  %v790_v51 = vand.u32 65535, %v786_v16 }
 0x657   :  { %v791_v4 = vshrl.u32 %v786_v16, 16  ;;  %v814_v29 = vmul.u32 %v812_v32, %v788_v39  ;;  %v815_v49 = vmul.u32 %v813_v34, %v788_v39  ;;  %v9950_v37 = vmul.u32 %v812_v32, %v789_v27  ;;  %v8292_v32 = vld [vmem:[#allocation2 + $0x168] sm:$0xff] }
 0x658   :  { %v689_v41 = vsel %vm687_vm11, %v688_v52, %v9930_v46  ;;  %v792_v58 = vmul.u32 %v790_v51, %v788_v39  ;;  %v9952_v8 = vmul.u32 %v790_v51, %v789_v27  ;;  %v9954_v44 = vadd.f32 1.0, %v414_v53  ;;  %2317 = vmatpush.bf16.msrb.mxu1 %v8292_v32  ;;  %v8289_v32 = vld [vmem:[#allocation2 + $0x150] sm:$0xff] }
 0x659   :  { %v690_v7 = vclz %v689_v41  ;;  %v793_v40 = vmul.u32 %v791_v4, %v788_v39  ;;  %v775_v20 = vsel %vm771_vm5, %v755_v54, %v758_v3  ;;  %v777_v35 = vsel %vm773_vm7, %v761_v18, %v776_v50 }
 0x65a   :  { %v818_v57 = vshll.u32 %v815_v49, 16  ;;  %v795_v2 = vmul.u32 %v791_v4, %v789_v27  ;;  %v817_v12 = vmul.u32 %v813_v34, %v789_v27  ;;  %v798_v33 = vshll.u32 %v9952_v8, 16  ;;  %v8300_v27 = vld [vmem:[#allocation2 + $0x1a8] sm:$0xff] }
 0x65b   :  { %v7278_v13 = vadd.s32 4294967294, %v690_v7  ;;  %v796_v15 = vshll.u32 %v793_v40, 16  ;;  %v819_v39 = vshrl.u32 %v815_v49, 16  ;;  %v820_v19 = vshll.u32 %v9950_v37, 16  ;;  %2402 = vmatpush.bf16.msrb.mxu2 %v8300_v27  ;;  %v8297_v27 = vld [vmem:[#allocation2 + $0x190] sm:$0xff] }
 0x65c   :  { %vm822_vm14 = vc.u32 %v814_v29, %v818_v57  ;;  %v797_v53 = vshrl.u32 %v793_v40, 16  ;;  %v824_v38 = vadd.s32 %v818_v57, %v814_v29  ;;  %v799_v59 = vshrl.u32 %v9952_v8, 16  ;;  %v8299_v40 = vld [vmem:[#allocation2 + $0x1a0] sm:$0xff] }
 0x65d   :  { %vm7279_vm15 = vcmp.lt.s32.totalorder %v7278_v13, 0  ;;  %vm800_vm6 = vc.u32 %v792_v58, %v796_v15  ;;  %v802_v3 = vadd.s32 %v796_v15, %v792_v58  ;;  %v823_v45 = vsel %vm822_vm14, 1, %v9164_v0 }
 0x65e   :  { %v693_v18 = vsel %vm7279_vm15, 0, %v7278_v13  ;;  %v801_v54 = vsel %vm800_vm6, 1, %v9164_v0  ;;  %v825_v50 = vadd.s32 %v823_v45, %v817_v12  ;;  %vm826_vm3 = vc.u32 %v824_v38, %v820_v19  ;;  %v8290_v45 = vld [vmem:[#allocation2 + $0x158] sm:$0xff] }
 0x65f   :  { %v694_v52 = vsub.s32 32, %v693_v18  ;;  %v695_v16 = vshll.u32 %v9930_v46, %v693_v18  ;;  %v698_v34 = vsub.s32 4294967266, %v693_v18  ;;  %v803_v36 = vadd.s32 %v801_v54, %v795_v2  ;;  %v8291_v46 = vld [vmem:[#allocation2 + $0x160] sm:$0xff]  ;;  %2403 = vmatpush.bf16.msrb.mxu2 %v8299_v40 }
 0x660   :  { %vm804_vm0 = vc.u32 %v802_v3, %v798_v33  ;;  %v827_v49 = vsel %vm826_vm3, 1, %v9164_v0  ;;  %v821_v7 = vshrl.u32 %v9950_v37, 16  ;;  %v403_v57 = vmul.f32 -0.001358992, %v9873_v48  ;;  %2318 = vmatpush.bf16.msrb.mxu1 %v8291_v46  ;;  %v8287_v46 = vld [vmem:[#allocation2 + $0x140] sm:$0xff] }
 0x661   :  { %v696_v51 = vshrl.u32 %v678_v55, %v694_v52  ;;  %v699_v4 = vadd.s32 127, %v698_v34  ;;  %v805_v41 = vsel %vm804_vm0, 1, %v9164_v0  ;;  %v829_v58 = vadd.s32 %v827_v49, %v825_v50  ;;  %v8295_v40 = vld [vmem:[#allocation2 + $0x180] sm:$0xff] }
 0x662   :  { %v807_v29 = vadd.s32 %v805_v41, %v803_v36  ;;  %v778_v6 = vsel %vm772_vm13, %v775_v20, %v777_v35  ;;  %v558_v55 = vmul.f32 -0.001358992, %v9831_v26  ;;  %v9973_v2 = vadd.s32 %v824_v38, %v820_v19  ;;  %v8298_v19 = vld [vmem:[#allocation2 + $0x198] sm:$0xff] }
 0x663   :  { %v697_v8 = vor.u32 %v696_v51, %v695_v16  ;;  %v700_v62 = vshll.u32 %v699_v4, 23  ;;  %v830_v0 = vadd.s32 %v829_v58, %v819_v39  ;;  %v404_v15 = vadd.f32 0.041655596, %v403_v57  ;;  %2404 = vmatpush.bf16.msrb.mxu2 %v8298_v19  ;;  %v8288_v51 = vld [vmem:[#allocation2 + $0x148] sm:$0xff] }
 0x664   :  { %v808_v13 = vadd.s32 %v807_v29, %v797_v53  ;;  %v573_v37 = vadd.s32 3, %v556_v9  ;;  %v559_v3 = vadd.f32 0.041655596, %v558_v55  ;;  %v570_v31 = vadd.f32 1.0, %v9923_v25  ;;  %2319 = vmatpush.bf16.msrb.mxu1 %v8290_v45  ;;  %v8296_v4 = vld [vmem:[#allocation2 + $0x188] sm:$0xff] }
 0x665   :  { %v701_v12 = vor.u32 4788187, %v700_v62  ;;  %v704_v33 = vcvt.s32.f32 %v697_v8  ;;  %v831_v35 = vadd.s32 %v830_v0, %v821_v7  ;;  %v405_v39 = vmul.f32 %v404_v15, %v9873_v48 }
 0x666   :  { %v9980_v20 = vadd.s32 %v808_v13, %v799_v59  ;;  %v418_v42 = vadd.s32 3, %v401_v21  ;;  %v832_v9 = vmul.u32 %v9904_v17, %v778_v6  ;;  %v560_v18 = vmul.f32 %v559_v3, %v9831_v26 }
 0x667   :  { %v702_v5 = vand.u32 2147483647, %v701_v12  ;;  %v416_v25 = vmul.f32 %v9954_v44, %v9868_v30  ;;  %v835_v53 = vadd.s32 1, %v831_v35  ;;  %v406_v54 = vadd.f32 -0.4999988, %v405_v39  ;;  %2405 = vmatpush.bf16.msrb.mxu2 %v8297_v27 }
 0x668   :  { %vm834_vm10 = vc.u32 %v9980_v20, %v9973_v2  ;;  %v561_v47 = vadd.f32 -0.4999988, %v560_v18  ;;  %v571_v56 = vmul.f32 %v570_v31, %v9824_v10  ;;  %v574_v52 = vand.u32 3, %v573_v37  ;;  %2320 = vmatpush.bf16.msrb.mxu1 %v8289_v32 }
 0x669   :  { %v705_v38 = vmul.f32 %v704_v33, %v702_v5  ;;  %v836_v21 = vsel %vm834_vm10, %v835_v53, %v831_v35  ;;  %v407_v17 = vmul.f32 %v406_v54, %v9873_v48  ;;  %v419_v16 = vand.u32 3, %v418_v42  ;;  %v10028_v54 = vld [vmem:[%s11434_s2 + $0x3] ss:$0 sm:$0xff] }
 0x66a   :  { %v837_v34 = vadd.s32 %v836_v21, %v832_v9  ;;  %v562_v30 = vmul.f32 %v561_v47, %v9831_v26  ;;  %v422_v44 = vxor.u32 2147483648, %v416_v25  ;;  %vm9998_vm12 = vcmp.le.f32.partialorder %v584_v14, 0.7853982 }
 0x66b   :  { %v706_v36 = vxor.u32 2147483648, %v705_v38  ;;  %v408_v59 = vadd.f32 1.0, %v407_v17  ;;  %vm586_vm5 = vcmp.lt.s32.totalorder %v9715_v23, 0  ;;  %v577_v48 = vxor.u32 2147483648, %v571_v56  ;;  %2406 = vmatpush.bf16.msrb.mxu2 %v8296_v4  ;;  %v8281_v4 = vld [vmem:[#allocation2 + $0x110] sm:$0xff] }
 0x66c   :  { %v838_v10 = vadd.s32 536870912, %v837_v34  ;;  %v563_v49 = vadd.f32 1.0, %v562_v30  ;;  %vm421_vm7 = vcmp.eq.s32.totalorder %v419_v16, 0  ;;  %vm424_vm8 = vcmp.eq.s32.totalorder %v419_v16, 2  ;;  %2321 = vmatpush.bf16.msrb.mxu1 %v8288_v51 }
 0x66d   :  { %v425_v41 = vxor.u32 2147483648, %v408_v59  ;;  %vm576_vm13 = vcmp.eq.s32.totalorder %v574_v52, 0  ;;  %v707_v14 = vsel %vm586_vm5, %v706_v36, %v705_v38  ;;  %vm420_vm11 = vcmp.lt.s32.totalorder %v419_v16, 2  ;;  %v2047_v38 = vpop.f32.mrf.mxu3 }
 0x66e   :  { %v10003_v26 = vshrl.u32 %v838_v10, 30  ;;  %v423_v29 = vsel %vm421_vm7, %v408_v59, %v422_v44  ;;  %vm417_vm14 = vweird.f32 %v9623_v43  ;;  %vm579_vm15 = vcmp.eq.s32.totalorder %v574_v52, 2 }
 0x66f   :  { %v426_v7 = vsel %vm424_vm8, %v425_v41, %v416_v25  ;;  %vm575_vm6 = vcmp.lt.s32.totalorder %v574_v52, 2  ;;  %v578_v8 = vsel %vm576_vm13, %v563_v49, %v577_v48  ;;  %v580_v62 = vxor.u32 2147483648, %v563_v49  ;;  %2407 = vmatpush.bf16.msrb.mxu2 %v8295_v40  ;;  %v8286_v48 = vld [vmem:[#allocation2 + $0x138] sm:$0xff] }
 0x670   :  { %v840_v58 = vshll.u32 %v10003_v26, 30  ;;  %v427_v57 = vsel %vm420_vm11, %v423_v29, %v426_v7  ;;  %v10012_v6 = vsel %vm9998_vm12, %v9715_v23, %v707_v14  ;;  %vm572_vm0 = vweird.f32 %v9617_v28  ;;  %2322 = vmatpush.bf16.msrb.mxu1 %v8287_v46  ;;  %2230 = vmatpush.bf16.msrb.mxu0 %v8286_v48  ;;  %v8285_v14 = vld [vmem:[#allocation2 + $0x130] sm:$0xff] }
 0x671   :  { %v428_v13 = vsel %vm417_vm14, nan, %v427_v57  ;;  %v581_v0 = vsel %vm579_vm15, %v580_v62, %v571_v56  ;;  %v712_v12 = vmul.f32 %v10012_v6, %v10012_v6  ;;  %v833_v39 = vadd.s32 %v9973_v2, %v9980_v20  ;;  %v8284_v62 = vld [vmem:[#allocation2 + $0x128] sm:$0xff] }
 0x672   :  { %v841_v55 = vsub.s32 %v837_v34, %v840_v58  ;;  %v582_v15 = vsel %vm575_vm6, %v578_v8, %v581_v0  ;;  %v894_v37 = vadd.f32 %v428_v13, %v9256_v60  ;;  %v2048_v21 = vadd.f32 %v10028_v54, %v2047_v38 }
 0x673   :  { %v583_v33 = vsel %vm572_vm0, nan, %v582_v15  ;;  %v720_v19 = vmul.f32 -0.00019511016, %v712_v12  ;;  %v713_v5 = vmul.f32 -0.001358992, %v712_v12  ;;  %v708_v52 = vsub.s32 4, %v9906_v24 }
 0x674   :  { %vm842_vm3 = vcmp.lt.s32.totalorder %v841_v55, 0  ;;  %v843_v43 = vsub.s32 0, %v841_v55  ;;  %v895_v31 = vadd.f32 %v583_v33, %v9258_v61  ;;  %v10032_v17 = vadd.f32 %v2048_v21, %v9256_v60  ;;  %2231 = vmatpush.bf16.msrb.mxu0 %v8285_v14  ;;  %v8279_v14 = vld [vmem:[#allocation2 + $0x100] sm:$0xff] }
 0x675   :  { %v721_v9 = vadd.f32 0.008332121, %v720_v19  ;;  %v714_v32 = vadd.f32 0.041655596, %v713_v5  ;;  %v709_v59 = vsel %vm586_vm5, %v708_v52, %v9906_v24  ;;  %v2049_v10 = vpop.f32.mrf.mxu3  ;;  %vm741_vm7 = vcmp.lt.s32.totalorder %v9784_v11, 0 }
 0x676   :  { %v844_v3 = vsel %vm842_vm3, %v843_v43, %v841_v55  ;;  %v10019_v45 = vpack.c.bf16 %v895_v31, %v894_v37  ;;  %2063 = vadd.xlane.f32.xlu0 %v10032_v17  ;;  %v2050_v60 = vadd.f32 %v10028_v54, %v2049_v10  ;;  %vm10043_vm8 = vcmp.le.f32.partialorder %v739_v22, 0.7853982 }
 0x677   :  { %v845_v35 = vclz %v844_v3  ;;  %v722_v27 = vmul.f32 %v721_v9, %v712_v12  ;;  %v715_v30 = vmul.f32 %v714_v32, %v712_v12  ;;  %v863_v41 = vsub.s32 4, %v10003_v26 }
 0x678   :  { %2323 = vmatmul.bf16.vlgmr.msrb.gmra.mxu1 %v10019_v45  ;;  %2408 = vmatmul.bf16.vlgmr.msrb.gmra.mxu2 %v10019_v45  ;;  %v711_v24 = vsel %vm9998_vm12, 0, %v709_v59  ;;  %v10051_v58 = vadd.f32 %v2050_v60, %v9258_v61  ;;  %vm727_vm14 = vweird.f32 %v9715_v23  ;;  %vm882_vm0 = vweird.f32 %v9784_v11  ;;  %v8282_v23 = vld [vmem:[#allocation2 + $0x118] sm:$0xff] }
 0x679   :  { %v7281_v28 = vadd.s32 4294967294, %v845_v35  ;;  %v723_v44 = vadd.f32 -0.16666654, %v722_v27  ;;  %v716_v49 = vadd.f32 -0.4999988, %v715_v30  ;;  %v728_v22 = vadd.s32 3, %v711_v24  ;;  %2232 = vmatpush.bf16.msrb.mxu0 %v8284_v62 }
 0x67a   :  { %2065 = vadd.xlane.f32.xlu1 %v10051_v58  ;;  %v864_v40 = vsel %vm741_vm7, %v863_v41, %v10003_v26  ;;  %v8283_v26 = vld [vmem:[#allocation2 + $0x120] sm:$0xff]  ;;  %v9177_v60 = vmov 128.0   ;;  %v8280_v41 = vld [vmem:[#allocation2 + $0x108] sm:$0xff] }
 0x67b   :  { %vm7282_vm10 = vcmp.lt.s32.totalorder %v7281_v28, 0  ;;  %v724_v29 = vmul.f32 %v723_v44, %v712_v12  ;;  %v717_v8 = vmul.f32 %v716_v49, %v712_v12  ;;  %v866_v61 = vsel %vm10043_vm8, 0, %v864_v40  ;;  %v8740_v62 = vld [vmem:[%s11434_s2 + $0x5] ss:$0 sm:$0xff] }
 0x67c   :  { %v848_v42 = vsel %vm7282_vm10, 0, %v7281_v28  ;;  %v729_v37 = vand.u32 3, %v728_v22  ;;  %v883_v19 = vadd.s32 3, %v866_v61  ;;  %8836 = vrcp.f32 %v9177_v60 }
 0x67d   :  { %v849_v18 = vsub.s32 32, %v848_v42  ;;  %v850_v25 = vshll.u32 %v841_v55, %v848_v42  ;;  %v853_v53 = vsub.s32 4294967266, %v848_v42  ;;  %v725_v50 = vadd.f32 1.0, %v724_v29  ;;  %v2052_v13 = vpop.f32.mrf.mxu3  ;;  %2233 = vmatpush.bf16.msrb.mxu0 %v8283_v26 }
 0x67e   :  { %v2053_v15 = vadd.f32 %v10028_v54, %v2052_v13  ;;  %v718_v33 = vadd.f32 1.0, %v717_v8  ;;  %vm734_vm12 = vcmp.eq.s32.totalorder %v729_v37, 2  ;;  %vm731_vm5 = vcmp.eq.s32.totalorder %v729_v37, 0 }
 0x67f   :  { %v851_v47 = vshrl.u32 %v833_v39, %v849_v18  ;;  %v854_v56 = vadd.s32 127, %v853_v53  ;;  %v726_v3 = vmul.f32 %v725_v50, %v10012_v6  ;;  %vm730_vm13 = vcmp.lt.s32.totalorder %v729_v37, 2 }
 0x680   :  { %v10063_v35 = vadd.f32 %v2053_v15, %v9262_v63  ;;  %v735_v42 = vxor.u32 2147483648, %v718_v33 }
 0x681   :  { %v852_v2 = vor.u32 %v851_v47, %v850_v25  ;;  %v855_v20 = vshll.u32 %v854_v56, 23  ;;  %v732_v5 = vxor.u32 2147483648, %v726_v3  ;;  %v884_v25 = vand.u32 3, %v883_v19  ;;  %2234 = vmatpush.bf16.msrb.mxu0 %v8282_v23 }
 0x682   :  { %2067 = vadd.xlane.f32.xlu2 %v10063_v35  ;;  %v736_v56 = vsel %vm734_vm12, %v735_v42, %v726_v3 }
 0x683   :  { %v856_v16 = vor.u32 4788187, %v855_v20  ;;  %v859_v34 = vcvt.s32.f32 %v852_v2  ;;  %v733_v32 = vsel %vm731_vm5, %v718_v33, %v732_v5  ;;  %vm889_vm11 = vcmp.eq.s32.totalorder %v884_v25, 2 }
 0x684   :  { %vm886_vm15 = vcmp.eq.s32.totalorder %v884_v25, 0  ;;  %vm885_vm6 = vcmp.lt.s32.totalorder %v884_v25, 2 }
 0x685   :  { %v857_v36 = vand.u32 2147483647, %v856_v16  ;;  %v2054_v53 = vpop.f32.mrf.mxu3  ;;  %v737_v16 = vsel %vm730_vm13, %v733_v32, %v736_v56  ;;  %2235 = vmatpush.bf16.msrb.mxu0 %v8281_v4 }
 0x686   :  { %v2055_v47 = vadd.f32 %v10028_v54, %v2054_v53  ;;  %v738_v30 = vsel %vm727_vm14, nan, %v737_v16 }
 0x687   :  { %v860_v51 = vmul.f32 %v859_v34, %v857_v36  ;;  %v896_v10 = vadd.f32 %v738_v30, %v9262_v63 }
 0x688   :  { %v10068_v2 = vadd.f32 %v2055_v47, %v9264_v1 }
 0x689   :  { %v861_v7 = vxor.u32 2147483648, %v860_v51  ;;  %2236 = vmatpush.bf16.msrb.mxu0 %v8280_v41 }
 0x68a   :  { %2069 = vadd.xlane.f32.xlu0 %v10068_v2 }
 0x68b   :  { %v862_v46 = vsel %vm741_vm7, %v861_v7, %v860_v51 }
 0x68c   :  { %v865_v57 = vsel %vm10043_vm8, %v9784_v11, %v862_v46  ;;  %v8837_v11 = vpop.eup %8836 }
 0x68d   :  { %v867_v55 = vmul.f32 %v865_v57, %v865_v57  ;;  %v2072_v49 = vmul.f32 128.0, %v8837_v11  ;;  %2237 = vmatpush.bf16.msrb.mxu0 %v8279_v14  ;;  %vm2076_vm3 = vweird.f32 %v8837_v11 }
 0x68f   :  { %v875_v0 = vmul.f32 -0.00019511016, %v867_v55  ;;  %v868_v43 = vmul.f32 -0.001358992, %v867_v55  ;;  %v2073_v63 = vsub.f32 1.0, %v2072_v49 }
 0x691   :  { %v876_v31 = vadd.f32 0.008332121, %v875_v0  ;;  %v869_v12 = vadd.f32 0.041655596, %v868_v43  ;;  %v8741_v0 = vld [vmem:[%s11434_s2 + $0x6] ss:$0 sm:$0xff] }
 0x693   :  { %v877_v28 = vmul.f32 %v876_v31, %v867_v55  ;;  %v870_v39 = vmul.f32 %v869_v12, %v867_v55 }
 0x695   :  { %v878_v9 = vadd.f32 -0.16666654, %v877_v28  ;;  %v871_v18 = vadd.f32 -0.4999988, %v870_v39 }
 0x697   :  { %v879_v6 = vmul.f32 %v878_v9, %v867_v55  ;;  %v872_v38 = vmul.f32 %v871_v18, %v867_v55 }
 0x699   :  { %v880_v21 = vadd.f32 1.0, %v879_v6  ;;  %v873_v27 = vadd.f32 1.0, %v872_v38 }
 0x69b   :  { %v881_v20 = vmul.f32 %v880_v21, %v865_v57  ;;  %v890_v52 = vxor.u32 2147483648, %v873_v27 }
 0x69d   :  { %v887_v34 = vxor.u32 2147483648, %v881_v20  ;;  %v891_v54 = vsel %vm889_vm11, %v890_v52, %v881_v20 }
 0x69f   :  { %v888_v44 = vsel %vm886_vm15, %v873_v27, %v887_v34 }
 0x6a0   :  { %v892_v36 = vsel %vm885_vm6, %v888_v44, %v891_v54 }
 0x6a1   :  { %v893_v59 = vsel %vm882_vm0, nan, %v892_v36 }
 0x6a2   :  { %v897_v48 = vadd.f32 %v893_v59, %v9264_v1  ;;  %v2074_v1 = vmul.f32 %v8837_v11, %v2073_v63 }
 0x6a4   :  { %v10075_v51 = vpack.c.bf16 %v897_v48, %v896_v10  ;;  %v2075_v24 = vadd.f32 %v8837_v11, %v2074_v1 }
 0x6a6   :  { %2328 = vmatmul.bf16.gmra.mxu1 %v10075_v51  ;;  %2413 = vmatmul.bf16.gmra.mxu2 %v10075_v51  ;;  %v10079_v29 = vsel %vm2076_vm3, %v8837_v11, %v2075_v24 }
 0x6e9   :  { %v2064_v7 = vpop.xlane.xlu0 %2063 }
 0x6ea   :  { %v2078_v22 = vmul.f32 %v10079_v29, %v2064_v7 }
 0x6ec   :  { %v10083_v40 = vsub.f32 %v10032_v17, %v2078_v22 }
 0x6ed   :  { %v2066_v50 = vpop.xlane.xlu1 %2065 }
 0x6ee   :  { %v2086_v57 = vmul.f32 %v10083_v40, %v10083_v40  ;;  %v2079_v13 = vmul.f32 %v10079_v29, %v2066_v50 }
 0x6f0   :  { %2090 = vadd.xlane.f32.xlu2 %v2086_v57  ;;  %v10096_v17 = vsub.f32 %v10051_v58, %v2079_v13  ;;  %v8743_v13 = vld [vmem:[%s11434_s2 + $0x17] ss:$0 sm:$0xff] }
 0x6f2   :  { %v2087_v37 = vmul.f32 %v10096_v17, %v10096_v17 }
 0x6f4   :  { %2092 = vadd.xlane.f32.xlu1 %v2087_v37 }
 0x6f5   :  { %v2324_v46 = vpop.f32.mrf.mxu1  ;;  %v2068_v3 = vpop.xlane.xlu2 %2067 }
 0x6f6   :  { %v10098_v43 = vadd.f32 %v8740_v62, %v2324_v46  ;;  %v2080_v31 = vmul.f32 %v10079_v29, %v2068_v3  ;;  %v8742_v46 = vld [vmem:[%s11434_s2 + $0x16] ss:$0 sm:$0xff] }
 0x6f8   :  { %v10108_v58 = vsub.f32 %v10063_v35, %v2080_v31 }
 0x6fa   :  { %v2088_v19 = vmul.f32 %v10108_v58, %v10108_v58 }
 0x6fb   :  { %v2409_v8 = vpop.f32.mrf.mxu2 }
 0x6fc   :  { %v2410_v33 = vadd.f32 %v8741_v0, %v2409_v8  ;;  %2094 = vadd.xlane.f32.xlu0 %v2088_v19 }
 0x6fd   :  { %v2326_v55 = vpop.f32.mrf.mxu1  ;;  %v2070_v28 = vpop.xlane.xlu0 %2069 }
 0x6fe   :  { %v2327_v61 = vadd.f32 %v8740_v62, %v2326_v55  ;;  %v2081_v39 = vmul.f32 %v10079_v29, %v2070_v28 }
 0x700   :  { %7555 = vmatpush.xpose.msk.msrb.mxu3 %vm86_vm4, %v2327_v61  ;;  %v10114_v42 = vsub.f32 %v10068_v2, %v2081_v39 }
 0x702   :  { %v2089_v5 = vmul.f32 %v10114_v42, %v10114_v42 }
 0x703   :  { %v2411_v15 = vpop.f32.mrf.mxu2 }
 0x704   :  { %v2412_v26 = vadd.f32 %v8741_v0, %v2411_v15  ;;  %7556 = vmatpush.xpose.msk.msrb.mxu3 %vm86_vm4, %v10098_v43  ;;  %2096 = vadd.xlane.f32.xlu2 %v2089_v5 }
 0x706   :  { %2496 = vmatpush.msra.mxu0 %v2412_v26  ;;  %v10105_v12 = vpack.i.bf16 %v2410_v33, %v2412_v26 }
 0x708   :  { %2497 = vmatpush.msra.mxu0 %v2410_v33 }
 0x70d   :  { %2597 = vrot.lane.b32.xlu1 %v2327_v61, %s9166_s25 }
 0x710   :  { %2595 = vrot.lane.b32.xlu0 %v10098_v43, %s9166_s25 }
 0x718   :  { %2793 = vrot.lane.b32.xlu0 %v2327_v61, %s9159_s26 }
 0x723   :  { %v2329_v9 = vpop.f32.mrf.mxu1 }
 0x724   :  { %v10128_v53 = vadd.f32 %v8740_v62, %v2329_v9 }
 0x729   :  { %v2414_v35 = vpop.f32.mrf.mxu2 }
 0x72a   :  { %v2415_v38 = vadd.f32 %v8741_v0, %v2414_v35 }
 0x72b   :  { %v2331_v18 = vpop.f32.mrf.mxu1 }
 0x72c   :  { %v10122_v25 = vadd.f32 %v8740_v62, %v2331_v18 }
 0x72e   :  { %7561 = vmatpush.xpose.msk.msra.mxu1 %vm86_vm4, %v10122_v25  ;;  %2695 = vrot.lane.b32.xlu1 %v10122_v25, %s9166_s25 }
 0x731   :  { %v2416_v6 = vpop.f32.mrf.mxu2 }
 0x732   :  { %v2417_v47 = vadd.f32 %v8741_v0, %v2416_v6  ;;  %7562 = vmatpush.xpose.msk.msra.mxu1 %vm86_vm4, %v10128_v53 }
 0x734   :  { %2582 = vmatpush.msra.mxu2 %v2417_v47  ;;  %v10132_v56 = vpack.i.bf16 %v2415_v38, %v2417_v47 }
 0x736   :  { %2583 = vmatpush.msra.mxu2 %v2415_v38  ;;  %2791 = vrot.lane.b32.xlu1 %v10098_v43, %s9159_s26 }
 0x73e   :  { %2985 = vrot.lane.b32.xlu1 %v2327_v61, %s9167_s29 }
 0x763   :  { %v2091_v21 = vpop.xlane.xlu2 %2090 }
 0x764   :  { %v2098_v32 = vmul.f32 %v2091_v21, %v10079_v29 }
 0x766   :  { %v2102_v27 = vadd.f32 1e-05, %v2098_v32 }
 0x767   :  { %v2093_v2 = vpop.xlane.xlu1 %2092 }
 0x768   :  { %8838 = vrsqrt.f32 %v2102_v27  ;;  %v2099_v52 = vmul.f32 %v2093_v2, %v10079_v29  ;;  %vm2112_vm7 = vweird.f32 %v2102_v27 }
 0x76a   :  { %v2103_v34 = vadd.f32 1e-05, %v2099_v52 }
 0x76c   :  { %8840 = vrsqrt.f32 %v2103_v34  ;;  %vm2122_vm5 = vweird.f32 %v2103_v34 }
 0x76e   :  { %v8839_v20 = vpop.eup %8838 }
 0x76f   :  { %v2107_v16 = vmul.f32 %v8839_v20, %v2102_v27  ;;  %v2095_v36 = vpop.xlane.xlu0 %2094  ;;  %vm2113_vm10 = vweird.f32 %v8839_v20 }
 0x770   :  { %v2100_v59 = vmul.f32 %v2095_v36, %v10079_v29  ;;  %vm2114_vm8 = vmor %vm2112_vm7, %vm2113_vm10 }
 0x771   :  { %v2108_v54 = vmul.f32 %v8839_v20, %v2107_v16 }
 0x772   :  { %v8841_v10 = vpop.eup %8840  ;;  %v2104_v48 = vadd.f32 1e-05, %v2100_v59 }
 0x773   :  { %v2109_v30 = vmul.f32 0.5, %v2108_v54  ;;  %v2117_v60 = vmul.f32 %v8841_v10, %v2103_v34  ;;  %vm2123_vm12 = vweird.f32 %v8841_v10 }
 0x774   :  { %8842 = vrsqrt.f32 %v2104_v48  ;;  %vm2124_vm13 = vmor %vm2122_vm5, %vm2123_vm12  ;;  %vm2132_vm14 = vweird.f32 %v2104_v48 }
 0x775   :  { %v2110_v44 = vsub.f32 1.5, %v2109_v30  ;;  %v2118_v4 = vmul.f32 %v8841_v10, %v2117_v60 }
 0x777   :  { %v2111_v23 = vmul.f32 %v8839_v20, %v2110_v44  ;;  %v2119_v41 = vmul.f32 0.5, %v2118_v4  ;;  %v2097_v49 = vpop.xlane.xlu2 %2096 }
 0x778   :  { %v2101_v14 = vmul.f32 %v2097_v49, %v10079_v29 }
 0x779   :  { %v2115_v11 = vsel %vm2114_vm8, %v8839_v20, %v2111_v23  ;;  %v2120_v63 = vsub.f32 1.5, %v2119_v41 }
 0x77a   :  { %v8843_v1 = vpop.eup %8842  ;;  %v2146_v24 = vmul.f32 %v2115_v11, %v10083_v40  ;;  %v2105_v7 = vadd.f32 1e-05, %v2101_v14 }
 0x77b   :  { %v2121_v22 = vmul.f32 %v8841_v10, %v2120_v63  ;;  %v2127_v57 = vmul.f32 %v8843_v1, %v2104_v48  ;;  %vm2133_vm11 = vweird.f32 %v8843_v1 }
 0x77c   :  { %8844 = vrsqrt.f32 %v2105_v7  ;;  %v2151_v55 = vmul.f32 %v8742_v46, %v2146_v24  ;;  %vm2134_vm15 = vmor %vm2132_vm14, %vm2133_vm11  ;;  %vm2142_vm0 = vweird.f32 %v2105_v7 }
 0x77d   :  { %v2125_v8 = vsel %vm2124_vm13, %v8841_v10, %v2121_v22  ;;  %v2128_v62 = vmul.f32 %v8843_v1, %v2127_v57 }
 0x77e   :  { %v2147_v50 = vmul.f32 %v2125_v8, %v10096_v17  ;;  %v10150_v26 = vadd.f32 %v8743_v13, %v2151_v55 }
 0x77f   :  { %v2129_v40 = vmul.f32 0.5, %v2128_v62  ;;  %v2598_v61 = vpop.permute.xlu1 %2597 }
 0x780   :  { %7567 = vmatpush.xpose.msk.msra.mxu3 %vm86_vm4, %v2598_v61  ;;  %v2152_v0 = vmul.f32 %v8742_v46, %v2147_v50 }
 0x781   :  { %v2130_v15 = vsub.f32 1.5, %v2129_v40 }
 0x782   :  { %v8845_v37 = vpop.eup %8844  ;;  %v2596_v33 = vpop.permute.xlu0 %2595  ;;  %v10152_v3 = vadd.f32 %v8743_v13, %v2152_v0 }
 0x783   :  { %v2131_v31 = vmul.f32 %v8843_v1, %v2130_v15  ;;  %v2137_v17 = vmul.f32 %v8845_v37, %v2105_v7  ;;  %vm2143_vm6 = vweird.f32 %v8845_v37 }
 0x784   :  { %7568 = vmatpush.xpose.msk.msra.mxu3 %vm86_vm4, %v2596_v33  ;;  %v2160_v19 = vpack.c.bf16 %v10152_v3, %v10150_v26  ;;  %vm2144_vm3 = vmor %vm2142_vm0, %vm2143_vm6 }
 0x785   :  { %v2138_v28 = vmul.f32 %v8845_v37, %v2137_v17  ;;  %v2135_v5 = vsel %vm2134_vm15, %v8843_v1, %v2131_v31 }
 0x786   :  { %2238 = vmatmul.bf16.vlgmr.msrb.gmra.mxu0 %v2160_v19  ;;  %v2148_v35 = vmul.f32 %v2135_v5, %v10108_v58  ;;  %v8744_v58 = vld [vmem:[%s11434_s2 + $0x4] ss:$0 sm:$0xff] }
 0x787   :  { %v2139_v39 = vmul.f32 0.5, %v2138_v28 }
 0x788   :  { %v2153_v21 = vmul.f32 %v8742_v46, %v2148_v35 }
 0x789   :  { %v2140_v9 = vsub.f32 1.5, %v2139_v39 }
 0x78a   :  { %v10160_v27 = vadd.f32 %v8743_v13, %v2153_v21  ;;  %v2794_v34 = vpop.permute.xlu0 %2793 }
 0x78b   :  { %v2141_v18 = vmul.f32 %v8845_v37, %v2140_v9 }
 0x78d   :  { %v2145_v38 = vsel %vm2144_vm3, %v8845_v37, %v2141_v18 }
 0x78e   :  { %v2149_v47 = vmul.f32 %v2145_v38, %v10114_v42 }
 0x790   :  { %v2154_v32 = vmul.f32 %v8742_v46, %v2149_v47 }
 0x792   :  { %v10162_v2 = vadd.f32 %v8743_v13, %v2154_v32 }
 0x794   :  { %v2161_v20 = vpack.c.bf16 %v10162_v2, %v10160_v27 }
 0x796   :  { %2243 = vmatmul.bf16.gmra.mxu0 %v2161_v20 }
 0x7a0   :  { %v2696_v6 = vpop.permute.xlu1 %2695 }
 0x7a1   :  { %7573 = vmatpush.xpose.msk.msrb.mxu1 %vm86_vm4, %v2696_v6 }
 0x7a8   :  { %v2792_v42 = vpop.permute.xlu1 %2791 }
 0x7b0   :  { %v2986_v48 = vpop.permute.xlu1 %2985 }
 0x803   :  { %v2239_v52 = vpop.f32.mrf.mxu0 }
 0x804   :  { %v2240_v16 = vadd.f32 %v8744_v58, %v2239_v52 }
 0x806   :  { %7557 = vmatmul.msk.f32.vlgmr.msrb.gmra.mxu3 %vm86_vm4, %v2240_v16  ;;  %2591 = vrot.lane.b32.xlu2 %v2240_v16, %s9166_s25 }
 0x807   :  { %7579 = vmatpush.xpose.msk.msrb.mxu3 %vm86_vm4, %v2794_v34 }
 0x80b   :  { %7580 = vmatpush.xpose.msk.msrb.mxu3 %vm86_vm4, %v2792_v42  ;;  %v2241_v54 = vpop.f32.mrf.mxu0 }
 0x80c   :  { %v2242_v30 = vadd.f32 %v8744_v58, %v2241_v54 }
 0x80e   :  { %2593 = vrot.lane.b32.xlu0 %v2242_v30, %s9166_s25  ;;  %7558 = vmatmul.msk.f32.gmra.mxu3 %vm86_vm4, %v2242_v30 }
 0x80f   :  { %2693 = vrot.lane.b32.xlu2 %v10128_v53, %s9166_s25 }
 0x813   :  { %v2244_v44 = vpop.f32.mrf.mxu0 }
 0x814   :  { %v2245_v36 = vadd.f32 %v8744_v58, %v2244_v44 }
 0x816   :  { %2789 = vrot.lane.b32.xlu0 %v2242_v30, %s9159_s26  ;;  %7563 = vmatmul.msk.f32.vlgmr.msra.gmra.mxu1 %vm86_vm4, %v2245_v36 }
 0x817   :  { %2787 = vrot.lane.b32.xlu2 %v2240_v16, %s9159_s26 }
 0x81b   :  { %v2246_v59 = vpop.f32.mrf.mxu0 }
 0x81c   :  { %v2247_v10 = vadd.f32 %v8744_v58, %v2246_v59 }
 0x81e   :  { %2691 = vrot.lane.b32.xlu1 %v2247_v10, %s9166_s25  ;;  %2689 = vrot.lane.b32.xlu0 %v2245_v36, %s9166_s25 }
 0x81f   :  { %2889 = vrot.lane.b32.xlu2 %v10122_v25, %s9159_s26  ;;  %7564 = vmatmul.msk.f32.gmra.mxu1 %vm86_vm4, %v2247_v10 }
 0x826   :  { %2883 = vrot.lane.b32.xlu1 %v2245_v36, %s9159_s26  ;;  %2887 = vrot.lane.b32.xlu0 %v10128_v53, %s9159_s26 }
 0x827   :  { %2983 = vrot.lane.b32.xlu2 %v10098_v43, %s9167_s29 }
 0x82e   :  { %2981 = vrot.lane.b32.xlu1 %v2242_v30, %s9167_s29  ;;  %2979 = vrot.lane.b32.xlu0 %v2240_v16, %s9167_s29 }
 0x82f   :  { %2885 = vrot.lane.b32.xlu2 %v2247_v10, %s9159_s26 }
 0x836   :  { %3075 = vrot.lane.b32.xlu1 %v2245_v36, %s9167_s29  ;;  %3081 = vrot.lane.b32.xlu0 %v10122_v25, %s9167_s29 }
 0x837   :  { %3079 = vrot.lane.b32.xlu2 %v10128_v53, %s9167_s29 }
 0x83e   :  { %3077 = vrot.lane.b32.xlu0 %v2247_v10, %s9167_s29 }
 0x83f   :  { %8556 = vrot.lane.b32.xlu2 %v10105_v12, %s9166_s25 }
 0x846   :  { %8561 = vrot.lane.b32.xlu0 %v10132_v56, %s9166_s25 }
 0x847   :  { %8566 = vrot.lane.b32.xlu2 %v10105_v12, %s9159_s26 }
 0x860   :  { %v2592_v43 = vpop.permute.xlu2 %2591 }
 0x861   :  { %7569 = vmatmul.msk.f32.vlgmr.msra.gmra.mxu3 %vm86_vm4, %v2592_v43 }
 0x862   :  { %7591 = vmatpush.xpose.msk.msra.mxu3 %vm86_vm4, %v2986_v48 }
 0x869   :  { %v2694_v25 = vpop.permute.xlu2 %2693 }
 0x86a   :  { %7574 = vmatpush.xpose.msk.msrb.mxu1 %vm86_vm4, %v2694_v25 }
 0x871   :  { %v2788_v53 = vpop.permute.xlu2 %2787 }
 0x879   :  { %v2890_v23 = vpop.permute.xlu2 %2889 }
 0x87a   :  { %7585 = vmatpush.xpose.msk.msra.mxu1 %vm86_vm4, %v2890_v23 }
 0x880   :  { %v2594_v60 = vpop.permute.xlu0 %2593 }
 0x881   :  { %v2984_v4 = vpop.permute.xlu2 %2983  ;;  %7570 = vmatmul.msk.f32.gmra.mxu3 %vm86_vm4, %v2594_v60 }
 0x882   :  { %7592 = vmatpush.xpose.msk.msra.mxu3 %vm86_vm4, %v2984_v4 }
 0x888   :  { %v2790_v11 = vpop.permute.xlu0 %2789 }
 0x889   :  { %v2886_v41 = vpop.permute.xlu2 %2885  ;;  %v2448_v49 = vpop.f32.mrf.mxu3  ;;  %7581 = vmatmul.msk.f32.vlgmr.msrb.gmra.mxu3 %vm86_vm4, %v2788_v53 }
 0x88a   :  { %v2454_v14 = vsel %vm1190_vm9, %v2448_v49, -inf }
 0x88b   :  { %2455 = vmax.xlane.f32.xlu2 %v2454_v14 }
 0x890   :  { %v2690_v63 = vpop.permute.xlu0 %2689  ;;  %v2692_v7 = vpop.permute.xlu1 %2691 }
 0x891   :  { %v3080_v1 = vpop.permute.xlu2 %3079  ;;  %v2451_v24 = vpop.f32.mrf.mxu3  ;;  %7575 = vmatmul.msk.f32.vlgmr.msrb.gmra.mxu1 %vm86_vm4, %v2690_v63  ;;  %7582 = vmatmul.msk.f32.gmra.mxu3 %vm86_vm4, %v2790_v11 }
 0x892   :  { %v2457_v46 = vsel %vm1190_vm9, %v2451_v24, -inf }
 0x893   :  { %2458 = vmax.xlane.f32.xlu1 %v2457_v46  ;;  %v2534_v22 = vpop.f32.mrf.mxu1 }
 0x894   :  { %v2540_v57 = vsel %vm1190_vm9, %v2534_v22, -inf }
 0x895   :  { %2541 = vmax.xlane.f32.xlu0 %v2540_v57 }
 0x898   :  { %v2888_v8 = vpop.permute.xlu0 %2887  ;;  %v2884_v13 = vpop.permute.xlu1 %2883 }
 0x899   :  { %v8557_v62 = vpop.permute.xlu2 %8556  ;;  %7576 = vmatmul.msk.f32.gmra.mxu1 %vm86_vm4, %v2692_v7 }
 0x89a   :  { %v8558_v50 = vunpack.i.l.bf16 %v8557_v62  ;;  %7586 = vmatpush.xpose.msk.msra.mxu1 %vm86_vm4, %v2888_v8  ;;  %v8559_v55 = vunpack.i.h.bf16 %v8557_v62 }
 0x89c   :  { %v2537_v40 = vpop.f32.mrf.mxu1  ;;  %2680 = vmatpush.msrb.mxu0 %v8558_v50 }
 0x89d   :  { %v2543_v61 = vsel %vm1190_vm9, %v2537_v40, -inf }
 0x89e   :  { %2681 = vmatpush.msrb.mxu0 %v8559_v55  ;;  %2544 = vmax.xlane.f32.xlu1 %v2543_v61 }
 0x8a0   :  { %v2980_v0 = vpop.permute.xlu0 %2979  ;;  %v2982_v15 = vpop.permute.xlu1 %2981 }
 0x8a1   :  { %7587 = vmatmul.msk.f32.vlgmr.msra.gmra.mxu1 %vm86_vm4, %v2884_v13  ;;  %7593 = vmatmul.msk.f32.vlgmr.msra.gmra.mxu3 %vm86_vm4, %v2980_v0  ;;  %v10232_v9 = vpop.permute.xlu2 %8566 }
 0x8a8   :  { %v3082_v37 = vpop.permute.xlu0 %3081  ;;  %v3076_v33 = vpop.permute.xlu1 %3075 }
 0x8a9   :  { %7588 = vmatmul.msk.f32.gmra.mxu1 %vm86_vm4, %v2886_v41  ;;  %7594 = vmatmul.msk.f32.gmra.mxu3 %vm86_vm4, %v2982_v15 }
 0x8aa   :  { %7597 = vmatpush.xpose.msk.msrb.mxu1 %vm86_vm4, %v3082_v37 }
 0x8ae   :  { %7598 = vmatpush.xpose.msk.msrb.mxu1 %vm86_vm4, %v3080_v1 }
 0x8b0   :  { %v3078_v31 = vpop.permute.xlu0 %3077 }
 0x8b1   :  { %7599 = vmatmul.msk.f32.vlgmr.msrb.gmra.mxu1 %vm86_vm4, %v3076_v33 }
 0x8b8   :  { %v8562_v17 = vpop.permute.xlu0 %8561 }
 0x8b9   :  { %v8563_v19 = vunpack.i.l.bf16 %v8562_v17  ;;  %7600 = vmatmul.msk.f32.gmra.mxu1 %vm86_vm4, %v3078_v31  ;;  %v8564_v28 = vunpack.i.h.bf16 %v8562_v17 }
 0x8bb   :  { %2778 = vmatpush.msrb.mxu2 %v8563_v19 }
 0x8bd   :  { %2779 = vmatpush.msrb.mxu2 %v8564_v28 }
 0x8e4   :  { %v10228_v39 = vpop.f32.mrf.mxu3 }
 0x8e5   :  { %v2630_v5 = vsel %vm1190_vm9, %v10228_v39, -inf }
 0x8e6   :  { %2631 = vmax.xlane.f32.xlu2 %v2630_v5 }
 0x8fe   :  { %v2456_v35 = vpop.xlane.xlu2 %2455 }
 0x8ff   :  { %v2460_v18 = vsub.f32 %v2448_v49, %v2456_v35 }
 0x901   :  { %v2462_v6 = vmul.f32 1.442695, %v2460_v18 }
 0x903   :  { %8846 = vpow2.f32 %v2462_v6 }
 0x904   :  { %v10234_v38 = vpop.f32.mrf.mxu3 }
 0x905   :  { %v2633_v47 = vsel %vm1190_vm9, %v10234_v38, -inf }
 0x906   :  { %v2459_v21 = vpop.xlane.xlu1 %2458  ;;  %2634 = vmax.xlane.f32.xlu0 %v2633_v47 }
 0x907   :  { %v2461_v20 = vsub.f32 %v2451_v24, %v2459_v21 }
 0x908   :  { %v2542_v52 = vpop.xlane.xlu0 %2541 }
 0x909   :  { %v10238_v32 = vpop.eup %8846  ;;  %v2464_v34 = vmul.f32 1.442695, %v2461_v20  ;;  %v2546_v42 = vsub.f32 %v2534_v22, %v2542_v52 }
 0x90a   :  { %v2466_v58 = vsel %vm1190_vm9, %v10238_v32, 0.0 }
 0x90b   :  { %2467 = vadd.xlane.f32.xlu1 %v2466_v58  ;;  %8848 = vpow2.f32 %v2464_v34  ;;  %v2548_v44 = vmul.f32 1.442695, %v2546_v42  ;;  %v8569_v58 = vunpack.i.h.bf16 %v10232_v9 }
 0x90c   :  { %v10242_v16 = vpop.f32.mrf.mxu3 }
 0x90d   :  { %v2826_v36 = vsel %vm1190_vm9, %v10242_v16, -inf  ;;  %8850 = vpow2.f32 %v2548_v44 }
 0x90e   :  { %v10244_v54 = vpop.f32.mrf.mxu1 }
 0x90f   :  { %v2728_v30 = vsel %vm1190_vm9, %v10244_v54, -inf }
 0x910   :  { %2729 = vmax.xlane.f32.xlu2 %v2728_v30 }
 0x911   :  { %v2545_v59 = vpop.xlane.xlu1 %2544  ;;  %v10254_v25 = vpop.eup %8848 }
 0x912   :  { %v2547_v43 = vsub.f32 %v2537_v40, %v2545_v59  ;;  %v2469_v4 = vsel %vm1190_vm9, %v10254_v25, 0.0 }
 0x913   :  { %2827 = vmax.xlane.f32.xlu1 %v2826_v36  ;;  %v10262_v11 = vpop.eup %8850 }
 0x914   :  { %v10250_v10 = vpop.f32.mrf.mxu3  ;;  %v2550_v60 = vmul.f32 1.442695, %v2547_v43  ;;  %v2552_v49 = vsel %vm1190_vm9, %v10262_v11, 0.0 }
 0x915   :  { %v2829_v53 = vsel %vm1190_vm9, %v10250_v10, -inf }
 0x916   :  { %v10252_v48 = vpop.f32.mrf.mxu1  ;;  %8852 = vpow2.f32 %v2550_v60 }
 0x917   :  { %v2731_v23 = vsel %vm1190_vm9, %v10252_v48, -inf }
 0x918   :  { %2830 = vmax.xlane.f32.xlu2 %v2829_v53  ;;  %2732 = vmax.xlane.f32.xlu0 %v2731_v23 }
 0x91b   :  { %2470 = vadd.xlane.f32.xlu1 %v2469_v4 }
 0x91c   :  { %v10270_v63 = vpop.eup %8852 }
 0x91d   :  { %v2555_v7 = vsel %vm1190_vm9, %v10270_v63, 0.0 }
 0x91e   :  { %v10264_v41 = vpop.f32.mrf.mxu1 }
 0x91f   :  { %v2922_v14 = vsel %vm1190_vm9, %v10264_v41, -inf }
 0x920   :  { %2553 = vadd.xlane.f32.xlu0 %v2552_v49 }
 0x923   :  { %2923 = vmax.xlane.f32.xlu1 %v2922_v14 }
 0x924   :  { %v10278_v46 = vpop.f32.mrf.mxu3 }
 0x925   :  { %v3018_v8 = vsel %vm1190_vm9, %v10278_v46, -inf }
 0x926   :  { %v10272_v1 = vpop.f32.mrf.mxu1 }
 0x927   :  { %v2925_v24 = vsel %vm1190_vm9, %v10272_v1, -inf }
 0x928   :  { %2926 = vmax.xlane.f32.xlu2 %v2925_v24  ;;  %2556 = vadd.xlane.f32.xlu0 %v2555_v7 }
 0x92c   :  { %v10286_v62 = vpop.f32.mrf.mxu3 }
 0x92d   :  { %v3021_v13 = vsel %vm1190_vm9, %v10286_v62, -inf }
 0x92e   :  { %v10280_v22 = vpop.f32.mrf.mxu1 }
 0x92f   :  { %v3114_v57 = vsel %vm1190_vm9, %v10280_v22, -inf }
 0x930   :  { %3115 = vmax.xlane.f32.xlu2 %v3114_v57  ;;  %3019 = vmax.xlane.f32.xlu0 %v3018_v8 }
 0x936   :  { %v10288_v50 = vpop.f32.mrf.mxu1 }
 0x937   :  { %v3117_v55 = vsel %vm1190_vm9, %v10288_v50, -inf }
 0x938   :  { %3118 = vmax.xlane.f32.xlu2 %v3117_v55  ;;  %3022 = vmax.xlane.f32.xlu0 %v3021_v13 }
 0x959   :  { %v2632_v40 = vpop.xlane.xlu2 %2631 }
 0x95a   :  { %v2636_v61 = vsub.f32 %v10228_v39, %v2632_v40 }
 0x95c   :  { %v2638_v0 = vmul.f32 1.442695, %v2636_v61 }
 0x95e   :  { %8854 = vpow2.f32 %v2638_v0 }
 0x964   :  { %v10295_v15 = vpop.eup %8854 }
 0x965   :  { %v2642_v37 = vsel %vm1190_vm9, %v10295_v15, 0.0 }
 0x966   :  { %2643 = vadd.xlane.f32.xlu1 %v2642_v37 }
 0x979   :  { %v2635_v33 = vpop.xlane.xlu0 %2634 }
 0x97a   :  { %v2637_v31 = vsub.f32 %v10234_v38, %v2635_v33  ;;  %v8568_v38 = vunpack.i.l.bf16 %v10232_v9 }
 0x97c   :  { %v2640_v17 = vmul.f32 1.442695, %v2637_v31 }
 0x97e   :  { %8856 = vpow2.f32 %v2640_v17  ;;  %v2468_v19 = vpop.xlane.xlu1 %2467 }
 0x97f   :  { %8858 = vrcp.f32 %v2468_v19 }
 0x983   :  { %v2730_v28 = vpop.xlane.xlu2 %2729 }
 0x984   :  { %v10300_v5 = vpop.eup %8856  ;;  %v2734_v39 = vsub.f32 %v10244_v54, %v2730_v28 }
 0x985   :  { %v8859_v35 = vpop.eup %8858  ;;  %v2645_v18 = vsel %vm1190_vm9, %v10300_v5, 0.0 }
 0x986   :  { %v2474_v6 = vmul.f32 %v8859_v35, %v10238_v32  ;;  %v2736_v47 = vmul.f32 1.442695, %v2734_v39  ;;  %v2828_v21 = vpop.xlane.xlu1 %2827  ;;  %2646 = vadd.xlane.f32.xlu1 %v2645_v18 }
 0x987   :  { %v2832_v20 = vsub.f32 %v10242_v16, %v2828_v21 }
 0x988   :  { %8860 = vpow2.f32 %v2736_v47  ;;  %7559 = vmatmul.msk.f32.vlgmr.msra.gmra.mxu0 %vm1190_vm9, %v2474_v6 }
 0x989   :  { %v2834_v52 = vmul.f32 1.442695, %v2832_v20  ;;  %2874 = vmatpush.msra.mxu0 %v8568_v38 }
 0x98b   :  { %8862 = vpow2.f32 %v2834_v52  ;;  %2875 = vmatpush.msra.mxu0 %v8569_v58  ;;  %v2733_v34 = vpop.xlane.xlu0 %2732  ;;  %v2831_v54 = vpop.xlane.xlu2 %2830 }
 0x98c   :  { %v2735_v42 = vsub.f32 %v10252_v48, %v2733_v34  ;;  %v2833_v9 = vsub.f32 %v10250_v10, %v2831_v54 }
 0x98e   :  { %v10311_v32 = vpop.eup %8860  ;;  %v2738_v30 = vmul.f32 1.442695, %v2735_v42  ;;  %v2471_v44 = vpop.xlane.xlu1 %2470  ;;  %v2836_v53 = vmul.f32 1.442695, %v2833_v9 }
 0x98f   :  { %8864 = vrcp.f32 %v2471_v44  ;;  %v2740_v16 = vsel %vm1190_vm9, %v10311_v32, 0.0 }
 0x990   :  { %2741 = vadd.xlane.f32.xlu0 %v2740_v16  ;;  %8866 = vpow2.f32 %v2738_v30 }
 0x991   :  { %v10315_v36 = vpop.eup %8862 }
 0x992   :  { %v2838_v59 = vsel %vm1190_vm9, %v10315_v36, 0.0 }
 0x993   :  { %2839 = vadd.xlane.f32.xlu1 %v2838_v59  ;;  %v2554_v43 = vpop.xlane.xlu0 %2553 }
 0x994   :  { %8868 = vrcp.f32 %v2554_v43 }
 0x995   :  { %v8865_v48 = vpop.eup %8864  ;;  %8870 = vpow2.f32 %v2836_v53 }
 0x996   :  { %v2924_v23 = vpop.xlane.xlu1 %2923  ;;  %v2475_v60 = vmul.f32 %v8865_v48, %v10254_v25  ;;  %v10321_v4 = vpop.eup %8866 }
 0x997   :  { %v2928_v49 = vsub.f32 %v10264_v41, %v2924_v23  ;;  %v2743_v24 = vsel %vm1190_vm9, %v10321_v4, 0.0 }
 0x998   :  { %7560 = vmatmul.msk.f32.gmra.mxu0 %vm1190_vm9, %v2475_v60 }
 0x999   :  { %v2930_v10 = vmul.f32 1.442695, %v2928_v49 }
 0x99a   :  { %v8869_v14 = vpop.eup %8868 }
 0x99b   :  { %v2560_v7 = vmul.f32 %v8869_v14, %v10262_v11  ;;  %8872 = vpow2.f32 %v2930_v10  ;;  %2744 = vadd.xlane.f32.xlu1 %v2743_v24  ;;  %v2557_v57 = vpop.xlane.xlu0 %2556  ;;  %v10329_v25 = vpop.eup %8870 }
 0x99c   :  { %8874 = vrcp.f32 %v2557_v57  ;;  %v2927_v55 = vpop.xlane.xlu2 %2926  ;;  %v2841_v40 = vsel %vm1190_vm9, %v10329_v25, 0.0 }
 0x99d   :  { %7565 = vmatmul.msk.f32.vlgmr.msra.gmra.mxu2 %vm1190_vm9, %v2560_v7  ;;  %v2929_v21 = vsub.f32 %v10272_v1, %v2927_v55 }
 0x99f   :  { %v2932_v20 = vmul.f32 1.442695, %v2929_v21 }
 0x9a1   :  { %v10331_v8 = vpop.eup %8872 }
 0x9a2   :  { %v8875_v41 = vpop.eup %8874  ;;  %v2934_v13 = vsel %vm1190_vm9, %v10331_v8, 0.0 }
 0x9a3   :  { %2935 = vadd.xlane.f32.xlu2 %v2934_v13  ;;  %2842 = vadd.xlane.f32.xlu1 %v2841_v40  ;;  %v3020_v11 = vpop.xlane.xlu0 %3019  ;;  %v2561_v61 = vmul.f32 %v8875_v41, %v10270_v63 }
 0x9a4   :  { %v3024_v0 = vsub.f32 %v10278_v46, %v3020_v11  ;;  %v3116_v31 = vpop.xlane.xlu2 %3115 }
 0x9a5   :  { %7566 = vmatmul.msk.f32.gmra.mxu2 %vm1190_vm9, %v2561_v61  ;;  %v3120_v39 = vsub.f32 %v10280_v22, %v3116_v31 }
 0x9a6   :  { %v3026_v37 = vmul.f32 1.442695, %v3024_v0 }
 0x9a7   :  { %v3122_v63 = vmul.f32 1.442695, %v3120_v39 }
 0x9a8   :  { %8876 = vpow2.f32 %v3026_v37 }
 0x9ab   :  { %v3023_v33 = vpop.xlane.xlu0 %3022 }
 0x9ac   :  { %v3025_v17 = vsub.f32 %v10286_v62, %v3023_v33  ;;  %v3119_v6 = vpop.xlane.xlu2 %3118 }
 0x9ad   :  { %v3121_v47 = vsub.f32 %v10288_v50, %v3119_v6 }
 0x9ae   :  { %v3028_v19 = vmul.f32 1.442695, %v3025_v17  ;;  %v10341_v28 = vpop.eup %8876 }
 0x9af   :  { %v3030_v35 = vsel %vm1190_vm9, %v10341_v28, 0.0  ;;  %v3124_v38 = vmul.f32 1.442695, %v3121_v47 }
 0x9b0   :  { %8878 = vpow2.f32 %v3028_v19  ;;  %3031 = vadd.xlane.f32.xlu0 %v3030_v35 }
 0x9b1   :  { %8880 = vpow2.f32 %v3122_v63 }
 0x9b2   :  { %8882 = vpow2.f32 %v3124_v38 }
 0x9b6   :  { %v10346_v46 = vpop.eup %8878 }
 0x9b7   :  { %v3033_v18 = vsel %vm1190_vm9, %v10346_v46, 0.0  ;;  %v10354_v22 = vpop.eup %8880 }
 0x9b8   :  { %3034 = vadd.xlane.f32.xlu0 %v3033_v18  ;;  %v3126_v62 = vsel %vm1190_vm9, %v10354_v22, 0.0  ;;  %v10362_v58 = vpop.eup %8882 }
 0x9b9   :  { %v3129_v1 = vsel %vm1190_vm9, %v10362_v58, 0.0 }
 0x9bb   :  { %8576 = vrot.lane.b32.xlu2 %v10105_v12, %s9167_s29 }
 0x9bc   :  { %8571 = vrot.lane.b32.xlu1 %v10132_v56, %s9159_s26 }
 0x9c0   :  { %3127 = vadd.xlane.f32.xlu0 %v3126_v62 }
 0x9d4   :  { %8581 = vrot.lane.b32.xlu0 %v10132_v56, %s9167_s29 }
 0x9d9   :  { %v2644_v12 = vpop.xlane.xlu1 %2643 }
 0x9da   :  { %8884 = vrcp.f32 %v2644_v12 }
 0x9db   :  { %8886 = vpow2.f32 %v2932_v20 }
 0x9e0   :  { %v8885_v52 = vpop.eup %8884 }
 0x9e1   :  { %v2650_v34 = vmul.f32 %v8885_v52, %v10295_v15  ;;  %v10365_v42 = vpop.eup %8886 }
 0x9e2   :  { %v2937_v56 = vsel %vm1190_vm9, %v10365_v42, 0.0 }
 0x9e3   :  { %7571 = vmatmul.msk.f32.vlgmr.msrb.gmra.mxu0 %vm1190_vm9, %v2650_v34 }
 0x9e4   :  { %3130 = vadd.xlane.f32.xlu2 %v3129_v1 }
 0x9e6   :  { %2938 = vadd.xlane.f32.xlu1 %v2937_v56 }
 0x9f9   :  { %v2647_v50 = vpop.xlane.xlu1 %2646 }
 0x9fa   :  { %8888 = vrcp.f32 %v2647_v50 }
 0xa00   :  { %v8889_v54 = vpop.eup %8888 }
 0xa01   :  { %v2651_v30 = vmul.f32 %v8889_v54, %v10300_v5  ;;  %v8310_v54 = vld [vmem:[#allocation2 + $0x1f8] sm:$0xff] }
 0xa02   :  { %3299 = vmatpush.bf16.msrb.mxu3 %v8310_v54 }
 0xa03   :  { %7572 = vmatmul.msk.f32.gmra.mxu0 %vm1190_vm9, %v2651_v30  ;;  %v2742_v15 = vpop.xlane.xlu0 %2741 }
 0xa04   :  { %8890 = vrcp.f32 %v2742_v15 }
 0xa05   :  { %v2499_v35 = vpop.f32.mrf.mxu0 }
 0xa06   :  { %v2840_v44 = vpop.xlane.xlu1 %2839 }
 0xa07   :  { %8892 = vrcp.f32 %v2840_v44 }
 0xa0a   :  { %v8891_v16 = vpop.eup %8890 }
 0xa0b   :  { %v2748_v9 = vmul.f32 %v8891_v16, %v10311_v32 }
 0xa0d   :  { %v8893_v59 = vpop.eup %8892  ;;  %7577 = vmatmul.msk.f32.vlgmr.msrb.gmra.mxu2 %vm1190_vm9, %v2748_v9  ;;  %v8309_v9 = vld [vmem:[#allocation2 + $0x1f0] sm:$0xff] }
 0xa0e   :  { %v2846_v43 = vmul.f32 %v8893_v59, %v10315_v36  ;;  %v2745_v48 = vpop.xlane.xlu1 %2744  ;;  %3300 = vmatpush.bf16.msrb.mxu3 %v8309_v9 }
 0xa0f   :  { %8894 = vrcp.f32 %v2745_v48 }
 0xa10   :  { %7583 = vmatmul.msk.f32.vlgmr.msra.gmra.mxu0 %vm1190_vm9, %v2846_v43  ;;  %v8308_v43 = vld [vmem:[#allocation2 + $0x1e8] sm:$0xff] }
 0xa12   :  { %3301 = vmatpush.bf16.msrb.mxu3 %v8308_v43 }
 0xa15   :  { %v8895_v53 = vpop.eup %8894  ;;  %v2502_v18 = vpop.f32.mrf.mxu0 }
 0xa16   :  { %v2936_v5 = vpop.xlane.xlu2 %2935  ;;  %v2843_v23 = vpop.xlane.xlu1 %2842  ;;  %v2749_v60 = vmul.f32 %v8895_v53, %v10321_v4  ;;  %v8307_v53 = vld [vmem:[#allocation2 + $0x1e0] sm:$0xff] }
 0xa17   :  { %8896 = vrcp.f32 %v2843_v23  ;;  %3302 = vmatpush.bf16.msrb.mxu3 %v8307_v53  ;;  %v8305_v23 = vld [vmem:[#allocation2 + $0x1d0] sm:$0xff] }
 0xa18   :  { %7578 = vmatmul.msk.f32.gmra.mxu2 %vm1190_vm9, %v2749_v60  ;;  %v8304_v60 = vld [vmem:[#allocation2 + $0x1c8] sm:$0xff] }
 0xa1d   :  { %v8897_v49 = vpop.eup %8896 }
 0xa1e   :  { %v8577_v10 = vpop.permute.xlu2 %8576  ;;  %v2847_v14 = vmul.f32 %v8897_v49, %v10329_v25  ;;  %v8303_v49 = vld [vmem:[#allocation2 + $0x1c0] sm:$0xff] }
 0xa1f   :  { %v8578_v32 = vunpack.i.l.bf16 %v8577_v10  ;;  %v8579_v36 = vunpack.i.h.bf16 %v8577_v10 }
 0xa20   :  { %7584 = vmatmul.msk.f32.gmra.mxu0 %vm1190_vm9, %v2847_v14  ;;  %v10394_v21 = vpop.f32.mrf.mxu2 }
 0xa21   :  { %3066 = vmatpush.msrb.mxu0 %v8578_v32 }
 0xa23   :  { %3067 = vmatpush.msrb.mxu0 %v8579_v36  ;;  %v3032_v24 = vpop.xlane.xlu0 %3031 }
 0xa24   :  { %8898 = vrcp.f32 %v3032_v24 }
 0xa25   :  { %8900 = vrcp.f32 %v2936_v5  ;;  %v8306_v5 = vld [vmem:[#allocation2 + $0x1d8] sm:$0xff] }
 0xa26   :  { %3303 = vmatpush.bf16.msrb.mxu3 %v8306_v5 }
 0xa28   :  { %v2588_v20 = vpop.f32.mrf.mxu2 }
 0xa2a   :  { %v8899_v7 = vpop.eup %8898  ;;  %3304 = vmatpush.bf16.msrb.mxu3 %v8305_v23 }
 0xa2b   :  { %v3038_v57 = vmul.f32 %v8899_v7, %v10341_v28  ;;  %v3035_v4 = vpop.xlane.xlu0 %3034  ;;  %v8901_v55 = vpop.eup %8900 }
 0xa2c   :  { %8902 = vrcp.f32 %v3035_v4  ;;  %v2942_v25 = vmul.f32 %v8901_v55, %v10331_v8 }
 0xa2d   :  { %7595 = vmatmul.msk.f32.vlgmr.msrb.gmra.mxu0 %vm1190_vm9, %v3038_v57 }
 0xa2e   :  { %v8572_v41 = vpop.permute.xlu1 %8571  ;;  %3305 = vmatpush.bf16.msrb.mxu3 %v8304_v60 }
 0xa2f   :  { %v8573_v13 = vunpack.i.l.bf16 %v8572_v41  ;;  %v8574_v40 = vunpack.i.h.bf16 %v8572_v41 }
 0xa31   :  { %2970 = vmatpush.msra.mxu2 %v8573_v13 }
 0xa32   :  { %v8903_v11 = vpop.eup %8902  ;;  %3306 = vmatpush.bf16.msrb.mxu3 %v8303_v49 }
 0xa33   :  { %2971 = vmatpush.msra.mxu2 %v8574_v40  ;;  %v3039_v61 = vmul.f32 %v8903_v11, %v10346_v46  ;;  %v3128_v0 = vpop.xlane.xlu0 %3127 }
 0xa34   :  { %7589 = vmatmul.msk.f32.vlgmr.msra.gmra.mxu2 %vm1190_vm9, %v2942_v25 }
 0xa35   :  { %7596 = vmatmul.msk.f32.gmra.mxu0 %vm1190_vm9, %v3039_v61 }
 0xa46   :  { %v8582_v37 = vpop.permute.xlu0 %8581 }
 0xa47   :  { %v8583_v33 = vunpack.i.l.bf16 %v8582_v37  ;;  %v8584_v31 = vunpack.i.h.bf16 %v8582_v37 }
 0xa49   :  { %3162 = vmatpush.msrb.mxu2 %v8583_v33 }
 0xa4b   :  { %3163 = vmatpush.msrb.mxu2 %v8584_v31 }
 0xa57   :  { %v3131_v28 = vpop.xlane.xlu2 %3130 }
 0xa59   :  { %v2939_v17 = vpop.xlane.xlu1 %2938 }
 0xa5a   :  { %8904 = vrcp.f32 %v2939_v17 }
 0xa5b   :  { %8906 = vrcp.f32 %v3128_v0 }
 0xa5c   :  { %8908 = vrcp.f32 %v3131_v28 }
 0xa60   :  { %v8905_v19 = vpop.eup %8904  ;;  %v2683_v6 = vpop.f32.mrf.mxu0 }
 0xa61   :  { %v2943_v8 = vmul.f32 %v8905_v19, %v10365_v42  ;;  %v8907_v39 = vpop.eup %8906 }
 0xa62   :  { %v3134_v63 = vmul.f32 %v8907_v39, %v10354_v22  ;;  %v8909_v46 = vpop.eup %8908 }
 0xa63   :  { %7590 = vmatmul.msk.f32.gmra.mxu2 %vm1190_vm9, %v2943_v8  ;;  %v3135_v62 = vmul.f32 %v8909_v46, %v10362_v58 }
 0xa6b   :  { %7601 = vmatmul.msk.f32.vlgmr.msrb.gmra.mxu2 %vm1190_vm9, %v3134_v63 }
 0xa73   :  { %7602 = vmatmul.msk.f32.gmra.mxu2 %vm1190_vm9, %v3135_v62 }
 0xa80   :  { %v2686_v47 = vpop.f32.mrf.mxu0 }
 0xa81   :  { %v8585_v38 = vpack.i.bf16 %v2686_v47, %v2683_v6 }
 0xa83   :  { %8586 = vrot.lane.b32.xlu1 %v8585_v38, %s9167_s29 }
 0xa8d   :  { %v2877_v52 = vpop.f32.mrf.mxu0 }
 0xa90   :  { %v2781_v12 = vpop.f32.mrf.mxu2 }
 0xa9b   :  { %v2784_v34 = vpop.f32.mrf.mxu2 }
 0xa9c   :  { %v8600_v22 = vpack.i.bf16 %v2784_v34, %v2781_v12  ;;  %v8745_v12 = vld [vmem:[%s11434_s2 + $0x7] ss:$0 sm:$0xff] }
 0xa9d   :  { %v2880_v42 = vpop.f32.mrf.mxu0 }
 0xa9e   :  { %8601 = vrot.lane.b32.xlu1 %v8600_v22, %s9167_s29  ;;  %v8590_v1 = vpack.i.bf16 %v2880_v42, %v2877_v52 }
 0xaa0   :  { %8591 = vrot.lane.b32.xlu0 %v8590_v1, %s9159_s26 }
 0xaaa   :  { %v3069_v58 = vpop.f32.mrf.mxu0 }
 0xab2   :  { %v3072_v56 = vpop.f32.mrf.mxu0 }
 0xab3   :  { %v8595_v50 = vpack.i.bf16 %v3072_v56, %v3069_v58 }
 0xab5   :  { %8596 = vrot.lane.b32.xlu0 %v8595_v50, %s9166_s25 }
 0xab7   :  { %v2973_v30 = vpop.f32.mrf.mxu2 }
 0xae6   :  { %v2976_v15 = vpop.f32.mrf.mxu2 }
 0xae7   :  { %v8605_v44 = vpack.i.bf16 %v2976_v15, %v2973_v30 }
 0xae9   :  { %8606 = vrot.lane.b32.xlu0 %v8605_v44, %s9159_s26 }
 0xaee   :  { %v3165_v16 = vpop.f32.mrf.mxu2 }
 0xaf5   :  { %v8587_v32 = vpop.permute.xlu1 %8586 }
 0xaf6   :  { %v3168_v59 = vpop.f32.mrf.mxu2  ;;  %v8589_v14 = vunpack.i.h.bf16 %v8587_v32  ;;  %v8588_v36 = vunpack.i.l.bf16 %v8587_v32  ;;  %v8326_v32 = vld [vmem:[#allocation2 + $0x478] sm:$0xff] }
 0xaf7   :  { %v8610_v48 = vpack.i.bf16 %v3168_v59, %v3165_v16  ;;  %3571 = vmatpush.bf16.msra.mxu1 %v8326_v32 }
 0xaf8   :  { %v3220_v4 = vsel %vm86_vm4, %v2502_v18, %v8589_v14  ;;  %v3219_v41 = vsel %vm86_vm4, %v2499_v35, %v8588_v36 }
 0xaf9   :  { %8611 = vrot.lane.b32.xlu1 %v8610_v48, %s9166_s25 }
 0xb10   :  { %v8602_v37 = vpop.permute.xlu1 %8601 }
 0xb11   :  { %v8604_v31 = vunpack.i.h.bf16 %v8602_v37  ;;  %v8603_v17 = vunpack.i.l.bf16 %v8602_v37  ;;  %v8322_v37 = vld [vmem:[#allocation2 + $0x458] sm:$0xff] }
 0xb12   :  { %v8592_v10 = vpop.permute.xlu0 %8591 }
 0xb13   :  { %v8594_v24 = vunpack.i.h.bf16 %v8592_v10  ;;  %v8593_v7 = vunpack.i.l.bf16 %v8592_v10  ;;  %v3222_v39 = vsel %vm86_vm4, %v2588_v20, %v8604_v31  ;;  %v3221_v35 = vsel %vm86_vm4, %v10394_v21, %v8603_v17  ;;  %v8318_v10 = vld [vmem:[#allocation2 + $0x438] sm:$0xff]  ;;  %v8313_v17 = vld [vmem:[#allocation2 + $0x410] sm:$0xff] }
 0xb14   :  { %3482 = vmatpush.bf16.msra.mxu0 %v8318_v10 }
 0xb15   :  { %v3224_v40 = vsel %vm1960_vm1, %v3220_v4, %v8594_v24  ;;  %v3223_v25 = vsel %vm1960_vm1, %v3219_v41, %v8593_v7  ;;  %v8317_v24 = vld [vmem:[#allocation2 + $0x430] sm:$0xff]  ;;  %v8316_v4 = vld [vmem:[#allocation2 + $0x428] sm:$0xff] }
 0xb16   :  { %v8325_v7 = vld [vmem:[#allocation2 + $0x470] sm:$0xff]  ;;  %v8324_v41 = vld [vmem:[#allocation2 + $0x468] sm:$0xff] }
 0xb17   :  { %3572 = vmatpush.bf16.msra.mxu1 %v8325_v7 }
 0xb18   :  { %3483 = vmatpush.bf16.msra.mxu0 %v8317_v24 }
 0xb1b   :  { %3573 = vmatpush.bf16.msra.mxu1 %v8324_v41 }
 0xb1c   :  { %3484 = vmatpush.bf16.msra.mxu0 %v8316_v4 }
 0xb27   :  { %v8597_v57 = vpop.permute.xlu0 %8596 }
 0xb28   :  { %v8599_v55 = vunpack.i.h.bf16 %v8597_v57  ;;  %v8598_v13 = vunpack.i.l.bf16 %v8597_v57 }
 0xb2a   :  { %v3227_v11 = vsel %vm1965_vm2, %v3223_v25, %v8598_v13  ;;  %v3228_v61 = vsel %vm1965_vm2, %v3224_v40, %v8599_v55  ;;  %v8315_v55 = vld [vmem:[#allocation2 + $0x420] sm:$0xff] }
 0xb2b   :  { %v3231_v0 = vpack.c.bf16 %v3228_v61, %v3227_v11  ;;  %v8323_v13 = vld [vmem:[#allocation2 + $0x460] sm:$0xff]  ;;  %3485 = vmatpush.bf16.msra.mxu0 %v8315_v55 }
 0xb2c   :  { %3574 = vmatpush.bf16.msra.mxu1 %v8323_v13 }
 0xb2d   :  { %3307 = vmatmul.bf16.vlgmr.msrb.gmra.mxu3 %v3231_v0  ;;  %v8314_v0 = vld [vmem:[#allocation2 + $0x418] sm:$0xff] }
 0xb2f   :  { %3486 = vmatpush.bf16.msra.mxu0 %v8314_v0 }
 0xb30   :  { %3575 = vmatpush.bf16.msra.mxu1 %v8322_v37 }
 0xb33   :  { %3487 = vmatpush.bf16.msra.mxu0 %v8313_v17 }
 0xb5b   :  { %v8607_v33 = vpop.permute.xlu0 %8606 }
 0xb5c   :  { %v8609_v19 = vunpack.i.h.bf16 %v8607_v33  ;;  %v8608_v8 = vunpack.i.l.bf16 %v8607_v33 }
 0xb5e   :  { %v3225_v18 = vsel %vm1960_vm1, %v3221_v35, %v8608_v8  ;;  %v3226_v62 = vsel %vm1960_vm1, %v3222_v39, %v8609_v19  ;;  %v8321_v19 = vld [vmem:[#allocation2 + $0x450] sm:$0xff]  ;;  %v8312_v35 = vld [vmem:[#allocation2 + $0x408] sm:$0xff] }
 0xb5f   :  { %3576 = vmatpush.bf16.msra.mxu1 %v8321_v19  ;;  %3488 = vmatpush.bf16.msra.mxu0 %v8312_v35  ;;  %v8328_v35 = vld [vmem:[#allocation2 + $0x488] sm:$0xff] }
 0xb6b   :  { %v8612_v28 = vpop.permute.xlu1 %8611 }
 0xb6c   :  { %v8614_v63 = vunpack.i.h.bf16 %v8612_v28  ;;  %v8613_v46 = vunpack.i.l.bf16 %v8612_v28 }
 0xb6e   :  { %v3229_v6 = vsel %vm1965_vm2, %v3225_v18, %v8613_v46  ;;  %v3230_v47 = vsel %vm1965_vm2, %v3226_v62, %v8614_v63  ;;  %v8320_v63 = vld [vmem:[#allocation2 + $0x448] sm:$0xff] }
 0xb6f   :  { %v3232_v38 = vpack.c.bf16 %v3230_v47, %v3229_v6  ;;  %3577 = vmatpush.bf16.msra.mxu1 %v8320_v63  ;;  %v8311_v6 = vld [vmem:[#allocation2 + $0x400] sm:$0xff] }
 0xb70   :  { %v8319_v47 = vld [vmem:[#allocation2 + $0x440] sm:$0xff]  ;;  %3489 = vmatpush.bf16.msra.mxu0 %v8311_v6  ;;  %v8748_v6 = vld [vmem:[%s11434_s2 + $0x10] ss:$0 sm:$0xff] }
 0xb71   :  { %3312 = vmatmul.bf16.gmra.mxu3 %v3232_v38  ;;  %v8335_v63 = vld [vmem:[#allocation2 + $0x4c0] sm:$0xff] }
 0xb73   :  { %3578 = vmatpush.bf16.msra.mxu1 %v8319_v47  ;;  %v8749_v47 = vld [vmem:[%s11434_s2 + $0x11] ss:$0 sm:$0xff] }
 0xbb0   :  { %v3308_v20 = vpop.f32.mrf.mxu3 }
 0xbb1   :  { %v3309_v52 = vadd.f32 %v8745_v12, %v3308_v20 }
 0xbb3   :  { %v3318_v21 = vadd.f32 %v3309_v52, %v10150_v26  ;;  %v10447_v52 = vld [vmem:[%s11434_s2 + $0x18] ss:$0 sm:$0xff] }
 0xbb5   :  { %3324 = vadd.xlane.f32.xlu0 %v3318_v21 }
 0xbb8   :  { %v3310_v34 = vpop.f32.mrf.mxu3 }
 0xbb9   :  { %v3311_v22 = vadd.f32 %v8745_v12, %v3310_v34 }
 0xbbb   :  { %v3319_v42 = vadd.f32 %v3311_v22, %v10152_v3 }
 0xbbd   :  { %3326 = vadd.xlane.f32.xlu2 %v3319_v42 }
 0xbf4   :  { %v3313_v1 = vpop.f32.mrf.mxu3 }
 0xbf5   :  { %v3314_v58 = vadd.f32 %v8745_v12, %v3313_v1 }
 0xbf7   :  { %v3320_v56 = vadd.f32 %v3314_v58, %v10160_v27  ;;  %v8747_v58 = vld [vmem:[%s11434_s2 + $0x19] ss:$0 sm:$0xff] }
 0xbf9   :  { %3328 = vadd.xlane.f32.xlu1 %v3320_v56 }
 0xbfc   :  { %v3315_v50 = vpop.f32.mrf.mxu3 }
 0xbfd   :  { %v3316_v54 = vadd.f32 %v8745_v12, %v3315_v50 }
 0xbff   :  { %v3321_v30 = vadd.f32 %v3316_v54, %v10162_v2 }
 0xc01   :  { %3330 = vadd.xlane.f32.xlu2 %v3321_v30 }
 0xc28   :  { %v3325_v15 = vpop.xlane.xlu0 %3324 }
 0xc29   :  { %v3332_v44 = vmul.f32 %v3325_v15, %v10079_v29 }
 0xc2b   :  { %v10423_v26 = vsub.f32 %v3318_v21, %v3332_v44 }
 0xc2d   :  { %v3340_v16 = vmul.f32 %v10423_v26, %v10423_v26 }
 0xc2f   :  { %3344 = vadd.xlane.f32.xlu2 %v3340_v16  ;;  %v8342_v16 = vld [vmem:[#allocation2 + $0x4f8] sm:$0xff] }
 0xc30   :  { %v3327_v3 = vpop.xlane.xlu2 %3326  ;;  %3678 = vmatpush.bf16.msra.mxu2 %v8342_v16 }
 0xc31   :  { %v3333_v9 = vmul.f32 %v3327_v3, %v10079_v29  ;;  %v8334_v3 = vld [vmem:[#allocation2 + $0x4b8] sm:$0xff] }
 0xc32   :  { %3745 = vmatpush.bf16.msra.mxu3 %v8334_v3 }
 0xc33   :  { %v10428_v59 = vsub.f32 %v3319_v42, %v3333_v9 }
 0xc35   :  { %v3341_v27 = vmul.f32 %v10428_v59, %v10428_v59 }
 0xc37   :  { %3346 = vadd.xlane.f32.xlu2 %v3341_v27  ;;  %v8341_v27 = vld [vmem:[#allocation2 + $0x4f0] sm:$0xff] }
 0xc38   :  { %3679 = vmatpush.bf16.msra.mxu2 %v8341_v27 }
 0xc6c   :  { %v3329_v2 = vpop.xlane.xlu1 %3328 }
 0xc6d   :  { %v3334_v43 = vmul.f32 %v3329_v2, %v10079_v29  ;;  %v8333_v2 = vld [vmem:[#allocation2 + $0x4b0] sm:$0xff] }
 0xc6e   :  { %3746 = vmatpush.bf16.msra.mxu3 %v8333_v2 }
 0xc6f   :  { %v10433_v48 = vsub.f32 %v3320_v56, %v3334_v43 }
 0xc71   :  { %v3342_v53 = vmul.f32 %v10433_v48, %v10433_v48 }
 0xc73   :  { %3348 = vadd.xlane.f32.xlu2 %v3342_v53 }
 0xc74   :  { %v3331_v5 = vpop.xlane.xlu2 %3330 }
 0xc75   :  { %v3335_v23 = vmul.f32 %v3331_v5, %v10079_v29 }
 0xc77   :  { %v10438_v60 = vsub.f32 %v3321_v30, %v3335_v23  ;;  %v8340_v23 = vld [vmem:[#allocation2 + $0x4e8] sm:$0xff] }
 0xc78   :  { %3680 = vmatpush.bf16.msra.mxu2 %v8340_v23 }
 0xc79   :  { %v3343_v49 = vmul.f32 %v10438_v60, %v10438_v60 }
 0xc7b   :  { %3350 = vadd.xlane.f32.xlu2 %v3343_v49  ;;  %v8332_v49 = vld [vmem:[#allocation2 + $0x4a8] sm:$0xff] }
 0xc7c   :  { %3747 = vmatpush.bf16.msra.mxu3 %v8332_v49 }
 0xca2   :  { %v3345_v14 = vpop.xlane.xlu2 %3344 }
 0xca3   :  { %v3352_v36 = vmul.f32 %v3345_v14, %v10079_v29  ;;  %v8339_v14 = vld [vmem:[#allocation2 + $0x4e0] sm:$0xff] }
 0xca4   :  { %3681 = vmatpush.bf16.msra.mxu2 %v8339_v14 }
 0xca5   :  { %v3356_v57 = vadd.f32 1e-05, %v3352_v36  ;;  %v8331_v36 = vld [vmem:[#allocation2 + $0x4a0] sm:$0xff] }
 0xca6   :  { %3748 = vmatpush.bf16.msra.mxu3 %v8331_v36 }
 0xca7   :  { %8910 = vrsqrt.f32 %v3356_v57  ;;  %vm3366_vm7 = vweird.f32 %v3356_v57 }
 0xcaa   :  { %v3347_v40 = vpop.xlane.xlu2 %3346 }
 0xcab   :  { %v3353_v25 = vmul.f32 %v3347_v40, %v10079_v29 }
 0xcad   :  { %v8911_v11 = vpop.eup %8910  ;;  %v3357_v61 = vadd.f32 1e-05, %v3353_v25 }
 0xcae   :  { %v3361_v33 = vmul.f32 %v8911_v11, %v3356_v57  ;;  %vm3367_vm10 = vweird.f32 %v8911_v11 }
 0xcaf   :  { %8912 = vrsqrt.f32 %v3357_v61  ;;  %vm3368_vm8 = vmor %vm3366_vm7, %vm3367_vm10  ;;  %vm3376_vm5 = vweird.f32 %v3357_v61 }
 0xcb0   :  { %v3362_v31 = vmul.f32 %v8911_v11, %v3361_v33 }
 0xcb2   :  { %v3363_v8 = vmul.f32 0.5, %v3362_v31 }
 0xcb4   :  { %v3364_v28 = vsub.f32 1.5, %v3363_v8  ;;  %v8330_v8 = vld [vmem:[#allocation2 + $0x498] sm:$0xff] }
 0xcb5   :  { %v8913_v39 = vpop.eup %8912  ;;  %3749 = vmatpush.bf16.msra.mxu3 %v8330_v8 }
 0xcb6   :  { %v3365_v46 = vmul.f32 %v8911_v11, %v3364_v28  ;;  %v3371_v18 = vmul.f32 %v8913_v39, %v3357_v61  ;;  %vm3377_vm12 = vweird.f32 %v8913_v39  ;;  %v8337_v28 = vld [vmem:[#allocation2 + $0x4d0] sm:$0xff] }
 0xcb7   :  { %vm3378_vm13 = vmor %vm3376_vm5, %vm3377_vm12 }
 0xcb8   :  { %v3372_v62 = vmul.f32 %v8913_v39, %v3371_v18  ;;  %v3369_v38 = vsel %vm3368_vm8, %v8911_v11, %v3365_v46  ;;  %v8327_v46 = vld [vmem:[#allocation2 + $0x480] sm:$0xff] }
 0xcb9   :  { %v3400_v21 = vmul.f32 %v3369_v38, %v10423_v26 }
 0xcba   :  { %v3373_v12 = vmul.f32 0.5, %v3372_v62 }
 0xcbb   :  { %v3405_v42 = vmul.f32 %v10447_v52, %v3400_v21 }
 0xcbc   :  { %v3374_v20 = vsub.f32 1.5, %v3373_v12 }
 0xcbd   :  { %v10456_v50 = vadd.f32 %v8747_v58, %v3405_v42 }
 0xcbe   :  { %v3375_v34 = vmul.f32 %v8913_v39, %v3374_v20 }
 0xcc0   :  { %v3379_v22 = vsel %vm3378_vm13, %v8913_v39, %v3375_v34  ;;  %v8329_v39 = vld [vmem:[#allocation2 + $0x490] sm:$0xff] }
 0xcc1   :  { %v3401_v1 = vmul.f32 %v3379_v22, %v10428_v59  ;;  %3750 = vmatpush.bf16.msra.mxu3 %v8329_v39 }
 0xcc3   :  { %v3406_v56 = vmul.f32 %v10447_v52, %v3401_v1 }
 0xcc5   :  { %v10458_v54 = vadd.f32 %v8747_v58, %v3406_v56  ;;  %3751 = vmatpush.bf16.msra.mxu3 %v8328_v35 }
 0xcc7   :  { %v3414_v30 = vpack.c.bf16 %v10458_v54, %v10456_v50 }
 0xcc9   :  { %3490 = vmatmul.bf16.vlgmr.msra.gmra.mxu0 %v3414_v30  ;;  %3579 = vmatmul.bf16.vlgmr.msra.gmra.mxu1 %v3414_v30 }
 0xcca   :  { %3752 = vmatpush.bf16.msra.mxu3 %v8327_v46 }
 0xce6   :  { %v3349_v15 = vpop.xlane.xlu2 %3348 }
 0xce7   :  { %v3354_v44 = vmul.f32 %v3349_v15, %v10079_v29 }
 0xce9   :  { %v3358_v26 = vadd.f32 1e-05, %v3354_v44 }
 0xceb   :  { %8914 = vrsqrt.f32 %v3358_v26  ;;  %vm3386_vm14 = vweird.f32 %v3358_v26 }
 0xcee   :  { %v3351_v9 = vpop.xlane.xlu2 %3350 }
 0xcef   :  { %v3355_v59 = vmul.f32 %v3351_v9, %v10079_v29 }
 0xcf1   :  { %v8915_v43 = vpop.eup %8914  ;;  %v3359_v53 = vadd.f32 1e-05, %v3355_v59 }
 0xcf2   :  { %v3381_v5 = vmul.f32 %v8915_v43, %v3358_v26  ;;  %vm3387_vm11 = vweird.f32 %v8915_v43 }
 0xcf3   :  { %8916 = vrsqrt.f32 %v3359_v53  ;;  %vm3388_vm15 = vmor %vm3386_vm14, %vm3387_vm11  ;;  %vm3396_vm0 = vweird.f32 %v3359_v53 }
 0xcf4   :  { %v3382_v10 = vmul.f32 %v8915_v43, %v3381_v5 }
 0xcf6   :  { %v3383_v32 = vmul.f32 0.5, %v3382_v10  ;;  %v8750_v10 = vld [vmem:[%s11434_s2 + $0x12] ss:$0 sm:$0xff] }
 0xcf8   :  { %v3384_v24 = vsub.f32 1.5, %v3383_v32 }
 0xcf9   :  { %v8917_v7 = vpop.eup %8916 }
 0xcfa   :  { %v3385_v57 = vmul.f32 %v8915_v43, %v3384_v24  ;;  %v3391_v4 = vmul.f32 %v8917_v7, %v3359_v53  ;;  %vm3397_vm6 = vweird.f32 %v8917_v7 }
 0xcfb   :  { %vm3398_vm3 = vmor %vm3396_vm0, %vm3397_vm6 }
 0xcfc   :  { %v3392_v41 = vmul.f32 %v8917_v7, %v3391_v4  ;;  %v3389_v55 = vsel %vm3388_vm15, %v8915_v43, %v3385_v57 }
 0xcfd   :  { %v3402_v25 = vmul.f32 %v3389_v55, %v10433_v48  ;;  %v8338_v48 = vld [vmem:[#allocation2 + $0x4d8] sm:$0xff] }
 0xcfe   :  { %v3393_v13 = vmul.f32 0.5, %v3392_v41  ;;  %3682 = vmatpush.bf16.msra.mxu2 %v8338_v48 }
 0xcff   :  { %v3407_v37 = vmul.f32 %v10447_v52, %v3402_v25 }
 0xd00   :  { %v3394_v40 = vsub.f32 1.5, %v3393_v13 }
 0xd01   :  { %v10468_v31 = vadd.f32 %v8747_v58, %v3407_v37 }
 0xd02   :  { %v3395_v11 = vmul.f32 %v8917_v7, %v3394_v40  ;;  %3683 = vmatpush.bf16.msra.mxu2 %v8337_v28 }
 0xd04   :  { %v3399_v61 = vsel %vm3398_vm3, %v8917_v7, %v3395_v11 }
 0xd05   :  { %v3403_v0 = vmul.f32 %v3399_v61, %v10438_v60  ;;  %v8336_v60 = vld [vmem:[#allocation2 + $0x4c8] sm:$0xff] }
 0xd06   :  { %3684 = vmatpush.bf16.msra.mxu2 %v8336_v60 }
 0xd07   :  { %v3408_v33 = vmul.f32 %v10447_v52, %v3403_v0 }
 0xd09   :  { %v10470_v17 = vadd.f32 %v8747_v58, %v3408_v33 }
 0xd0a   :  { %3685 = vmatpush.bf16.msra.mxu2 %v8335_v63 }
 0xd0b   :  { %v3415_v19 = vpack.c.bf16 %v10470_v17, %v10468_v31 }
 0xd0d   :  { %3495 = vmatmul.bf16.gmra.mxu0 %v3415_v19  ;;  %3584 = vmatmul.bf16.gmra.mxu1 %v3415_v19 }
 0xd46   :  { %v3491_v18 = vpop.f32.mrf.mxu0  ;;  %v3580_v62 = vpop.f32.mrf.mxu1 }
 0xd47   :  { %v3492_v38 = vadd.f32 %v8748_v6, %v3491_v18  ;;  %v3581_v12 = vadd.f32 %v8749_v47, %v3580_v62 }
 0xd49   :  { %v3501_v22 = vmax.f32 %v3492_v38, 0.0  ;;  %v3590_v42 = vmax.f32 %v3581_v12, 0.0 }
 0xd4e   :  { %v3493_v20 = vpop.f32.mrf.mxu0  ;;  %v3582_v52 = vpop.f32.mrf.mxu1 }
 0xd4f   :  { %v3494_v21 = vadd.f32 %v8748_v6, %v3493_v20  ;;  %v3583_v34 = vadd.f32 %v8749_v47, %v3582_v52  ;;  %v8350_v20 = vld [vmem:[#allocation2 + $0x238] sm:$0xff] }
 0xd50   :  { %v8358_v52 = vld [vmem:[#allocation2 + $0x278] sm:$0xff]  ;;  %3934 = vmatpush.bf16.msrb.mxu0 %v8350_v20 }
 0xd51   :  { %v3502_v1 = vmax.f32 %v3494_v21, 0.0  ;;  %v3591_v58 = vmax.f32 %v3583_v34, 0.0  ;;  %v8366_v21 = vld [vmem:[#allocation2 + $0x2b8] sm:$0xff]  ;;  %4019 = vmatpush.bf16.msrb.mxu1 %v8358_v52 }
 0xd52   :  { %4104 = vmatpush.bf16.msrb.mxu2 %v8366_v21 }
 0xd53   :  { %v3594_v56 = vpack.c.bf16 %v3502_v1, %v3501_v22  ;;  %v3612_v30 = vpack.c.bf16 %v3591_v58, %v3590_v42  ;;  %v8349_v42 = vld [vmem:[#allocation2 + $0x230] sm:$0xff] }
 0xd54   :  { %v8357_v1 = vld [vmem:[#allocation2 + $0x270] sm:$0xff]  ;;  %3935 = vmatpush.bf16.msrb.mxu0 %v8349_v42 }
 0xd55   :  { %3686 = vmatmul.bf16.vlgmr.msra.gmra.mxu2 %v3612_v30  ;;  %3753 = vmatmul.bf16.vlgmr.msra.gmra.mxu3 %v3594_v56  ;;  %v8365_v58 = vld [vmem:[#allocation2 + $0x2b0] sm:$0xff]  ;;  %v8348_v30 = vld [vmem:[#allocation2 + $0x228] sm:$0xff] }
 0xd56   :  { %4020 = vmatpush.bf16.msrb.mxu1 %v8357_v1  ;;  %4105 = vmatpush.bf16.msrb.mxu2 %v8365_v58 }
 0xd58   :  { %3936 = vmatpush.bf16.msrb.mxu0 %v8348_v30 }
 0xd8a   :  { %v3496_v15 = vpop.f32.mrf.mxu0  ;;  %v3585_v44 = vpop.f32.mrf.mxu1 }
 0xd8b   :  { %v3497_v26 = vadd.f32 %v8748_v6, %v3496_v15  ;;  %v3586_v16 = vadd.f32 %v8749_v47, %v3585_v44  ;;  %v8356_v15 = vld [vmem:[#allocation2 + $0x268] sm:$0xff] }
 0xd8c   :  { %v8364_v44 = vld [vmem:[#allocation2 + $0x2a8] sm:$0xff]  ;;  %4021 = vmatpush.bf16.msrb.mxu1 %v8356_v15 }
 0xd8d   :  { %v3503_v2 = vmax.f32 %v3497_v26, 0.0  ;;  %v3592_v43 = vmax.f32 %v3586_v16, 0.0  ;;  %v8347_v26 = vld [vmem:[#allocation2 + $0x220] sm:$0xff]  ;;  %4106 = vmatpush.bf16.msrb.mxu2 %v8364_v44 }
 0xd8e   :  { %v8355_v16 = vld [vmem:[#allocation2 + $0x260] sm:$0xff]  ;;  %3937 = vmatpush.bf16.msrb.mxu0 %v8347_v26 }
 0xd90   :  { %4022 = vmatpush.bf16.msrb.mxu1 %v8355_v16 }
 0xd92   :  { %v3498_v3 = vpop.f32.mrf.mxu0  ;;  %v3587_v9 = vpop.f32.mrf.mxu1 }
 0xd93   :  { %v3499_v59 = vadd.f32 %v8748_v6, %v3498_v3  ;;  %v3588_v27 = vadd.f32 %v8749_v47, %v3587_v9  ;;  %v8363_v9 = vld [vmem:[#allocation2 + $0x2a0] sm:$0xff] }
 0xd94   :  { %4107 = vmatpush.bf16.msrb.mxu2 %v8363_v9 }
 0xd95   :  { %v3504_v53 = vmax.f32 %v3499_v59, 0.0  ;;  %v3593_v5 = vmax.f32 %v3588_v27, 0.0 }
 0xd97   :  { %v3613_v23 = vpack.c.bf16 %v3593_v5, %v3592_v43  ;;  %v3595_v49 = vpack.c.bf16 %v3504_v53, %v3503_v2  ;;  %v8346_v43 = vld [vmem:[#allocation2 + $0x218] sm:$0xff] }
 0xd98   :  { %v8354_v53 = vld [vmem:[#allocation2 + $0x258] sm:$0xff]  ;;  %3938 = vmatpush.bf16.msrb.mxu0 %v8346_v43 }
 0xd99   :  { %3691 = vmatmul.bf16.gmra.mxu2 %v3613_v23  ;;  %3758 = vmatmul.bf16.gmra.mxu3 %v3595_v49  ;;  %v8362_v23 = vld [vmem:[#allocation2 + $0x298] sm:$0xff] }
 0xd9a   :  { %4023 = vmatpush.bf16.msrb.mxu1 %v8354_v53  ;;  %4108 = vmatpush.bf16.msrb.mxu2 %v8362_v23 }
 0xdd8   :  { %v3687_v32 = vpop.f32.mrf.mxu2  ;;  %v3754_v14 = vpop.f32.mrf.mxu3 }
 0xdd9   :  { %v3755_v36 = vadd.f32 %v3754_v14, %v3687_v32  ;;  %v8353_v32 = vld [vmem:[#allocation2 + $0x250] sm:$0xff] }
 0xdda   :  { %4024 = vmatpush.bf16.msrb.mxu1 %v8353_v32 }
 0xddb   :  { %v3766_v24 = vadd.f32 %v8750_v10, %v3755_v36  ;;  %v8361_v36 = vld [vmem:[#allocation2 + $0x290] sm:$0xff] }
 0xddc   :  { %4109 = vmatpush.bf16.msrb.mxu2 %v8361_v36 }
 0xddd   :  { %v3770_v7 = vadd.f32 %v3766_v24, %v10456_v50 }
 0xddf   :  { %3776 = vadd.xlane.f32.xlu0 %v3770_v7 }
 0xde0   :  { %v3689_v57 = vpop.f32.mrf.mxu2  ;;  %v3756_v4 = vpop.f32.mrf.mxu3 }
 0xde1   :  { %v3757_v41 = vadd.f32 %v3756_v4, %v3689_v57  ;;  %v8344_v57 = vld [vmem:[#allocation2 + $0x208] sm:$0xff] }
 0xde2   :  { %v8352_v4 = vld [vmem:[#allocation2 + $0x248] sm:$0xff] }
 0xde3   :  { %v3767_v55 = vadd.f32 %v8750_v10, %v3757_v41  ;;  %4025 = vmatpush.bf16.msrb.mxu1 %v8352_v4 }
 0xde5   :  { %v3771_v13 = vadd.f32 %v3767_v55, %v10458_v54 }
 0xde7   :  { %3778 = vadd.xlane.f32.xlu1 %v3771_v13 }
 0xe1c   :  { %v3692_v40 = vpop.f32.mrf.mxu2  ;;  %v3759_v25 = vpop.f32.mrf.mxu3 }
 0xe1d   :  { %v3760_v11 = vadd.f32 %v3759_v25, %v3692_v40  ;;  %v8343_v25 = vld [vmem:[#allocation2 + $0x200] sm:$0xff] }
 0xe1f   :  { %v3768_v61 = vadd.f32 %v8750_v10, %v3760_v11  ;;  %v8351_v11 = vld [vmem:[#allocation2 + $0x240] sm:$0xff] }
 0xe20   :  { %4026 = vmatpush.bf16.msrb.mxu1 %v8351_v11 }
 0xe21   :  { %v3772_v0 = vadd.f32 %v3768_v61, %v10468_v31 }
 0xe23   :  { %3780 = vadd.xlane.f32.xlu2 %v3772_v0 }
 0xe24   :  { %v3694_v37 = vpop.f32.mrf.mxu2  ;;  %v3761_v33 = vpop.f32.mrf.mxu3 }
 0xe25   :  { %v3762_v19 = vadd.f32 %v3761_v33, %v3694_v37  ;;  %v8359_v37 = vld [vmem:[#allocation2 + $0x280] sm:$0xff] }
 0xe27   :  { %v3769_v48 = vadd.f32 %v8750_v10, %v3762_v19  ;;  %v8345_v10 = vld [vmem:[#allocation2 + $0x210] sm:$0xff]  ;;  %v8751_v19 = vld [vmem:[%s11434_s2 + $0x1a] ss:$0 sm:$0xff] }
 0xe28   :  { %3939 = vmatpush.bf16.msrb.mxu0 %v8345_v10 }
 0xe29   :  { %v3773_v50 = vadd.f32 %v3769_v48, %v10470_v17 }
 0xe2b   :  { %3782 = vadd.xlane.f32.xlu0 %v3773_v50 }
 0xe2c   :  { %3940 = vmatpush.bf16.msrb.mxu0 %v8344_v57  ;;  %v8755_v57 = vld [vmem:[%s11434_s2 + $0xa] ss:$0 sm:$0xff] }
 0xe30   :  { %3941 = vmatpush.bf16.msrb.mxu0 %v8343_v25 }
 0xe52   :  { %v3777_v8 = vpop.xlane.xlu0 %3776 }
 0xe53   :  { %v3784_v28 = vmul.f32 %v3777_v8, %v10079_v29 }
 0xe55   :  { %v10488_v39 = vsub.f32 %v3770_v7, %v3784_v28 }
 0xe57   :  { %v3792_v54 = vmul.f32 %v10488_v39, %v10488_v39 }
 0xe59   :  { %3796 = vadd.xlane.f32.xlu1 %v3792_v54 }
 0xe5a   :  { %v3779_v60 = vpop.xlane.xlu1 %3778 }
 0xe5b   :  { %v3785_v31 = vmul.f32 %v3779_v60, %v10079_v29  ;;  %v8752_v60 = vld [vmem:[%s11434_s2 + $0x1b] ss:$0 sm:$0xff] }
 0xe5d   :  { %v10493_v35 = vsub.f32 %v3771_v13, %v3785_v31  ;;  %v8360_v13 = vld [vmem:[#allocation2 + $0x288] sm:$0xff] }
 0xe5e   :  { %4110 = vmatpush.bf16.msrb.mxu2 %v8360_v13 }
 0xe5f   :  { %v3793_v63 = vmul.f32 %v10493_v35, %v10493_v35 }
 0xe61   :  { %3798 = vadd.xlane.f32.xlu2 %v3793_v63 }
 0xe62   :  { %4111 = vmatpush.bf16.msrb.mxu2 %v8359_v37 }
 0xe96   :  { %v3781_v17 = vpop.xlane.xlu2 %3780 }
 0xe97   :  { %v3786_v46 = vmul.f32 %v3781_v17, %v10079_v29 }
 0xe99   :  { %v10498_v18 = vsub.f32 %v3772_v0, %v3786_v46 }
 0xe9b   :  { %v3794_v62 = vmul.f32 %v10498_v18, %v10498_v18 }
 0xe9d   :  { %3800 = vadd.xlane.f32.xlu0 %v3794_v62 }
 0xe9e   :  { %v3783_v6 = vpop.xlane.xlu0 %3782 }
 0xe9f   :  { %v3787_v47 = vmul.f32 %v3783_v6, %v10079_v29 }
 0xea1   :  { %v10503_v38 = vsub.f32 %v3773_v50, %v3787_v47 }
 0xea3   :  { %v3795_v12 = vmul.f32 %v10503_v38, %v10503_v38 }
 0xea5   :  { %3802 = vadd.xlane.f32.xlu1 %v3795_v12 }
 0xecc   :  { %v3797_v34 = vpop.xlane.xlu1 %3796 }
 0xecd   :  { %v3804_v22 = vmul.f32 %v3797_v34, %v10079_v29 }
 0xecf   :  { %v3808_v56 = vadd.f32 1e-05, %v3804_v22 }
 0xed1   :  { %8918 = vrsqrt.f32 %v3808_v56  ;;  %vm3818_vm7 = vweird.f32 %v3808_v56 }
 0xed4   :  { %v3799_v3 = vpop.xlane.xlu2 %3798 }
 0xed5   :  { %v3805_v59 = vmul.f32 %v3799_v3, %v10079_v29 }
 0xed7   :  { %v8919_v27 = vpop.eup %8918  ;;  %v3809_v2 = vadd.f32 1e-05, %v3805_v59 }
 0xed8   :  { %v3813_v5 = vmul.f32 %v8919_v27, %v3808_v56  ;;  %vm3819_vm10 = vweird.f32 %v8919_v27 }
 0xed9   :  { %8920 = vrsqrt.f32 %v3809_v2  ;;  %vm3820_vm8 = vmor %vm3818_vm7, %vm3819_vm10  ;;  %vm3828_vm5 = vweird.f32 %v3809_v2 }
 0xeda   :  { %v3814_v49 = vmul.f32 %v8919_v27, %v3813_v5 }
 0xedc   :  { %v3815_v14 = vmul.f32 0.5, %v3814_v49 }
 0xede   :  { %v3816_v24 = vsub.f32 1.5, %v3815_v14 }
 0xedf   :  { %v8921_v7 = vpop.eup %8920 }
 0xee0   :  { %v3817_v41 = vmul.f32 %v8919_v27, %v3816_v24  ;;  %v3823_v55 = vmul.f32 %v8921_v7, %v3809_v2  ;;  %vm3829_vm12 = vweird.f32 %v8921_v7 }
 0xee1   :  { %vm3830_vm13 = vmor %vm3828_vm5, %vm3829_vm12 }
 0xee2   :  { %v3824_v40 = vmul.f32 %v8921_v7, %v3823_v55  ;;  %v3821_v61 = vsel %vm3820_vm8, %v8919_v27, %v3817_v41 }
 0xee3   :  { %v3852_v48 = vmul.f32 %v3821_v61, %v10488_v39 }
 0xee4   :  { %v3825_v0 = vmul.f32 0.5, %v3824_v40 }
 0xee5   :  { %v3857_v28 = vmul.f32 %v8751_v19, %v3852_v48 }
 0xee6   :  { %v3826_v33 = vsub.f32 1.5, %v3825_v0 }
 0xee7   :  { %v10517_v63 = vadd.f32 %v8752_v60, %v3857_v28 }
 0xee8   :  { %v3827_v50 = vmul.f32 %v8921_v7, %v3826_v33 }
 0xeea   :  { %v3831_v8 = vsel %vm3830_vm13, %v8921_v7, %v3827_v50 }
 0xeeb   :  { %v3853_v54 = vmul.f32 %v3831_v8, %v10493_v35 }
 0xeed   :  { %v3858_v31 = vmul.f32 %v8751_v19, %v3853_v54 }
 0xeef   :  { %v10519_v17 = vadd.f32 %v8752_v60, %v3858_v31 }
 0xef1   :  { %v3866_v39 = vpack.c.bf16 %v10519_v17, %v10517_v63 }
 0xef3   :  { %3942 = vmatmul.bf16.vlgmr.msrb.gmra.mxu0 %v3866_v39  ;;  %4027 = vmatmul.bf16.vlgmr.msrb.gmra.mxu1 %v3866_v39 }
 0xef4   :  { %4112 = vmatmul.bf16.vlgmr.msrb.gmra.mxu2 %v3866_v39 }
 0xf10   :  { %v3801_v46 = vpop.xlane.xlu0 %3800 }
 0xf11   :  { %v3806_v62 = vmul.f32 %v3801_v46, %v10079_v29 }
 0xf13   :  { %v3810_v6 = vadd.f32 1e-05, %v3806_v62 }
 0xf15   :  { %8922 = vrsqrt.f32 %v3810_v6  ;;  %vm3838_vm14 = vweird.f32 %v3810_v6 }
 0xf18   :  { %v3803_v35 = vpop.xlane.xlu1 %3802 }
 0xf19   :  { %v3807_v47 = vmul.f32 %v3803_v35, %v10079_v29 }
 0xf1b   :  { %v8923_v12 = vpop.eup %8922  ;;  %v3811_v20 = vadd.f32 1e-05, %v3807_v47 }
 0xf1c   :  { %v3833_v52 = vmul.f32 %v8923_v12, %v3810_v6  ;;  %vm3839_vm11 = vweird.f32 %v8923_v12 }
 0xf1d   :  { %8924 = vrsqrt.f32 %v3811_v20  ;;  %vm3840_vm15 = vmor %vm3838_vm14, %vm3839_vm11  ;;  %vm3848_vm0 = vweird.f32 %v3811_v20 }
 0xf1e   :  { %v3834_v21 = vmul.f32 %v8923_v12, %v3833_v52 }
 0xf20   :  { %v3835_v34 = vmul.f32 0.5, %v3834_v21 }
 0xf22   :  { %v3836_v22 = vsub.f32 1.5, %v3835_v34 }
 0xf23   :  { %v8925_v42 = vpop.eup %8924 }
 0xf24   :  { %v3837_v1 = vmul.f32 %v8923_v12, %v3836_v22  ;;  %v3843_v58 = vmul.f32 %v8925_v42, %v3811_v20  ;;  %vm3849_vm6 = vweird.f32 %v8925_v42 }
 0xf25   :  { %vm3850_vm3 = vmor %vm3848_vm0, %vm3849_vm6 }
 0xf26   :  { %v3844_v56 = vmul.f32 %v8925_v42, %v3843_v58  ;;  %v3841_v30 = vsel %vm3840_vm15, %v8923_v12, %v3837_v1 }
 0xf27   :  { %v3854_v26 = vmul.f32 %v3841_v30, %v10498_v18  ;;  %v8753_v18 = vld [vmem:[%s11434_s2 + $0x8] ss:$0 sm:$0xff] }
 0xf28   :  { %v3845_v15 = vmul.f32 0.5, %v3844_v56 }
 0xf29   :  { %v3859_v59 = vmul.f32 %v8751_v19, %v3854_v26 }
 0xf2a   :  { %v3846_v44 = vsub.f32 1.5, %v3845_v15 }
 0xf2b   :  { %v10527_v2 = vadd.f32 %v8752_v60, %v3859_v59 }
 0xf2c   :  { %v3847_v16 = vmul.f32 %v8925_v42, %v3846_v44 }
 0xf2e   :  { %v3851_v3 = vsel %vm3850_vm3, %v8925_v42, %v3847_v16 }
 0xf2f   :  { %v3855_v9 = vmul.f32 %v3851_v3, %v10503_v38  ;;  %v8754_v38 = vld [vmem:[%s11434_s2 + $0x9] ss:$0 sm:$0xff] }
 0xf31   :  { %v3860_v27 = vmul.f32 %v8751_v19, %v3855_v9 }
 0xf33   :  { %v10529_v43 = vadd.f32 %v8752_v60, %v3860_v27 }
 0xf35   :  { %v3867_v53 = vpack.c.bf16 %v10529_v43, %v10527_v2 }
 0xf37   :  { %3947 = vmatmul.bf16.gmra.mxu0 %v3867_v53  ;;  %4032 = vmatmul.bf16.gmra.mxu1 %v3867_v53 }
 0xf38   :  { %4117 = vmatmul.bf16.gmra.mxu2 %v3867_v53 }
 0xf70   :  { %v3943_v5 = vpop.f32.mrf.mxu0  ;;  %v4028_v23 = vpop.f32.mrf.mxu1 }
 0xf71   :  { %v3944_v49 = vadd.f32 %v8753_v18, %v3943_v5  ;;  %v4029_v10 = vadd.f32 %v8754_v38, %v4028_v23 }
 0xf73   :  { %4299 = vrot.lane.b32.xlu0 %v4029_v10, %s9166_s25  ;;  %4295 = vrot.lane.b32.xlu1 %v3944_v49, %s9166_s25 }
 0xf77   :  { %v4113_v32 = vpop.f32.mrf.mxu2 }
 0xf78   :  { %v3945_v14 = vpop.f32.mrf.mxu0  ;;  %v4030_v36 = vpop.f32.mrf.mxu1  ;;  %v4114_v41 = vadd.f32 %v8755_v57, %v4113_v32 }
 0xf79   :  { %v3946_v24 = vadd.f32 %v8753_v18, %v3945_v14  ;;  %v4031_v7 = vadd.f32 %v8754_v38, %v4030_v36  ;;  %v8389_v36 = vld [vmem:[#allocation2 + $0x370] sm:$0xff] }
 0xf7b   :  { %4301 = vrot.lane.b32.xlu2 %v4031_v7, %s9166_s25  ;;  %7859 = vmatpush.xpose.msk.msrb.mxu3 %vm86_vm4, %v4031_v7 }
 0xf7c   :  { %4297 = vrot.lane.b32.xlu0 %v3946_v24, %s9166_s25  ;;  %4491 = vrot.lane.b32.xlu1 %v3944_v49, %s9159_s26 }
 0xf7f   :  { %v4115_v4 = vpop.f32.mrf.mxu2  ;;  %7860 = vmatpush.xpose.msk.msrb.mxu3 %vm86_vm4, %v4029_v10 }
 0xf80   :  { %v4116_v55 = vadd.f32 %v8755_v57, %v4115_v4  ;;  %v8387_v4 = vld [vmem:[#allocation2 + $0x360] sm:$0xff] }
 0xf82   :  { %4200 = vmatpush.msra.mxu0 %v4116_v55  ;;  %7861 = vmatmul.msk.f32.vlgmr.msrb.gmra.mxu3 %vm86_vm4, %v3944_v49  ;;  %v10550_v13 = vpack.i.bf16 %v4114_v41, %v4116_v55  ;;  %v8386_v55 = vld [vmem:[#allocation2 + $0x358] sm:$0xff] }
 0xf83   :  { %4495 = vrot.lane.b32.xlu2 %v4029_v10, %s9159_s26 }
 0xf84   :  { %4201 = vmatpush.msra.mxu0 %v4114_v41  ;;  %4497 = vrot.lane.b32.xlu0 %v4031_v7, %s9159_s26 }
 0xf8a   :  { %7862 = vmatmul.msk.f32.gmra.mxu3 %vm86_vm4, %v3946_v24 }
 0xf8c   :  { %4493 = vrot.lane.b32.xlu0 %v3946_v24, %s9159_s26 }
 0xfb4   :  { %v3948_v40 = vpop.f32.mrf.mxu0  ;;  %v4033_v25 = vpop.f32.mrf.mxu1 }
 0xfb5   :  { %v3949_v11 = vadd.f32 %v8753_v18, %v3948_v40  ;;  %v4034_v61 = vadd.f32 %v8754_v38, %v4033_v25  ;;  %v8385_v40 = vld [vmem:[#allocation2 + $0x350] sm:$0xff]  ;;  %v8384_v25 = vld [vmem:[#allocation2 + $0x348] sm:$0xff] }
 0xfb7   :  { %4397 = vrot.lane.b32.xlu1 %v4034_v61, %s9166_s25  ;;  %4393 = vrot.lane.b32.xlu0 %v3949_v11, %s9166_s25 }
 0xfbb   :  { %v4118_v0 = vpop.f32.mrf.mxu2 }
 0xfbc   :  { %v4035_v37 = vpop.f32.mrf.mxu1  ;;  %v4119_v48 = vadd.f32 %v8755_v57, %v4118_v0  ;;  %v3950_v28 = vpop.f32.mrf.mxu0 }
 0xfbd   :  { %v4036_v33 = vadd.f32 %v8754_v38, %v4035_v37  ;;  %v3951_v54 = vadd.f32 %v8753_v18, %v3950_v28  ;;  %v8390_v18 = vld [vmem:[#allocation2 + $0x378] sm:$0xff] }
 0xfbf   :  { %4399 = vrot.lane.b32.xlu2 %v4036_v33, %s9166_s25  ;;  %7865 = vmatpush.xpose.msk.msra.mxu1 %vm86_vm4, %v4036_v33 }
 0xfc0   :  { %4593 = vrot.lane.b32.xlu1 %v4036_v33, %s9159_s26  ;;  %4591 = vrot.lane.b32.xlu0 %v4034_v61, %s9159_s26 }
 0xfc3   :  { %v4120_v19 = vpop.f32.mrf.mxu2  ;;  %7866 = vmatpush.xpose.msk.msra.mxu1 %vm86_vm4, %v4034_v61 }
 0xfc4   :  { %v4121_v50 = vadd.f32 %v8755_v57, %v4120_v19 }
 0xfc6   :  { %4286 = vmatpush.msra.mxu2 %v4121_v50  ;;  %7867 = vmatmul.msk.f32.vlgmr.msra.gmra.mxu1 %vm86_vm4, %v3949_v11  ;;  %v10564_v8 = vpack.i.bf16 %v4119_v48, %v4121_v50 }
 0xfc7   :  { %4689 = vrot.lane.b32.xlu2 %v4031_v7, %s9167_s29 }
 0xfc8   :  { %4287 = vmatpush.msra.mxu2 %v4119_v48  ;;  %4687 = vrot.lane.b32.xlu1 %v4029_v10, %s9167_s29 }
 0xfc9   :  { %4683 = vrot.lane.b32.xlu0 %v3944_v49, %s9167_s29 }
 0xfce   :  { %7868 = vmatmul.msk.f32.gmra.mxu1 %vm86_vm4, %v3951_v54 }
 0xfcf   :  { %4395 = vrot.lane.b32.xlu2 %v3951_v54, %s9166_s25 }
 0xfd0   :  { %4589 = vrot.lane.b32.xlu1 %v3951_v54, %s9159_s26 }
 0xfd1   :  { %4785 = vrot.lane.b32.xlu0 %v4036_v33, %s9167_s29 }
 0xfd5   :  { %v4302_v60 = vpop.permute.xlu2 %4301 }
 0xfd6   :  { %7871 = vmatpush.xpose.msk.msra.mxu3 %vm86_vm4, %v4302_v60 }
 0xfd7   :  { %4587 = vrot.lane.b32.xlu2 %v3949_v11, %s9159_s26 }
 0xfd8   :  { %4783 = vrot.lane.b32.xlu1 %v4034_v61, %s9167_s29 }
 0xfd9   :  { %4781 = vrot.lane.b32.xlu0 %v3951_v54, %s9167_s29 }
 0xfdd   :  { %v4496_v6 = vpop.permute.xlu2 %4495 }
 0xfdf   :  { %4685 = vrot.lane.b32.xlu2 %v3946_v24, %s9167_s29  ;;  %v8388_v24 = vld [vmem:[#allocation2 + $0x368] sm:$0xff] }
 0xfe1   :  { %8621 = vrot.lane.b32.xlu0 %v10564_v8, %s9166_s25 }
 0xfe5   :  { %v4300_v31 = vpop.permute.xlu0 %4299  ;;  %v4296_v39 = vpop.permute.xlu1 %4295 }
 0xfe6   :  { %7872 = vmatpush.xpose.msk.msra.mxu3 %vm86_vm4, %v4300_v31 }
 0xfe7   :  { %4779 = vrot.lane.b32.xlu2 %v3949_v11, %s9167_s29  ;;  %v8383_v11 = vld [vmem:[#allocation2 + $0x340] sm:$0xff] }
 0xfe9   :  { %7873 = vmatmul.msk.f32.vlgmr.msra.gmra.mxu3 %vm86_vm4, %v4296_v39 }
 0xfee   :  { %v4298_v46 = vpop.permute.xlu0 %4297  ;;  %v4492_v35 = vpop.permute.xlu1 %4491 }
 0xfef   :  { %8616 = vrot.lane.b32.xlu2 %v10550_v13, %s9166_s25 }
 0xff1   :  { %7874 = vmatmul.msk.f32.gmra.mxu3 %vm86_vm4, %v4298_v46 }
 0xff6   :  { %v4498_v62 = vpop.permute.xlu0 %4497 }
 0xff7   :  { %7883 = vmatpush.xpose.msk.msrb.mxu3 %vm86_vm4, %v4498_v62 }
 0xffb   :  { %7884 = vmatpush.xpose.msk.msrb.mxu3 %vm86_vm4, %v4496_v6 }
 0xffe   :  { %7885 = vmatmul.msk.f32.vlgmr.msrb.gmra.mxu3 %vm86_vm4, %v4492_v35  ;;  %v4494_v47 = vpop.permute.xlu0 %4493 }
0x1005   :  { %v10589_v12 = vpop.f32.mrf.mxu3 }
0x1006   :  { %7886 = vmatmul.msk.f32.gmra.mxu3 %vm86_vm4, %v4494_v47  ;;  %v4158_v20 = vsel %vm1190_vm9, %v10589_v12, -inf }
0x1007   :  { %4159 = vmax.xlane.f32.xlu1 %v4158_v20 }
0x100d   :  { %v10594_v52 = vpop.f32.mrf.mxu3 }
0x100e   :  { %v4161_v21 = vsel %vm1190_vm9, %v10594_v52, -inf }
0x1018   :  { %4162 = vmax.xlane.f32.xlu2 %v4161_v21 }
0x1019   :  { %v4400_v34 = vpop.permute.xlu2 %4399 }
0x101a   :  { %7877 = vmatpush.xpose.msk.msrb.mxu1 %vm86_vm4, %v4400_v34 }
0x1021   :  { %v4690_v22 = vpop.permute.xlu2 %4689 }
0x1022   :  { %7895 = vmatpush.xpose.msk.msra.mxu3 %vm86_vm4, %v4690_v22  ;;  %v8374_v22 = vld [vmem:[#allocation2 + $0x2f8] sm:$0xff] }
0x1029   :  { %v4396_v42 = vpop.permute.xlu2 %4395  ;;  %v4394_v1 = vpop.permute.xlu0 %4393 }
0x102a   :  { %v4398_v58 = vpop.permute.xlu1 %4397 }
0x102b   :  { %7878 = vmatpush.xpose.msk.msrb.mxu1 %vm86_vm4, %v4398_v58 }
0x102e   :  { %7879 = vmatmul.msk.f32.vlgmr.msrb.gmra.mxu1 %vm86_vm4, %v4394_v1 }
0x1031   :  { %v4588_v56 = vpop.permute.xlu2 %4587 }
0x1032   :  { %v4592_v30 = vpop.permute.xlu0 %4591  ;;  %v4594_v15 = vpop.permute.xlu1 %4593 }
0x1033   :  { %7889 = vmatpush.xpose.msk.msra.mxu1 %vm86_vm4, %v4594_v15  ;;  %v8372_v15 = vld [vmem:[#allocation2 + $0x2e8] sm:$0xff] }
0x1036   :  { %7880 = vmatmul.msk.f32.gmra.mxu1 %vm86_vm4, %v4396_v42  ;;  %v8373_v42 = vld [vmem:[#allocation2 + $0x2f0] sm:$0xff] }
0x1037   :  { %7890 = vmatpush.xpose.msk.msra.mxu1 %vm86_vm4, %v4592_v30 }
0x1039   :  { %v4686_v44 = vpop.permute.xlu2 %4685 }
0x103a   :  { %v4688_v26 = vpop.permute.xlu1 %4687 }
0x103b   :  { %v4684_v16 = vpop.permute.xlu0 %4683  ;;  %7896 = vmatpush.xpose.msk.msra.mxu3 %vm86_vm4, %v4688_v26 }
0x103e   :  { %7891 = vmatmul.msk.f32.vlgmr.msra.gmra.mxu1 %vm86_vm4, %v4588_v56  ;;  %7897 = vmatmul.msk.f32.vlgmr.msra.gmra.mxu3 %vm86_vm4, %v4684_v16 }
0x103f   :  { %5003 = vmatpush.bf16.msrb.mxu3 %v8374_v22 }
0x1041   :  { %v4780_v3 = vpop.permute.xlu2 %4779 }
0x1042   :  { %v4590_v9 = vpop.permute.xlu1 %4589 }
0x1043   :  { %v4786_v59 = vpop.permute.xlu0 %4785  ;;  %v10608_v27 = vpop.f32.mrf.mxu1  ;;  %5004 = vmatpush.bf16.msrb.mxu3 %v8373_v42 }
0x1044   :  { %7901 = vmatpush.xpose.msk.msrb.mxu1 %vm86_vm4, %v4786_v59  ;;  %v4244_v53 = vsel %vm1190_vm9, %v10608_v27, -inf }
0x1045   :  { %4245 = vmax.xlane.f32.xlu0 %v4244_v53 }
0x1046   :  { %7892 = vmatmul.msk.f32.gmra.mxu1 %vm86_vm4, %v4590_v9  ;;  %7898 = vmatmul.msk.f32.gmra.mxu3 %vm86_vm4, %v4686_v44 }
0x1047   :  { %5005 = vmatpush.bf16.msrb.mxu3 %v8372_v15 }
0x1049   :  { %v8617_v38 = vpop.permute.xlu2 %8616 }
0x104a   :  { %v8618_v5 = vunpack.i.l.bf16 %v8617_v38  ;;  %v4784_v23 = vpop.permute.xlu1 %4783  ;;  %v8619_v32 = vunpack.i.h.bf16 %v8617_v38  ;;  %v8370_v38 = vld [vmem:[#allocation2 + $0x2d8] sm:$0xff] }
0x104b   :  { %v4782_v49 = vpop.permute.xlu0 %4781  ;;  %7902 = vmatpush.xpose.msk.msrb.mxu1 %vm86_vm4, %v4784_v23  ;;  %v10616_v10 = vpop.f32.mrf.mxu1 }
0x104c   :  { %4384 = vmatpush.msrb.mxu0 %v8618_v5  ;;  %v4247_v14 = vsel %vm1190_vm9, %v10616_v10, -inf }
0x104d   :  { %4248 = vmax.xlane.f32.xlu1 %v4247_v14  ;;  %v8369_v14 = vld [vmem:[#allocation2 + $0x2d0] sm:$0xff] }
0x104e   :  { %7903 = vmatmul.msk.f32.vlgmr.msrb.gmra.mxu1 %vm86_vm4, %v4780_v3  ;;  %4385 = vmatpush.msrb.mxu0 %v8619_v32 }
0x104f   :  { %5271 = vmatpush.bf16.msra.mxu1 %v8390_v18  ;;  %v8371_v18 = vld [vmem:[#allocation2 + $0x2e0] sm:$0xff] }
0x1050   :  { %5006 = vmatpush.bf16.msrb.mxu3 %v8371_v18 }
0x1053   :  { %5272 = vmatpush.bf16.msra.mxu1 %v8389_v36  ;;  %v8622_v7 = vpop.permute.xlu0 %8621  ;;  %v8368_v36 = vld [vmem:[#allocation2 + $0x2c8] sm:$0xff] }
0x1054   :  { %v8623_v57 = vunpack.i.l.bf16 %v8622_v7  ;;  %v8624_v41 = vunpack.i.h.bf16 %v8622_v7  ;;  %5007 = vmatpush.bf16.msrb.mxu3 %v8370_v38 }
0x1056   :  { %4482 = vmatpush.msrb.mxu2 %v8623_v57  ;;  %7904 = vmatmul.msk.f32.gmra.mxu1 %vm86_vm4, %v4782_v49 }
0x1057   :  { %5273 = vmatpush.bf16.msra.mxu1 %v8388_v24 }
0x1058   :  { %4483 = vmatpush.msrb.mxu2 %v8624_v41  ;;  %5008 = vmatpush.bf16.msrb.mxu3 %v8369_v14 }
0x105b   :  { %5274 = vmatpush.bf16.msra.mxu1 %v8387_v4  ;;  %v8367_v4 = vld [vmem:[#allocation2 + $0x2c0] sm:$0xff] }
0x105c   :  { %5009 = vmatpush.bf16.msrb.mxu3 %v8368_v36 }
0x105f   :  { %5275 = vmatpush.bf16.msra.mxu1 %v8386_v55 }
0x1060   :  { %5010 = vmatpush.bf16.msrb.mxu3 %v8367_v4 }
0x1063   :  { %5276 = vmatpush.bf16.msra.mxu1 %v8385_v40 }
0x1067   :  { %5277 = vmatpush.bf16.msra.mxu1 %v8384_v25 }
0x106b   :  { %5278 = vmatpush.bf16.msra.mxu1 %v8383_v11 }
0x106c   :  { %v10623_v61 = vpop.f32.mrf.mxu3 }
0x106d   :  { %v4334_v0 = vsel %vm1190_vm9, %v10623_v61, -inf }
0x106e   :  { %5279 = vmatmul.bf16.vlgmr.msra.gmra.mxu1 %v10019_v45  ;;  %4335 = vmax.xlane.f32.xlu2 %v4334_v0 }
0x1074   :  { %v10627_v37 = vpop.f32.mrf.mxu3 }
0x1075   :  { %v4337_v33 = vsel %vm1190_vm9, %v10627_v37, -inf }
0x1076   :  { %4338 = vmax.xlane.f32.xlu0 %v4337_v33 }
0x107a   :  { %v4160_v19 = vpop.xlane.xlu1 %4159 }
0x107b   :  { %v4164_v48 = vsub.f32 %v10589_v12, %v4160_v19 }
0x107d   :  { %v4166_v50 = vmul.f32 1.442695, %v4164_v48 }
0x107e   :  { %5284 = vmatmul.bf16.gmra.mxu1 %v10075_v51 }
0x107f   :  { %8926 = vpow2.f32 %v4166_v50 }
0x1081   :  { %v10637_v31 = vpop.f32.mrf.mxu3 }
0x1082   :  { %v4530_v62 = vsel %vm1190_vm9, %v10637_v31, -inf }
0x1085   :  { %v10633_v28 = vpop.eup %8926 }
0x1086   :  { %v4170_v54 = vsel %vm1190_vm9, %v10633_v28, 0.0 }
0x1087   :  { %4171 = vadd.xlane.f32.xlu1 %v4170_v54 }
0x1089   :  { %v10650_v20 = vpop.f32.mrf.mxu3 }
0x108a   :  { %v4533_v21 = vsel %vm1190_vm9, %v10650_v20, -inf }
0x108b   :  { %v4163_v60 = vpop.xlane.xlu2 %4162 }
0x108c   :  { %v4165_v39 = vsub.f32 %v10594_v52, %v4163_v60  ;;  %v8756_v60 = vld [vmem:[%s11434_s2 + $0xd] ss:$0 sm:$0xff] }
0x108e   :  { %v4168_v46 = vmul.f32 1.442695, %v4165_v39 }
0x108f   :  { %4531 = vmax.xlane.f32.xlu1 %v4530_v62 }
0x1090   :  { %8928 = vpow2.f32 %v4168_v46 }
0x1096   :  { %v10642_v6 = vpop.eup %8928 }
0x1097   :  { %v4173_v35 = vsel %vm1190_vm9, %v10642_v6, 0.0 }
0x1098   :  { %4174 = vadd.xlane.f32.xlu1 %v4173_v35 }
0x10ab   :  { %v10646_v47 = vpop.f32.mrf.mxu1 }
0x10ac   :  { %v4432_v12 = vsel %vm1190_vm9, %v10646_v47, -inf }
0x10ad   :  { %4433 = vmax.xlane.f32.xlu2 %v4432_v12 }
0x10b3   :  { %v10652_v52 = vpop.f32.mrf.mxu1 }
0x10b4   :  { %v4435_v34 = vsel %vm1190_vm9, %v10652_v52, -inf }
0x10b5   :  { %4534 = vmax.xlane.f32.xlu2 %v4533_v21  ;;  %4436 = vmax.xlane.f32.xlu0 %v4435_v34 }
0x10b8   :  { %v4246_v1 = vpop.xlane.xlu0 %4245 }
0x10b9   :  { %v4250_v58 = vsub.f32 %v10608_v27, %v4246_v1 }
0x10bb   :  { %v4252_v56 = vmul.f32 1.442695, %v4250_v58  ;;  %v10659_v30 = vpop.f32.mrf.mxu1 }
0x10bc   :  { %v4626_v44 = vsel %vm1190_vm9, %v10659_v30, -inf }
0x10bd   :  { %8930 = vpow2.f32 %v4252_v56  ;;  %4627 = vmax.xlane.f32.xlu1 %v4626_v44 }
0x10c0   :  { %v4249_v26 = vpop.xlane.xlu1 %4248 }
0x10c1   :  { %v4251_v16 = vsub.f32 %v10616_v10, %v4249_v26  ;;  %v10680_v32 = vpop.f32.mrf.mxu3 }
0x10c2   :  { %v4722_v57 = vsel %vm1190_vm9, %v10680_v32, -inf }
0x10c3   :  { %v10664_v3 = vpop.eup %8930  ;;  %v4254_v9 = vmul.f32 1.442695, %v4251_v16  ;;  %v10666_v59 = vpop.f32.mrf.mxu1 }
0x10c4   :  { %v4629_v27 = vsel %vm1190_vm9, %v10666_v59, -inf  ;;  %v4256_v53 = vsel %vm1190_vm9, %v10664_v3, 0.0 }
0x10c5   :  { %8932 = vpow2.f32 %v4254_v9  ;;  %4630 = vmax.xlane.f32.xlu2 %v4629_v27  ;;  %4257 = vadd.xlane.f32.xlu0 %v4256_v53 }
0x10c9   :  { %v10688_v41 = vpop.f32.mrf.mxu3 }
0x10ca   :  { %v4725_v55 = vsel %vm1190_vm9, %v10688_v41, -inf }
0x10cb   :  { %v10672_v5 = vpop.eup %8932  ;;  %v10674_v23 = vpop.f32.mrf.mxu1 }
0x10cc   :  { %v4818_v49 = vsel %vm1190_vm9, %v10674_v23, -inf  ;;  %v4259_v10 = vsel %vm1190_vm9, %v10672_v5, 0.0 }
0x10cd   :  { %4819 = vmax.xlane.f32.xlu2 %v4818_v49  ;;  %4260 = vadd.xlane.f32.xlu0 %v4259_v10 }
0x10d3   :  { %v10682_v24 = vpop.f32.mrf.mxu1 }
0x10d4   :  { %v4821_v7 = vsel %vm1190_vm9, %v10682_v24, -inf }
0x10d5   :  { %4822 = vmax.xlane.f32.xlu2 %v4821_v7  ;;  %4723 = vmax.xlane.f32.xlu0 %v4722_v57 }
0x10dd   :  { %4726 = vmax.xlane.f32.xlu0 %v4725_v55 }
0x10e1   :  { %v4336_v40 = vpop.xlane.xlu2 %4335 }
0x10e2   :  { %v4340_v25 = vsub.f32 %v10623_v61, %v4336_v40 }
0x10e4   :  { %v4342_v11 = vmul.f32 1.442695, %v4340_v25 }
0x10e6   :  { %8934 = vpow2.f32 %v4342_v11 }
0x10e9   :  { %v4339_v33 = vpop.xlane.xlu0 %4338 }
0x10ea   :  { %v4341_v19 = vsub.f32 %v10627_v37, %v4339_v33 }
0x10eb   :  { %v5280_v0 = vpop.f32.mrf.mxu1 }
0x10ec   :  { %v10694_v48 = vpop.eup %8934  ;;  %v4344_v50 = vmul.f32 1.442695, %v4341_v19  ;;  %v10709_v46 = vadd.f32 %v8756_v60, %v5280_v0 }
0x10ed   :  { %8626 = vrot.lane.b32.xlu2 %v10550_v13, %s9159_s26  ;;  %v4346_v54 = vsel %vm1190_vm9, %v10694_v48, 0.0 }
0x10ee   :  { %8936 = vpow2.f32 %v4344_v50  ;;  %4347 = vadd.xlane.f32.xlu1 %v4346_v54 }
0x10f3   :  { %v5282_v61 = vpop.f32.mrf.mxu1 }
0x10f4   :  { %v10703_v39 = vadd.f32 %v8756_v60, %v5282_v61  ;;  %v10707_v37 = vpop.eup %8936 }
0x10f5   :  { %v4349_v62 = vsel %vm1190_vm9, %v10707_v37, 0.0 }
0x10f6   :  { %8035 = vmatpush.xpose.msk.msra.mxu3 %vm86_vm4, %v10703_v39  ;;  %4350 = vadd.xlane.f32.xlu1 %v4349_v62 }
0x10fa   :  { %8036 = vmatpush.xpose.msk.msra.mxu3 %vm86_vm4, %v10709_v46  ;;  %v4172_v12 = vpop.xlane.xlu1 %4171 }
0x10fb   :  { %v5285_v35 = vpop.f32.mrf.mxu1  ;;  %8938 = vrcp.f32 %v4172_v12 }
0x10fc   :  { %v10721_v56 = vadd.f32 %v8756_v60, %v5285_v35 }
0x1101   :  { %v8939_v22 = vpop.eup %8938 }
0x1102   :  { %v4178_v42 = vmul.f32 %v8939_v22, %v10633_v28  ;;  %v4532_v1 = vpop.xlane.xlu1 %4531 }
0x1103   :  { %v5287_v21 = vpop.f32.mrf.mxu1  ;;  %v4536_v58 = vsub.f32 %v10637_v31, %v4532_v1 }
0x1104   :  { %v10715_v34 = vadd.f32 %v8756_v60, %v5287_v21  ;;  %7863 = vmatmul.msk.f32.vlgmr.msra.gmra.mxu0 %vm1190_vm9, %v4178_v42 }
0x1105   :  { %v4538_v15 = vmul.f32 1.442695, %v4536_v58 }
0x1106   :  { %8041 = vmatpush.xpose.msk.msrb.mxu1 %vm86_vm4, %v10715_v34 }
0x1107   :  { %8940 = vpow2.f32 %v4538_v15 }
0x110a   :  { %8042 = vmatpush.xpose.msk.msrb.mxu1 %vm86_vm4, %v10721_v56 }
0x110b   :  { %v4175_v44 = vpop.xlane.xlu1 %4174 }
0x110c   :  { %8942 = vrcp.f32 %v4175_v44 }
0x110d   :  { %v10726_v26 = vpop.eup %8940 }
0x110e   :  { %v4542_v28 = vsel %vm1190_vm9, %v10726_v26, 0.0 }
0x110f   :  { %4543 = vadd.xlane.f32.xlu1 %v4542_v28 }
0x1112   :  { %v8943_v16 = vpop.eup %8942 }
0x1113   :  { %v4179_v31 = vmul.f32 %v8943_v16, %v10642_v6 }
0x1115   :  { %7864 = vmatmul.msk.f32.gmra.mxu0 %vm1190_vm9, %v4179_v31 }
0x1120   :  { %v4434_v9 = vpop.xlane.xlu2 %4433 }
0x1121   :  { %v4438_v27 = vsub.f32 %v10646_v47, %v4434_v9 }
0x1123   :  { %v4440_v53 = vmul.f32 1.442695, %v4438_v27 }
0x1125   :  { %8944 = vpow2.f32 %v4440_v53 }
0x1128   :  { %v4437_v18 = vpop.xlane.xlu0 %4436  ;;  %v4535_v38 = vpop.xlane.xlu2 %4534 }
0x1129   :  { %v4439_v49 = vsub.f32 %v10652_v52, %v4437_v18  ;;  %v4537_v36 = vsub.f32 %v10650_v20, %v4535_v38 }
0x112b   :  { %v10734_v10 = vpop.eup %8944  ;;  %v4442_v14 = vmul.f32 1.442695, %v4439_v49  ;;  %v4540_v6 = vmul.f32 1.442695, %v4537_v36 }
0x112c   :  { %v4444_v7 = vsel %vm1190_vm9, %v10734_v10, 0.0 }
0x112d   :  { %4445 = vadd.xlane.f32.xlu0 %v4444_v7  ;;  %8946 = vpow2.f32 %v4442_v14 }
0x112e   :  { %8948 = vpow2.f32 %v4540_v6 }
0x1130   :  { %v4628_v57 = vpop.xlane.xlu1 %4627 }
0x1131   :  { %v4632_v47 = vsub.f32 %v10659_v30, %v4628_v57 }
0x1133   :  { %v4634_v4 = vmul.f32 1.442695, %v4632_v47  ;;  %v10740_v55 = vpop.eup %8946 }
0x1134   :  { %v4447_v52 = vsel %vm1190_vm9, %v10740_v55, 0.0  ;;  %v10744_v25 = vpop.eup %8948 }
0x1135   :  { %8950 = vpow2.f32 %v4634_v4  ;;  %4448 = vadd.xlane.f32.xlu1 %v4447_v52  ;;  %v4545_v30 = vsel %vm1190_vm9, %v10744_v25, 0.0 }
0x1138   :  { %v4631_v40 = vpop.xlane.xlu2 %4630  ;;  %v4258_v20 = vpop.xlane.xlu0 %4257 }
0x1139   :  { %8952 = vrcp.f32 %v4258_v20  ;;  %v4633_v42 = vsub.f32 %v10666_v59, %v4631_v40 }
0x113b   :  { %v10746_v11 = vpop.eup %8950  ;;  %v4636_v1 = vmul.f32 1.442695, %v4633_v42 }
0x113c   :  { %v4638_v0 = vsel %vm1190_vm9, %v10746_v11, 0.0 }
0x113d   :  { %4639 = vadd.xlane.f32.xlu2 %v4638_v0  ;;  %4546 = vadd.xlane.f32.xlu1 %v4545_v30 }
0x113f   :  { %v8953_v33 = vpop.eup %8952 }
0x1140   :  { %v4264_v19 = vmul.f32 %v8953_v33, %v10664_v3  ;;  %v4820_v50 = vpop.xlane.xlu2 %4819  ;;  %v4261_v54 = vpop.xlane.xlu0 %4260 }
0x1141   :  { %8631 = vrot.lane.b32.xlu0 %v10564_v8, %s9159_s26  ;;  %8954 = vrcp.f32 %v4261_v54  ;;  %v4824_v27 = vsub.f32 %v10674_v23, %v4820_v50 }
0x1142   :  { %7869 = vmatmul.msk.f32.vlgmr.msra.gmra.mxu2 %vm1190_vm9, %v4264_v19 }
0x1143   :  { %v4826_v18 = vmul.f32 1.442695, %v4824_v27 }
0x1147   :  { %v8955_v60 = vpop.eup %8954 }
0x1148   :  { %v4823_v61 = vpop.xlane.xlu2 %4822  ;;  %v4724_v62 = vpop.xlane.xlu0 %4723  ;;  %v4265_v35 = vmul.f32 %v8955_v60, %v10672_v5 }
0x1149   :  { %v4825_v12 = vsub.f32 %v10682_v24, %v4823_v61  ;;  %8636 = vrot.lane.b32.xlu0 %v10550_v13, %s9167_s29  ;;  %v4728_v3 = vsub.f32 %v10680_v32, %v4724_v62 }
0x114a   :  { %7870 = vmatmul.msk.f32.gmra.mxu2 %vm1190_vm9, %v4265_v35 }
0x114b   :  { %v4828_v21 = vmul.f32 1.442695, %v4825_v12  ;;  %v4730_v22 = vmul.f32 1.442695, %v4728_v3 }
0x114d   :  { %8956 = vpow2.f32 %v4828_v21 }
0x114e   :  { %8958 = vpow2.f32 %v4730_v22 }
0x114f   :  { %8960 = vpow2.f32 %v4636_v1 }
0x1150   :  { %v8627_v58 = vpop.permute.xlu2 %8626  ;;  %v4727_v44 = vpop.xlane.xlu0 %4726 }
0x1151   :  { %v8628_v15 = vunpack.i.l.bf16 %v8627_v58  ;;  %v8629_v24 = vunpack.i.h.bf16 %v8627_v58  ;;  %v4729_v13 = vsub.f32 %v10688_v41, %v4727_v44 }
0x1153   :  { %v10763_v5 = vpop.eup %8956  ;;  %4578 = vmatpush.msra.mxu0 %v8628_v15  ;;  %v4732_v16 = vmul.f32 1.442695, %v4729_v13 }
0x1154   :  { %v10765_v28 = vpop.eup %8958  ;;  %v4833_v32 = vsel %vm1190_vm9, %v10763_v5, 0.0 }
0x1155   :  { %4579 = vmatpush.msra.mxu0 %v8629_v24  ;;  %4834 = vadd.xlane.f32.xlu2 %v4833_v32  ;;  %v4734_v59 = vsel %vm1190_vm9, %v10765_v28, 0.0  ;;  %v10772_v31 = vpop.eup %8960  ;;  %8962 = vpow2.f32 %v4732_v16 }
0x1156   :  { %4735 = vadd.xlane.f32.xlu1 %v4734_v59  ;;  %v4641_v9 = vsel %vm1190_vm9, %v10772_v31, 0.0 }
0x115b   :  { %v10777_v41 = vpop.eup %8962 }
0x115c   :  { %v4737_v38 = vsel %vm1190_vm9, %v10777_v41, 0.0 }
0x115e   :  { %4642 = vadd.xlane.f32.xlu1 %v4641_v9 }
0x1161   :  { %v4348_v53 = vpop.xlane.xlu1 %4347 }
0x1162   :  { %8964 = vrcp.f32 %v4348_v53  ;;  %v8398_v53 = vld [vmem:[#allocation2 + $0x3b8] sm:$0xff] }
0x1163   :  { %8966 = vpow2.f32 %v4826_v18 }
0x1166   :  { %4738 = vadd.xlane.f32.xlu1 %v4737_v38 }
0x1168   :  { %v8965_v49 = vpop.eup %8964 }
0x1169   :  { %v4354_v14 = vmul.f32 %v8965_v49, %v10694_v48  ;;  %v4351_v36 = vpop.xlane.xlu1 %4350  ;;  %v10783_v7 = vpop.eup %8966  ;;  %v8396_v49 = vld [vmem:[#allocation2 + $0x3a8] sm:$0xff] }
0x116a   :  { %8968 = vrcp.f32 %v4351_v36  ;;  %v4830_v6 = vsel %vm1190_vm9, %v10783_v7, 0.0  ;;  %v8395_v36 = vld [vmem:[#allocation2 + $0x3a0] sm:$0xff] }
0x116b   :  { %7875 = vmatmul.msk.f32.vlgmr.msrb.gmra.mxu0 %vm1190_vm9, %v4354_v14 }
0x1170   :  { %v8969_v23 = vpop.eup %8968 }
0x1171   :  { %v4355_v57 = vmul.f32 %v8969_v23, %v10707_v37  ;;  %v8394_v23 = vld [vmem:[#allocation2 + $0x398] sm:$0xff] }
0x1173   :  { %4831 = vadd.xlane.f32.xlu0 %v4830_v6  ;;  %7876 = vmatmul.msk.f32.gmra.mxu0 %vm1190_vm9, %v4355_v57  ;;  %v8393_v6 = vld [vmem:[#allocation2 + $0x390] sm:$0xff]  ;;  %v8391_v57 = vld [vmem:[#allocation2 + $0x380] sm:$0xff] }
0x117f   :  { %8641 = vrot.lane.b32.xlu1 %v10564_v8, %s9167_s29 }
0x1182   :  { %v4544_v47 = vpop.xlane.xlu1 %4543 }
0x1183   :  { %8970 = vrcp.f32 %v4544_v47 }
0x1189   :  { %v8971_v48 = vpop.eup %8970 }
0x118a   :  { %v4550_v4 = vmul.f32 %v8971_v48, %v10726_v26 }
0x118c   :  { %7887 = vmatmul.msk.f32.vlgmr.msra.gmra.mxu0 %vm1190_vm9, %v4550_v4 }
0x11a0   :  { %v4446_v52 = vpop.xlane.xlu0 %4445 }
0x11a1   :  { %8972 = vrcp.f32 %v4446_v52 }
0x11a7   :  { %v8973_v40 = vpop.eup %8972 }
0x11a8   :  { %v4452_v20 = vmul.f32 %v8973_v40, %v10734_v10  ;;  %v4449_v0 = vpop.xlane.xlu1 %4448 }
0x11a9   :  { %8974 = vrcp.f32 %v4449_v0 }
0x11aa   :  { %7881 = vmatmul.msk.f32.vlgmr.msrb.gmra.mxu2 %vm1190_vm9, %v4452_v20 }
0x11af   :  { %v8975_v37 = vpop.eup %8974 }
0x11b0   :  { %v4640_v30 = vpop.xlane.xlu2 %4639  ;;  %v4547_v8 = vpop.xlane.xlu1 %4546  ;;  %v4453_v33 = vmul.f32 %v8975_v37, %v10740_v55 }
0x11b1   :  { %8976 = vrcp.f32 %v4640_v30 }
0x11b2   :  { %8978 = vrcp.f32 %v4547_v8  ;;  %7882 = vmatmul.msk.f32.gmra.mxu2 %vm1190_vm9, %v4453_v33  ;;  %v8382_v33 = vld [vmem:[#allocation2 + $0x338] sm:$0xff] }
0x11b3   :  { %v8632_v26 = vpop.permute.xlu0 %8631 }
0x11b4   :  { %v8633_v19 = vunpack.i.l.bf16 %v8632_v26  ;;  %v8634_v50 = vunpack.i.h.bf16 %v8632_v26 }
0x11b6   :  { %4674 = vmatpush.msra.mxu2 %v8633_v19 }
0x11b7   :  { %v8977_v54 = vpop.eup %8976 }
0x11b8   :  { %v8979_v60 = vpop.eup %8978  ;;  %v4646_v10 = vmul.f32 %v8977_v54, %v10746_v11  ;;  %4675 = vmatpush.msra.mxu2 %v8634_v50  ;;  %v8380_v50 = vld [vmem:[#allocation2 + $0x328] sm:$0xff]  ;;  %v8379_v54 = vld [vmem:[#allocation2 + $0x320] sm:$0xff] }
0x11b9   :  { %v4551_v61 = vmul.f32 %v8979_v60, %v10744_v25  ;;  %v10803_v25 = vpop.f32.mrf.mxu0  ;;  %v8378_v60 = vld [vmem:[#allocation2 + $0x318] sm:$0xff] }
0x11ba   :  { %7893 = vmatmul.msk.f32.vlgmr.msra.gmra.mxu2 %vm1190_vm9, %v4646_v10 }
0x11bb   :  { %7888 = vmatmul.msk.f32.gmra.mxu0 %vm1190_vm9, %v4551_v61  ;;  %v8637_v62 = vpop.permute.xlu0 %8636  ;;  %v8377_v61 = vld [vmem:[#allocation2 + $0x310] sm:$0xff] }
0x11bc   :  { %v8638_v55 = vunpack.i.l.bf16 %v8637_v62  ;;  %v8639_v35 = vunpack.i.h.bf16 %v8637_v62  ;;  %v8376_v62 = vld [vmem:[#allocation2 + $0x308] sm:$0xff] }
0x11be   :  { %4770 = vmatpush.msrb.mxu0 %v8638_v55 }
0x11c0   :  { %4771 = vmatpush.msrb.mxu0 %v8639_v35 }
0x11c1   :  { %v10807_v15 = vpop.f32.mrf.mxu0 }
0x11c2   :  { %5186 = vmatpush.bf16.msra.mxu0 %v8382_v33 }
0x11c5   :  { %v10817_v47 = vpop.f32.mrf.mxu2 }
0x11c8   :  { %v4835_v13 = vpop.xlane.xlu2 %4834 }
0x11c9   :  { %v4736_v12 = vpop.xlane.xlu1 %4735 }
0x11ca   :  { %8980 = vrcp.f32 %v4736_v12  ;;  %v8375_v12 = vld [vmem:[#allocation2 + $0x300] sm:$0xff] }
0x11cd   :  { %v10819_v48 = vpop.f32.mrf.mxu2 }
0x11d0   :  { %v8981_v3 = vpop.eup %8980 }
0x11d1   :  { %v4742_v21 = vmul.f32 %v8981_v3, %v10765_v28  ;;  %v4643_v22 = vpop.xlane.xlu1 %4642 }
0x11d2   :  { %8982 = vrcp.f32 %v4643_v22 }
0x11d3   :  { %7899 = vmatmul.msk.f32.vlgmr.msrb.gmra.mxu0 %vm1190_vm9, %v4742_v21  ;;  %v8757_v21 = vld [vmem:[%s11434_s2 + $0xe] ss:$0 sm:$0xff] }
0x11d8   :  { %v8983_v11 = vpop.eup %8982 }
0x11d9   :  { %v4739_v42 = vpop.xlane.xlu1 %4738  ;;  %v4647_v1 = vmul.f32 %v8983_v11, %v10772_v31 }
0x11da   :  { %8984 = vrcp.f32 %v4739_v42 }
0x11db   :  { %7894 = vmatmul.msk.f32.gmra.mxu2 %vm1190_vm9, %v4647_v1 }
0x11e0   :  { %v8985_v58 = vpop.eup %8984 }
0x11e1   :  { %v4743_v44 = vmul.f32 %v8985_v58, %v10777_v41  ;;  %v8397_v41 = vld [vmem:[#allocation2 + $0x3b0] sm:$0xff] }
0x11e3   :  { %7900 = vmatmul.msk.f32.gmra.mxu0 %vm1190_vm9, %v4743_v44 }
0x11e6   :  { %v4832_v24 = vpop.xlane.xlu0 %4831 }
0x11e7   :  { %8986 = vrcp.f32 %v4832_v24 }
0x11e8   :  { %v4387_v28 = vpop.f32.mrf.mxu0  ;;  %8988 = vrcp.f32 %v4835_v13 }
0x11ed   :  { %v8987_v16 = vpop.eup %8986 }
0x11ee   :  { %v4838_v18 = vmul.f32 %v8987_v16, %v10783_v7  ;;  %v8989_v38 = vpop.eup %8988  ;;  %v8392_v7 = vld [vmem:[#allocation2 + $0x388] sm:$0xff] }
0x11ef   :  { %v4839_v14 = vmul.f32 %v8989_v38, %v10763_v5 }
0x11f0   :  { %v4390_v32 = vpop.f32.mrf.mxu0 }
0x11f1   :  { %v8642_v59 = vpop.permute.xlu1 %8641  ;;  %v8645_v9 = vpack.i.bf16 %v4390_v32, %v4387_v28 }
0x11f2   :  { %v8643_v27 = vunpack.i.l.bf16 %v8642_v59  ;;  %v8644_v31 = vunpack.i.h.bf16 %v8642_v59 }
0x11f3   :  { %8646 = vrot.lane.b32.xlu2 %v8645_v9, %s9167_s29 }
0x11f4   :  { %4866 = vmatpush.msrb.mxu2 %v8643_v27 }
0x11f6   :  { %4867 = vmatpush.msrb.mxu2 %v8644_v31 }
0x11f7   :  { %7905 = vmatmul.msk.f32.vlgmr.msrb.gmra.mxu2 %vm1190_vm9, %v4838_v18 }
0x11f8   :  { %5356 = vmatpush.bf16.msra.mxu2 %v8398_v53 }
0x11fc   :  { %5357 = vmatpush.bf16.msra.mxu2 %v8397_v41 }
0x11ff   :  { %7906 = vmatmul.msk.f32.gmra.mxu2 %vm1190_vm9, %v4839_v14 }
0x1200   :  { %5358 = vmatpush.bf16.msra.mxu2 %v8396_v49 }
0x1204   :  { %5359 = vmatpush.bf16.msra.mxu2 %v8395_v36 }
0x1208   :  { %5360 = vmatpush.bf16.msra.mxu2 %v8394_v23 }
0x1209   :  { %v4581_v4 = vpop.f32.mrf.mxu0 }
0x120c   :  { %5361 = vmatpush.bf16.msra.mxu2 %v8393_v6 }
0x1210   :  { %5362 = vmatpush.bf16.msra.mxu2 %v8392_v7 }
0x1214   :  { %5363 = vmatpush.bf16.msra.mxu2 %v8391_v57 }
0x1217   :  { %5364 = vmatmul.bf16.vlgmr.msra.gmra.mxu2 %v10019_v45 }
0x1227   :  { %5369 = vmatmul.bf16.gmra.mxu2 %v10075_v51  ;;  %v8381_v51 = vld [vmem:[#allocation2 + $0x330] sm:$0xff] }
0x1228   :  { %5187 = vmatpush.bf16.msra.mxu0 %v8381_v51 }
0x122c   :  { %5188 = vmatpush.bf16.msra.mxu0 %v8380_v50 }
0x122d   :  { %v4485_v5 = vpop.f32.mrf.mxu2 }
0x1230   :  { %5189 = vmatpush.bf16.msra.mxu0 %v8379_v54 }
0x1234   :  { %5190 = vmatpush.bf16.msra.mxu0 %v8378_v60 }
0x1235   :  { %v4488_v52 = vpop.f32.mrf.mxu2 }
0x1236   :  { %v8660_v40 = vpack.i.bf16 %v4488_v52, %v4485_v5 }
0x1238   :  { %v4584_v20 = vpop.f32.mrf.mxu0  ;;  %8661 = vrot.lane.b32.xlu0 %v8660_v40, %s9167_s29  ;;  %5191 = vmatpush.bf16.msra.mxu0 %v8377_v61 }
0x1239   :  { %v8650_v0 = vpack.i.bf16 %v4584_v20, %v4581_v4 }
0x123b   :  { %8651 = vrot.lane.b32.xlu1 %v8650_v0, %s9159_s26 }
0x123c   :  { %5192 = vmatpush.bf16.msra.mxu0 %v8376_v62 }
0x123d   :  { %v4677_v30 = vpop.f32.mrf.mxu2 }
0x1240   :  { %5193 = vmatpush.bf16.msra.mxu0 %v8375_v12 }
0x124d   :  { %v8647_v59 = vpop.permute.xlu2 %8646 }
0x124e   :  { %v8649_v16 = vunpack.i.h.bf16 %v8647_v59  ;;  %v8648_v9 = vunpack.i.l.bf16 %v8647_v59 }
0x1250   :  { %v4773_v37 = vpop.f32.mrf.mxu0  ;;  %v4924_v18 = vsel %vm86_vm4, %v10807_v15, %v8649_v16  ;;  %v4923_v41 = vsel %vm86_vm4, %v10803_v25, %v8648_v9 }
0x125e   :  { %v4680_v26 = vpop.f32.mrf.mxu2 }
0x125f   :  { %v8665_v19 = vpack.i.bf16 %v4680_v26, %v4677_v30 }
0x1260   :  { %v4776_v8 = vpop.f32.mrf.mxu0 }
0x1261   :  { %v8655_v45 = vpack.i.bf16 %v4776_v8, %v4773_v37 }
0x1263   :  { %8656 = vrot.lane.b32.xlu1 %v8655_v45, %s9166_s25 }
0x126b   :  { %8666 = vrot.lane.b32.xlu1 %v8665_v19, %s9159_s26  ;;  %v8758_v19 = vld [vmem:[%s11434_s2 + $0xb] ss:$0 sm:$0xff] }
0x127a   :  { %v4869_v10 = vpop.f32.mrf.mxu2 }
0x1282   :  { %v4872_v55 = vpop.f32.mrf.mxu2 }
0x1283   :  { %v8670_v35 = vpack.i.bf16 %v4872_v55, %v4869_v10 }
0x1285   :  { %8671 = vrot.lane.b32.xlu2 %v8670_v35, %s9166_s25 }
0x129a   :  { %v5365_v3 = vpop.f32.mrf.mxu2 }
0x129b   :  { %v5366_v11 = vadd.f32 %v8757_v21, %v5365_v3 }
0x12a2   :  { %v5367_v22 = vpop.f32.mrf.mxu2 }
0x12a3   :  { %v5368_v42 = vadd.f32 %v8757_v21, %v5367_v22 }
0x12a5   :  { %5452 = vmatpush.msrb.mxu0 %v5368_v42  ;;  %v10830_v1 = vpack.i.bf16 %v5366_v11, %v5368_v42 }
0x12a7   :  { %5453 = vmatpush.msrb.mxu0 %v5366_v11 }
0x12aa   :  { %v5370_v58 = vpop.f32.mrf.mxu2  ;;  %v8662_v57 = vpop.permute.xlu0 %8661 }
0x12ab   :  { %v5371_v24 = vadd.f32 %v8757_v21, %v5370_v58  ;;  %v8664_v4 = vunpack.i.h.bf16 %v8662_v57  ;;  %v8663_v52 = vunpack.i.l.bf16 %v8662_v57 }
0x12ad   :  { %v8652_v32 = vpop.permute.xlu1 %8651  ;;  %v4926_v25 = vsel %vm86_vm4, %v10819_v48, %v8664_v4  ;;  %v4925_v0 = vsel %vm86_vm4, %v10817_v47, %v8663_v52 }
0x12ae   :  { %v8654_v27 = vunpack.i.h.bf16 %v8652_v32  ;;  %v8653_v31 = vunpack.i.l.bf16 %v8652_v32 }
0x12b0   :  { %v4928_v14 = vsel %vm1960_vm1, %v4924_v18, %v8654_v27  ;;  %v4927_v36 = vsel %vm1960_vm1, %v4923_v41, %v8653_v31 }
0x12b2   :  { %v5372_v44 = vpop.f32.mrf.mxu2 }
0x12b3   :  { %v5373_v28 = vadd.f32 %v8757_v21, %v5372_v44 }
0x12b5   :  { %5538 = vmatpush.msrb.mxu2 %v5373_v28  ;;  %v10832_v13 = vpack.i.bf16 %v5371_v24, %v5373_v28 }
0x12b7   :  { %5539 = vmatpush.msrb.mxu2 %v5371_v24 }
0x12d5   :  { %v8657_v53 = vpop.permute.xlu1 %8656 }
0x12d6   :  { %v8659_v38 = vunpack.i.h.bf16 %v8657_v53  ;;  %v8658_v49 = vunpack.i.l.bf16 %v8657_v53 }
0x12d8   :  { %v4931_v23 = vsel %vm1965_vm2, %v4927_v36, %v8658_v49  ;;  %v4932_v6 = vsel %vm1965_vm2, %v4928_v14, %v8659_v38 }
0x12d9   :  { %v4935_v7 = vpack.c.bf16 %v4932_v6, %v4931_v23 }
0x12db   :  { %5011 = vmatmul.bf16.vlgmr.msrb.gmra.mxu3 %v4935_v7 }
0x12dd   :  { %v8667_v5 = vpop.permute.xlu1 %8666 }
0x12de   :  { %v8669_v15 = vunpack.i.h.bf16 %v8667_v5  ;;  %v8668_v40 = vunpack.i.l.bf16 %v8667_v5 }
0x12df   :  { %v8672_v20 = vpop.permute.xlu2 %8671 }
0x12e0   :  { %v8674_v37 = vunpack.i.h.bf16 %v8672_v20  ;;  %v8673_v30 = vunpack.i.l.bf16 %v8672_v20  ;;  %v4929_v8 = vsel %vm1960_vm1, %v4925_v0, %v8668_v40  ;;  %v4930_v45 = vsel %vm1960_vm1, %v4926_v25, %v8669_v15 }
0x12e2   :  { %v4933_v33 = vsel %vm1965_vm2, %v4929_v8, %v8673_v30  ;;  %v4934_v26 = vsel %vm1965_vm2, %v4930_v45, %v8674_v37  ;;  %v8759_v45 = vld [vmem:[%s11434_s2 + $0x1c] ss:$0 sm:$0xff] }
0x12e3   :  { %v4936_v51 = vpack.c.bf16 %v4934_v26, %v4933_v33 }
0x12eb   :  { %5016 = vmatmul.bf16.gmra.mxu3 %v4936_v51 }
0x135e   :  { %v5012_v48 = vpop.f32.mrf.mxu3 }
0x135f   :  { %v5013_v50 = vadd.f32 %v8758_v19, %v5012_v48 }
0x1361   :  { %v5022_v47 = vadd.f32 %v5013_v50, %v10517_v63 }
0x1363   :  { %5028 = vadd.xlane.f32.xlu1 %v5022_v47 }
0x1366   :  { %v5014_v54 = vpop.f32.mrf.mxu3 }
0x1367   :  { %v5015_v60 = vadd.f32 %v8758_v19, %v5014_v54 }
0x1369   :  { %v5023_v10 = vadd.f32 %v5015_v60, %v10519_v17  ;;  %v8760_v60 = vld [vmem:[%s11434_s2 + $0x1d] ss:$0 sm:$0xff] }
0x136b   :  { %5030 = vadd.xlane.f32.xlu0 %v5023_v10 }
0x136e   :  { %v5017_v61 = vpop.f32.mrf.mxu3 }
0x136f   :  { %v5018_v62 = vadd.f32 %v8758_v19, %v5017_v61 }
0x1371   :  { %v5024_v55 = vadd.f32 %v5018_v62, %v10527_v2 }
0x1373   :  { %5032 = vadd.xlane.f32.xlu2 %v5024_v55 }
0x1376   :  { %v5019_v35 = vpop.f32.mrf.mxu3 }
0x1377   :  { %v5020_v12 = vadd.f32 %v8758_v19, %v5019_v35 }
0x1379   :  { %v5025_v3 = vadd.f32 %v5020_v12, %v10529_v43 }
0x137b   :  { %5034 = vadd.xlane.f32.xlu1 %v5025_v3 }
0x13d6   :  { %v5029_v21 = vpop.xlane.xlu1 %5028 }
0x13d7   :  { %v5036_v22 = vmul.f32 %v5029_v21, %v10079_v29 }
0x13d9   :  { %v5040_v63 = vsub.f32 %v5022_v47, %v5036_v22 }
0x13db   :  { %v5044_v11 = vmul.f32 %v5040_v63, %v5040_v63 }
0x13dd   :  { %5048 = vadd.xlane.f32.xlu0 %v5044_v11 }
0x13de   :  { %v5031_v42 = vpop.xlane.xlu0 %5030 }
0x13df   :  { %v5037_v17 = vmul.f32 %v5031_v42, %v10079_v29 }
0x13e1   :  { %v10859_v58 = vsub.f32 %v5023_v10, %v5037_v17 }
0x13e3   :  { %v5045_v2 = vmul.f32 %v10859_v58, %v10859_v58 }
0x13e5   :  { %5050 = vadd.xlane.f32.xlu2 %v5045_v2 }
0x13e6   :  { %v5033_v44 = vpop.xlane.xlu2 %5032 }
0x13e7   :  { %v5038_v24 = vmul.f32 %v5033_v44, %v10079_v29 }
0x13e9   :  { %v10864_v43 = vsub.f32 %v5024_v55, %v5038_v24 }
0x13eb   :  { %v5046_v28 = vmul.f32 %v10864_v43, %v10864_v43 }
0x13ed   :  { %5052 = vadd.xlane.f32.xlu1 %v5046_v28 }
0x13ee   :  { %v5035_v32 = vpop.xlane.xlu1 %5034 }
0x13ef   :  { %v5039_v59 = vmul.f32 %v5035_v32, %v10079_v29 }
0x13f1   :  { %v10869_v16 = vsub.f32 %v5025_v3, %v5039_v59 }
0x13f3   :  { %v5047_v9 = vmul.f32 %v10869_v16, %v10869_v16 }
0x13f5   :  { %5054 = vadd.xlane.f32.xlu0 %v5047_v9 }
0x13fd   :  { %5553 = vrot.lane.b32.xlu2 %v10703_v39, %s9166_s25 }
0x1405   :  { %5649 = vrot.lane.b32.xlu2 %v10721_v56, %s9166_s25 }
0x1406   :  { %5551 = vrot.lane.b32.xlu1 %v10709_v46, %s9166_s25 }
0x1409   :  { %5749 = vrot.lane.b32.xlu0 %v10703_v39, %s9159_s26 }
0x140e   :  { %5651 = vrot.lane.b32.xlu1 %v10715_v34, %s9166_s25 }
0x1416   :  { %5747 = vrot.lane.b32.xlu1 %v10709_v46, %s9159_s26 }
0x141e   :  { %5941 = vrot.lane.b32.xlu1 %v10703_v39, %s9167_s29 }
0x1450   :  { %v5049_v27 = vpop.xlane.xlu0 %5048 }
0x1451   :  { %v5056_v31 = vmul.f32 %v5049_v27, %v10079_v29 }
0x1453   :  { %v5060_v53 = vadd.f32 1e-05, %v5056_v31 }
0x1455   :  { %8990 = vrsqrt.f32 %v5060_v53  ;;  %vm5070_vm7 = vweird.f32 %v5060_v53 }
0x1458   :  { %v5051_v18 = vpop.xlane.xlu2 %5050 }
0x1459   :  { %v5057_v41 = vmul.f32 %v5051_v18, %v10079_v29 }
0x145b   :  { %v8991_v38 = vpop.eup %8990  ;;  %v5061_v49 = vadd.f32 1e-05, %v5057_v41 }
0x145c   :  { %v5065_v14 = vmul.f32 %v8991_v38, %v5060_v53  ;;  %vm5071_vm10 = vweird.f32 %v8991_v38 }
0x145d   :  { %8992 = vrsqrt.f32 %v5061_v49  ;;  %vm5072_vm8 = vmor %vm5070_vm7, %vm5071_vm10  ;;  %vm5080_vm5 = vweird.f32 %v5061_v49 }
0x145e   :  { %v5066_v36 = vmul.f32 %v8991_v38, %v5065_v14 }
0x1460   :  { %v5067_v23 = vmul.f32 0.5, %v5066_v36  ;;  %v5053_v6 = vpop.xlane.xlu1 %5052  ;;  %v5554_v7 = vpop.permute.xlu2 %5553 }
0x1461   :  { %v5058_v57 = vmul.f32 %v5053_v6, %v10079_v29  ;;  %8047 = vmatpush.xpose.msk.msrb.mxu3 %vm86_vm4, %v5554_v7 }
0x1462   :  { %v5068_v39 = vsub.f32 1.5, %v5067_v23 }
0x1463   :  { %v8993_v5 = vpop.eup %8992  ;;  %v5062_v4 = vadd.f32 1e-05, %v5058_v57 }
0x1464   :  { %v5069_v52 = vmul.f32 %v8991_v38, %v5068_v39  ;;  %v5075_v15 = vmul.f32 %v8993_v5, %v5061_v49  ;;  %vm5081_vm12 = vweird.f32 %v8993_v5 }
0x1465   :  { %8994 = vrsqrt.f32 %v5062_v4  ;;  %vm5082_vm13 = vmor %vm5080_vm5, %vm5081_vm12  ;;  %vm5090_vm14 = vweird.f32 %v5062_v4 }
0x1466   :  { %v5076_v40 = vmul.f32 %v8993_v5, %v5075_v15  ;;  %v5073_v20 = vsel %vm5072_vm8, %v8991_v38, %v5069_v52 }
0x1467   :  { %v5104_v33 = vmul.f32 %v5073_v20, %v5040_v63 }
0x1468   :  { %v5077_v25 = vmul.f32 0.5, %v5076_v40  ;;  %v5055_v0 = vpop.xlane.xlu0 %5054  ;;  %v5650_v53 = vpop.permute.xlu2 %5649 }
0x1469   :  { %v5059_v37 = vmul.f32 %v5055_v0, %v10079_v29  ;;  %v5109_v47 = vmul.f32 %v8759_v45, %v5104_v33 }
0x146a   :  { %v5078_v30 = vsub.f32 1.5, %v5077_v25 }
0x146b   :  { %v8995_v8 = vpop.eup %8994  ;;  %v5063_v26 = vadd.f32 1e-05, %v5059_v37  ;;  %v10899_v35 = vadd.f32 %v8760_v60, %v5109_v47 }
0x146c   :  { %v5079_v51 = vmul.f32 %v8993_v5, %v5078_v30  ;;  %v5085_v19 = vmul.f32 %v8995_v8, %v5062_v4  ;;  %vm5091_vm11 = vweird.f32 %v8995_v8 }
0x146d   :  { %8996 = vrsqrt.f32 %v5063_v26  ;;  %vm5092_vm15 = vmor %vm5090_vm14, %vm5091_vm11  ;;  %vm5100_vm0 = vweird.f32 %v5063_v26 }
0x146e   :  { %v5083_v48 = vsel %vm5082_vm13, %v8993_v5, %v5079_v51  ;;  %v5086_v50 = vmul.f32 %v8995_v8, %v5085_v19 }
0x146f   :  { %v5105_v54 = vmul.f32 %v5083_v48, %v10859_v58 }
0x1470   :  { %v5087_v10 = vmul.f32 0.5, %v5086_v50 }
0x1471   :  { %v5110_v61 = vmul.f32 %v8759_v45, %v5105_v54 }
0x1472   :  { %v5088_v62 = vsub.f32 1.5, %v5087_v10 }
0x1473   :  { %v8997_v55 = vpop.eup %8996  ;;  %v10901_v12 = vadd.f32 %v8760_v60, %v5110_v61 }
0x1474   :  { %v5089_v3 = vmul.f32 %v8995_v8, %v5088_v62  ;;  %v5095_v21 = vmul.f32 %v8997_v55, %v5063_v26  ;;  %vm5101_vm6 = vweird.f32 %v8997_v55 }
0x1475   :  { %v5118_v22 = vpack.c.bf16 %v10901_v12, %v10899_v35  ;;  %vm5102_vm3 = vmor %vm5100_vm0, %vm5101_vm6 }
0x1476   :  { %v5096_v63 = vmul.f32 %v8997_v55, %v5095_v21  ;;  %v5093_v11 = vsel %vm5092_vm15, %v8995_v8, %v5089_v3 }
0x1477   :  { %5194 = vmatmul.bf16.vlgmr.msra.gmra.mxu0 %v5118_v22  ;;  %v5106_v2 = vmul.f32 %v5093_v11, %v10864_v43 }
0x1478   :  { %v5097_v42 = vmul.f32 0.5, %v5096_v63  ;;  %v5552_v17 = vpop.permute.xlu1 %5551 }
0x1479   :  { %8048 = vmatpush.xpose.msk.msrb.mxu3 %vm86_vm4, %v5552_v17  ;;  %v5111_v32 = vmul.f32 %v8759_v45, %v5106_v2 }
0x147a   :  { %v5098_v58 = vsub.f32 1.5, %v5097_v42 }
0x147b   :  { %v10909_v27 = vadd.f32 %v8760_v60, %v5111_v32  ;;  %v5750_v38 = vpop.permute.xlu0 %5749 }
0x147c   :  { %v5099_v44 = vmul.f32 %v8997_v55, %v5098_v58 }
0x147e   :  { %v5103_v24 = vsel %vm5102_vm3, %v8997_v55, %v5099_v44 }
0x147f   :  { %v5107_v28 = vmul.f32 %v5103_v24, %v10869_v16  ;;  %v8761_v16 = vld [vmem:[%s11434_s2 + $0xc] ss:$0 sm:$0xff] }
0x1480   :  { %v5652_v59 = vpop.permute.xlu1 %5651 }
0x1481   :  { %8053 = vmatpush.xpose.msk.msra.mxu1 %vm86_vm4, %v5652_v59  ;;  %v5112_v9 = vmul.f32 %v8759_v45, %v5107_v28 }
0x1483   :  { %v10911_v31 = vadd.f32 %v8760_v60, %v5112_v9 }
0x1485   :  { %8054 = vmatpush.xpose.msk.msra.mxu1 %vm86_vm4, %v5650_v53  ;;  %v5119_v43 = vpack.c.bf16 %v10911_v31, %v10909_v27 }
0x1487   :  { %5199 = vmatmul.bf16.gmra.mxu0 %v5119_v43 }
0x1488   :  { %v5748_v49 = vpop.permute.xlu1 %5747 }
0x14f4   :  { %v5195_v18 = vpop.f32.mrf.mxu0 }
0x14f5   :  { %v5196_v41 = vadd.f32 %v8761_v16, %v5195_v18 }
0x14f7   :  { %5547 = vrot.lane.b32.xlu0 %v5196_v41, %s9166_s25  ;;  %8037 = vmatmul.msk.f32.vlgmr.msra.gmra.mxu3 %vm86_vm4, %v5196_v41 }
0x14f8   :  { %8059 = vmatpush.xpose.msk.msra.mxu3 %vm86_vm4, %v5750_v38 }
0x14fc   :  { %8060 = vmatpush.xpose.msk.msra.mxu3 %vm86_vm4, %v5748_v49  ;;  %v5197_v14 = vpop.f32.mrf.mxu0 }
0x14fd   :  { %v5198_v36 = vadd.f32 %v8761_v16, %v5197_v14 }
0x14ff   :  { %5549 = vrot.lane.b32.xlu2 %v5198_v36, %s9166_s25  ;;  %5745 = vrot.lane.b32.xlu0 %v5198_v36, %s9159_s26 }
0x1500   :  { %8038 = vmatmul.msk.f32.gmra.mxu3 %vm86_vm4, %v5198_v36 }
0x1504   :  { %v5200_v23 = vpop.f32.mrf.mxu0 }
0x1505   :  { %v5201_v6 = vadd.f32 %v8761_v16, %v5200_v23 }
0x1507   :  { %8043 = vmatmul.msk.f32.vlgmr.msrb.gmra.mxu1 %vm86_vm4, %v5201_v6  ;;  %5743 = vrot.lane.b32.xlu2 %v5196_v41, %s9159_s26 }
0x1508   :  { %5645 = vrot.lane.b32.xlu0 %v5201_v6, %s9166_s25 }
0x150c   :  { %v5202_v7 = vpop.f32.mrf.mxu0 }
0x150d   :  { %v5203_v57 = vadd.f32 %v8761_v16, %v5202_v7 }
0x150f   :  { %5647 = vrot.lane.b32.xlu1 %v5203_v57, %s9166_s25  ;;  %8044 = vmatmul.msk.f32.gmra.mxu1 %vm86_vm4, %v5203_v57 }
0x1510   :  { %5845 = vrot.lane.b32.xlu2 %v10715_v34, %s9159_s26  ;;  %5843 = vrot.lane.b32.xlu0 %v10721_v56, %s9159_s26 }
0x1517   :  { %5839 = vrot.lane.b32.xlu1 %v5201_v6, %s9159_s26 }
0x1518   :  { %5939 = vrot.lane.b32.xlu2 %v10709_v46, %s9167_s29  ;;  %5935 = vrot.lane.b32.xlu0 %v5196_v41, %s9167_s29 }
0x151f   :  { %5937 = vrot.lane.b32.xlu1 %v5198_v36, %s9167_s29 }
0x1520   :  { %5841 = vrot.lane.b32.xlu2 %v5203_v57, %s9159_s26  ;;  %6037 = vrot.lane.b32.xlu0 %v10715_v34, %s9167_s29  ;;  %v5942_v34 = vpop.permute.xlu1 %5941 }
0x1527   :  { %6031 = vrot.lane.b32.xlu1 %v5201_v6, %s9167_s29 }
0x1528   :  { %6035 = vrot.lane.b32.xlu2 %v10721_v56, %s9167_s29  ;;  %6033 = vrot.lane.b32.xlu0 %v5203_v57, %s9167_s29 }
0x1530   :  { %8681 = vrot.lane.b32.xlu0 %v10832_v13, %s9166_s25  ;;  %8676 = vrot.lane.b32.xlu2 %v10830_v1, %s9166_s25 }
0x1538   :  { %8686 = vrot.lane.b32.xlu2 %v10830_v1, %s9159_s26 }
0x1559   :  { %v5550_v46 = vpop.permute.xlu2 %5549 }
0x1561   :  { %v5744_v39 = vpop.permute.xlu2 %5743 }
0x1569   :  { %v5548_v5 = vpop.permute.xlu0 %5547 }
0x156a   :  { %v5846_v4 = vpop.permute.xlu2 %5845  ;;  %8049 = vmatmul.msk.f32.vlgmr.msrb.gmra.mxu3 %vm86_vm4, %v5548_v5 }
0x156b   :  { %8065 = vmatpush.xpose.msk.msrb.mxu1 %vm86_vm4, %v5846_v4  ;;  %8071 = vmatpush.xpose.msk.msrb.mxu3 %vm86_vm4, %v5942_v34 }
0x1571   :  { %v5746_v56 = vpop.permute.xlu0 %5745 }
0x1572   :  { %v5940_v52 = vpop.permute.xlu2 %5939  ;;  %8050 = vmatmul.msk.f32.gmra.mxu3 %vm86_vm4, %v5550_v46 }
0x1573   :  { %8072 = vmatpush.xpose.msk.msrb.mxu3 %vm86_vm4, %v5940_v52 }
0x157a   :  { %v5646_v15 = vpop.permute.xlu0 %5645  ;;  %v5842_v40 = vpop.permute.xlu2 %5841  ;;  %8061 = vmatmul.msk.f32.vlgmr.msra.gmra.mxu3 %vm86_vm4, %v5744_v39 }
0x157b   :  { %v5404_v20 = vpop.f32.mrf.mxu3  ;;  %8055 = vmatmul.msk.f32.vlgmr.msra.gmra.mxu1 %vm86_vm4, %v5646_v15 }
0x157c   :  { %v5410_v25 = vsel %vm1190_vm9, %v5404_v20, -inf }
0x157d   :  { %5411 = vmax.xlane.f32.xlu2 %v5410_v25 }
0x1581   :  { %v5648_v0 = vpop.permute.xlu1 %5647 }
0x1582   :  { %v5844_v37 = vpop.permute.xlu0 %5843  ;;  %v6036_v30 = vpop.permute.xlu2 %6035  ;;  %8062 = vmatmul.msk.f32.gmra.mxu3 %vm86_vm4, %v5746_v56 }
0x1583   :  { %v5407_v8 = vpop.f32.mrf.mxu3  ;;  %8056 = vmatmul.msk.f32.gmra.mxu1 %vm86_vm4, %v5648_v0 }
0x1584   :  { %8066 = vmatpush.xpose.msk.msrb.mxu1 %vm86_vm4, %v5844_v37  ;;  %v5490_v45 = vpop.f32.mrf.mxu1  ;;  %v5413_v33 = vsel %vm1190_vm9, %v5407_v8, -inf }
0x1585   :  { %5414 = vmax.xlane.f32.xlu1 %v5413_v33  ;;  %v5496_v26 = vsel %vm1190_vm9, %v5490_v45, -inf }
0x1586   :  { %5497 = vmax.xlane.f32.xlu0 %v5496_v26 }
0x1589   :  { %v5840_v51 = vpop.permute.xlu1 %5839 }
0x158a   :  { %v5936_v19 = vpop.permute.xlu0 %5935  ;;  %v8677_v48 = vpop.permute.xlu2 %8676 }
0x158b   :  { %v8678_v50 = vunpack.i.l.bf16 %v8677_v48  ;;  %8067 = vmatmul.msk.f32.vlgmr.msrb.gmra.mxu1 %vm86_vm4, %v5840_v51  ;;  %8073 = vmatmul.msk.f32.vlgmr.msrb.gmra.mxu3 %vm86_vm4, %v5936_v19  ;;  %v8679_v54 = vunpack.i.h.bf16 %v8677_v48 }
0x158c   :  { %v5493_v47 = vpop.f32.mrf.mxu1 }
0x158d   :  { %5636 = vmatpush.msra.mxu0 %v8678_v50  ;;  %v5499_v60 = vsel %vm1190_vm9, %v5493_v47, -inf }
0x158e   :  { %5500 = vmax.xlane.f32.xlu1 %v5499_v60 }
0x158f   :  { %5637 = vmatpush.msra.mxu0 %v8679_v54 }
0x1591   :  { %v5938_v10 = vpop.permute.xlu1 %5937 }
0x1592   :  { %v6038_v61 = vpop.permute.xlu0 %6037  ;;  %v10975_v63 = vpop.permute.xlu2 %8686 }
0x1593   :  { %8068 = vmatmul.msk.f32.gmra.mxu1 %vm86_vm4, %v5842_v40  ;;  %8074 = vmatmul.msk.f32.gmra.mxu3 %vm86_vm4, %v5938_v10 }
0x1594   :  { %8077 = vmatpush.xpose.msk.msra.mxu1 %vm86_vm4, %v6038_v61 }
0x1598   :  { %8078 = vmatpush.xpose.msk.msra.mxu1 %vm86_vm4, %v6036_v30 }
0x1599   :  { %v6032_v62 = vpop.permute.xlu1 %6031 }
0x159a   :  { %v6034_v55 = vpop.permute.xlu0 %6033 }
0x159b   :  { %8079 = vmatmul.msk.f32.vlgmr.msra.gmra.mxu1 %vm86_vm4, %v6032_v62 }
0x15a2   :  { %v8682_v3 = vpop.permute.xlu0 %8681 }
0x15a3   :  { %v8683_v21 = vunpack.i.l.bf16 %v8682_v3  ;;  %8080 = vmatmul.msk.f32.gmra.mxu1 %vm86_vm4, %v6034_v55  ;;  %v8684_v22 = vunpack.i.h.bf16 %v8682_v3 }
0x15a5   :  { %5734 = vmatpush.msra.mxu2 %v8683_v21 }
0x15a7   :  { %5735 = vmatpush.msra.mxu2 %v8684_v22 }
0x15ed   :  { %v10977_v11 = vpop.f32.mrf.mxu3 }
0x15ee   :  { %v5586_v42 = vsel %vm1190_vm9, %v10977_v11, -inf }
0x15ef   :  { %5587 = vmax.xlane.f32.xlu2 %v5586_v42 }
0x15f0   :  { %v5412_v17 = vpop.xlane.xlu2 %5411 }
0x15f1   :  { %v5416_v58 = vsub.f32 %v5404_v20, %v5412_v17 }
0x15f3   :  { %v5418_v2 = vmul.f32 1.442695, %v5416_v58 }
0x15f5   :  { %8998 = vpow2.f32 %v5418_v2  ;;  %v10981_v44 = vpop.f32.mrf.mxu3 }
0x15f6   :  { %v5589_v24 = vsel %vm1190_vm9, %v10981_v44, -inf }
0x15f7   :  { %5590 = vmax.xlane.f32.xlu0 %v5589_v24 }
0x15f8   :  { %v5415_v28 = vpop.xlane.xlu1 %5414  ;;  %v10985_v32 = vpop.f32.mrf.mxu1 }
0x15f9   :  { %v5498_v59 = vpop.xlane.xlu0 %5497  ;;  %v5684_v9 = vsel %vm1190_vm9, %v10985_v32, -inf  ;;  %v5417_v16 = vsub.f32 %v5407_v8, %v5415_v28  ;;  %v8688_v28 = vunpack.i.l.bf16 %v10975_v63 }
0x15fa   :  { %v5502_v53 = vsub.f32 %v5490_v45, %v5498_v59  ;;  %5685 = vmax.xlane.f32.xlu2 %v5684_v9  ;;  %v8689_v9 = vunpack.i.h.bf16 %v10975_v63 }
0x15fb   :  { %v10989_v43 = vpop.eup %8998  ;;  %v5420_v49 = vmul.f32 1.442695, %v5417_v16 }
0x15fc   :  { %v5504_v18 = vmul.f32 1.442695, %v5502_v53  ;;  %v5422_v41 = vsel %vm1190_vm9, %v10989_v43, 0.0 }
0x15fd   :  { %5423 = vadd.xlane.f32.xlu1 %v5422_v41  ;;  %v10993_v38 = vpop.f32.mrf.mxu3 }
0x15fe   :  { %9000 = vpow2.f32 %v5504_v18  ;;  %v5782_v57 = vsel %vm1190_vm9, %v10993_v38, -inf }
0x15ff   :  { %9002 = vpow2.f32 %v5420_v49 }
0x1600   :  { %v10995_v14 = vpop.f32.mrf.mxu1 }
0x1601   :  { %v5501_v36 = vpop.xlane.xlu1 %5500  ;;  %v5687_v23 = vsel %vm1190_vm9, %v10995_v14, -inf }
0x1602   :  { %v5503_v6 = vsub.f32 %v5493_v47, %v5501_v36  ;;  %5688 = vmax.xlane.f32.xlu0 %v5687_v23 }
0x1604   :  { %v5506_v7 = vmul.f32 1.442695, %v5503_v6  ;;  %v11003_v39 = vpop.eup %9000 }
0x1605   :  { %5783 = vmax.xlane.f32.xlu1 %v5782_v57  ;;  %v11001_v46 = vpop.f32.mrf.mxu3  ;;  %v11009_v4 = vpop.eup %9002  ;;  %v5508_v56 = vsel %vm1190_vm9, %v11003_v39, 0.0 }
0x1606   :  { %v5785_v5 = vsel %vm1190_vm9, %v11001_v46, -inf  ;;  %9004 = vpow2.f32 %v5506_v7  ;;  %v5425_v52 = vsel %vm1190_vm9, %v11009_v4, 0.0 }
0x1607   :  { %5786 = vmax.xlane.f32.xlu2 %v5785_v5 }
0x1608   :  { %v11007_v34 = vpop.f32.mrf.mxu1 }
0x1609   :  { %v5878_v37 = vsel %vm1190_vm9, %v11007_v34, -inf }
0x160a   :  { %5509 = vadd.xlane.f32.xlu0 %v5508_v56 }
0x160c   :  { %v11015_v15 = vpop.eup %9004 }
0x160d   :  { %5426 = vadd.xlane.f32.xlu1 %v5425_v52  ;;  %v5511_v20 = vsel %vm1190_vm9, %v11015_v15, 0.0 }
0x160e   :  { %v11023_v0 = vpop.f32.mrf.mxu3 }
0x160f   :  { %v5974_v8 = vsel %vm1190_vm9, %v11023_v0, -inf }
0x1610   :  { %v11017_v40 = vpop.f32.mrf.mxu1 }
0x1611   :  { %v5881_v25 = vsel %vm1190_vm9, %v11017_v40, -inf }
0x1612   :  { %5512 = vadd.xlane.f32.xlu0 %v5511_v20  ;;  %5882 = vmax.xlane.f32.xlu2 %v5881_v25 }
0x1615   :  { %5879 = vmax.xlane.f32.xlu1 %v5878_v37 }
0x1616   :  { %v11033_v33 = vpop.f32.mrf.mxu3 }
0x1617   :  { %v5977_v51 = vsel %vm1190_vm9, %v11033_v33, -inf }
0x1618   :  { %v11027_v30 = vpop.f32.mrf.mxu1 }
0x1619   :  { %v6070_v45 = vsel %vm1190_vm9, %v11027_v30, -inf }
0x161a   :  { %5975 = vmax.xlane.f32.xlu0 %v5974_v8  ;;  %6071 = vmax.xlane.f32.xlu2 %v6070_v45 }
0x1620   :  { %v11035_v26 = vpop.f32.mrf.mxu1 }
0x1621   :  { %v6073_v19 = vsel %vm1190_vm9, %v11035_v26, -inf }
0x1622   :  { %5978 = vmax.xlane.f32.xlu0 %v5977_v51  ;;  %6074 = vmax.xlane.f32.xlu2 %v6073_v19 }
0x1662   :  { %v5588_v48 = vpop.xlane.xlu2 %5587 }
0x1663   :  { %v5592_v50 = vsub.f32 %v10977_v11, %v5588_v48 }
0x1665   :  { %v5594_v47 = vmul.f32 1.442695, %v5592_v50 }
0x1667   :  { %9006 = vpow2.f32 %v5594_v47 }
0x166a   :  { %v5591_v54 = vpop.xlane.xlu0 %5590 }
0x166b   :  { %v5593_v60 = vsub.f32 %v10981_v44, %v5591_v54 }
0x166d   :  { %v11043_v10 = vpop.eup %9006  ;;  %v5596_v61 = vmul.f32 1.442695, %v5593_v60  ;;  %v5686_v62 = vpop.xlane.xlu2 %5685 }
0x166e   :  { %v5690_v55 = vsub.f32 %v10985_v32, %v5686_v62  ;;  %v5598_v3 = vsel %vm1190_vm9, %v11043_v10, 0.0 }
0x166f   :  { %9008 = vpow2.f32 %v5596_v61  ;;  %5599 = vadd.xlane.f32.xlu1 %v5598_v3 }
0x1670   :  { %v5692_v21 = vmul.f32 1.442695, %v5690_v55  ;;  %v5424_v22 = vpop.xlane.xlu1 %5423 }
0x1671   :  { %9010 = vrcp.f32 %v5424_v22 }
0x1672   :  { %9012 = vpow2.f32 %v5692_v21 }
0x1675   :  { %v11048_v11 = vpop.eup %9008  ;;  %v5689_v42 = vpop.xlane.xlu0 %5688 }
0x1676   :  { %v5601_v17 = vsel %vm1190_vm9, %v11048_v11, 0.0  ;;  %v5691_v53 = vsub.f32 %v10995_v14, %v5689_v42 }
0x1677   :  { %v9011_v58 = vpop.eup %9010  ;;  %5602 = vadd.xlane.f32.xlu1 %v5601_v17 }
0x1678   :  { %v11052_v2 = vpop.eup %9012  ;;  %v5430_v44 = vmul.f32 %v9011_v58, %v10989_v43  ;;  %v5784_v24 = vpop.xlane.xlu1 %5783  ;;  %v5694_v18 = vmul.f32 1.442695, %v5691_v53 }
0x1679   :  { %v5788_v32 = vsub.f32 %v10993_v38, %v5784_v24  ;;  %v5696_v59 = vsel %vm1190_vm9, %v11052_v2, 0.0 }
0x167a   :  { %5697 = vadd.xlane.f32.xlu0 %v5696_v59  ;;  %8039 = vmatmul.msk.f32.vlgmr.msrb.gmra.mxu0 %vm1190_vm9, %v5430_v44  ;;  %v5787_v41 = vpop.xlane.xlu2 %5786 }
0x167b   :  { %v5790_v16 = vmul.f32 1.442695, %v5788_v32  ;;  %5830 = vmatpush.msrb.mxu0 %v8688_v28  ;;  %v5789_v36 = vsub.f32 %v11001_v46, %v5787_v41 }
0x167d   :  { %9014 = vpow2.f32 %v5790_v16  ;;  %5831 = vmatpush.msrb.mxu0 %v8689_v9  ;;  %v5510_v43 = vpop.xlane.xlu0 %5509  ;;  %v5792_v57 = vmul.f32 1.442695, %v5789_v36 }
0x167e   :  { %9016 = vrcp.f32 %v5510_v43 }
0x1680   :  { %v5427_v49 = vpop.xlane.xlu1 %5426 }
0x1681   :  { %9018 = vrcp.f32 %v5427_v49 }
0x1682   :  { %9020 = vpow2.f32 %v5694_v18 }
0x1683   :  { %v11062_v38 = vpop.eup %9014 }
0x1684   :  { %v9017_v23 = vpop.eup %9016  ;;  %v5794_v63 = vsel %vm1190_vm9, %v11062_v38, 0.0 }
0x1685   :  { %v5516_v14 = vmul.f32 %v9017_v23, %v11003_v39  ;;  %v5513_v6 = vpop.xlane.xlu0 %5512  ;;  %5795 = vadd.xlane.f32.xlu1 %v5794_v63  ;;  %v5883_v20 = vpop.xlane.xlu2 %5882 }
0x1686   :  { %9022 = vrcp.f32 %v5513_v6  ;;  %v5885_v17 = vsub.f32 %v11017_v40, %v5883_v20 }
0x1687   :  { %v9019_v7 = vpop.eup %9018  ;;  %8045 = vmatmul.msk.f32.vlgmr.msrb.gmra.mxu2 %vm1190_vm9, %v5516_v14  ;;  %9024 = vpow2.f32 %v5792_v57 }
0x1688   :  { %v5880_v5 = vpop.xlane.xlu1 %5879  ;;  %v5431_v56 = vmul.f32 %v9019_v7, %v11009_v4  ;;  %v11070_v52 = vpop.eup %9020  ;;  %v5888_v44 = vmul.f32 1.442695, %v5885_v17 }
0x1689   :  { %v5884_v46 = vsub.f32 %v11007_v34, %v5880_v5  ;;  %v5699_v37 = vsel %vm1190_vm9, %v11070_v52, 0.0 }
0x168a   :  { %8040 = vmatmul.msk.f32.gmra.mxu0 %vm1190_vm9, %v5431_v56 }
0x168b   :  { %v5886_v25 = vmul.f32 1.442695, %v5884_v46 }
0x168c   :  { %v9023_v39 = vpop.eup %9022 }
0x168d   :  { %9026 = vpow2.f32 %v5886_v25  ;;  %v5976_v8 = vpop.xlane.xlu0 %5975  ;;  %5700 = vadd.xlane.f32.xlu1 %v5699_v37  ;;  %v5517_v45 = vmul.f32 %v9023_v39, %v11015_v15  ;;  %v11079_v34 = vpop.eup %9024 }
0x168e   :  { %v5980_v4 = vsub.f32 %v11023_v0, %v5976_v8  ;;  %v5797_v50 = vsel %vm1190_vm9, %v11079_v34, 0.0  ;;  %v6072_v47 = vpop.xlane.xlu2 %6071 }
0x168f   :  { %8046 = vmatmul.msk.f32.gmra.mxu2 %vm1190_vm9, %v5517_v45  ;;  %v6076_v60 = vsub.f32 %v11027_v30, %v6072_v47 }
0x1690   :  { %v5982_v51 = vmul.f32 1.442695, %v5980_v4 }
0x1691   :  { %v6078_v55 = vmul.f32 1.442695, %v6076_v60 }
0x1692   :  { %9028 = vpow2.f32 %v5982_v51 }
0x1693   :  { %v11081_v19 = vpop.eup %9026 }
0x1694   :  { %v5890_v48 = vsel %vm1190_vm9, %v11081_v19, 0.0 }
0x1695   :  { %v5979_v54 = vpop.xlane.xlu0 %5978  ;;  %5891 = vadd.xlane.f32.xlu2 %v5890_v48  ;;  %5798 = vadd.xlane.f32.xlu1 %v5797_v50 }
0x1696   :  { %v5981_v15 = vsub.f32 %v11033_v33, %v5979_v54  ;;  %v6075_v30 = vpop.xlane.xlu2 %6074 }
0x1697   :  { %v6077_v42 = vsub.f32 %v11035_v26, %v6075_v30 }
0x1698   :  { %v11088_v0 = vpop.eup %9028  ;;  %v5984_v61 = vmul.f32 1.442695, %v5981_v15 }
0x1699   :  { %v5986_v62 = vsel %vm1190_vm9, %v11088_v0, 0.0  ;;  %v6080_v58 = vmul.f32 1.442695, %v6077_v42 }
0x169a   :  { %9030 = vpow2.f32 %v5984_v61  ;;  %5987 = vadd.xlane.f32.xlu0 %v5986_v62 }
0x169b   :  { %9032 = vpow2.f32 %v6078_v55 }
0x169c   :  { %9034 = vpow2.f32 %v6080_v58 }
0x169d   :  { %9036 = vpow2.f32 %v5888_v44 }
0x16a0   :  { %v11093_v3 = vpop.eup %9030 }
0x16a1   :  { %v5989_v21 = vsel %vm1190_vm9, %v11093_v3, 0.0  ;;  %v11097_v22 = vpop.eup %9032 }
0x16a2   :  { %5990 = vadd.xlane.f32.xlu0 %v5989_v21  ;;  %v6082_v33 = vsel %vm1190_vm9, %v11097_v22, 0.0  ;;  %v11109_v24 = vpop.eup %9034 }
0x16a3   :  { %v11111_v28 = vpop.eup %9036 }
0x16aa   :  { %6083 = vadd.xlane.f32.xlu0 %v6082_v33 }
0x16ad   :  { %8696 = vrot.lane.b32.xlu2 %v10830_v1, %s9167_s29  ;;  %v6085_v1 = vsel %vm1190_vm9, %v11109_v24, 0.0 }
0x16ae   :  { %8691 = vrot.lane.b32.xlu1 %v10832_v13, %s9159_s26 }
0x16be   :  { %8701 = vrot.lane.b32.xlu0 %v10832_v13, %s9167_s29  ;;  %v5893_v13 = vsel %vm1190_vm9, %v11111_v28, 0.0 }
0x16d6   :  { %6086 = vadd.xlane.f32.xlu2 %v6085_v1 }
0x16d8   :  { %5894 = vadd.xlane.f32.xlu1 %v5893_v13 }
0x16e2   :  { %v5600_v32 = vpop.xlane.xlu1 %5599 }
0x16e3   :  { %9038 = vrcp.f32 %v5600_v32 }
0x16e9   :  { %v9039_v26 = vpop.eup %9038 }
0x16ea   :  { %v5606_v40 = vmul.f32 %v9039_v26, %v11043_v10  ;;  %v5603_v59 = vpop.xlane.xlu1 %5602 }
0x16eb   :  { %9040 = vrcp.f32 %v5603_v59  ;;  %v8405_v59 = vld [vmem:[#allocation2 + $0x3f0] sm:$0xff] }
0x16ec   :  { %8051 = vmatmul.msk.f32.vlgmr.msra.gmra.mxu0 %vm1190_vm9, %v5606_v40  ;;  %v8406_v40 = vld [vmem:[#allocation2 + $0x3f8] sm:$0xff] }
0x16ed   :  { %v5698_v9 = vpop.xlane.xlu0 %5697  ;;  %6255 = vmatpush.bf16.msra.mxu3 %v8406_v40 }
0x16ee   :  { %9042 = vrcp.f32 %v5698_v9 }
0x16f1   :  { %v9041_v53 = vpop.eup %9040  ;;  %6256 = vmatpush.bf16.msra.mxu3 %v8405_v59 }
0x16f2   :  { %v5607_v16 = vmul.f32 %v9041_v53, %v11048_v11  ;;  %v8404_v53 = vld [vmem:[#allocation2 + $0x3e8] sm:$0xff] }
0x16f4   :  { %v9043_v43 = vpop.eup %9042  ;;  %8052 = vmatmul.msk.f32.gmra.mxu0 %vm1190_vm9, %v5607_v16 }
0x16f5   :  { %v5704_v18 = vmul.f32 %v9043_v43, %v11052_v2  ;;  %6257 = vmatpush.bf16.msra.mxu3 %v8404_v53 }
0x16f7   :  { %8057 = vmatmul.msk.f32.vlgmr.msra.gmra.mxu2 %vm1190_vm9, %v5704_v18 }
0x16f8   :  { %v5796_v41 = vpop.xlane.xlu1 %5795 }
0x16f9   :  { %9044 = vrcp.f32 %v5796_v41  ;;  %v8403_v41 = vld [vmem:[#allocation2 + $0x3e0] sm:$0xff] }
0x16fa   :  { %6258 = vmatpush.bf16.msra.mxu3 %v8403_v41 }
0x16ff   :  { %v9045_v49 = vpop.eup %9044 }
0x1700   :  { %v5802_v10 = vmul.f32 %v9045_v49, %v11062_v38  ;;  %v5701_v36 = vpop.xlane.xlu1 %5700 }
0x1701   :  { %9046 = vrcp.f32 %v5701_v36  ;;  %v8402_v36 = vld [vmem:[#allocation2 + $0x3d8] sm:$0xff] }
0x1702   :  { %8063 = vmatmul.msk.f32.vlgmr.msrb.gmra.mxu0 %vm1190_vm9, %v5802_v10  ;;  %6259 = vmatpush.bf16.msra.mxu3 %v8402_v36 }
0x1707   :  { %v9047_v23 = vpop.eup %9046 }
0x1708   :  { %v5799_v63 = vpop.xlane.xlu1 %5798  ;;  %v5892_v14 = vpop.xlane.xlu2 %5891  ;;  %v5705_v11 = vmul.f32 %v9047_v23, %v11070_v52  ;;  %v8401_v23 = vld [vmem:[#allocation2 + $0x3d0] sm:$0xff] }
0x1709   :  { %9048 = vrcp.f32 %v5799_v63  ;;  %6260 = vmatpush.bf16.msra.mxu3 %v8401_v23  ;;  %v8400_v63 = vld [vmem:[#allocation2 + $0x3c8] sm:$0xff] }
0x170a   :  { %8058 = vmatmul.msk.f32.gmra.mxu2 %vm1190_vm9, %v5705_v11  ;;  %v11142_v17 = vpop.f32.mrf.mxu2 }
0x170d   :  { %v5988_v2 = vpop.xlane.xlu0 %5987  ;;  %6261 = vmatpush.bf16.msra.mxu3 %v8400_v63  ;;  %v8414_v63 = vld [vmem:[#allocation2 + $0x538] sm:$0xff] }
0x170e   :  { %9050 = vrcp.f32 %v5988_v2 }
0x170f   :  { %v9049_v6 = vpop.eup %9048 }
0x1710   :  { %v8697_v7 = vpop.permute.xlu2 %8696  ;;  %v5803_v57 = vmul.f32 %v9049_v6, %v11079_v34 }
0x1711   :  { %v8698_v5 = vunpack.i.l.bf16 %v8697_v7  ;;  %v8699_v38 = vunpack.i.h.bf16 %v8697_v7 }
0x1712   :  { %8064 = vmatmul.msk.f32.gmra.mxu0 %vm1190_vm9, %v5803_v57 }
0x1713   :  { %6022 = vmatpush.msra.mxu0 %v8698_v5 }
0x1714   :  { %v9051_v56 = vpop.eup %9050 }
0x1715   :  { %v5991_v46 = vpop.xlane.xlu0 %5990  ;;  %6023 = vmatpush.msra.mxu0 %v8699_v38  ;;  %v5994_v52 = vmul.f32 %v9051_v56, %v11088_v0 }
0x1716   :  { %9052 = vrcp.f32 %v5991_v46 }
0x1717   :  { %9054 = vrcp.f32 %v5892_v14  ;;  %v8399_v14 = vld [vmem:[#allocation2 + $0x3c0] sm:$0xff]  ;;  %6438 = vmatpush.bf16.msrb.mxu0 %v8414_v63 }
0x1718   :  { %6262 = vmatpush.bf16.msra.mxu3 %v8399_v14  ;;  %v8422_v14 = vld [vmem:[#allocation2 + $0x578] sm:$0xff]  ;;  %v8435_v63 = vld [vmem:[#allocation2 + $0x5e0] sm:$0xff] }
0x1719   :  { %6527 = vmatpush.bf16.msrb.mxu1 %v8422_v14  ;;  %v8427_v14 = vld [vmem:[#allocation2 + $0x5a0] sm:$0xff] }
0x171a   :  { %8075 = vmatmul.msk.f32.vlgmr.msra.gmra.mxu0 %vm1190_vm9, %v5994_v52 }
0x171c   :  { %v9053_v20 = vpop.eup %9052 }
0x171d   :  { %v5995_v39 = vmul.f32 %v9053_v20, %v11093_v3  ;;  %v9055_v37 = vpop.eup %9054  ;;  %v6084_v51 = vpop.xlane.xlu0 %6083 }
0x171e   :  { %v5898_v4 = vmul.f32 %v9055_v37, %v11081_v19  ;;  %v5455_v19 = vpop.f32.mrf.mxu0 }
0x1720   :  { %v8692_v25 = vpop.permute.xlu1 %8691 }
0x1721   :  { %v8693_v8 = vunpack.i.l.bf16 %v8692_v25  ;;  %v8694_v45 = vunpack.i.h.bf16 %v8692_v25 }
0x1722   :  { %8076 = vmatmul.msk.f32.gmra.mxu0 %vm1190_vm9, %v5995_v39 }
0x1723   :  { %5926 = vmatpush.msrb.mxu2 %v8693_v8 }
0x1725   :  { %5927 = vmatpush.msrb.mxu2 %v8694_v45 }
0x1726   :  { %8069 = vmatmul.msk.f32.vlgmr.msrb.gmra.mxu2 %vm1190_vm9, %v5898_v4  ;;  %v5458_v55 = vpop.f32.mrf.mxu0 }
0x1730   :  { %v8702_v34 = vpop.permute.xlu0 %8701 }
0x1731   :  { %v8703_v48 = vunpack.i.l.bf16 %v8702_v34  ;;  %v8704_v50 = vunpack.i.h.bf16 %v8702_v34 }
0x1733   :  { %6118 = vmatpush.msra.mxu2 %v8703_v48 }
0x1735   :  { %6119 = vmatpush.msra.mxu2 %v8704_v50 }
0x1749   :  { %v6087_v0 = vpop.xlane.xlu2 %6086 }
0x174b   :  { %v5895_v47 = vpop.xlane.xlu1 %5894 }
0x174c   :  { %9056 = vrcp.f32 %v5895_v47 }
0x174d   :  { %9058 = vrcp.f32 %v6084_v51 }
0x174e   :  { %9060 = vrcp.f32 %v6087_v0 }
0x1752   :  { %v9057_v54 = vpop.eup %9056 }
0x1753   :  { %v5899_v15 = vmul.f32 %v9057_v54, %v11111_v28  ;;  %v9059_v60 = vpop.eup %9058 }
0x1754   :  { %v6090_v61 = vmul.f32 %v9059_v60, %v11097_v22  ;;  %v9061_v62 = vpop.eup %9060  ;;  %v5544_v22 = vpop.f32.mrf.mxu2 }
0x1755   :  { %8070 = vmatmul.msk.f32.gmra.mxu2 %vm1190_vm9, %v5899_v15  ;;  %v6091_v3 = vmul.f32 %v9061_v62, %v11109_v24 }
0x175d   :  { %8081 = vmatmul.msk.f32.vlgmr.msra.gmra.mxu2 %vm1190_vm9, %v6090_v61 }
0x1765   :  { %8082 = vmatmul.msk.f32.gmra.mxu2 %vm1190_vm9, %v6091_v3 }
0x1769   :  { %v5639_v21 = vpop.f32.mrf.mxu0 }
0x1771   :  { %v5642_v33 = vpop.f32.mrf.mxu0 }
0x1772   :  { %v8705_v30 = vpack.i.bf16 %v5642_v33, %v5639_v21  ;;  %v8762_v33 = vld [vmem:[%s11434_s2 + $0xf] ss:$0 sm:$0xff] }
0x1774   :  { %8706 = vrot.lane.b32.xlu1 %v8705_v30, %s9167_s29 }
0x177a   :  { %v5737_v1 = vpop.f32.mrf.mxu2 }
0x177f   :  { %v5833_v42 = vpop.f32.mrf.mxu0 }
0x178d   :  { %v5740_v24 = vpop.f32.mrf.mxu2 }
0x178e   :  { %v8720_v26 = vpack.i.bf16 %v5740_v24, %v5737_v1 }
0x178f   :  { %v5836_v58 = vpop.f32.mrf.mxu0 }
0x1790   :  { %v8710_v44 = vpack.i.bf16 %v5836_v58, %v5833_v42 }
0x1792   :  { %8711 = vrot.lane.b32.xlu0 %v8710_v44, %s9159_s26 }
0x1797   :  { %v6025_v28 = vpop.f32.mrf.mxu0 }
0x179f   :  { %v6028_v13 = vpop.f32.mrf.mxu0 }
0x17a0   :  { %v8715_v32 = vpack.i.bf16 %v6028_v13, %v6025_v28 }
0x17a2   :  { %8716 = vrot.lane.b32.xlu0 %v8715_v32, %s9166_s25 }
0x17a9   :  { %v5929_v9 = vpop.f32.mrf.mxu2 }
0x17aa   :  { %8721 = vrot.lane.b32.xlu0 %v8720_v26, %s9167_s29 }
0x17d8   :  { %v5932_v16 = vpop.f32.mrf.mxu2 }
0x17d9   :  { %v8725_v43 = vpack.i.bf16 %v5932_v16, %v5929_v9 }
0x17db   :  { %8726 = vrot.lane.b32.xlu1 %v8725_v43, %s9159_s26 }
0x17e0   :  { %v6121_v18 = vpop.f32.mrf.mxu2 }
0x17e6   :  { %v8707_v2 = vpop.permute.xlu1 %8706 }
0x17e7   :  { %v8709_v6 = vunpack.i.h.bf16 %v8707_v2  ;;  %v8708_v7 = vunpack.i.l.bf16 %v8707_v2 }
0x17e8   :  { %v6124_v49 = vpop.f32.mrf.mxu2 }
0x17e9   :  { %v8730_v10 = vpack.i.bf16 %v6124_v49, %v6121_v18  ;;  %v6176_v56 = vsel %vm86_vm4, %v5458_v55, %v8709_v6  ;;  %v6175_v46 = vsel %vm86_vm4, %v5455_v19, %v8708_v7  ;;  %v8413_v7 = vld [vmem:[#allocation2 + $0x530] sm:$0xff] }
0x17ea   :  { %6439 = vmatpush.bf16.msrb.mxu0 %v8413_v7 }
0x17eb   :  { %8731 = vrot.lane.b32.xlu0 %v8730_v10, %s9166_s25 }
0x1804   :  { %v8712_v11 = vpop.permute.xlu0 %8711 }
0x1805   :  { %v8714_v57 = vunpack.i.h.bf16 %v8712_v11  ;;  %v8713_v5 = vunpack.i.l.bf16 %v8712_v11 }
0x1807   :  { %v6180_v25 = vsel %vm1960_vm1, %v6176_v56, %v8714_v57  ;;  %v6179_v39 = vsel %vm1960_vm1, %v6175_v46, %v8713_v5  ;;  %v8421_v57 = vld [vmem:[#allocation2 + $0x570] sm:$0xff]  ;;  %v8412_v5 = vld [vmem:[#allocation2 + $0x528] sm:$0xff] }
0x1808   :  { %6528 = vmatpush.bf16.msrb.mxu1 %v8421_v57  ;;  %6440 = vmatpush.bf16.msrb.mxu0 %v8412_v5 }
0x1814   :  { %v8717_v38 = vpop.permute.xlu0 %8716 }
0x1815   :  { %v8719_v52 = vunpack.i.h.bf16 %v8717_v38  ;;  %v8718_v20 = vunpack.i.l.bf16 %v8717_v38  ;;  %v8420_v38 = vld [vmem:[#allocation2 + $0x568] sm:$0xff] }
0x1816   :  { %6529 = vmatpush.bf16.msrb.mxu1 %v8420_v38 }
0x1817   :  { %v6184_v37 = vsel %vm1965_vm2, %v6180_v25, %v8719_v52  ;;  %v6183_v8 = vsel %vm1965_vm2, %v6179_v39, %v8718_v20  ;;  %v8411_v52 = vld [vmem:[#allocation2 + $0x520] sm:$0xff] }
0x1818   :  { %v6187_v45 = vpack.c.bf16 %v6184_v37, %v6183_v8  ;;  %v8419_v20 = vld [vmem:[#allocation2 + $0x560] sm:$0xff]  ;;  %6441 = vmatpush.bf16.msrb.mxu0 %v8411_v52  ;;  %v8410_v8 = vld [vmem:[#allocation2 + $0x518] sm:$0xff] }
0x181a   :  { %6263 = vmatmul.bf16.vlgmr.msra.gmra.mxu3 %v6187_v45  ;;  %6530 = vmatpush.bf16.msrb.mxu1 %v8419_v20  ;;  %v8418_v45 = vld [vmem:[#allocation2 + $0x558] sm:$0xff] }
0x181c   :  { %v8722_v4 = vpop.permute.xlu0 %8721  ;;  %6442 = vmatpush.bf16.msrb.mxu0 %v8410_v8 }
0x181d   :  { %v8724_v34 = vunpack.i.h.bf16 %v8722_v4  ;;  %v8723_v48 = vunpack.i.l.bf16 %v8722_v4 }
0x181e   :  { %6531 = vmatpush.bf16.msrb.mxu1 %v8418_v45 }
0x181f   :  { %v6178_v15 = vsel %vm86_vm4, %v5544_v22, %v8724_v34  ;;  %v6177_v0 = vsel %vm86_vm4, %v11142_v17, %v8723_v48  ;;  %v8409_v34 = vld [vmem:[#allocation2 + $0x510] sm:$0xff] }
0x1820   :  { %v8417_v48 = vld [vmem:[#allocation2 + $0x550] sm:$0xff]  ;;  %6443 = vmatpush.bf16.msrb.mxu0 %v8409_v34  ;;  %v8426_v34 = vld [vmem:[#allocation2 + $0x598] sm:$0xff] }
0x1822   :  { %6532 = vmatpush.bf16.msrb.mxu1 %v8417_v48  ;;  %v8425_v48 = vld [vmem:[#allocation2 + $0x590] sm:$0xff] }
0x184d   :  { %v8727_v51 = vpop.permute.xlu1 %8726 }
0x184e   :  { %v8729_v50 = vunpack.i.h.bf16 %v8727_v51  ;;  %v8728_v47 = vunpack.i.l.bf16 %v8727_v51 }
0x1850   :  { %v6181_v61 = vsel %vm1960_vm1, %v6177_v0, %v8728_v47  ;;  %v6182_v62 = vsel %vm1960_vm1, %v6178_v15, %v8729_v50  ;;  %v8408_v0 = vld [vmem:[#allocation2 + $0x508] sm:$0xff] }
0x1851   :  { %6444 = vmatpush.bf16.msrb.mxu0 %v8408_v0 }
0x185d   :  { %v8732_v54 = vpop.permute.xlu0 %8731 }
0x185e   :  { %v8734_v60 = vunpack.i.h.bf16 %v8732_v54  ;;  %v8733_v19 = vunpack.i.l.bf16 %v8732_v54 }
0x1860   :  { %v6185_v55 = vsel %vm1965_vm2, %v6181_v61, %v8733_v19  ;;  %v6186_v3 = vsel %vm1965_vm2, %v6182_v62, %v8734_v60  ;;  %v8416_v60 = vld [vmem:[#allocation2 + $0x548] sm:$0xff] }
0x1861   :  { %v6188_v21 = vpack.c.bf16 %v6186_v3, %v6185_v55  ;;  %6533 = vmatpush.bf16.msrb.mxu1 %v8416_v60  ;;  %v8407_v55 = vld [vmem:[#allocation2 + $0x500] sm:$0xff]  ;;  %v8765_v60 = vld [vmem:[%s11434_s2 + $0x13] ss:$0 sm:$0xff] }
0x1862   :  { %v8415_v3 = vld [vmem:[#allocation2 + $0x540] sm:$0xff]  ;;  %6445 = vmatpush.bf16.msrb.mxu0 %v8407_v55 }
0x1863   :  { %6268 = vmatmul.bf16.gmra.mxu3 %v6188_v21 }
0x1865   :  { %6534 = vmatpush.bf16.msrb.mxu1 %v8415_v3 }
0x189d   :  { %v6264_v30 = vpop.f32.mrf.mxu3 }
0x189e   :  { %v6265_v42 = vadd.f32 %v8762_v33, %v6264_v30 }
0x18a0   :  { %v6274_v17 = vadd.f32 %v6265_v42, %v10899_v35 }
0x18a2   :  { %6280 = vadd.xlane.f32.xlu1 %v6274_v17 }
0x18a5   :  { %v6266_v58 = vpop.f32.mrf.mxu3 }
0x18a6   :  { %v6267_v44 = vadd.f32 %v8762_v33, %v6266_v58  ;;  %v8764_v58 = vld [vmem:[%s11434_s2 + $0x1f] ss:$0 sm:$0xff] }
0x18a8   :  { %v6275_v22 = vadd.f32 %v6267_v44, %v10901_v12 }
0x18aa   :  { %6282 = vadd.xlane.f32.xlu2 %v6275_v22 }
0x18e6   :  { %v6269_v28 = vpop.f32.mrf.mxu3 }
0x18e7   :  { %v6270_v1 = vadd.f32 %v8762_v33, %v6269_v28 }
0x18e9   :  { %v6276_v13 = vadd.f32 %v6270_v1, %v10909_v27 }
0x18eb   :  { %6284 = vadd.xlane.f32.xlu0 %v6276_v13 }
0x18ee   :  { %v6271_v32 = vpop.f32.mrf.mxu3 }
0x18ef   :  { %v6272_v24 = vadd.f32 %v8762_v33, %v6271_v32  ;;  %v11194_v33 = vld [vmem:[%s11434_s2 + $0x1e] ss:$0 sm:$0xff] }
0x18f1   :  { %v6277_v26 = vadd.f32 %v6272_v24, %v10911_v31 }
0x18f3   :  { %6286 = vadd.xlane.f32.xlu2 %v6277_v26 }
0x1915   :  { %v6281_v40 = vpop.xlane.xlu1 %6280 }
0x1916   :  { %v6288_v59 = vmul.f32 %v6281_v40, %v10079_v29 }
0x1918   :  { %v11170_v35 = vsub.f32 %v6274_v17, %v6288_v59  ;;  %v8438_v59 = vld [vmem:[#allocation2 + $0x5f8] sm:$0xff] }
0x1919   :  { %6634 = vmatpush.bf16.msrb.mxu2 %v8438_v59 }
0x191a   :  { %v6296_v9 = vmul.f32 %v11170_v35, %v11170_v35 }
0x191c   :  { %6300 = vadd.xlane.f32.xlu2 %v6296_v9 }
0x191d   :  { %v6283_v12 = vpop.xlane.xlu2 %6282 }
0x191e   :  { %v6289_v53 = vmul.f32 %v6283_v12, %v10079_v29 }
0x1920   :  { %v11175_v16 = vsub.f32 %v6275_v22, %v6289_v53  ;;  %v8437_v53 = vld [vmem:[#allocation2 + $0x5f0] sm:$0xff] }
0x1921   :  { %6635 = vmatpush.bf16.msrb.mxu2 %v8437_v53 }
0x1922   :  { %v6297_v27 = vmul.f32 %v11175_v16, %v11175_v16 }
0x1924   :  { %6302 = vadd.xlane.f32.xlu2 %v6297_v27 }
0x195e   :  { %v6285_v31 = vpop.xlane.xlu0 %6284 }
0x195f   :  { %v6290_v43 = vmul.f32 %v6285_v31, %v10079_v29 }
0x1961   :  { %v11180_v18 = vsub.f32 %v6276_v13, %v6290_v43 }
0x1963   :  { %v6298_v41 = vmul.f32 %v11180_v18, %v11180_v18 }
0x1965   :  { %6304 = vadd.xlane.f32.xlu2 %v6298_v41  ;;  %v8436_v41 = vld [vmem:[#allocation2 + $0x5e8] sm:$0xff] }
0x1966   :  { %v6287_v49 = vpop.xlane.xlu2 %6286  ;;  %6636 = vmatpush.bf16.msrb.mxu2 %v8436_v41 }
0x1967   :  { %v6291_v10 = vmul.f32 %v6287_v49, %v10079_v29  ;;  %v8428_v49 = vld [vmem:[#allocation2 + $0x5a8] sm:$0xff] }
0x1969   :  { %v11185_v36 = vsub.f32 %v6277_v26, %v6291_v10 }
0x196a   :  { %6637 = vmatpush.bf16.msrb.mxu2 %v8435_v63 }
0x196b   :  { %v6299_v23 = vmul.f32 %v11185_v36, %v11185_v36 }
0x196d   :  { %6306 = vadd.xlane.f32.xlu1 %v6299_v23 }
0x198f   :  { %v6301_v11 = vpop.xlane.xlu2 %6300 }
0x1990   :  { %v6308_v2 = vmul.f32 %v6301_v11, %v10079_v29 }
0x1992   :  { %v6312_v6 = vadd.f32 1e-05, %v6308_v2 }
0x1994   :  { %9062 = vrsqrt.f32 %v6312_v6  ;;  %vm6322_vm9 = vweird.f32 %v6312_v6 }
0x1997   :  { %v6303_v56 = vpop.xlane.xlu2 %6302 }
0x1998   :  { %v6309_v46 = vmul.f32 %v6303_v56, %v10079_v29 }
0x199a   :  { %v9063_v25 = vpop.eup %9062  ;;  %v6313_v39 = vadd.f32 1e-05, %v6309_v46 }
0x199b   :  { %v6317_v37 = vmul.f32 %v9063_v25, %v6312_v6  ;;  %vm6323_vm4 = vweird.f32 %v9063_v25 }
0x199c   :  { %9064 = vrsqrt.f32 %v6313_v39  ;;  %vm6324_vm1 = vmor %vm6322_vm9, %vm6323_vm4  ;;  %vm6332_vm10 = vweird.f32 %v6313_v39 }
0x199d   :  { %v6318_v4 = vmul.f32 %v9063_v25, %v6317_v37 }
0x199f   :  { %v6319_v51 = vmul.f32 0.5, %v6318_v4 }
0x19a1   :  { %v6320_v50 = vsub.f32 1.5, %v6319_v51  ;;  %v8434_v51 = vld [vmem:[#allocation2 + $0x5d8] sm:$0xff] }
0x19a2   :  { %v9065_v47 = vpop.eup %9064  ;;  %6638 = vmatpush.bf16.msrb.mxu2 %v8434_v51 }
0x19a3   :  { %v6321_v54 = vmul.f32 %v9063_v25, %v6320_v50  ;;  %v6327_v15 = vmul.f32 %v9065_v47, %v6313_v39  ;;  %vm6333_vm2 = vweird.f32 %v9065_v47  ;;  %v8424_v50 = vld [vmem:[#allocation2 + $0x588] sm:$0xff] }
0x19a4   :  { %vm6334_vm7 = vmor %vm6332_vm10, %vm6333_vm2 }
0x19a5   :  { %v6328_v19 = vmul.f32 %v9065_v47, %v6327_v15  ;;  %v6325_v61 = vsel %vm6324_vm1, %v9063_v25, %v6321_v54  ;;  %v8423_v54 = vld [vmem:[#allocation2 + $0x580] sm:$0xff]  ;;  %vm6773_vm1 = vcmask 1040384  }
0x19a6   :  { %v6356_v30 = vmul.f32 %v6325_v61, %v11170_v35  ;;  %v8430_v35 = vld [vmem:[#allocation2 + $0x5b8] sm:$0xff] }
0x19a7   :  { %v6329_v62 = vmul.f32 0.5, %v6328_v19  ;;  %6699 = vmatpush.bf16.msrb.mxu3 %v8430_v35  ;;  %v8766_v19 = vld [vmem:[%s11434_s2 + $0x14] ss:$0 sm:$0xff] }
0x19a8   :  { %v6361_v44 = vmul.f32 %v11194_v33, %v6356_v30 }
0x19a9   :  { %v6330_v21 = vsub.f32 1.5, %v6329_v62 }
0x19aa   :  { %v11203_v1 = vadd.f32 %v8764_v58, %v6361_v44 }
0x19ab   :  { %v6331_v42 = vmul.f32 %v9065_v47, %v6330_v21 }
0x19ad   :  { %v6335_v17 = vsel %vm6334_vm7, %v9065_v47, %v6331_v42  ;;  %v8431_v47 = vld [vmem:[#allocation2 + $0x5c0] sm:$0xff] }
0x19ae   :  { %v6357_v22 = vmul.f32 %v6335_v17, %v11175_v16  ;;  %v8429_v16 = vld [vmem:[#allocation2 + $0x5b0] sm:$0xff] }
0x19af   :  { %6700 = vmatpush.bf16.msrb.mxu3 %v8429_v16 }
0x19b0   :  { %v6362_v28 = vmul.f32 %v11194_v33, %v6357_v22 }
0x19b2   :  { %v6367_v13 = vadd.f32 %v8764_v58, %v6362_v28 }
0x19b3   :  { %6701 = vmatpush.bf16.msrb.mxu3 %v8428_v49 }
0x19b4   :  { %v6370_v32 = vpack.c.bf16 %v6367_v13, %v11203_v1 }
0x19b6   :  { %6446 = vmatmul.bf16.vlgmr.msrb.gmra.mxu0 %v6370_v32  ;;  %6535 = vmatmul.bf16.vlgmr.msrb.gmra.mxu1 %v6370_v32 }
0x19b7   :  { %6702 = vmatpush.bf16.msrb.mxu3 %v8427_v14 }
0x19bb   :  { %6703 = vmatpush.bf16.msrb.mxu3 %v8426_v34  ;;  %v6805_v34 = vld [vmem:[#allocation4 + $0xf0] sm:$0xff] }
0x19bc   :  { %6814 = vmatpush.msra.mxu0 %v6805_v34 }
0x19bf   :  { %6704 = vmatpush.bf16.msrb.mxu3 %v8425_v48  ;;  %v6803_v48 = vld [vmem:[#allocation4 + $0xe0] sm:$0xff] }
0x19c0   :  { %6815 = vmatpush.msra.mxu0 %v6803_v48 }
0x19c3   :  { %6705 = vmatpush.bf16.msrb.mxu3 %v8424_v50 }
0x19c7   :  { %6706 = vmatpush.bf16.msrb.mxu3 %v8423_v54  ;;  %v6802_v54 = vld [vmem:[#allocation4 + $0xd8] sm:$0xff] }
0x19d8   :  { %v6305_v24 = vpop.xlane.xlu2 %6304 }
0x19d9   :  { %v6310_v26 = vmul.f32 %v6305_v24, %v10079_v29 }
0x19db   :  { %v6314_v40 = vadd.f32 1e-05, %v6310_v26 }
0x19dd   :  { %9066 = vrsqrt.f32 %v6314_v40  ;;  %vm6342_vm12 = vweird.f32 %v6314_v40 }
0x19e0   :  { %v6307_v9 = vpop.xlane.xlu1 %6306 }
0x19e1   :  { %v6311_v12 = vmul.f32 %v6307_v9, %v10079_v29 }
0x19e3   :  { %v9067_v27 = vpop.eup %9066  ;;  %v6315_v31 = vadd.f32 1e-05, %v6311_v12 }
0x19e4   :  { %v6337_v43 = vmul.f32 %v9067_v27, %v6314_v40  ;;  %vm6343_vm8 = vweird.f32 %v9067_v27 }
0x19e5   :  { %9068 = vrsqrt.f32 %v6315_v31  ;;  %vm6344_vm5 = vmor %vm6342_vm12, %vm6343_vm8  ;;  %vm6352_vm11 = vweird.f32 %v6315_v31 }
0x19e6   :  { %v6338_v10 = vmul.f32 %v9067_v27, %v6337_v43  ;;  %v8767_v43 = vld [vmem:[%s11434_s2 + $0x15] ss:$0 sm:$0xff] }
0x19e8   :  { %v6339_v23 = vmul.f32 0.5, %v6338_v10 }
0x19ea   :  { %v6340_v11 = vsub.f32 1.5, %v6339_v23 }
0x19eb   :  { %v9069_v2 = vpop.eup %9068 }
0x19ec   :  { %v6341_v6 = vmul.f32 %v9067_v27, %v6340_v11  ;;  %v6347_v7 = vmul.f32 %v9069_v2, %v6315_v31  ;;  %vm6353_vm13 = vweird.f32 %v9069_v2 }
0x19ed   :  { %vm6354_vm14 = vmor %vm6352_vm11, %vm6353_vm13 }
0x19ee   :  { %v6348_v57 = vmul.f32 %v9069_v2, %v6347_v7  ;;  %v6345_v5 = vsel %vm6344_vm5, %v9067_v27, %v6341_v6 }
0x19ef   :  { %v6358_v46 = vmul.f32 %v6345_v5, %v11180_v18  ;;  %v8433_v18 = vld [vmem:[#allocation2 + $0x5d0] sm:$0xff] }
0x19f0   :  { %v6349_v38 = vmul.f32 0.5, %v6348_v57  ;;  %6639 = vmatpush.bf16.msrb.mxu2 %v8433_v18  ;;  %v6806_v18 = vld [vmem:[#allocation4 + $0xf8] sm:$0xff] }
0x19f1   :  { %v6363_v39 = vmul.f32 %v11194_v33, %v6358_v46  ;;  %6834 = vmatpush.msra.mxu1 %v6806_v18 }
0x19f2   :  { %v6350_v56 = vsub.f32 1.5, %v6349_v38 }
0x19f3   :  { %v11212_v8 = vadd.f32 %v8764_v58, %v6363_v39 }
0x19f4   :  { %v6351_v52 = vmul.f32 %v9069_v2, %v6350_v56 }
0x19f6   :  { %v6355_v20 = vsel %vm6354_vm14, %v9069_v2, %v6351_v52  ;;  %vm7256_vm14 = vcmask 64512  }
0x19f7   :  { %v6359_v25 = vmul.f32 %v6355_v20, %v11185_v36  ;;  %v8432_v36 = vld [vmem:[#allocation2 + $0x5c8] sm:$0xff] }
0x19f8   :  { %6640 = vmatpush.bf16.msrb.mxu2 %v8432_v36  ;;  %v6804_v36 = vld [vmem:[#allocation4 + $0xe8] sm:$0xff] }
0x19f9   :  { %v6364_v37 = vmul.f32 %v11194_v33, %v6359_v25  ;;  %6835 = vmatpush.msra.mxu1 %v6804_v36 }
0x19fb   :  { %v6369_v45 = vadd.f32 %v8764_v58, %v6364_v37  ;;  %6836 = vmatpush.msra.mxu1 %v6802_v54 }
0x19fc   :  { %6641 = vmatpush.bf16.msrb.mxu2 %v8431_v47  ;;  %v6801_v47 = vld [vmem:[#allocation4 + $0xd0] sm:$0xff] }
0x19fd   :  { %v6371_v4 = vpack.c.bf16 %v6369_v45, %v11212_v8  ;;  %6816 = vmatpush.msra.mxu0 %v6801_v47 }
0x19ff   :  { %6451 = vmatmul.bf16.gmra.mxu0 %v6371_v4  ;;  %6540 = vmatmul.bf16.gmra.mxu1 %v6371_v4 }
0x1a33   :  { %v6447_v15 = vpop.f32.mrf.mxu0  ;;  %v6536_v0 = vpop.f32.mrf.mxu1 }
0x1a34   :  { %v6448_v61 = vadd.f32 %v8765_v60, %v6447_v15  ;;  %v6537_v62 = vadd.f32 %v8766_v19, %v6536_v0  ;;  %v6799_v15 = vld [vmem:[#allocation4 + $0xc0] sm:$0xff]  ;;  %v6800_v0 = vld [vmem:[#allocation4 + $0xc8] sm:$0xff] }
0x1a35   :  { %6817 = vmatpush.msra.mxu0 %v6799_v15  ;;  %6837 = vmatpush.msra.mxu1 %v6800_v0 }
0x1a36   :  { %v6457_v30 = vmax.f32 %v6448_v61, 0.0  ;;  %v6546_v42 = vmax.f32 %v6537_v62, 0.0  ;;  %v6798_v61 = vld [vmem:[#allocation4 + $0xb8] sm:$0xff] }
0x1a37   :  { %6838 = vmatpush.msra.mxu1 %v6798_v61 }
0x1a3b   :  { %v6449_v55 = vpop.f32.mrf.mxu0  ;;  %v6538_v3 = vpop.f32.mrf.mxu1 }
0x1a3c   :  { %v6450_v21 = vadd.f32 %v8765_v60, %v6449_v55  ;;  %v6539_v33 = vadd.f32 %v8766_v19, %v6538_v3  ;;  %v6795_v3 = vld [vmem:[#allocation4 + $0xa0] sm:$0xff] }
0x1a3e   :  { %v6458_v17 = vmax.f32 %v6450_v21, 0.0  ;;  %v6547_v58 = vmax.f32 %v6539_v33, 0.0  ;;  %v6796_v21 = vld [vmem:[#allocation4 + $0xa8] sm:$0xff] }
0x1a3f   :  { %6839 = vmatpush.msra.mxu1 %v6796_v21 }
0x1a40   :  { %v6550_v44 = vpack.c.bf16 %v6458_v17, %v6457_v30  ;;  %v6568_v22 = vpack.c.bf16 %v6547_v58, %v6546_v42  ;;  %v6793_v42 = vld [vmem:[#allocation4 + $0x90] sm:$0xff]  ;;  %v6794_v17 = vld [vmem:[#allocation4 + $0x98] sm:$0xff]  ;;  %v6791_v58 = vld [vmem:[#allocation4 + $0x80] sm:$0xff] }
0x1a41   :  { %6840 = vmatpush.msra.mxu1 %v6794_v17 }
0x1a42   :  { %6642 = vmatmul.bf16.vlgmr.msrb.gmra.mxu2 %v6568_v22  ;;  %6707 = vmatmul.bf16.vlgmr.msrb.gmra.mxu3 %v6550_v44  ;;  %v6792_v44 = vld [vmem:[#allocation4 + $0x88] sm:$0xff] }
0x1a43   :  { %6841 = vmatpush.msra.mxu1 %v6792_v44 }
0x1a7c   :  { %v6452_v28 = vpop.f32.mrf.mxu0  ;;  %v6541_v13 = vpop.f32.mrf.mxu1 }
0x1a7d   :  { %v6453_v32 = vadd.f32 %v8765_v60, %v6452_v28  ;;  %v6542_v24 = vadd.f32 %v8766_v19, %v6541_v13  ;;  %v6789_v28 = vld [vmem:[#allocation4 + $0x70] sm:$0xff]  ;;  %v6790_v13 = vld [vmem:[#allocation4 + $0x78] sm:$0xff] }
0x1a7e   :  { %6842 = vmatpush.msra.mxu1 %v6790_v13 }
0x1a7f   :  { %v6459_v9 = vmax.f32 %v6453_v32, 0.0  ;;  %v6548_v12 = vmax.f32 %v6542_v24, 0.0  ;;  %v6788_v32 = vld [vmem:[#allocation4 + $0x68] sm:$0xff] }
0x1a80   :  { %6843 = vmatpush.msra.mxu1 %v6788_v32 }
0x1a84   :  { %v6454_v26 = vpop.f32.mrf.mxu0  ;;  %v6543_v40 = vpop.f32.mrf.mxu1 }
0x1a85   :  { %v6455_v59 = vadd.f32 %v8765_v60, %v6454_v26  ;;  %v6544_v35 = vadd.f32 %v8766_v19, %v6543_v40  ;;  %v6797_v19 = vld [vmem:[#allocation4 + $0xb0] sm:$0xff] }
0x1a86   :  { %6818 = vmatpush.msra.mxu0 %v6797_v19  ;;  %v6785_v40 = vld [vmem:[#allocation4 + $0x50] sm:$0xff] }
0x1a87   :  { %v6460_v53 = vmax.f32 %v6455_v59, 0.0  ;;  %v6549_v16 = vmax.f32 %v6544_v35, 0.0  ;;  %v6786_v59 = vld [vmem:[#allocation4 + $0x58] sm:$0xff] }
0x1a88   :  { %6819 = vmatpush.msra.mxu0 %v6795_v3  ;;  %6844 = vmatpush.msra.mxu1 %v6786_v59 }
0x1a89   :  { %v6551_v27 = vpack.c.bf16 %v6460_v53, %v6459_v9  ;;  %v6569_v31 = vpack.c.bf16 %v6549_v16, %v6548_v12  ;;  %v6783_v9 = vld [vmem:[#allocation4 + $0x40] sm:$0xff]  ;;  %v6784_v12 = vld [vmem:[#allocation4 + $0x48] sm:$0xff] }
0x1a8a   :  { %6820 = vmatpush.msra.mxu0 %v6793_v42  ;;  %6845 = vmatpush.msra.mxu1 %v6784_v12 }
0x1a8b   :  { %6646 = vmatmul.bf16.gmra.mxu2 %v6569_v31  ;;  %6711 = vmatmul.bf16.gmra.mxu3 %v6551_v27  ;;  %v6781_v27 = vld [vmem:[#allocation4 + $0x30] sm:$0xff]  ;;  %v6782_v31 = vld [vmem:[#allocation4 + $0x38] sm:$0xff] }
0x1a8c   :  { %6821 = vmatpush.msra.mxu0 %v6791_v58  ;;  %6846 = vmatpush.msra.mxu1 %v6782_v31 }
0x1a8e   :  { %6822 = vmatpush.msra.mxu0 %v6789_v28 }
0x1ac5   :  { %v6643_v41 = vpop.f32.mrf.mxu2  ;;  %v6708_v49 = vpop.f32.mrf.mxu3 }
0x1ac6   :  { %v6709_v10 = vadd.f32 %v6708_v49, %v6643_v41  ;;  %v6779_v41 = vld [vmem:[#allocation4 + $0x20] sm:$0xff]  ;;  %v6780_v49 = vld [vmem:[#allocation4 + $0x28] sm:$0xff] }
0x1ac7   :  { %6847 = vmatpush.msra.mxu1 %v6780_v49 }
0x1ac8   :  { %v6718_v23 = vadd.f32 %v8767_v43, %v6709_v10 }
0x1aca   :  { %v6720_v63 = vadd.f32 %v6718_v23, %v11203_v1 }
0x1acc   :  { %6724 = vadd.xlane.f32.xlu0 %v6720_v63 }
0x1acd   :  { %v6645_v14 = vpop.f32.mrf.mxu2  ;;  %v6710_v11 = vpop.f32.mrf.mxu3 }
0x1ace   :  { %v6778_v14 = vld [vmem:[#allocation4 + $0x18] sm:$0xff]  ;;  %v8768_v11 = vld [vmem:[%s11434_s2 + $0x20] ss:$0 sm:$0xff] }
0x1acf   :  { %6848 = vmatpush.msra.mxu1 %v6778_v14 }
0x1b0e   :  { %v6647_v2 = vpop.f32.mrf.mxu2  ;;  %v6712_v6 = vpop.f32.mrf.mxu3 }
0x1b0f   :  { %v6713_v7 = vadd.f32 %v6712_v6, %v6647_v2 }
0x1b11   :  { %v6719_v57 = vadd.f32 %v8767_v43, %v6713_v7  ;;  %v6775_v7 = vld [vmem:[#allocation4] sm:$0xff] }
0x1b13   :  { %v6721_v5 = vadd.f32 %v6719_v57, %v11212_v8  ;;  %v6776_v57 = vld [vmem:[#allocation4 + $0x8] sm:$0xff] }
0x1b14   :  { %6849 = vmatpush.msra.mxu1 %v6776_v57 }
0x1b15   :  { %6726 = vadd.xlane.f32.xlu2 %v6721_v5 }
0x1b16   :  { %v6649_v38 = vpop.f32.mrf.mxu2  ;;  %v6714_v56 = vpop.f32.mrf.mxu3 }
0x1b3f   :  { %v6725_v46 = vpop.xlane.xlu0 %6724 }
0x1b40   :  { %v6728_v52 = vmul.f32 %v6725_v46, %v10079_v29 }
0x1b42   :  { %v11227_v20 = vsub.f32 %v6720_v63, %v6728_v52  ;;  %v6777_v63 = vld [vmem:[#allocation4 + $0x10] sm:$0xff]  ;;  %v8769_v52 = vld [vmem:[%s11434_s2 + $0x21] ss:$0 sm:$0xff]  ;;  %s9179_s2 = smov 112  }
0x1b44   :  { %v6732_v1 = vmul.f32 %v11227_v20, %v11227_v20 }
0x1b46   :  { %6734 = vadd.xlane.f32.xlu2 %v6732_v1 }
0x1b88   :  { %v6727_v25 = vpop.xlane.xlu2 %6726 }
0x1b89   :  { %v6729_v39 = vmul.f32 %v6727_v25, %v10079_v29 }
0x1b8b   :  { %v11232_v37 = vsub.f32 %v6721_v5, %v6729_v39 }
0x1b8d   :  { %v6733_v8 = vmul.f32 %v11232_v37, %v11232_v37 }
0x1b8f   :  { %6736 = vadd.xlane.f32.xlu1 %v6733_v8  ;;  %v6808_v8 = vld [vmem:[#allocation4 + $0x100] ss:$8 sm:$0x3] }
0x1bb9   :  { %v6735_v45 = vpop.xlane.xlu2 %6734 }
0x1bba   :  { %v6738_v4 = vmul.f32 %v6735_v45, %v10079_v29  ;;  %v6810_v45 = vperm.slane %v6808_v8, 0 }
0x1bbc   :  { %v11237_v51 = vadd.f32 1e-05, %v6738_v4  ;;  %v6811_v4 = vperm.slane %v6808_v8, 1 }
0x1bbe   :  { %9070 = vrsqrt.f32 %v11237_v51  ;;  %vm6748_vm6 = vweird.f32 %v11237_v51 }
0x1bc4   :  { %v11240_v50 = vpop.eup %9070 }
0x1bc5   :  { %v6743_v60 = vmul.f32 %v11240_v50, %v11237_v51  ;;  %vm6749_vm15 = vweird.f32 %v11240_v50 }
0x1bc6   :  { %vm6750_vm0 = vmor %vm6748_vm6, %vm6749_vm15  ;;  %vm7258_vm15 = vcmask 72704  }
0x1bc7   :  { %v6744_v33 = vmul.f32 %v11240_v50, %v6743_v60 }
0x1bc9   :  { %v6745_v22 = vmul.f32 0.5, %v6744_v33 }
0x1bcb   :  { %v6746_v24 = vsub.f32 1.5, %v6745_v22 }
0x1bcd   :  { %v6747_v53 = vmul.f32 %v11240_v50, %v6746_v24 }
0x1bcf   :  { %v6751_v10 = vsel %vm6750_vm0, %v11240_v50, %v6747_v53 }
0x1bd0   :  { %v6762_v6 = vmul.f32 %v6751_v10, %v11227_v20 }
0x1bd2   :  { %v6765_v56 = vmul.f32 %v8768_v11, %v6762_v6 }
0x1bd4   :  { %v6768_v25 = vadd.f32 %v8769_v52, %v6765_v56 }
0x1c02   :  { %v6737_v62 = vpop.xlane.xlu1 %6736 }
0x1c03   :  { %v6739_v55 = vmul.f32 %v6737_v62, %v10079_v29  ;;  %v6787_v29 = vld [vmem:[#allocation4 + $0x60] sm:$0xff] }
0x1c04   :  { %6823 = vmatpush.msra.mxu0 %v6787_v29 }
0x1c05   :  { %v6741_v30 = vadd.f32 1e-05, %v6739_v55 }
0x1c06   :  { %6824 = vmatpush.msra.mxu0 %v6785_v40 }
0x1c07   :  { %9072 = vrsqrt.f32 %v6741_v30  ;;  %vm6758_vm4 = vweird.f32 %v6741_v30 }
0x1c08   :  { %6825 = vmatpush.msra.mxu0 %v6783_v9 }
0x1c0a   :  { %6826 = vmatpush.msra.mxu0 %v6781_v27 }
0x1c0c   :  { %6827 = vmatpush.msra.mxu0 %v6779_v41  ;;  %v8245_v41 = vld [vmem:[%s11436_s4 + $0x6] sm:$0x3] }
0x1c0d   :  { %v9073_v26 = vpop.eup %9072 }
0x1c0e   :  { %v6753_v35 = vmul.f32 %v9073_v26, %v6741_v30  ;;  %vm6759_vm3 = vweird.f32 %v9073_v26  ;;  %6828 = vmatpush.msra.mxu0 %v6777_v63 }
0x1c0f   :  { %vm6760_vm9 = vmor %vm6758_vm4, %vm6759_vm3 }
0x1c10   :  { %v6754_v16 = vmul.f32 %v9073_v26, %v6753_v35  ;;  %6829 = vmatpush.msra.mxu0 %v6775_v7  ;;  %v8243_v35 = vld [vmem:[%s11436_s4 + $0x2] sm:$0x3]  ;;  %v8246_v7 = vld [vmem:[%s11436_s4 + $0x8] sm:$0x3] }
0x1c12   :  { %v6755_v43 = vmul.f32 0.5, %v6754_v16 }
0x1c14   :  { %v6756_v23 = vsub.f32 1.5, %v6755_v43 }
0x1c16   :  { %v6757_v2 = vmul.f32 %v9073_v26, %v6756_v23 }
0x1c18   :  { %v6761_v5 = vsel %vm6760_vm9, %v9073_v26, %v6757_v2 }
0x1c19   :  { %v6763_v38 = vmul.f32 %v6761_v5, %v11232_v37 }
0x1c1b   :  { %v6766_v46 = vmul.f32 %v8768_v11, %v6763_v38 }
0x1c1d   :  { %v6769_v1 = vadd.f32 %v8769_v52, %v6766_v46  ;;  %v8244_v46 = vld [vmem:[%s11436_s4 + $0x4] sm:$0x3] }
0x1c1f   :  { %v6771_v20 = vrot.slane %v6769_v1, 7 }
0x1c21   :  { %v6774_v39 = vsel %vm6773_vm1, %v6768_v25, %v6771_v20 }
0x1c22   :  { %6830 = vmatmul.f32.vlgmr.msra.gmra.mxu0 %v6774_v39  ;;  %6850 = vmatmul.f32.vlgmr.msra.gmra.mxu1 %v6774_v39 }
0x1c9f   :  { %v6831_v51 = vpop.f32.mrf.mxu0  ;;  %v6851_v37 = vpop.f32.mrf.mxu1 }
0x1ca0   :  { %v11258_v34 = vadd.f32 %v6831_v51, %v6810_v45  ;;  %v11260_v18 = vadd.f32 %v6851_v37, %v6811_v4 }
0x1ca2   :  { %6953 = vrot.lane.b32.xlu1 %v11260_v18, %s9178_s30  ;;  %6859 = vrot.lane.b32.xlu2 %v11258_v34, %s9179_s2 }
0x1ca3   :  { %6855 = vrot.lane.b32.xlu0 %v11258_v34, %s9178_s30 }
0x1caa   :  { %6961 = vrot.lane.b32.xlu1 %v11260_v18, %s9180_s3  ;;  %6863 = vrot.lane.b32.xlu2 %v11258_v34, %s9180_s3 }
0x1cab   :  { %6957 = vrot.lane.b32.xlu0 %v11260_v18, %s9179_s2 }
0x1cb2   :  { %6965 = vrot.lane.b32.xlu2 %v11260_v18, %s9166_s25 }
0x1cb3   :  { %6867 = vrot.lane.b32.xlu0 %v11258_v34, %s9166_s25 }
0x1cfc   :  { %v6860_v48 = vpop.permute.xlu2 %6859 }
0x1d04   :  { %v6864_v47 = vpop.permute.xlu2 %6863 }
0x1d0c   :  { %v6966_v55 = vpop.permute.xlu2 %6965 }
0x1d14   :  { %v6954_v36 = vpop.permute.xlu1 %6953 }
0x1d15   :  { %v6856_v50 = vpop.permute.xlu0 %6855  ;;  %v6956_v54 = vmax.f32 %v11258_v34, %v6954_v36 }
0x1d16   :  { %v6858_v15 = vmax.f32 %v11258_v34, %v6856_v50 }
0x1d18   :  { %v6862_v61 = vmax.f32 %v6858_v15, %v6860_v48 }
0x1d1a   :  { %v6866_v21 = vmax.f32 %v6862_v61, %v6864_v47 }
0x1d1c   :  { %v6962_v19 = vpop.permute.xlu1 %6961 }
0x1d1d   :  { %v6958_v0 = vpop.permute.xlu0 %6957 }
0x1d1e   :  { %v6960_v60 = vmax.f32 %v6956_v54, %v6958_v0 }
0x1d20   :  { %v6964_v62 = vmax.f32 %v6960_v60, %v6962_v19 }
0x1d22   :  { %v11280_v3 = vmax.f32 %v6964_v62, %v6966_v55 }
0x1d24   :  { %6973 = vrot.lane.b32.xlu0 %v11280_v3, %s9181_s6  ;;  %v6969_v20 = vsub.f32 %v11258_v34, %v11280_v3 }
0x1d25   :  { %v6868_v33 = vpop.permute.xlu0 %6867 }
0x1d26   :  { %v11284_v30 = vmax.f32 %v6866_v21, %v6868_v33  ;;  %v6970_v39 = vmul.f32 1.442695, %v6969_v20 }
0x1d28   :  { %6881 = vrot.lane.b32.xlu2 %v11284_v30, %s9163_s1  ;;  %6875 = vrot.lane.b32.xlu1 %v11284_v30, %s9181_s6  ;;  %v6871_v52 = vsub.f32 %v11258_v34, %v11284_v30 }
0x1d2a   :  { %v6872_v25 = vmul.f32 1.442695, %v6871_v52 }
0x1d2c   :  { %6887 = vrot.lane.b32.xlu0 %v11284_v30, %s9182_s7 }
0x1d30   :  { %6985 = vrot.lane.b32.xlu2 %v11280_v3, %s9182_s7  ;;  %6979 = vrot.lane.b32.xlu1 %v11280_v3, %s9163_s1 }
0x1d34   :  { %6991 = vrot.lane.b32.xlu0 %v11280_v3, %s9167_s29 }
0x1d38   :  { %6893 = vrot.lane.b32.xlu1 %v11284_v30, %s9167_s29 }
0x1d82   :  { %v6882_v42 = vpop.permute.xlu2 %6881 }
0x1d83   :  { %v6884_v17 = vsub.f32 %v11258_v34, %v6882_v42 }
0x1d85   :  { %v6885_v58 = vmul.f32 1.442695, %v6884_v17 }
0x1d87   :  { %9074 = vpow2.f32 %v6885_v58 }
0x1d8a   :  { %v6986_v44 = vpop.permute.xlu2 %6985 }
0x1d8b   :  { %v6988_v22 = vsub.f32 %v11260_v18, %v6986_v44 }
0x1d8d   :  { %v11302_v28 = vpop.eup %9074  ;;  %v6989_v13 = vmul.f32 1.442695, %v6988_v22 }
0x1d8e   :  { %6905 = vrot.lane.b32.xlu0 %v11302_v28, %s9179_s2 }
0x1d8f   :  { %9076 = vpow2.f32 %v6989_v13 }
0x1d95   :  { %v11306_v29 = vpop.eup %9076 }
0x1d96   :  { %7008 = vrot.lane.b32.xlu0 %v11306_v29, %s9180_s3  ;;  %v6974_v32 = vpop.permute.xlu0 %6973 }
0x1d97   :  { %v6976_v24 = vsub.f32 %v11260_v18, %v6974_v32 }
0x1d99   :  { %v6977_v26 = vmul.f32 1.442695, %v6976_v24 }
0x1d9a   :  { %v6876_v40 = vpop.permute.xlu1 %6875 }
0x1d9b   :  { %9078 = vpow2.f32 %v6977_v26  ;;  %v6878_v59 = vsub.f32 %v11258_v34, %v6876_v40 }
0x1d9d   :  { %v6879_v9 = vmul.f32 1.442695, %v6878_v59 }
0x1d9e   :  { %7087 = vrot.lane.b32.xlu0 %v8243_v35, %s9183_s10  ;;  %v6888_v12 = vpop.permute.xlu0 %6887 }
0x1d9f   :  { %9080 = vpow2.f32 %v6879_v9  ;;  %v6890_v53 = vsub.f32 %v11258_v34, %v6888_v12 }
0x1da1   :  { %v11317_v16 = vpop.eup %9078  ;;  %v6891_v27 = vmul.f32 1.442695, %v6890_v53 }
0x1da2   :  { %v6980_v31 = vpop.permute.xlu1 %6979  ;;  %6998 = vrot.lane.b32.xlu1 %v11317_v16, %s9178_s30 }
0x1da3   :  { %9082 = vpow2.f32 %v6891_v27  ;;  %v6982_v43 = vsub.f32 %v11260_v18, %v6980_v31 }
0x1da5   :  { %v11325_v49 = vpop.eup %9080  ;;  %v6983_v10 = vmul.f32 1.442695, %v6982_v43 }
0x1da6   :  { %6900 = vrot.lane.b32.xlu2 %v11325_v49, %s9178_s30  ;;  %7183 = vrot.lane.b32.xlu0 %v8245_v41, %s9183_s10  ;;  %v6992_v23 = vpop.permute.xlu0 %6991 }
0x1da7   :  { %9084 = vpow2.f32 %v6983_v10  ;;  %v6994_v63 = vsub.f32 %v11260_v18, %v6992_v23  ;;  %v7052_v10 = vmul.f32 1.442695, %v11260_v18  ;;  %v7054_v23 = vld [vmem:[%s11436_s4] sm:$0x3]  ;;  %s9186_s4 = smov 40  }
0x1da9   :  { %v11331_v14 = vpop.eup %9082  ;;  %v6995_v11 = vmul.f32 1.442695, %v6994_v63 }
0x1daa   :  { %v6894_v2 = vpop.permute.xlu1 %6893  ;;  %6910 = vrot.lane.b32.xlu1 %v11331_v14, %s9180_s3 }
0x1dab   :  { %9086 = vpow2.f32 %v6995_v11  ;;  %v6896_v6 = vsub.f32 %v11258_v34, %v6894_v2 }
0x1dad   :  { %v11339_v57 = vpop.eup %9084  ;;  %v6897_v5 = vmul.f32 1.442695, %v6896_v6 }
0x1dae   :  { %7003 = vrot.lane.b32.xlu2 %v11339_v57, %s9179_s2  ;;  %7210 = vrot.lane.b32.xlu0 %v8246_v7, %s9179_s2 }
0x1daf   :  { %9088 = vpow2.f32 %v6897_v5 }
0x1db0   :  { %9090 = vpow2.f32 %v6872_v25 }
0x1db1   :  { %v11344_v38 = vpop.eup %9086  ;;  %9092 = vpow2.f32 %v6970_v39 }
0x1db2   :  { %7013 = vrot.lane.b32.xlu1 %v11344_v38, %s9166_s25 }
0x1db5   :  { %v11348_v56 = vpop.eup %9088 }
0x1db6   :  { %6915 = vrot.lane.b32.xlu2 %v11348_v56, %s9166_s25  ;;  %v9091_v4 = vpop.eup %9090 }
0x1db7   :  { %v9093_v48 = vpop.eup %9092 }
0x1dba   :  { %7142 = vrot.lane.b32.xlu1 %v8244_v46, %s9184_s16 }
0x1dbe   :  { %7101 = vrot.lane.b32.xlu2 %v8243_v35, %s9185_s17 }
0x1dc2   :  { %7169 = vrot.lane.b32.xlu1 %v8245_v41, %s9180_s3  ;;  %v7050_v41 = vmul.f32 1.442695, %v11258_v34 }
0x1dc6   :  { %7128 = vrot.lane.b32.xlu2 %v8244_v46, %s9166_s25 }
0x1dce   :  { %7224 = vrot.lane.b32.xlu2 %v8246_v7, %s9166_s25 }
0x1e00   :  { %v6901_v1 = vpop.permute.xlu2 %6900  ;;  %v6906_v37 = vpop.permute.xlu0 %6905 }
0x1e01   :  { %v6903_v51 = vadd.f32 %v9091_v4, %v6901_v1 }
0x1e03   :  { %v6908_v36 = vadd.f32 %v6906_v37, %v6903_v51 }
0x1e08   :  { %v7004_v8 = vpop.permute.xlu2 %7003  ;;  %v7009_v19 = vpop.permute.xlu0 %7008 }
0x1e10   :  { %v6916_v15 = vpop.permute.xlu2 %6915  ;;  %v7088_v63 = vpop.permute.xlu0 %7087 }
0x1e14   :  { %v6999_v45 = vpop.permute.xlu1 %6998 }
0x1e15   :  { %v7001_v50 = vadd.f32 %v9093_v48, %v6999_v45 }
0x1e17   :  { %v7006_v0 = vadd.f32 %v7004_v8, %v7001_v50 }
0x1e18   :  { %v7102_v11 = vpop.permute.xlu2 %7101  ;;  %v7184_v1 = vpop.permute.xlu0 %7183 }
0x1e19   :  { %v7011_v61 = vadd.f32 %v7009_v19, %v7006_v0 }
0x1e1c   :  { %v6911_v47 = vpop.permute.xlu1 %6910 }
0x1e1d   :  { %v6913_v54 = vadd.f32 %v6911_v47, %v6908_v36 }
0x1e1f   :  { %v6918_v60 = vadd.f32 %v6916_v15, %v6913_v54 }
0x1e20   :  { %v7129_v25 = vpop.permute.xlu2 %7128 }
0x1e21   :  { %9094 = vrcp.f32 %v6918_v60  ;;  %v6930_v30 = vand.u32 2147483648, %v6918_v60  ;;  %v6928_v17 = vand.u32 2147483647, %v6918_v60  ;;  %vm6924_vm10 = vweird.f32 %v6918_v60 }
0x1e23   :  { %v6931_v13 = vor.u32 1.1754944e-38, %v6930_v30  ;;  %vm6929_vm8 = vcmp.eq.f32.partialorder %v6928_v17, 8.507059e+37 }
0x1e24   :  { %v7014_v62 = vpop.permute.xlu1 %7013 }
0x1e25   :  { %v7016_v55 = vadd.f32 %v7014_v62, %v7011_v61 }
0x1e27   :  { %v9095_v3 = vpop.eup %9094  ;;  %9096 = vrcp.f32 %v7016_v55  ;;  %v7028_v40 = vand.u32 2147483648, %v7016_v55  ;;  %v7026_v35 = vand.u32 2147483647, %v7016_v55  ;;  %vm7022_vm5 = vweird.f32 %v7016_v55 }
0x1e28   :  { %v6920_v21 = vmul.f32 %v9095_v3, %v6918_v60  ;;  %vm6925_vm2 = vweird.f32 %v9095_v3  ;;  %9098 = vpow2.f32 %v7050_v41  ;;  %v7225_v37 = vpop.permute.xlu2 %7224 }
0x1e29   :  { %vm6926_vm7 = vmor %vm6924_vm10, %vm6925_vm2  ;;  %v7029_v53 = vor.u32 1.1754944e-38, %v7028_v40  ;;  %vm7027_vm11 = vcmp.eq.f32.partialorder %v7026_v35, 8.507059e+37  ;;  %9100 = vpow2.f32 %v7052_v10 }
0x1e2a   :  { %v6921_v33 = vsub.f32 1.0, %v6920_v21 }
0x1e2c   :  { %v6922_v42 = vmul.f32 %v9095_v3, %v6921_v33  ;;  %v7143_v2 = vpop.permute.xlu1 %7142 }
0x1e2d   :  { %v9097_v58 = vpop.eup %9096 }
0x1e2e   :  { %v7018_v44 = vmul.f32 %v9097_v58, %v7016_v55  ;;  %v6923_v22 = vadd.f32 %v9095_v3, %v6922_v42  ;;  %vm7023_vm12 = vweird.f32 %v9097_v58  ;;  %v9099_v6 = vpop.eup %9098 }
0x1e2f   :  { %vm7024_vm13 = vmor %vm7022_vm5, %vm7023_vm12  ;;  %v9101_v7 = vpop.eup %9100  ;;  %v7090_v5 = vmul.f32 %v9099_v6, %v7088_v63  ;;  %v7131_v8 = vmul.f32 %v9099_v6, %v7129_v25 }
0x1e30   :  { %v7019_v32 = vsub.f32 1.0, %v7018_v44  ;;  %v6927_v24 = vsel %vm6926_vm7, %v9095_v3, %v6923_v22  ;;  %v7104_v46 = vmul.f32 %v9101_v7, %v7102_v11  ;;  %v7145_v52 = vmul.f32 %v9101_v7, %v7143_v2 }
0x1e31   :  { %v6932_v26 = vsel %vm6929_vm8, %v6931_v13, %v6927_v24  ;;  %v7186_v39 = vmul.f32 %v9101_v7, %v7184_v1  ;;  %v7227_v54 = vmul.f32 %v9101_v7, %v7225_v37 }
0x1e32   :  { %6936 = vrot.lane.b32.xlu1 %v6932_v26, %s9181_s6  ;;  %v7020_v59 = vmul.f32 %v9097_v58, %v7019_v32  ;;  %v11364_v9 = vmul.f32 %v9091_v4, %v6932_v26  ;;  %v7211_v4 = vpop.permute.xlu0 %7210 }
0x1e33   :  { %v7213_v51 = vmul.f32 %v9099_v6, %v7211_v4 }
0x1e34   :  { %v7021_v12 = vadd.f32 %v9097_v58, %v7020_v59  ;;  %v7170_v20 = vpop.permute.xlu1 %7169 }
0x1e35   :  { %v7172_v45 = vmul.f32 %v9099_v6, %v7170_v20 }
0x1e36   :  { %v7025_v27 = vsel %vm7024_vm13, %v9097_v58, %v7021_v12 }
0x1e37   :  { %v7030_v31 = vsel %vm7027_vm11, %v7029_v53, %v7025_v27 }
0x1e38   :  { %7038 = vrot.lane.b32.xlu2 %v7030_v31, %s9163_s1  ;;  %7034 = vrot.lane.b32.xlu0 %v7030_v31, %s9181_s6  ;;  %v7032_v43 = vmul.f32 %v9093_v48, %v7030_v31 }
0x1e3a   :  { %7042 = vrot.lane.b32.xlu1 %v7030_v31, %s9182_s7 }
0x1e40   :  { %6944 = vrot.lane.b32.xlu2 %v6932_v26, %s9182_s7  ;;  %6940 = vrot.lane.b32.xlu0 %v6932_v26, %s9163_s1 }
0x1e42   :  { %6948 = vrot.lane.b32.xlu1 %v6932_v26, %s9167_s29 }
0x1e48   :  { %7056 = vrot.lane.b32.xlu2 %v7054_v23, %s9184_s16  ;;  %7046 = vrot.lane.b32.xlu0 %v7030_v31, %s9167_s29 }
0x1e4a   :  { %7070 = vrot.lane.b32.xlu1 %v7054_v23, %s9159_s26 }
0x1e50   :  { %7106 = vrot.lane.b32.xlu2 %v7104_v46, %s9183_s10  ;;  %7092 = vrot.lane.b32.xlu0 %v7090_v5, %s9183_s10 }
0x1e52   :  { %7147 = vrot.lane.b32.xlu1 %v7145_v52, %s9183_s10 }
0x1e58   :  { %7133 = vrot.lane.b32.xlu2 %v7131_v8, %s9183_s10  ;;  %7188 = vrot.lane.b32.xlu0 %v7186_v39, %s9183_s10 }
0x1e5a   :  { %7174 = vrot.lane.b32.xlu1 %v7172_v45, %s9183_s10 }
0x1e60   :  { %7215 = vrot.lane.b32.xlu0 %v7213_v51, %s9183_s10 }
0x1e92   :  { %v7039_v48 = vpop.permute.xlu2 %7038 }
0x1e93   :  { %v7041_v36 = vmul.f32 %v11339_v57, %v7039_v48 }
0x1e95   :  { %7152 = vrot.lane.b32.xlu2 %v7041_v36, %s9186_s4 }
0x1e9a   :  { %v6945_v50 = vpop.permute.xlu2 %6944 }
0x1e9b   :  { %v6947_v47 = vmul.f32 %v11331_v14, %v6945_v50 }
0x1e9d   :  { %7179 = vrot.lane.b32.xlu2 %v6947_v47, %s9186_s4 }
0x1ea2   :  { %v7057_v60 = vpop.permute.xlu2 %7056 }
0x1ea3   :  { %v7059_v61 = vmul.f32 %v9099_v6, %v7057_v60 }
0x1ea4   :  { %v6937_v15 = vpop.permute.xlu1 %6936 }
0x1ea5   :  { %v6939_v0 = vmul.f32 %v11325_v49, %v6937_v15  ;;  %7229 = vrot.lane.b32.xlu2 %v7227_v54, %s9183_s10 }
0x1ea7   :  { %7097 = vrot.lane.b32.xlu1 %v6939_v0, %s9186_s4 }
0x1eaa   :  { %v7035_v19 = vpop.permute.xlu0 %7034 }
0x1eab   :  { %v7037_v57 = vmul.f32 %v11317_v16, %v7035_v19 }
0x1eac   :  { %v7043_v62 = vpop.permute.xlu1 %7042 }
0x1ead   :  { %v7045_v55 = vmul.f32 %v11306_v29, %v7043_v62  ;;  %7061 = vrot.lane.b32.xlu2 %v7059_v61, %s9183_s10  ;;  %7111 = vrot.lane.b32.xlu0 %v7037_v57, %s9186_s4 }
0x1eaf   :  { %7193 = vrot.lane.b32.xlu1 %v7045_v55, %s9186_s4 }
0x1eb2   :  { %v6941_v14 = vpop.permute.xlu0 %6940 }
0x1eb3   :  { %v6943_v49 = vmul.f32 %v11302_v28, %v6941_v14 }
0x1eb4   :  { %v6949_v3 = vpop.permute.xlu1 %6948 }
0x1eb5   :  { %v6951_v21 = vmul.f32 %v11348_v56, %v6949_v3  ;;  %7138 = vrot.lane.b32.xlu0 %v6943_v49, %s9186_s4  ;;  %7080 = vrot.lane.b32.xlu2 %v7032_v43, %s9186_s4  ;;  %v7107_v56 = vpop.permute.xlu2 %7106 }
0x1eb6   :  { %v7109_v26 = vadd.f32 %v7107_v56, %v11260_v18 }
0x1eb7   :  { %7220 = vrot.lane.b32.xlu1 %v6951_v21, %s9186_s4 }
0x1eba   :  { %v7047_v16 = vpop.permute.xlu0 %7046 }
0x1ebb   :  { %v7049_v29 = vmul.f32 %v11344_v38, %v7047_v16 }
0x1ebc   :  { %v7071_v33 = vpop.permute.xlu1 %7070 }
0x1ebd   :  { %v7073_v30 = vmul.f32 %v9101_v7, %v7071_v33  ;;  %7234 = vrot.lane.b32.xlu0 %v7049_v29, %s9186_s4  ;;  %v7134_v58 = vpop.permute.xlu2 %7133 }
0x1ebe   :  { %v7136_v27 = vadd.f32 %v7134_v58, %v11258_v34 }
0x1ebf   :  { %7075 = vrot.lane.b32.xlu1 %v7073_v30, %s9183_s10 }
0x1ec2   :  { %v7093_v28 = vpop.permute.xlu0 %7092 }
0x1ec3   :  { %v7095_v32 = vadd.f32 %v7093_v28, %v11258_v34 }
0x1ec4   :  { %v7148_v42 = vpop.permute.xlu1 %7147 }
0x1ec5   :  { %7066 = vrot.lane.b32.xlu0 %v11364_v9, %s9186_s4  ;;  %v7150_v59 = vadd.f32 %v7148_v42, %v11260_v18 }
0x1eca   :  { %v7189_v17 = vpop.permute.xlu0 %7188 }
0x1ecb   :  { %v7191_v6 = vadd.f32 %v7189_v17, %v11260_v18 }
0x1ecc   :  { %v7175_v44 = vpop.permute.xlu1 %7174 }
0x1ecd   :  { %v7177_v31 = vadd.f32 %v7175_v44, %v11258_v34 }
0x1ed2   :  { %v7216_v22 = vpop.permute.xlu0 %7215 }
0x1ed3   :  { %v7218_v41 = vadd.f32 %v7216_v22, %v11258_v34 }
0x1eef   :  { %v7153_v13 = vpop.permute.xlu2 %7152 }
0x1ef0   :  { %v7155_v53 = vmul.f32 %v7153_v13, %v7150_v59 }
0x1ef7   :  { %v7180_v9 = vpop.permute.xlu2 %7179 }
0x1ef8   :  { %v7182_v10 = vmul.f32 %v7180_v9, %v7177_v31 }
0x1eff   :  { %v7230_v2 = vpop.permute.xlu2 %7229 }
0x1f00   :  { %v7232_v7 = vadd.f32 %v7230_v2, %v11260_v18 }
0x1f07   :  { %v7062_v1 = vpop.permute.xlu2 %7061 }
0x1f08   :  { %v7064_v45 = vadd.f32 %v7062_v1, %v11258_v34 }
0x1f0f   :  { %v7081_v8 = vpop.permute.xlu2 %7080 }
0x1f19   :  { %v7098_v38 = vpop.permute.xlu1 %7097 }
0x1f1a   :  { %v7100_v24 = vmul.f32 %v7098_v38, %v7095_v32 }
0x1f1c   :  { %7116 = vrot.lane.b32.xlu1 %v7100_v24, %s9178_s30 }
0x1f1f   :  { %v7112_v40 = vpop.permute.xlu0 %7111 }
0x1f20   :  { %v7114_v35 = vmul.f32 %v7112_v40, %v7109_v26 }
0x1f21   :  { %v7194_v12 = vpop.permute.xlu1 %7193 }
0x1f22   :  { %7121 = vrot.lane.b32.xlu0 %v7114_v35, %s9178_s30  ;;  %v7196_v46 = vmul.f32 %v7194_v12, %v7191_v6 }
0x1f24   :  { %7162 = vrot.lane.b32.xlu1 %v7155_v53, %s9179_s2 }
0x1f27   :  { %v7139_v43 = vpop.permute.xlu0 %7138 }
0x1f28   :  { %v7141_v23 = vmul.f32 %v7139_v43, %v7136_v27 }
0x1f29   :  { %v7221_v63 = vpop.permute.xlu1 %7220 }
0x1f2a   :  { %v7223_v11 = vmul.f32 %v7221_v63, %v7218_v41  ;;  %7198 = vrot.lane.b32.xlu0 %v7182_v10, %s9180_s3  ;;  %7157 = vrot.lane.b32.xlu2 %v7141_v23, %s9179_s2 }
0x1f2c   :  { %7239 = vrot.lane.b32.xlu1 %v7223_v11, %s9166_s25 }
0x1f2f   :  { %v7235_v5 = vpop.permute.xlu0 %7234 }
0x1f30   :  { %v7237_v52 = vmul.f32 %v7235_v5, %v7232_v7 }
0x1f31   :  { %v7076_v25 = vpop.permute.xlu1 %7075 }
0x1f32   :  { %7244 = vrot.lane.b32.xlu0 %v7237_v52, %s9166_s25  ;;  %7203 = vrot.lane.b32.xlu2 %v7196_v46, %s9180_s3  ;;  %v7078_v51 = vadd.f32 %v7076_v25, %v11260_v18 }
0x1f34   :  { %v7083_v47 = vmul.f32 %v7081_v8, %v7078_v51 }
0x1f37   :  { %v7067_v20 = vpop.permute.xlu0 %7066 }
0x1f38   :  { %v7069_v37 = vmul.f32 %v7067_v20, %v7064_v45 }
0x1f84   :  { %v7158_v50 = vpop.permute.xlu2 %7157 }
0x1f8c   :  { %v7204_v62 = vpop.permute.xlu2 %7203 }
0x1f8e   :  { %v7117_v39 = vpop.permute.xlu1 %7116 }
0x1f8f   :  { %v7119_v36 = vadd.f32 %v7117_v39, %v7069_v37 }
0x1f91   :  { %v7160_v15 = vadd.f32 %v7158_v50, %v7119_v36 }
0x1f94   :  { %v7122_v4 = vpop.permute.xlu0 %7121 }
0x1f95   :  { %v7124_v54 = vadd.f32 %v7122_v4, %v7083_v47 }
0x1f96   :  { %v7163_v48 = vpop.permute.xlu1 %7162 }
0x1f97   :  { %v7165_v61 = vadd.f32 %v7163_v48, %v7124_v54 }
0x1f99   :  { %v7206_v55 = vadd.f32 %v7204_v62, %v7165_v61 }
0x1f9c   :  { %v7199_v0 = vpop.permute.xlu0 %7198 }
0x1f9d   :  { %v7201_v60 = vadd.f32 %v7199_v0, %v7160_v15 }
0x1f9e   :  { %v7240_v19 = vpop.permute.xlu1 %7239 }
0x1f9f   :  { %v7242_v57 = vadd.f32 %v7240_v19, %v7201_v60 }
0x1fa1   :  { %7249 = vrot.lane.b32.xlu2 %v7242_v57, %s9183_s10 }
0x1fa4   :  { %v7245_v34 = vpop.permute.xlu0 %7244 }
0x1fa5   :  { %v7247_v14 = vadd.f32 %v7245_v34, %v7206_v55 }
0x1fa7   :  { %7253 = vrot.lane.b32.xlu1 %v7247_v14, %s9180_s3 }
0x1ffb   :  { %v7250_v18 = vpop.permute.xlu2 %7249 }
0x2019   :  { %v7254_v49 = vpop.permute.xlu1 %7253 }
0x201a   :  { %v7257_v3 = vsel %vm7256_vm14, %v7250_v18, %v7254_v49 }
0x201b   :  { %v7259_v21 = vsel %vm7258_vm15, %v7257_v3, 0.0 }
0x201c   :  { %7260 = vst [vmem:[%s11437_s5] sm:$0x3] %v7259_v21 }
0x201d   :  { %7265 = vsyncpa [#allocation3], 1 }
0x201e   :  { %7266 = vsyncpa [#allocation5], 1 }

</bundles_post_ra>
